<compile_context>
chip_gen: v5e
topology: v5e:2x2
jax: 0.10.0
libtpu: 0.0.40
codegen_flags: <defaults>
</compile_context>

<pallas_src>
import functools

import jax
import jax.numpy as jnp
from jax.experimental import pallas as pl
from jax.experimental.pallas import tpu as pltpu


# ---------------------------------------------------------------------------
# Fused per-batch-element kernel: 2 x TransformerEncoderLayer + word-pair heads.
# Grid = (B,). Weights are VMEM-resident; x / logits / scores are pipelined tiles.
# ---------------------------------------------------------------------------
def gts_fused_kernel(x_ref, wqkv_ref, bqkv_ref, wo_ref, bo_ref,
                     ln1g_ref, ln1b_ref, w1_ref, b1_ref, w2_ref, b2_ref,
                     ln2g_ref, ln2b_ref, whT_ref, bh_ref,
                     logits_ref, scores_ref, ctx_ref, *, num_heads):
    _, S, D = x_ref.shape
    NL = wqkv_ref.shape[0]
    H = num_heads
    assert D % H == 0
    hd = D // H
    scale = 1.0 / float(hd) ** 0.5

    x = x_ref[0].astype(jnp.float32)                                       # (S, D)

    for l in range(NL):                                                    # static unroll (NL=2)
        # Fused QKV projection: (S, D) @ (D, 3D), bf16 operands, f32 accumulation.
        qkv = jnp.dot(x.astype(jnp.bfloat16), wqkv_ref[l],
                      preferred_element_type=jnp.float32) + bqkv_ref[l]    # (S, 3D)

        # Per-head attention (static unroll, H=4). Each head writes its context into
        # its hd-lane slice of the ctx scratch so the out-projection below is a single
        # K=D matmul (full MXU fill) instead of H accumulated K=hd matmuls.
        # TODO(synk): at real GTS shapes (D=256, long S) use a head-batched dot_general /
        # sublane-aligned head layout to avoid the 32-lane qkv slices per head.
        for h in range(H):
            qh = qkv[:, h * hd:(h + 1) * hd].astype(jnp.bfloat16)          # (S, hd)
            kh = qkv[:, D + h * hd:D + (h + 1) * hd].astype(jnp.bfloat16)
            vh = qkv[:, 2 * D + h * hd:2 * D + (h + 1) * hd].astype(jnp.bfloat16)
            s = jax.lax.dot_general(qh, kh, (((1,), (1,)), ((), ())),
                                    preferred_element_type=jnp.float32)    # (S, S)
            s = s * scale
            s = s - jnp.max(s, axis=-1, keepdims=True)
            p = jnp.exp(s)
            p = p * pl.reciprocal(jnp.sum(p, axis=-1, keepdims=True), approx=True)
            ctx_ref[:, h * hd:(h + 1) * hd] = jnp.dot(
                p.astype(jnp.bfloat16), vh,
                preferred_element_type=jnp.float32).astype(jnp.bfloat16)

        attn = jnp.dot(ctx_ref[...], wo_ref[l],
                       preferred_element_type=jnp.float32) + bo_ref[l]     # (S, D)

        # residual + LayerNorm 1 (post-LN, eps = 1e-5, PyTorch default).
        h1 = x + attn
        mu = jnp.mean(h1, axis=-1, keepdims=True)
        var = jnp.mean((h1 - mu) ** 2, axis=-1, keepdims=True)
        h1 = (h1 - mu) * jax.lax.rsqrt(var + 1e-5) * ln1g_ref[l] + ln1b_ref[l]

        # FFN: relu(h1 @ W1 + b1) @ W2 + b2, bf16 operands, f32 accumulation.
        f = jnp.dot(h1.astype(jnp.bfloat16), w1_ref[l],
                    preferred_element_type=jnp.float32) + b1_ref[l]
        f = jnp.maximum(f, 0.0)
        f = jnp.dot(f.astype(jnp.bfloat16), w2_ref[l],
                    preferred_element_type=jnp.float32) + b2_ref[l]

        # residual + LayerNorm 2.
        h2 = h1 + f
        mu2 = jnp.mean(h2, axis=-1, keepdims=True)
        var2 = jnp.mean((h2 - mu2) ** 2, axis=-1, keepdims=True)
        x = (h2 - mu2) * jax.lax.rsqrt(var2 + 1e-5) * ln2g_ref[l] + ln2b_ref[l]

    # --- word-pair einsum('bik,bjk->bijk') fused with BOTH linear heads --------------
    # Build the matmul operand already transposed: wpT[k, i*S + j] = x[i, k] * x[j, k]
    # via one small (S,D)->(D,S) transpose + broadcast multiply, keeping the lane-dense
    # (D, S*S) operand and lane-dense (L+1, S*S) outputs (wrapper does the final reshape).
    # TODO(synk): at real GTS shapes tile this over the S*S axis instead of materializing
    # the full (D, S*S) buffer (VMEM scaling on v7x / v5e).
    hbT = x.T                                                              # (D, S)
    wpT = (hbT[:, :, None] * hbT[:, None, :]).reshape(D, S * S)            # (D, S*S)
    headT = jnp.dot(whT_ref[...], wpT.astype(jnp.bfloat16),
                    preferred_element_type=jnp.float32) + bh_ref[...]      # (L+1, S*S)
    Lp1 = whT_ref.shape[0]
    logits_ref[0] = headT[:Lp1 - 1].astype(logits_ref.dtype)               # (L, S*S)
    scores_ref[0] = headT[Lp1 - 1:].astype(scores_ref.dtype)               # (1, S*S)


# ---------------------------------------------------------------------------
# Wrapper: embedding gather in plain JAX, one gridded fused Pallas call, layout plumbing.
# ---------------------------------------------------------------------------
def gts_transformer_forward(input_ids, params, num_heads):
    x = jnp.take(params["emb"], input_ids, axis=0)                         # (B, S, D) f32
    B, S, D = x.shape
    NL = params["wqkv"].shape[0]
    F = params["w1"].shape[-1]
    L = params["whT"].shape[0] - 1

    weights = (params["wqkv"], params["bqkv"], params["wo"], params["bo"],
               params["ln1g"], params["ln1b"], params["w1"], params["b1"],
               params["w2"], params["b2"], params["ln2g"], params["ln2b"],
               params["whT"], params["bh"])

    def full_spec(w):  # whole-array block, pinned resident via constant index_map
        return pl.BlockSpec(w.shape, lambda b, _nd=w.ndim: (0,) * _nd)

    in_specs = ([pl.BlockSpec((1, S, D), lambda b: (b, 0, 0))]
                + [full_spec(w) for w in weights])
    out_specs = (pl.BlockSpec((1, L, S * S), lambda b: (b, 0, 0)),
                 pl.BlockSpec((1, 1, S * S), lambda b: (b, 0, 0)))

    # VMEM budget sized from actual resident bytes (+~2x headroom), capped at 100 MiB.
    weight_bytes = sum(int(w.size) * w.dtype.itemsize for w in weights)
    act_bytes = (2 * S * D * 4                              # x tile (double-buffered)
                 + 2 * (L + 1) * S * S * 4                  # logits + scores tiles
                 + S * D * 2                                # ctx scratch (bf16)
                 + S * 3 * D * 4 + S * F * 4                # qkv / ffn intermediates
                 + D * S * S * 4 + (L + 1) * S * S * 4)     # word-pair operand + head out
    vmem_limit = int(min(100 << 20, max(32 << 20, 2 * (weight_bytes + act_bytes))))

    # Advisory cost estimate for XLA scheduling around the custom call.
    flops_layer = 2 * S * D * 3 * D + 4 * S * S * D + 2 * S * D * D + 4 * S * D * F
    flops = B * (NL * flops_layer + 2 * (L + 1) * D * S * S)
    cost = pl.CostEstimate(
        flops=int(flops),
        transcendentals=int(B * NL * num_heads * S * S),
        bytes_accessed=int(x.size * 4 + weight_bytes + B * (L + 1) * S * S * 4))

    kern = functools.partial(gts_fused_kernel, num_heads=num_heads)
    logits_t, scores_t = pl.pallas_call(
        kern,
        out_shape=(jax.ShapeDtypeStruct((B, L, S * S), jnp.float32),
                   jax.ShapeDtypeStruct((B, 1, S * S), jnp.float32)),
        grid_spec=pltpu.PrefetchScalarGridSpec(
            num_scalar_prefetch=0,
            grid=(B,),
            in_specs=in_specs,
            out_specs=out_specs,
            scratch_shapes=[pltpu.VMEM((S, D), jnp.bfloat16)]),
        compiler_params=pltpu.CompilerParams(
            dimension_semantics=("parallel",),   # shard batch across v7x's 2 TensorCores
            vmem_limit_bytes=vmem_limit),
        cost_estimate=cost,
    )(x, *weights)

    triple_logits = jnp.transpose(logits_t, (0, 2, 1)).reshape(B, S, S, L)
    scores = scores_t.reshape(B, S, S)
    # TODO(synk): loss_compute (masked CE + MSE) only runs when labels are given; not implemented.
    return triple_logits, scores


# ---------------------------------------------------------------------------
# Pure-JAX reference (f32) for a tolerance check of the bf16-MXU kernel.
# ---------------------------------------------------------------------------
def gts_transformer_reference(input_ids, p, num_heads):
    x = jnp.take(p["emb"], input_ids, axis=0).astype(jnp.float32)
    B, S, D = x.shape
    H = num_heads
    hd = D // H
    NL = p["wqkv"].shape[0]

    def ln(v, g, b):
        mu = jnp.mean(v, axis=-1, keepdims=True)
        var = jnp.mean((v - mu) ** 2, axis=-1, keepdims=True)
        return (v - mu) * jax.lax.rsqrt(var + 1e-5) * g + b

    for l in range(NL):
        qkv = x @ p["wqkv"][l].astype(jnp.float32) + p["bqkv"][l]
        q, k, v = jnp.split(qkv, 3, axis=-1)

        def split_heads(t):
            return t.reshape(B, S, H, hd).transpose(0, 2, 1, 3)

        qh, kh, vh = split_heads(q), split_heads(k), split_heads(v)
        s = jnp.einsum("bhik,bhjk->bhij", qh, kh) / jnp.sqrt(float(hd))
        a = jax.nn.softmax(s, axis=-1)
        ctx = jnp.einsum("bhij,bhjk->bhik", a, vh).transpose(0, 2, 1, 3).reshape(B, S, D)
        attn = ctx @ p["wo"][l].astype(jnp.float32) + p["bo"][l]
        h1 = ln(x + attn, p["ln1g"][l], p["ln1b"][l])
        f = jnp.maximum(h1 @ p["w1"][l].astype(jnp.float32) + p["b1"][l], 0.0)
        f = f @ p["w2"][l].astype(jnp.float32) + p["b2"][l]
        x = ln(h1 + f, p["ln2g"][l], p["ln2b"][l])

    wp = jnp.einsum("bik,bjk->bijk", x, x)
    whT = p["whT"].astype(jnp.float32)
    L = whT.shape[0] - 1
    logits = jnp.einsum("bijk,lk->bijl", wp, whT[:L]) + p["bh"][:L, 0]
    scores = jnp.einsum("bijk,k->bij", wp, whT[L]) + p["bh"][L, 0]
    return logits, scores


# ---------------------------------------------------------------------------
# Parameter construction (matmul weights bf16, biases / LayerNorm params f32).
# ---------------------------------------------------------------------------
def init_params(key, vocab, D, F, L, num_layers):
    def nrm(k, shape, scale=0.05):
        return jax.random.normal(k, shape, jnp.float32) * scale

    ki = iter(jax.random.split(key, 6 * num_layers + 3))
    wq, wk, wv, wo, w1, w2 = [], [], [], [], [], []
    for _ in range(num_layers):
        wq.append(nrm(next(ki), (D, D)))
        wk.append(nrm(next(ki), (D, D)))
        wv.append(nrm(next(ki), (D, D)))
        wo.append(nrm(next(ki), (D, D)))
        w1.append(nrm(next(ki), (D, F)))
        w2.append(nrm(next(ki), (F, D)))
    emb = nrm(next(ki), (vocab, D), 0.1)
    wt = nrm(next(ki), (L, D))    # triple_linear.weight (PyTorch (out, in) layout)
    ws = nrm(next(ki), (1, D))    # score_linear.weight

    bf16, f32 = jnp.bfloat16, jnp.float32
    nl = num_layers
    return dict(
        emb=emb,
        wqkv=jnp.stack([jnp.concatenate([a, b, c], axis=1)
                        for a, b, c in zip(wq, wk, wv)]).astype(bf16),   # (nl, D, 3D)
        bqkv=jnp.zeros((nl, 1, 3 * D), f32),
        wo=jnp.stack(wo).astype(bf16),                                   # (nl, D, D)
        bo=jnp.zeros((nl, 1, D), f32),
        ln1g=jnp.ones((nl, 1, D), f32), ln1b=jnp.zeros((nl, 1, D), f32),
        w1=jnp.stack(w1).astype(bf16),                                   # (nl, D, F)
        b1=jnp.zeros((nl, 1, F), f32),
        w2=jnp.stack(w2).astype(bf16),                                   # (nl, F, D)
        b2=jnp.zeros((nl, 1, D), f32),
        ln2g=jnp.ones((nl, 1, D), f32), ln2b=jnp.zeros((nl, 1, D), f32),
        whT=jnp.concatenate([wt, ws], axis=0).astype(bf16),              # (L+1, D)
        bh=jnp.zeros((L + 1, 1), f32),
    )


if __name__ == "__main__":
    # Small shapes consistent with the module (d_model divisible by nhead=4).
    B, S = 2, 16
    VOCAB, D, FF, HEADS, NUM_LABELS, NUM_LAYERS = 100, 128, 256, 4, 6, 2

    key = jax.random.PRNGKey(0)
    pkey, ikey = jax.random.split(key)
    params = init_params(pkey, VOCAB, D, FF, NUM_LABELS, NUM_LAYERS)
    input_ids = jax.random.randint(ikey, (B, S), 0, VOCAB, dtype=jnp.int32)

    fwd = jax.jit(lambda ids: gts_transformer_forward(ids, params, HEADS))
    triple_logits, scores = fwd(input_ids)
    jax.block_until_ready((triple_logits, scores))

    assert triple_logits.shape == (B, S, S, NUM_LABELS)
    assert scores.shape == (B, S, S)
    assert bool(jnp.all(jnp.isfinite(triple_logits))) and bool(jnp.all(jnp.isfinite(scores)))

    # Tolerance-asserted pure-JAX reference (bf16 MXU operands, bf16 softmax probs and
    # approx reciprocal introduce small deviations vs the f32 reference).
    ref_logits, ref_scores = gts_transformer_reference(input_ids, params, HEADS)
    assert bool(jnp.allclose(triple_logits, ref_logits, atol=0.12, rtol=0.12)), float(
        jnp.max(jnp.abs(triple_logits - ref_logits)))
    assert bool(jnp.allclose(scores, ref_scores, atol=0.12, rtol=0.12)), float(
        jnp.max(jnp.abs(scores - ref_scores)))
    print("KERNEL_OK")
</pallas_src>

<mosaic_0001>
module attributes {stable_mosaic.version = 11 : i64} {
  func.func @gts_fused_kernel(%arg0: i32, %arg1: memref<1x16x128xf32, #tpu.memory_space<vmem>>, %arg2: memref<2x128x384xbf16, #tpu.memory_space<vmem>>, %arg3: memref<2x1x384xf32, #tpu.memory_space<vmem>>, %arg4: memref<2x128x128xbf16, #tpu.memory_space<vmem>>, %arg5: memref<2x1x128xf32, #tpu.memory_space<vmem>>, %arg6: memref<2x1x128xf32, #tpu.memory_space<vmem>>, %arg7: memref<2x1x128xf32, #tpu.memory_space<vmem>>, %arg8: memref<2x128x256xbf16, #tpu.memory_space<vmem>>, %arg9: memref<2x1x256xf32, #tpu.memory_space<vmem>>, %arg10: memref<2x256x128xbf16, #tpu.memory_space<vmem>>, %arg11: memref<2x1x128xf32, #tpu.memory_space<vmem>>, %arg12: memref<2x1x128xf32, #tpu.memory_space<vmem>>, %arg13: memref<2x1x128xf32, #tpu.memory_space<vmem>>, %arg14: memref<7x128xbf16, #tpu.memory_space<vmem>>, %arg15: memref<7x1xf32, #tpu.memory_space<vmem>>, %arg16: memref<1x6x256xf32, #tpu.memory_space<vmem>>, %arg17: memref<1x1x256xf32, #tpu.memory_space<vmem>>, %arg18: memref<16x128xbf16, #tpu.memory_space<vmem>>) attributes {dimension_semantics = [#tpu.dimension_semantics<parallel>], iteration_bounds = array<i64: 2>, scalar_prefetch = 0 : i64, scratch_operands = 1 : i64, tpu.core_type = #tpu.core_type<tc>, window_params = [{transform_indices = @transform_0, window_bounds = array<i64: 1, 16, 128>}, {pipeline_mode = #tpu.pipeline_mode<synchronous>, transform_indices = @transform_1, window_bounds = array<i64: 2, 128, 384>}, {pipeline_mode = #tpu.pipeline_mode<synchronous>, transform_indices = @transform_2, window_bounds = array<i64: 2, 1, 384>}, {pipeline_mode = #tpu.pipeline_mode<synchronous>, transform_indices = @transform_3, window_bounds = array<i64: 2, 128, 128>}, {pipeline_mode = #tpu.pipeline_mode<synchronous>, transform_indices = @transform_4, window_bounds = array<i64: 2, 1, 128>}, {pipeline_mode = #tpu.pipeline_mode<synchronous>, transform_indices = @transform_5, window_bounds = array<i64: 2, 1, 128>}, {pipeline_mode = #tpu.pipeline_mode<synchronous>, transform_indices = @transform_6, window_bounds = array<i64: 2, 1, 128>}, {pipeline_mode = #tpu.pipeline_mode<synchronous>, transform_indices = @transform_7, window_bounds = array<i64: 2, 128, 256>}, {pipeline_mode = #tpu.pipeline_mode<synchronous>, transform_indices = @transform_8, window_bounds = array<i64: 2, 1, 256>}, {pipeline_mode = #tpu.pipeline_mode<synchronous>, transform_indices = @transform_9, window_bounds = array<i64: 2, 256, 128>}, {pipeline_mode = #tpu.pipeline_mode<synchronous>, transform_indices = @transform_10, window_bounds = array<i64: 2, 1, 128>}, {pipeline_mode = #tpu.pipeline_mode<synchronous>, transform_indices = @transform_11, window_bounds = array<i64: 2, 1, 128>}, {pipeline_mode = #tpu.pipeline_mode<synchronous>, transform_indices = @transform_12, window_bounds = array<i64: 2, 1, 128>}, {pipeline_mode = #tpu.pipeline_mode<synchronous>, transform_indices = @transform_13, window_bounds = array<i64: 7, 128>}, {pipeline_mode = #tpu.pipeline_mode<synchronous>, transform_indices = @transform_14, window_bounds = array<i64: 7, 1>}, {transform_indices = @transform_15, window_bounds = array<i64: 1, 6, 256>}, {transform_indices = @transform_16, window_bounds = array<i64: 1, 1, 256>}]} {
    %c0 = arith.constant 0 : index
    %c0_0 = arith.constant 0 : index
    %c0_1 = arith.constant 0 : index
    %0 = vector.load %arg1[%c0, %c0_0, %c0_1] : memref<1x16x128xf32, #tpu.memory_space<vmem>>, vector<1x16x128xf32>
    %1 = vector.shape_cast %0 : vector<1x16x128xf32> to vector<16x128xf32>
    %2 = arith.truncf %1 : vector<16x128xf32> to vector<16x128xbf16>
    %c0_2 = arith.constant 0 : index
    %c0_3 = arith.constant 0 : index
    %c0_4 = arith.constant 0 : index
    %3 = vector.load %arg2[%c0_2, %c0_3, %c0_4] : memref<2x128x384xbf16, #tpu.memory_space<vmem>>, vector<1x128x384xbf16>
    %4 = vector.shape_cast %3 : vector<1x128x384xbf16> to vector<128x384xbf16>
    %cst = arith.constant dense<0.000000e+00> : vector<16x384xf32>
    %5 = tpu.matmul %2, %4, %cst {dimension_numbers = #tpu.dot_dimension_numbers<[1], [0], [0], [1], [0, 0, 1, 1], [], []>} : vector<16x128xbf16>, vector<128x384xbf16>, vector<16x384xf32> -> vector<16x384xf32>
    %c0_5 = arith.constant 0 : index
    %c0_6 = arith.constant 0 : index
    %c0_7 = arith.constant 0 : index
    %6 = vector.load %arg3[%c0_5, %c0_6, %c0_7] : memref<2x1x384xf32, #tpu.memory_space<vmem>>, vector<1x1x384xf32>
    %7 = vector.shape_cast %6 : vector<1x1x384xf32> to vector<1x384xf32>
    %8 = vector.broadcast %7 : vector<1x384xf32> to vector<16x384xf32>
    %9 = arith.addf %5, %8 : vector<16x384xf32>
    %10 = vector.extract_strided_slice %9 {offsets = [0, 0], sizes = [16, 32], strides = [1, 1]} : vector<16x384xf32> to vector<16x32xf32>
    %11 = arith.truncf %10 : vector<16x32xf32> to vector<16x32xbf16>
    %12 = vector.extract_strided_slice %9 {offsets = [0, 128], sizes = [16, 32], strides = [1, 1]} : vector<16x384xf32> to vector<16x32xf32>
    %13 = arith.truncf %12 : vector<16x32xf32> to vector<16x32xbf16>
    %14 = vector.extract_strided_slice %9 {offsets = [0, 256], sizes = [16, 32], strides = [1, 1]} : vector<16x384xf32> to vector<16x32xf32>
    %15 = arith.truncf %14 : vector<16x32xf32> to vector<16x32xbf16>
    %cst_8 = arith.constant dense<0.000000e+00> : vector<16x16xf32>
    %16 = tpu.matmul %11, %13, %cst_8 {dimension_numbers = #tpu.dot_dimension_numbers<[1], [1], [0], [0], [0, 0, 1, 0], [], []>} : vector<16x32xbf16>, vector<16x32xbf16>, vector<16x16xf32> -> vector<16x16xf32>
    %cst_9 = arith.constant 0.176776692 : f32
    %17 = vector.broadcast %cst_9 : f32 to vector<16x16xf32>
    %18 = arith.mulf %16, %17 : vector<16x16xf32>
    %cst_10 = arith.constant dense<0xFF800000> : vector<16xf32>
    %19 = vector.multi_reduction <maximumf>, %18, %cst_10 [1] : vector<16x16xf32> to vector<16xf32>
    %20 = vector.shape_cast %19 : vector<16xf32> to vector<16x1xf32>
    %21 = vector.broadcast %20 : vector<16x1xf32> to vector<16x16xf32>
    %22 = arith.subf %18, %21 : vector<16x16xf32>
    %23 = math.exp %22 : vector<16x16xf32>
    %cst_11 = arith.constant dense<0.000000e+00> : vector<16xf32>
    %24 = vector.multi_reduction <add>, %23, %cst_11 [1] : vector<16x16xf32> to vector<16xf32>
    %25 = vector.shape_cast %24 : vector<16xf32> to vector<16x1xf32>
    %26 = tpu.reciprocal %25 {approx = true} : vector<16x1xf32> -> vector<16x1xf32>
    %27 = vector.broadcast %26 : vector<16x1xf32> to vector<16x16xf32>
    %28 = arith.mulf %23, %27 : vector<16x16xf32>
    %29 = arith.truncf %28 : vector<16x16xf32> to vector<16x16xbf16>
    %cst_12 = arith.constant dense<0.000000e+00> : vector<16x32xf32>
    %30 = tpu.matmul %29, %15, %cst_12 {dimension_numbers = #tpu.dot_dimension_numbers<[1], [0], [0], [1], [0, 0, 1, 1], [], []>} : vector<16x16xbf16>, vector<16x32xbf16>, vector<16x32xf32> -> vector<16x32xf32>
    %31 = arith.truncf %30 : vector<16x32xf32> to vector<16x32xbf16>
    %c0_13 = arith.constant 0 : index
    %c0_14 = arith.constant 0 : index
    %32 = vector.load %arg18[%c0_13, %c0_14] : memref<16x128xbf16, #tpu.memory_space<vmem>>, vector<16x32xbf16>
    tpu.vector_store %arg18[%c0_13, %c0_14], %31 {strides = array<i32>} : memref<16x128xbf16, #tpu.memory_space<vmem>>, vector<16x32xbf16>,
    %33 = vector.extract_strided_slice %9 {offsets = [0, 32], sizes = [16, 32], strides = [1, 1]} : vector<16x384xf32> to vector<16x32xf32>
    %34 = arith.truncf %33 : vector<16x32xf32> to vector<16x32xbf16>
    %35 = vector.extract_strided_slice %9 {offsets = [0, 160], sizes = [16, 32], strides = [1, 1]} : vector<16x384xf32> to vector<16x32xf32>
    %36 = arith.truncf %35 : vector<16x32xf32> to vector<16x32xbf16>
    %37 = vector.extract_strided_slice %9 {offsets = [0, 288], sizes = [16, 32], strides = [1, 1]} : vector<16x384xf32> to vector<16x32xf32>
    %38 = arith.truncf %37 : vector<16x32xf32> to vector<16x32xbf16>
    %cst_15 = arith.constant dense<0.000000e+00> : vector<16x16xf32>
    %39 = tpu.matmul %34, %36, %cst_15 {dimension_numbers = #tpu.dot_dimension_numbers<[1], [1], [0], [0], [0, 0, 1, 0], [], []>} : vector<16x32xbf16>, vector<16x32xbf16>, vector<16x16xf32> -> vector<16x16xf32>
    %cst_16 = arith.constant 0.176776692 : f32
    %40 = vector.broadcast %cst_16 : f32 to vector<16x16xf32>
    %41 = arith.mulf %39, %40 : vector<16x16xf32>
    %cst_17 = arith.constant dense<0xFF800000> : vector<16xf32>
    %42 = vector.multi_reduction <maximumf>, %41, %cst_17 [1] : vector<16x16xf32> to vector<16xf32>
    %43 = vector.shape_cast %42 : vector<16xf32> to vector<16x1xf32>
    %44 = vector.broadcast %43 : vector<16x1xf32> to vector<16x16xf32>
    %45 = arith.subf %41, %44 : vector<16x16xf32>
    %46 = math.exp %45 : vector<16x16xf32>
    %cst_18 = arith.constant dense<0.000000e+00> : vector<16xf32>
    %47 = vector.multi_reduction <add>, %46, %cst_18 [1] : vector<16x16xf32> to vector<16xf32>
    %48 = vector.shape_cast %47 : vector<16xf32> to vector<16x1xf32>
    %49 = tpu.reciprocal %48 {approx = true} : vector<16x1xf32> -> vector<16x1xf32>
    %50 = vector.broadcast %49 : vector<16x1xf32> to vector<16x16xf32>
    %51 = arith.mulf %46, %50 : vector<16x16xf32>
    %52 = arith.truncf %51 : vector<16x16xf32> to vector<16x16xbf16>
    %cst_19 = arith.constant dense<0.000000e+00> : vector<16x32xf32>
    %53 = tpu.matmul %52, %38, %cst_19 {dimension_numbers = #tpu.dot_dimension_numbers<[1], [0], [0], [1], [0, 0, 1, 1], [], []>} : vector<16x16xbf16>, vector<16x32xbf16>, vector<16x32xf32> -> vector<16x32xf32>
    %54 = arith.truncf %53 : vector<16x32xf32> to vector<16x32xbf16>
    %c0_20 = arith.constant 0 : index
    %c32 = arith.constant 32 : index
    %55 = vector.load %arg18[%c0_20, %c32] : memref<16x128xbf16, #tpu.memory_space<vmem>>, vector<16x32xbf16>
    tpu.vector_store %arg18[%c0_20, %c32], %54 {strides = array<i32>} : memref<16x128xbf16, #tpu.memory_space<vmem>>, vector<16x32xbf16>,
    %56 = vector.extract_strided_slice %9 {offsets = [0, 64], sizes = [16, 32], strides = [1, 1]} : vector<16x384xf32> to vector<16x32xf32>
    %57 = arith.truncf %56 : vector<16x32xf32> to vector<16x32xbf16>
    %58 = vector.extract_strided_slice %9 {offsets = [0, 192], sizes = [16, 32], strides = [1, 1]} : vector<16x384xf32> to vector<16x32xf32>
    %59 = arith.truncf %58 : vector<16x32xf32> to vector<16x32xbf16>
    %60 = vector.extract_strided_slice %9 {offsets = [0, 320], sizes = [16, 32], strides = [1, 1]} : vector<16x384xf32> to vector<16x32xf32>
    %61 = arith.truncf %60 : vector<16x32xf32> to vector<16x32xbf16>
    %cst_21 = arith.constant dense<0.000000e+00> : vector<16x16xf32>
    %62 = tpu.matmul %57, %59, %cst_21 {dimension_numbers = #tpu.dot_dimension_numbers<[1], [1], [0], [0], [0, 0, 1, 0], [], []>} : vector<16x32xbf16>, vector<16x32xbf16>, vector<16x16xf32> -> vector<16x16xf32>
    %cst_22 = arith.constant 0.176776692 : f32
    %63 = vector.broadcast %cst_22 : f32 to vector<16x16xf32>
    %64 = arith.mulf %62, %63 : vector<16x16xf32>
    %cst_23 = arith.constant dense<0xFF800000> : vector<16xf32>
    %65 = vector.multi_reduction <maximumf>, %64, %cst_23 [1] : vector<16x16xf32> to vector<16xf32>
    %66 = vector.shape_cast %65 : vector<16xf32> to vector<16x1xf32>
    %67 = vector.broadcast %66 : vector<16x1xf32> to vector<16x16xf32>
    %68 = arith.subf %64, %67 : vector<16x16xf32>
    %69 = math.exp %68 : vector<16x16xf32>
    %cst_24 = arith.constant dense<0.000000e+00> : vector<16xf32>
    %70 = vector.multi_reduction <add>, %69, %cst_24 [1] : vector<16x16xf32> to vector<16xf32>
    %71 = vector.shape_cast %70 : vector<16xf32> to vector<16x1xf32>
    %72 = tpu.reciprocal %71 {approx = true} : vector<16x1xf32> -> vector<16x1xf32>
    %73 = vector.broadcast %72 : vector<16x1xf32> to vector<16x16xf32>
    %74 = arith.mulf %69, %73 : vector<16x16xf32>
    %75 = arith.truncf %74 : vector<16x16xf32> to vector<16x16xbf16>
    %cst_25 = arith.constant dense<0.000000e+00> : vector<16x32xf32>
    %76 = tpu.matmul %75, %61, %cst_25 {dimension_numbers = #tpu.dot_dimension_numbers<[1], [0], [0], [1], [0, 0, 1, 1], [], []>} : vector<16x16xbf16>, vector<16x32xbf16>, vector<16x32xf32> -> vector<16x32xf32>
    %77 = arith.truncf %76 : vector<16x32xf32> to vector<16x32xbf16>
    %c0_26 = arith.constant 0 : index
    %c64 = arith.constant 64 : index
    %78 = vector.load %arg18[%c0_26, %c64] : memref<16x128xbf16, #tpu.memory_space<vmem>>, vector<16x32xbf16>
    tpu.vector_store %arg18[%c0_26, %c64], %77 {strides = array<i32>} : memref<16x128xbf16, #tpu.memory_space<vmem>>, vector<16x32xbf16>,
    %79 = vector.extract_strided_slice %9 {offsets = [0, 96], sizes = [16, 32], strides = [1, 1]} : vector<16x384xf32> to vector<16x32xf32>
    %80 = arith.truncf %79 : vector<16x32xf32> to vector<16x32xbf16>
    %81 = vector.extract_strided_slice %9 {offsets = [0, 224], sizes = [16, 32], strides = [1, 1]} : vector<16x384xf32> to vector<16x32xf32>
    %82 = arith.truncf %81 : vector<16x32xf32> to vector<16x32xbf16>
    %83 = vector.extract_strided_slice %9 {offsets = [0, 352], sizes = [16, 32], strides = [1, 1]} : vector<16x384xf32> to vector<16x32xf32>
    %84 = arith.truncf %83 : vector<16x32xf32> to vector<16x32xbf16>
    %cst_27 = arith.constant dense<0.000000e+00> : vector<16x16xf32>
    %85 = tpu.matmul %80, %82, %cst_27 {dimension_numbers = #tpu.dot_dimension_numbers<[1], [1], [0], [0], [0, 0, 1, 0], [], []>} : vector<16x32xbf16>, vector<16x32xbf16>, vector<16x16xf32> -> vector<16x16xf32>
    %cst_28 = arith.constant 0.176776692 : f32
    %86 = vector.broadcast %cst_28 : f32 to vector<16x16xf32>
    %87 = arith.mulf %85, %86 : vector<16x16xf32>
    %cst_29 = arith.constant dense<0xFF800000> : vector<16xf32>
    %88 = vector.multi_reduction <maximumf>, %87, %cst_29 [1] : vector<16x16xf32> to vector<16xf32>
    %89 = vector.shape_cast %88 : vector<16xf32> to vector<16x1xf32>
    %90 = vector.broadcast %89 : vector<16x1xf32> to vector<16x16xf32>
    %91 = arith.subf %87, %90 : vector<16x16xf32>
    %92 = math.exp %91 : vector<16x16xf32>
    %cst_30 = arith.constant dense<0.000000e+00> : vector<16xf32>
    %93 = vector.multi_reduction <add>, %92, %cst_30 [1] : vector<16x16xf32> to vector<16xf32>
    %94 = vector.shape_cast %93 : vector<16xf32> to vector<16x1xf32>
    %95 = tpu.reciprocal %94 {approx = true} : vector<16x1xf32> -> vector<16x1xf32>
    %96 = vector.broadcast %95 : vector<16x1xf32> to vector<16x16xf32>
    %97 = arith.mulf %92, %96 : vector<16x16xf32>
    %98 = arith.truncf %97 : vector<16x16xf32> to vector<16x16xbf16>
    %cst_31 = arith.constant dense<0.000000e+00> : vector<16x32xf32>
    %99 = tpu.matmul %98, %84, %cst_31 {dimension_numbers = #tpu.dot_dimension_numbers<[1], [0], [0], [1], [0, 0, 1, 1], [], []>} : vector<16x16xbf16>, vector<16x32xbf16>, vector<16x32xf32> -> vector<16x32xf32>
    %100 = arith.truncf %99 : vector<16x32xf32> to vector<16x32xbf16>
    %c0_32 = arith.constant 0 : index
    %c96 = arith.constant 96 : index
    %101 = vector.load %arg18[%c0_32, %c96] : memref<16x128xbf16, #tpu.memory_space<vmem>>, vector<16x32xbf16>
    tpu.vector_store %arg18[%c0_32, %c96], %100 {strides = array<i32>} : memref<16x128xbf16, #tpu.memory_space<vmem>>, vector<16x32xbf16>,
    %c0_33 = arith.constant 0 : index
    %c0_34 = arith.constant 0 : index
    %102 = vector.load %arg18[%c0_33, %c0_34] : memref<16x128xbf16, #tpu.memory_space<vmem>>, vector<16x128xbf16>
    %c0_35 = arith.constant 0 : index
    %c0_36 = arith.constant 0 : index
    %c0_37 = arith.constant 0 : index
    %103 = vector.load %arg4[%c0_35, %c0_36, %c0_37] : memref<2x128x128xbf16, #tpu.memory_space<vmem>>, vector<1x128x128xbf16>
    %104 = vector.shape_cast %103 : vector<1x128x128xbf16> to vector<128x128xbf16>
    %cst_38 = arith.constant dense<0.000000e+00> : vector<16x128xf32>
    %105 = tpu.matmul %102, %104, %cst_38 {dimension_numbers = #tpu.dot_dimension_numbers<[1], [0], [0], [1], [0, 0, 1, 1], [], []>} : vector<16x128xbf16>, vector<128x128xbf16>, vector<16x128xf32> -> vector<16x128xf32>
    %c0_39 = arith.constant 0 : index
    %c0_40 = arith.constant 0 : index
    %c0_41 = arith.constant 0 : index
    %106 = vector.load %arg5[%c0_39, %c0_40, %c0_41] : memref<2x1x128xf32, #tpu.memory_space<vmem>>, vector<1x1x128xf32>
    %107 = vector.shape_cast %106 : vector<1x1x128xf32> to vector<1x128xf32>
    %108 = vector.broadcast %107 : vector<1x128xf32> to vector<16x128xf32>
    %109 = arith.addf %105, %108 : vector<16x128xf32>
    %110 = arith.addf %1, %109 : vector<16x128xf32>
    %cst_42 = arith.constant dense<0.000000e+00> : vector<16xf32>
    %111 = vector.multi_reduction <add>, %110, %cst_42 [1] : vector<16x128xf32> to vector<16xf32>
    %112 = vector.shape_cast %111 : vector<16xf32> to vector<16x1xf32>
    %cst_43 = arith.constant 1.280000e+02 : f32
    %113 = vector.broadcast %cst_43 : f32 to vector<16x1xf32>
    %114 = arith.divf %112, %113 : vector<16x1xf32>
    %115 = vector.broadcast %114 : vector<16x1xf32> to vector<16x128xf32>
    %116 = arith.subf %110, %115 : vector<16x128xf32>
    %117 = arith.mulf %116, %116 : vector<16x128xf32>
    %cst_44 = arith.constant dense<0.000000e+00> : vector<16xf32>
    %118 = vector.multi_reduction <add>, %117, %cst_44 [1] : vector<16x128xf32> to vector<16xf32>
    %119 = vector.shape_cast %118 : vector<16xf32> to vector<16x1xf32>
    %cst_45 = arith.constant 1.280000e+02 : f32
    %120 = vector.broadcast %cst_45 : f32 to vector<16x1xf32>
    %121 = arith.divf %119, %120 : vector<16x1xf32>
    %122 = vector.broadcast %114 : vector<16x1xf32> to vector<16x128xf32>
    %123 = arith.subf %110, %122 : vector<16x128xf32>
    %cst_46 = arith.constant 9.99999974E-6 : f32
    %124 = vector.broadcast %cst_46 : f32 to vector<16x1xf32>
    %125 = arith.addf %121, %124 : vector<16x1xf32>
    %126 = math.rsqrt %125 : vector<16x1xf32>
    %127 = vector.broadcast %126 : vector<16x1xf32> to vector<16x128xf32>
    %128 = arith.mulf %123, %127 : vector<16x128xf32>
    %c0_47 = arith.constant 0 : index
    %c0_48 = arith.constant 0 : index
    %c0_49 = arith.constant 0 : index
    %129 = vector.load %arg6[%c0_47, %c0_48, %c0_49] : memref<2x1x128xf32, #tpu.memory_space<vmem>>, vector<1x1x128xf32>
    %130 = vector.shape_cast %129 : vector<1x1x128xf32> to vector<1x128xf32>
    %131 = vector.broadcast %130 : vector<1x128xf32> to vector<16x128xf32>
    %132 = arith.mulf %128, %131 : vector<16x128xf32>
    %c0_50 = arith.constant 0 : index
    %c0_51 = arith.constant 0 : index
    %c0_52 = arith.constant 0 : index
    %133 = vector.load %arg7[%c0_50, %c0_51, %c0_52] : memref<2x1x128xf32, #tpu.memory_space<vmem>>, vector<1x1x128xf32>
    %134 = vector.shape_cast %133 : vector<1x1x128xf32> to vector<1x128xf32>
    %135 = vector.broadcast %134 : vector<1x128xf32> to vector<16x128xf32>
    %136 = arith.addf %132, %135 : vector<16x128xf32>
    %137 = arith.truncf %136 : vector<16x128xf32> to vector<16x128xbf16>
    %c0_53 = arith.constant 0 : index
    %c0_54 = arith.constant 0 : index
    %c0_55 = arith.constant 0 : index
    %138 = vector.load %arg8[%c0_53, %c0_54, %c0_55] : memref<2x128x256xbf16, #tpu.memory_space<vmem>>, vector<1x128x256xbf16>
    %139 = vector.shape_cast %138 : vector<1x128x256xbf16> to vector<128x256xbf16>
    %cst_56 = arith.constant dense<0.000000e+00> : vector<16x256xf32>
    %140 = tpu.matmul %137, %139, %cst_56 {dimension_numbers = #tpu.dot_dimension_numbers<[1], [0], [0], [1], [0, 0, 1, 1], [], []>} : vector<16x128xbf16>, vector<128x256xbf16>, vector<16x256xf32> -> vector<16x256xf32>
    %c0_57 = arith.constant 0 : index
    %c0_58 = arith.constant 0 : index
    %c0_59 = arith.constant 0 : index
    %141 = vector.load %arg9[%c0_57, %c0_58, %c0_59] : memref<2x1x256xf32, #tpu.memory_space<vmem>>, vector<1x1x256xf32>
    %142 = vector.shape_cast %141 : vector<1x1x256xf32> to vector<1x256xf32>
    %143 = vector.broadcast %142 : vector<1x256xf32> to vector<16x256xf32>
    %144 = arith.addf %140, %143 : vector<16x256xf32>
    %cst_60 = arith.constant 0.000000e+00 : f32
    %145 = vector.broadcast %cst_60 : f32 to vector<16x256xf32>
    %146 = arith.maximumf %144, %145 : vector<16x256xf32>
    %147 = arith.truncf %146 : vector<16x256xf32> to vector<16x256xbf16>
    %c0_61 = arith.constant 0 : index
    %c0_62 = arith.constant 0 : index
    %c0_63 = arith.constant 0 : index
    %148 = vector.load %arg10[%c0_61, %c0_62, %c0_63] : memref<2x256x128xbf16, #tpu.memory_space<vmem>>, vector<1x256x128xbf16>
    %149 = vector.shape_cast %148 : vector<1x256x128xbf16> to vector<256x128xbf16>
    %cst_64 = arith.constant dense<0.000000e+00> : vector<16x128xf32>
    %150 = tpu.matmul %147, %149, %cst_64 {dimension_numbers = #tpu.dot_dimension_numbers<[1], [0], [0], [1], [0, 0, 1, 1], [], []>} : vector<16x256xbf16>, vector<256x128xbf16>, vector<16x128xf32> -> vector<16x128xf32>
    %c0_65 = arith.constant 0 : index
    %c0_66 = arith.constant 0 : index
    %c0_67 = arith.constant 0 : index
    %151 = vector.load %arg11[%c0_65, %c0_66, %c0_67] : memref<2x1x128xf32, #tpu.memory_space<vmem>>, vector<1x1x128xf32>
    %152 = vector.shape_cast %151 : vector<1x1x128xf32> to vector<1x128xf32>
    %153 = vector.broadcast %152 : vector<1x128xf32> to vector<16x128xf32>
    %154 = arith.addf %150, %153 : vector<16x128xf32>
    %155 = arith.addf %136, %154 : vector<16x128xf32>
    %cst_68 = arith.constant dense<0.000000e+00> : vector<16xf32>
    %156 = vector.multi_reduction <add>, %155, %cst_68 [1] : vector<16x128xf32> to vector<16xf32>
    %157 = vector.shape_cast %156 : vector<16xf32> to vector<16x1xf32>
    %cst_69 = arith.constant 1.280000e+02 : f32
    %158 = vector.broadcast %cst_69 : f32 to vector<16x1xf32>
    %159 = arith.divf %157, %158 : vector<16x1xf32>
    %160 = vector.broadcast %159 : vector<16x1xf32> to vector<16x128xf32>
    %161 = arith.subf %155, %160 : vector<16x128xf32>
    %162 = arith.mulf %161, %161 : vector<16x128xf32>
    %cst_70 = arith.constant dense<0.000000e+00> : vector<16xf32>
    %163 = vector.multi_reduction <add>, %162, %cst_70 [1] : vector<16x128xf32> to vector<16xf32>
    %164 = vector.shape_cast %163 : vector<16xf32> to vector<16x1xf32>
    %cst_71 = arith.constant 1.280000e+02 : f32
    %165 = vector.broadcast %cst_71 : f32 to vector<16x1xf32>
    %166 = arith.divf %164, %165 : vector<16x1xf32>
    %167 = vector.broadcast %159 : vector<16x1xf32> to vector<16x128xf32>
    %168 = arith.subf %155, %167 : vector<16x128xf32>
    %cst_72 = arith.constant 9.99999974E-6 : f32
    %169 = vector.broadcast %cst_72 : f32 to vector<16x1xf32>
    %170 = arith.addf %166, %169 : vector<16x1xf32>
    %171 = math.rsqrt %170 : vector<16x1xf32>
    %172 = vector.broadcast %171 : vector<16x1xf32> to vector<16x128xf32>
    %173 = arith.mulf %168, %172 : vector<16x128xf32>
    %c0_73 = arith.constant 0 : index
    %c0_74 = arith.constant 0 : index
    %c0_75 = arith.constant 0 : index
    %174 = vector.load %arg12[%c0_73, %c0_74, %c0_75] : memref<2x1x128xf32, #tpu.memory_space<vmem>>, vector<1x1x128xf32>
    %175 = vector.shape_cast %174 : vector<1x1x128xf32> to vector<1x128xf32>
    %176 = vector.broadcast %175 : vector<1x128xf32> to vector<16x128xf32>
    %177 = arith.mulf %173, %176 : vector<16x128xf32>
    %c0_76 = arith.constant 0 : index
    %c0_77 = arith.constant 0 : index
    %c0_78 = arith.constant 0 : index
    %178 = vector.load %arg13[%c0_76, %c0_77, %c0_78] : memref<2x1x128xf32, #tpu.memory_space<vmem>>, vector<1x1x128xf32>
    %179 = vector.shape_cast %178 : vector<1x1x128xf32> to vector<1x128xf32>
    %180 = vector.broadcast %179 : vector<1x128xf32> to vector<16x128xf32>
    %181 = arith.addf %177, %180 : vector<16x128xf32>
    %182 = arith.truncf %181 : vector<16x128xf32> to vector<16x128xbf16>
    %c1 = arith.constant 1 : index
    %c0_79 = arith.constant 0 : index
    %c0_80 = arith.constant 0 : index
    %183 = vector.load %arg2[%c1, %c0_79, %c0_80] : memref<2x128x384xbf16, #tpu.memory_space<vmem>>, vector<1x128x384xbf16>
    %184 = vector.shape_cast %183 : vector<1x128x384xbf16> to vector<128x384xbf16>
    %cst_81 = arith.constant dense<0.000000e+00> : vector<16x384xf32>
    %185 = tpu.matmul %182, %184, %cst_81 {dimension_numbers = #tpu.dot_dimension_numbers<[1], [0], [0], [1], [0, 0, 1, 1], [], []>} : vector<16x128xbf16>, vector<128x384xbf16>, vector<16x384xf32> -> vector<16x384xf32>
    %c1_82 = arith.constant 1 : index
    %c0_83 = arith.constant 0 : index
    %c0_84 = arith.constant 0 : index
    %186 = vector.load %arg3[%c1_82, %c0_83, %c0_84] : memref<2x1x384xf32, #tpu.memory_space<vmem>>, vector<1x1x384xf32>
    %187 = vector.shape_cast %186 : vector<1x1x384xf32> to vector<1x384xf32>
    %188 = vector.broadcast %187 : vector<1x384xf32> to vector<16x384xf32>
    %189 = arith.addf %185, %188 : vector<16x384xf32>
    %190 = vector.extract_strided_slice %189 {offsets = [0, 0], sizes = [16, 32], strides = [1, 1]} : vector<16x384xf32> to vector<16x32xf32>
    %191 = arith.truncf %190 : vector<16x32xf32> to vector<16x32xbf16>
    %192 = vector.extract_strided_slice %189 {offsets = [0, 128], sizes = [16, 32], strides = [1, 1]} : vector<16x384xf32> to vector<16x32xf32>
    %193 = arith.truncf %192 : vector<16x32xf32> to vector<16x32xbf16>
    %194 = vector.extract_strided_slice %189 {offsets = [0, 256], sizes = [16, 32], strides = [1, 1]} : vector<16x384xf32> to vector<16x32xf32>
    %195 = arith.truncf %194 : vector<16x32xf32> to vector<16x32xbf16>
    %cst_85 = arith.constant dense<0.000000e+00> : vector<16x16xf32>
    %196 = tpu.matmul %191, %193, %cst_85 {dimension_numbers = #tpu.dot_dimension_numbers<[1], [1], [0], [0], [0, 0, 1, 0], [], []>} : vector<16x32xbf16>, vector<16x32xbf16>, vector<16x16xf32> -> vector<16x16xf32>
    %cst_86 = arith.constant 0.176776692 : f32
    %197 = vector.broadcast %cst_86 : f32 to vector<16x16xf32>
    %198 = arith.mulf %196, %197 : vector<16x16xf32>
    %cst_87 = arith.constant dense<0xFF800000> : vector<16xf32>
    %199 = vector.multi_reduction <maximumf>, %198, %cst_87 [1] : vector<16x16xf32> to vector<16xf32>
    %200 = vector.shape_cast %199 : vector<16xf32> to vector<16x1xf32>
    %201 = vector.broadcast %200 : vector<16x1xf32> to vector<16x16xf32>
    %202 = arith.subf %198, %201 : vector<16x16xf32>
    %203 = math.exp %202 : vector<16x16xf32>
    %cst_88 = arith.constant dense<0.000000e+00> : vector<16xf32>
    %204 = vector.multi_reduction <add>, %203, %cst_88 [1] : vector<16x16xf32> to vector<16xf32>
    %205 = vector.shape_cast %204 : vector<16xf32> to vector<16x1xf32>
    %206 = tpu.reciprocal %205 {approx = true} : vector<16x1xf32> -> vector<16x1xf32>
    %207 = vector.broadcast %206 : vector<16x1xf32> to vector<16x16xf32>
    %208 = arith.mulf %203, %207 : vector<16x16xf32>
    %209 = arith.truncf %208 : vector<16x16xf32> to vector<16x16xbf16>
    %cst_89 = arith.constant dense<0.000000e+00> : vector<16x32xf32>
    %210 = tpu.matmul %209, %195, %cst_89 {dimension_numbers = #tpu.dot_dimension_numbers<[1], [0], [0], [1], [0, 0, 1, 1], [], []>} : vector<16x16xbf16>, vector<16x32xbf16>, vector<16x32xf32> -> vector<16x32xf32>
    %211 = arith.truncf %210 : vector<16x32xf32> to vector<16x32xbf16>
    %c0_90 = arith.constant 0 : index
    %c0_91 = arith.constant 0 : index
    %212 = vector.load %arg18[%c0_90, %c0_91] : memref<16x128xbf16, #tpu.memory_space<vmem>>, vector<16x32xbf16>
    tpu.vector_store %arg18[%c0_90, %c0_91], %211 {strides = array<i32>} : memref<16x128xbf16, #tpu.memory_space<vmem>>, vector<16x32xbf16>,
    %213 = vector.extract_strided_slice %189 {offsets = [0, 32], sizes = [16, 32], strides = [1, 1]} : vector<16x384xf32> to vector<16x32xf32>
    %214 = arith.truncf %213 : vector<16x32xf32> to vector<16x32xbf16>
    %215 = vector.extract_strided_slice %189 {offsets = [0, 160], sizes = [16, 32], strides = [1, 1]} : vector<16x384xf32> to vector<16x32xf32>
    %216 = arith.truncf %215 : vector<16x32xf32> to vector<16x32xbf16>
    %217 = vector.extract_strided_slice %189 {offsets = [0, 288], sizes = [16, 32], strides = [1, 1]} : vector<16x384xf32> to vector<16x32xf32>
    %218 = arith.truncf %217 : vector<16x32xf32> to vector<16x32xbf16>
    %cst_92 = arith.constant dense<0.000000e+00> : vector<16x16xf32>
    %219 = tpu.matmul %214, %216, %cst_92 {dimension_numbers = #tpu.dot_dimension_numbers<[1], [1], [0], [0], [0, 0, 1, 0], [], []>} : vector<16x32xbf16>, vector<16x32xbf16>, vector<16x16xf32> -> vector<16x16xf32>
    %cst_93 = arith.constant 0.176776692 : f32
    %220 = vector.broadcast %cst_93 : f32 to vector<16x16xf32>
    %221 = arith.mulf %219, %220 : vector<16x16xf32>
    %cst_94 = arith.constant dense<0xFF800000> : vector<16xf32>
    %222 = vector.multi_reduction <maximumf>, %221, %cst_94 [1] : vector<16x16xf32> to vector<16xf32>
    %223 = vector.shape_cast %222 : vector<16xf32> to vector<16x1xf32>
    %224 = vector.broadcast %223 : vector<16x1xf32> to vector<16x16xf32>
    %225 = arith.subf %221, %224 : vector<16x16xf32>
    %226 = math.exp %225 : vector<16x16xf32>
    %cst_95 = arith.constant dense<0.000000e+00> : vector<16xf32>
    %227 = vector.multi_reduction <add>, %226, %cst_95 [1] : vector<16x16xf32> to vector<16xf32>
    %228 = vector.shape_cast %227 : vector<16xf32> to vector<16x1xf32>
    %229 = tpu.reciprocal %228 {approx = true} : vector<16x1xf32> -> vector<16x1xf32>
    %230 = vector.broadcast %229 : vector<16x1xf32> to vector<16x16xf32>
    %231 = arith.mulf %226, %230 : vector<16x16xf32>
    %232 = arith.truncf %231 : vector<16x16xf32> to vector<16x16xbf16>
    %cst_96 = arith.constant dense<0.000000e+00> : vector<16x32xf32>
    %233 = tpu.matmul %232, %218, %cst_96 {dimension_numbers = #tpu.dot_dimension_numbers<[1], [0], [0], [1], [0, 0, 1, 1], [], []>} : vector<16x16xbf16>, vector<16x32xbf16>, vector<16x32xf32> -> vector<16x32xf32>
    %234 = arith.truncf %233 : vector<16x32xf32> to vector<16x32xbf16>
    %c0_97 = arith.constant 0 : index
    %c32_98 = arith.constant 32 : index
    %235 = vector.load %arg18[%c0_97, %c32_98] : memref<16x128xbf16, #tpu.memory_space<vmem>>, vector<16x32xbf16>
    tpu.vector_store %arg18[%c0_97, %c32_98], %234 {strides = array<i32>} : memref<16x128xbf16, #tpu.memory_space<vmem>>, vector<16x32xbf16>,
    %236 = vector.extract_strided_slice %189 {offsets = [0, 64], sizes = [16, 32], strides = [1, 1]} : vector<16x384xf32> to vector<16x32xf32>
    %237 = arith.truncf %236 : vector<16x32xf32> to vector<16x32xbf16>
    %238 = vector.extract_strided_slice %189 {offsets = [0, 192], sizes = [16, 32], strides = [1, 1]} : vector<16x384xf32> to vector<16x32xf32>
    %239 = arith.truncf %238 : vector<16x32xf32> to vector<16x32xbf16>
    %240 = vector.extract_strided_slice %189 {offsets = [0, 320], sizes = [16, 32], strides = [1, 1]} : vector<16x384xf32> to vector<16x32xf32>
    %241 = arith.truncf %240 : vector<16x32xf32> to vector<16x32xbf16>
    %cst_99 = arith.constant dense<0.000000e+00> : vector<16x16xf32>
    %242 = tpu.matmul %237, %239, %cst_99 {dimension_numbers = #tpu.dot_dimension_numbers<[1], [1], [0], [0], [0, 0, 1, 0], [], []>} : vector<16x32xbf16>, vector<16x32xbf16>, vector<16x16xf32> -> vector<16x16xf32>
    %cst_100 = arith.constant 0.176776692 : f32
    %243 = vector.broadcast %cst_100 : f32 to vector<16x16xf32>
    %244 = arith.mulf %242, %243 : vector<16x16xf32>
    %cst_101 = arith.constant dense<0xFF800000> : vector<16xf32>
    %245 = vector.multi_reduction <maximumf>, %244, %cst_101 [1] : vector<16x16xf32> to vector<16xf32>
    %246 = vector.shape_cast %245 : vector<16xf32> to vector<16x1xf32>
    %247 = vector.broadcast %246 : vector<16x1xf32> to vector<16x16xf32>
    %248 = arith.subf %244, %247 : vector<16x16xf32>
    %249 = math.exp %248 : vector<16x16xf32>
    %cst_102 = arith.constant dense<0.000000e+00> : vector<16xf32>
    %250 = vector.multi_reduction <add>, %249, %cst_102 [1] : vector<16x16xf32> to vector<16xf32>
    %251 = vector.shape_cast %250 : vector<16xf32> to vector<16x1xf32>
    %252 = tpu.reciprocal %251 {approx = true} : vector<16x1xf32> -> vector<16x1xf32>
    %253 = vector.broadcast %252 : vector<16x1xf32> to vector<16x16xf32>
    %254 = arith.mulf %249, %253 : vector<16x16xf32>
    %255 = arith.truncf %254 : vector<16x16xf32> to vector<16x16xbf16>
    %cst_103 = arith.constant dense<0.000000e+00> : vector<16x32xf32>
    %256 = tpu.matmul %255, %241, %cst_103 {dimension_numbers = #tpu.dot_dimension_numbers<[1], [0], [0], [1], [0, 0, 1, 1], [], []>} : vector<16x16xbf16>, vector<16x32xbf16>, vector<16x32xf32> -> vector<16x32xf32>
    %257 = arith.truncf %256 : vector<16x32xf32> to vector<16x32xbf16>
    %c0_104 = arith.constant 0 : index
    %c64_105 = arith.constant 64 : index
    %258 = vector.load %arg18[%c0_104, %c64_105] : memref<16x128xbf16, #tpu.memory_space<vmem>>, vector<16x32xbf16>
    tpu.vector_store %arg18[%c0_104, %c64_105], %257 {strides = array<i32>} : memref<16x128xbf16, #tpu.memory_space<vmem>>, vector<16x32xbf16>,
    %259 = vector.extract_strided_slice %189 {offsets = [0, 96], sizes = [16, 32], strides = [1, 1]} : vector<16x384xf32> to vector<16x32xf32>
    %260 = arith.truncf %259 : vector<16x32xf32> to vector<16x32xbf16>
    %261 = vector.extract_strided_slice %189 {offsets = [0, 224], sizes = [16, 32], strides = [1, 1]} : vector<16x384xf32> to vector<16x32xf32>
    %262 = arith.truncf %261 : vector<16x32xf32> to vector<16x32xbf16>
    %263 = vector.extract_strided_slice %189 {offsets = [0, 352], sizes = [16, 32], strides = [1, 1]} : vector<16x384xf32> to vector<16x32xf32>
    %264 = arith.truncf %263 : vector<16x32xf32> to vector<16x32xbf16>
    %cst_106 = arith.constant dense<0.000000e+00> : vector<16x16xf32>
    %265 = tpu.matmul %260, %262, %cst_106 {dimension_numbers = #tpu.dot_dimension_numbers<[1], [1], [0], [0], [0, 0, 1, 0], [], []>} : vector<16x32xbf16>, vector<16x32xbf16>, vector<16x16xf32> -> vector<16x16xf32>
    %cst_107 = arith.constant 0.176776692 : f32
    %266 = vector.broadcast %cst_107 : f32 to vector<16x16xf32>
    %267 = arith.mulf %265, %266 : vector<16x16xf32>
    %cst_108 = arith.constant dense<0xFF800000> : vector<16xf32>
    %268 = vector.multi_reduction <maximumf>, %267, %cst_108 [1] : vector<16x16xf32> to vector<16xf32>
    %269 = vector.shape_cast %268 : vector<16xf32> to vector<16x1xf32>
    %270 = vector.broadcast %269 : vector<16x1xf32> to vector<16x16xf32>
    %271 = arith.subf %267, %270 : vector<16x16xf32>
    %272 = math.exp %271 : vector<16x16xf32>
    %cst_109 = arith.constant dense<0.000000e+00> : vector<16xf32>
    %273 = vector.multi_reduction <add>, %272, %cst_109 [1] : vector<16x16xf32> to vector<16xf32>
    %274 = vector.shape_cast %273 : vector<16xf32> to vector<16x1xf32>
    %275 = tpu.reciprocal %274 {approx = true} : vector<16x1xf32> -> vector<16x1xf32>
    %276 = vector.broadcast %275 : vector<16x1xf32> to vector<16x16xf32>
    %277 = arith.mulf %272, %276 : vector<16x16xf32>
    %278 = arith.truncf %277 : vector<16x16xf32> to vector<16x16xbf16>
    %cst_110 = arith.constant dense<0.000000e+00> : vector<16x32xf32>
    %279 = tpu.matmul %278, %264, %cst_110 {dimension_numbers = #tpu.dot_dimension_numbers<[1], [0], [0], [1], [0, 0, 1, 1], [], []>} : vector<16x16xbf16>, vector<16x32xbf16>, vector<16x32xf32> -> vector<16x32xf32>
    %280 = arith.truncf %279 : vector<16x32xf32> to vector<16x32xbf16>
    %c0_111 = arith.constant 0 : index
    %c96_112 = arith.constant 96 : index
    %281 = vector.load %arg18[%c0_111, %c96_112] : memref<16x128xbf16, #tpu.memory_space<vmem>>, vector<16x32xbf16>
    tpu.vector_store %arg18[%c0_111, %c96_112], %280 {strides = array<i32>} : memref<16x128xbf16, #tpu.memory_space<vmem>>, vector<16x32xbf16>,
    %c0_113 = arith.constant 0 : index
    %c0_114 = arith.constant 0 : index
    %282 = vector.load %arg18[%c0_113, %c0_114] : memref<16x128xbf16, #tpu.memory_space<vmem>>, vector<16x128xbf16>
    %c1_115 = arith.constant 1 : index
    %c0_116 = arith.constant 0 : index
    %c0_117 = arith.constant 0 : index
    %283 = vector.load %arg4[%c1_115, %c0_116, %c0_117] : memref<2x128x128xbf16, #tpu.memory_space<vmem>>, vector<1x128x128xbf16>
    %284 = vector.shape_cast %283 : vector<1x128x128xbf16> to vector<128x128xbf16>
    %cst_118 = arith.constant dense<0.000000e+00> : vector<16x128xf32>
    %285 = tpu.matmul %282, %284, %cst_118 {dimension_numbers = #tpu.dot_dimension_numbers<[1], [0], [0], [1], [0, 0, 1, 1], [], []>} : vector<16x128xbf16>, vector<128x128xbf16>, vector<16x128xf32> -> vector<16x128xf32>
    %c1_119 = arith.constant 1 : index
    %c0_120 = arith.constant 0 : index
    %c0_121 = arith.constant 0 : index
    %286 = vector.load %arg5[%c1_119, %c0_120, %c0_121] : memref<2x1x128xf32, #tpu.memory_space<vmem>>, vector<1x1x128xf32>
    %287 = vector.shape_cast %286 : vector<1x1x128xf32> to vector<1x128xf32>
    %288 = vector.broadcast %287 : vector<1x128xf32> to vector<16x128xf32>
    %289 = arith.addf %285, %288 : vector<16x128xf32>
    %290 = arith.addf %181, %289 : vector<16x128xf32>
    %cst_122 = arith.constant dense<0.000000e+00> : vector<16xf32>
    %291 = vector.multi_reduction <add>, %290, %cst_122 [1] : vector<16x128xf32> to vector<16xf32>
    %292 = vector.shape_cast %291 : vector<16xf32> to vector<16x1xf32>
    %cst_123 = arith.constant 1.280000e+02 : f32
    %293 = vector.broadcast %cst_123 : f32 to vector<16x1xf32>
    %294 = arith.divf %292, %293 : vector<16x1xf32>
    %295 = vector.broadcast %294 : vector<16x1xf32> to vector<16x128xf32>
    %296 = arith.subf %290, %295 : vector<16x128xf32>
    %297 = arith.mulf %296, %296 : vector<16x128xf32>
    %cst_124 = arith.constant dense<0.000000e+00> : vector<16xf32>
    %298 = vector.multi_reduction <add>, %297, %cst_124 [1] : vector<16x128xf32> to vector<16xf32>
    %299 = vector.shape_cast %298 : vector<16xf32> to vector<16x1xf32>
    %cst_125 = arith.constant 1.280000e+02 : f32
    %300 = vector.broadcast %cst_125 : f32 to vector<16x1xf32>
    %301 = arith.divf %299, %300 : vector<16x1xf32>
    %302 = vector.broadcast %294 : vector<16x1xf32> to vector<16x128xf32>
    %303 = arith.subf %290, %302 : vector<16x128xf32>
    %cst_126 = arith.constant 9.99999974E-6 : f32
    %304 = vector.broadcast %cst_126 : f32 to vector<16x1xf32>
    %305 = arith.addf %301, %304 : vector<16x1xf32>
    %306 = math.rsqrt %305 : vector<16x1xf32>
    %307 = vector.broadcast %306 : vector<16x1xf32> to vector<16x128xf32>
    %308 = arith.mulf %303, %307 : vector<16x128xf32>
    %c1_127 = arith.constant 1 : index
    %c0_128 = arith.constant 0 : index
    %c0_129 = arith.constant 0 : index
    %309 = vector.load %arg6[%c1_127, %c0_128, %c0_129] : memref<2x1x128xf32, #tpu.memory_space<vmem>>, vector<1x1x128xf32>
    %310 = vector.shape_cast %309 : vector<1x1x128xf32> to vector<1x128xf32>
    %311 = vector.broadcast %310 : vector<1x128xf32> to vector<16x128xf32>
    %312 = arith.mulf %308, %311 : vector<16x128xf32>
    %c1_130 = arith.constant 1 : index
    %c0_131 = arith.constant 0 : index
    %c0_132 = arith.constant 0 : index
    %313 = vector.load %arg7[%c1_130, %c0_131, %c0_132] : memref<2x1x128xf32, #tpu.memory_space<vmem>>, vector<1x1x128xf32>
    %314 = vector.shape_cast %313 : vector<1x1x128xf32> to vector<1x128xf32>
    %315 = vector.broadcast %314 : vector<1x128xf32> to vector<16x128xf32>
    %316 = arith.addf %312, %315 : vector<16x128xf32>
    %317 = arith.truncf %316 : vector<16x128xf32> to vector<16x128xbf16>
    %c1_133 = arith.constant 1 : index
    %c0_134 = arith.constant 0 : index
    %c0_135 = arith.constant 0 : index
    %318 = vector.load %arg8[%c1_133, %c0_134, %c0_135] : memref<2x128x256xbf16, #tpu.memory_space<vmem>>, vector<1x128x256xbf16>
    %319 = vector.shape_cast %318 : vector<1x128x256xbf16> to vector<128x256xbf16>
    %cst_136 = arith.constant dense<0.000000e+00> : vector<16x256xf32>
    %320 = tpu.matmul %317, %319, %cst_136 {dimension_numbers = #tpu.dot_dimension_numbers<[1], [0], [0], [1], [0, 0, 1, 1], [], []>} : vector<16x128xbf16>, vector<128x256xbf16>, vector<16x256xf32> -> vector<16x256xf32>
    %c1_137 = arith.constant 1 : index
    %c0_138 = arith.constant 0 : index
    %c0_139 = arith.constant 0 : index
    %321 = vector.load %arg9[%c1_137, %c0_138, %c0_139] : memref<2x1x256xf32, #tpu.memory_space<vmem>>, vector<1x1x256xf32>
    %322 = vector.shape_cast %321 : vector<1x1x256xf32> to vector<1x256xf32>
    %323 = vector.broadcast %322 : vector<1x256xf32> to vector<16x256xf32>
    %324 = arith.addf %320, %323 : vector<16x256xf32>
    %cst_140 = arith.constant 0.000000e+00 : f32
    %325 = vector.broadcast %cst_140 : f32 to vector<16x256xf32>
    %326 = arith.maximumf %324, %325 : vector<16x256xf32>
    %327 = arith.truncf %326 : vector<16x256xf32> to vector<16x256xbf16>
    %c1_141 = arith.constant 1 : index
    %c0_142 = arith.constant 0 : index
    %c0_143 = arith.constant 0 : index
    %328 = vector.load %arg10[%c1_141, %c0_142, %c0_143] : memref<2x256x128xbf16, #tpu.memory_space<vmem>>, vector<1x256x128xbf16>
    %329 = vector.shape_cast %328 : vector<1x256x128xbf16> to vector<256x128xbf16>
    %cst_144 = arith.constant dense<0.000000e+00> : vector<16x128xf32>
    %330 = tpu.matmul %327, %329, %cst_144 {dimension_numbers = #tpu.dot_dimension_numbers<[1], [0], [0], [1], [0, 0, 1, 1], [], []>} : vector<16x256xbf16>, vector<256x128xbf16>, vector<16x128xf32> -> vector<16x128xf32>
    %c1_145 = arith.constant 1 : index
    %c0_146 = arith.constant 0 : index
    %c0_147 = arith.constant 0 : index
    %331 = vector.load %arg11[%c1_145, %c0_146, %c0_147] : memref<2x1x128xf32, #tpu.memory_space<vmem>>, vector<1x1x128xf32>
    %332 = vector.shape_cast %331 : vector<1x1x128xf32> to vector<1x128xf32>
    %333 = vector.broadcast %332 : vector<1x128xf32> to vector<16x128xf32>
    %334 = arith.addf %330, %333 : vector<16x128xf32>
    %335 = arith.addf %316, %334 : vector<16x128xf32>
    %cst_148 = arith.constant dense<0.000000e+00> : vector<16xf32>
    %336 = vector.multi_reduction <add>, %335, %cst_148 [1] : vector<16x128xf32> to vector<16xf32>
    %337 = vector.shape_cast %336 : vector<16xf32> to vector<16x1xf32>
    %cst_149 = arith.constant 1.280000e+02 : f32
    %338 = vector.broadcast %cst_149 : f32 to vector<16x1xf32>
    %339 = arith.divf %337, %338 : vector<16x1xf32>
    %340 = vector.broadcast %339 : vector<16x1xf32> to vector<16x128xf32>
    %341 = arith.subf %335, %340 : vector<16x128xf32>
    %342 = arith.mulf %341, %341 : vector<16x128xf32>
    %cst_150 = arith.constant dense<0.000000e+00> : vector<16xf32>
    %343 = vector.multi_reduction <add>, %342, %cst_150 [1] : vector<16x128xf32> to vector<16xf32>
    %344 = vector.shape_cast %343 : vector<16xf32> to vector<16x1xf32>
    %cst_151 = arith.constant 1.280000e+02 : f32
    %345 = vector.broadcast %cst_151 : f32 to vector<16x1xf32>
    %346 = arith.divf %344, %345 : vector<16x1xf32>
    %347 = vector.broadcast %339 : vector<16x1xf32> to vector<16x128xf32>
    %348 = arith.subf %335, %347 : vector<16x128xf32>
    %cst_152 = arith.constant 9.99999974E-6 : f32
    %349 = vector.broadcast %cst_152 : f32 to vector<16x1xf32>
    %350 = arith.addf %346, %349 : vector<16x1xf32>
    %351 = math.rsqrt %350 : vector<16x1xf32>
    %352 = vector.broadcast %351 : vector<16x1xf32> to vector<16x128xf32>
    %353 = arith.mulf %348, %352 : vector<16x128xf32>
    %c1_153 = arith.constant 1 : index
    %c0_154 = arith.constant 0 : index
    %c0_155 = arith.constant 0 : index
    %354 = vector.load %arg12[%c1_153, %c0_154, %c0_155] : memref<2x1x128xf32, #tpu.memory_space<vmem>>, vector<1x1x128xf32>
    %355 = vector.shape_cast %354 : vector<1x1x128xf32> to vector<1x128xf32>
    %356 = vector.broadcast %355 : vector<1x128xf32> to vector<16x128xf32>
    %357 = arith.mulf %353, %356 : vector<16x128xf32>
    %c1_156 = arith.constant 1 : index
    %c0_157 = arith.constant 0 : index
    %c0_158 = arith.constant 0 : index
    %358 = vector.load %arg13[%c1_156, %c0_157, %c0_158] : memref<2x1x128xf32, #tpu.memory_space<vmem>>, vector<1x1x128xf32>
    %359 = vector.shape_cast %358 : vector<1x1x128xf32> to vector<1x128xf32>
    %360 = vector.broadcast %359 : vector<1x128xf32> to vector<16x128xf32>
    %361 = arith.addf %357, %360 : vector<16x128xf32>
    %362 = tpu.transpose %361, [1, 0] : vector<16x128xf32> -> vector<128x16xf32>
    %363 = vector.shape_cast %362 : vector<128x16xf32> to vector<128x16x1xf32>
    %364 = vector.shape_cast %362 : vector<128x16xf32> to vector<128x1x16xf32>
    %365 = vector.broadcast %363 : vector<128x16x1xf32> to vector<128x16x16xf32>
    %366 = vector.broadcast %364 : vector<128x1x16xf32> to vector<128x16x16xf32>
    %367 = arith.mulf %365, %366 : vector<128x16x16xf32>
    %368 = vector.shape_cast %367 : vector<128x16x16xf32> to vector<128x256xf32>
    %c0_159 = arith.constant 0 : index
    %c0_160 = arith.constant 0 : index
    %369 = vector.load %arg14[%c0_159, %c0_160] : memref<7x128xbf16, #tpu.memory_space<vmem>>, vector<7x128xbf16>
    %370 = arith.truncf %368 : vector<128x256xf32> to vector<128x256xbf16>
    %cst_161 = arith.constant dense<0.000000e+00> : vector<7x256xf32>
    %371 = tpu.matmul %369, %370, %cst_161 {dimension_numbers = #tpu.dot_dimension_numbers<[1], [0], [0], [1], [0, 0, 1, 1], [], []>} : vector<7x128xbf16>, vector<128x256xbf16>, vector<7x256xf32> -> vector<7x256xf32>
    %c0_162 = arith.constant 0 : index
    %c0_163 = arith.constant 0 : index
    %372 = vector.load %arg15[%c0_162, %c0_163] : memref<7x1xf32, #tpu.memory_space<vmem>>, vector<7x1xf32>
    %373 = vector.broadcast %372 : vector<7x1xf32> to vector<7x256xf32>
    %374 = arith.addf %371, %373 : vector<7x256xf32>
    %375 = vector.extract_strided_slice %374 {offsets = [0, 0], sizes = [6, 256], strides = [1, 1]} : vector<7x256xf32> to vector<6x256xf32>
    %c0_164 = arith.constant 0 : index
    %c0_165 = arith.constant 0 : index
    %c0_166 = arith.constant 0 : index
    %376 = vector.load %arg16[%c0_164, %c0_165, %c0_166] : memref<1x6x256xf32, #tpu.memory_space<vmem>>, vector<1x6x256xf32>
    %377 = vector.shape_cast %376 : vector<1x6x256xf32> to vector<6x256xf32>
    %378 = vector.shape_cast %375 : vector<6x256xf32> to vector<1x6x256xf32>
    tpu.vector_store %arg16[%c0_164, %c0_165, %c0_166], %378 {strides = array<i32>} : memref<1x6x256xf32, #tpu.memory_space<vmem>>, vector<1x6x256xf32>,
    %379 = vector.extract_strided_slice %374 {offsets = [6, 0], sizes = [1, 256], strides = [1, 1]} : vector<7x256xf32> to vector<1x256xf32>
    %c0_167 = arith.constant 0 : index
    %c0_168 = arith.constant 0 : index
    %c0_169 = arith.constant 0 : index
    %380 = vector.load %arg17[%c0_167, %c0_168, %c0_169] : memref<1x1x256xf32, #tpu.memory_space<vmem>>, vector<1x1x256xf32>
    %381 = vector.shape_cast %380 : vector<1x1x256xf32> to vector<1x256xf32>
    %382 = vector.shape_cast %379 : vector<1x256xf32> to vector<1x1x256xf32>
    tpu.vector_store %arg17[%c0_167, %c0_168, %c0_169], %382 {strides = array<i32>} : memref<1x1x256xf32, #tpu.memory_space<vmem>>, vector<1x1x256xf32>,
    return
  }
  func.func @transform_0(%arg0: i32) -> (i32, i32, i32) {
    %c0_i32 = arith.constant 0 : i32
    %c0_i32_0 = arith.constant 0 : i32
    %c0_i32_1 = arith.constant 0 : i32
    return %arg0, %c0_i32, %c0_i32_0 : i32, i32, i32
  }
  func.func @transform_1(%arg0: i32) -> (i32, i32, i32) {
    %c0_i32 = arith.constant 0 : i32
    %c0_i32_0 = arith.constant 0 : i32
    %c0_i32_1 = arith.constant 0 : i32
    %c0_i32_2 = arith.constant 0 : i32
    return %c0_i32, %c0_i32_0, %c0_i32_1 : i32, i32, i32
  }
  func.func @transform_2(%arg0: i32) -> (i32, i32, i32) {
    %c0_i32 = arith.constant 0 : i32
    %c0_i32_0 = arith.constant 0 : i32
    %c0_i32_1 = arith.constant 0 : i32
    %c0_i32_2 = arith.constant 0 : i32
    return %c0_i32, %c0_i32_0, %c0_i32_1 : i32, i32, i32
  }
  func.func @transform_3(%arg0: i32) -> (i32, i32, i32) {
    %c0_i32 = arith.constant 0 : i32
    %c0_i32_0 = arith.constant 0 : i32
    %c0_i32_1 = arith.constant 0 : i32
    %c0_i32_2 = arith.constant 0 : i32
    return %c0_i32, %c0_i32_0, %c0_i32_1 : i32, i32, i32
  }
  func.func @transform_4(%arg0: i32) -> (i32, i32, i32) {
    %c0_i32 = arith.constant 0 : i32
    %c0_i32_0 = arith.constant 0 : i32
    %c0_i32_1 = arith.constant 0 : i32
    %c0_i32_2 = arith.constant 0 : i32
    return %c0_i32, %c0_i32_0, %c0_i32_1 : i32, i32, i32
  }
  func.func @transform_5(%arg0: i32) -> (i32, i32, i32) {
    %c0_i32 = arith.constant 0 : i32
    %c0_i32_0 = arith.constant 0 : i32
    %c0_i32_1 = arith.constant 0 : i32
    %c0_i32_2 = arith.constant 0 : i32
    return %c0_i32, %c0_i32_0, %c0_i32_1 : i32, i32, i32
  }
  func.func @transform_6(%arg0: i32) -> (i32, i32, i32) {
    %c0_i32 = arith.constant 0 : i32
    %c0_i32_0 = arith.constant 0 : i32
    %c0_i32_1 = arith.constant 0 : i32
    %c0_i32_2 = arith.constant 0 : i32
    return %c0_i32, %c0_i32_0, %c0_i32_1 : i32, i32, i32
  }
  func.func @transform_7(%arg0: i32) -> (i32, i32, i32) {
    %c0_i32 = arith.constant 0 : i32
    %c0_i32_0 = arith.constant 0 : i32
    %c0_i32_1 = arith.constant 0 : i32
    %c0_i32_2 = arith.constant 0 : i32
    return %c0_i32, %c0_i32_0, %c0_i32_1 : i32, i32, i32
  }
  func.func @transform_8(%arg0: i32) -> (i32, i32, i32) {
    %c0_i32 = arith.constant 0 : i32
    %c0_i32_0 = arith.constant 0 : i32
    %c0_i32_1 = arith.constant 0 : i32
    %c0_i32_2 = arith.constant 0 : i32
    return %c0_i32, %c0_i32_0, %c0_i32_1 : i32, i32, i32
  }
  func.func @transform_9(%arg0: i32) -> (i32, i32, i32) {
    %c0_i32 = arith.constant 0 : i32
    %c0_i32_0 = arith.constant 0 : i32
    %c0_i32_1 = arith.constant 0 : i32
    %c0_i32_2 = arith.constant 0 : i32
    return %c0_i32, %c0_i32_0, %c0_i32_1 : i32, i32, i32
  }
  func.func @transform_10(%arg0: i32) -> (i32, i32, i32) {
    %c0_i32 = arith.constant 0 : i32
    %c0_i32_0 = arith.constant 0 : i32
    %c0_i32_1 = arith.constant 0 : i32
    %c0_i32_2 = arith.constant 0 : i32
    return %c0_i32, %c0_i32_0, %c0_i32_1 : i32, i32, i32
  }
  func.func @transform_11(%arg0: i32) -> (i32, i32, i32) {
    %c0_i32 = arith.constant 0 : i32
    %c0_i32_0 = arith.constant 0 : i32
    %c0_i32_1 = arith.constant 0 : i32
    %c0_i32_2 = arith.constant 0 : i32
    return %c0_i32, %c0_i32_0, %c0_i32_1 : i32, i32, i32
  }
  func.func @transform_12(%arg0: i32) -> (i32, i32, i32) {
    %c0_i32 = arith.constant 0 : i32
    %c0_i32_0 = arith.constant 0 : i32
    %c0_i32_1 = arith.constant 0 : i32
    %c0_i32_2 = arith.constant 0 : i32
    return %c0_i32, %c0_i32_0, %c0_i32_1 : i32, i32, i32
  }
  func.func @transform_13(%arg0: i32) -> (i32, i32) {
    %c0_i32 = arith.constant 0 : i32
    %c0_i32_0 = arith.constant 0 : i32
    %c0_i32_1 = arith.constant 0 : i32
    return %c0_i32, %c0_i32_0 : i32, i32
  }
  func.func @transform_14(%arg0: i32) -> (i32, i32) {
    %c0_i32 = arith.constant 0 : i32
    %c0_i32_0 = arith.constant 0 : i32
    %c0_i32_1 = arith.constant 0 : i32
    return %c0_i32, %c0_i32_0 : i32, i32
  }
  func.func @transform_15(%arg0: i32) -> (i32, i32, i32) {
    %c0_i32 = arith.constant 0 : i32
    %c0_i32_0 = arith.constant 0 : i32
    %c0_i32_1 = arith.constant 0 : i32
    return %arg0, %c0_i32, %c0_i32_0 : i32, i32, i32
  }
  func.func @transform_16(%arg0: i32) -> (i32, i32, i32) {
    %c0_i32 = arith.constant 0 : i32
    %c0_i32_0 = arith.constant 0 : i32
    %c0_i32_1 = arith.constant 0 : i32
    return %arg0, %c0_i32, %c0_i32_0 : i32, i32, i32
  }
}

</mosaic_0001>

<bundles_post_ra>
// kernel: _lambda_.1
= control target key start
LH: loop header
LB: loop body
LE: loop exit
PB: predicated region body
PF: predicated region fallthrough
CT: control target
= control target key end

     0   :  { %s16992_s0 = inlined_call_operand.vmem [shape: f32[2,16,128], index: 0, kind: input, shape index: {}]   ;;  %s16993_s1 = inlined_call_operand.vmem [shape: bf16[2,128,384], index: 1, kind: input, shape index: {}]   ;;  %s16994_s2 = inlined_call_operand.vmem [shape: f32[2,1,384], index: 2, kind: input, shape index: {}]   ;;  %s16995_s3 = inlined_call_operand.hbm [shape: bf16[2,128,128], index: 3, kind: input, shape index: {}]   ;;  %s16996_s4 = inlined_call_operand.vmem [shape: f32[2,1,128], index: 4, kind: input, shape index: {}, may-alias: {4,6,10,12}]   ;;  %s16997_s5 = inlined_call_operand.vmem [shape: f32[2,1,128], index: 5, kind: input, shape index: {}, may-alias: {5,11}]   ;;  %s16998_s6 = inlined_call_operand.vmem [shape: f32[2,1,128], index: 6, kind: input, shape index: {}, may-alias: {4,6,10,12}]   ;;  %s16999_s7 = inlined_call_operand.hbm [shape: bf16[2,128,256], index: 7, kind: input, shape index: {}]   ;;  %s17000_s8 = inlined_call_operand.vmem [shape: f32[2,1,256], index: 8, kind: input, shape index: {}]   ;;  %s17001_s9 = inlined_call_operand.hbm [shape: bf16[2,256,128], index: 9, kind: input, shape index: {}]   ;;  %s17002_s10 = inlined_call_operand.vmem [shape: f32[2,1,128], index: 10, kind: input, shape index: {}, may-alias: {4,6,10,12}]   ;;  %s17003_s11 = inlined_call_operand.vmem [shape: f32[2,1,128], index: 11, kind: input, shape index: {}, may-alias: {5,11}]   ;;  %s17004_s12 = inlined_call_operand.vmem [shape: f32[2,1,128], index: 12, kind: input, shape index: {}, may-alias: {4,6,10,12}]   ;;  %s17005_s13 = inlined_call_operand.vmem [shape: bf16[7,128], index: 13, kind: input, shape index: {}]   ;;  %s17006_s14 = inlined_call_operand.vmem [shape: f32[7,1], index: 14, kind: input, shape index: {}]   ;;  %s17007_s15 = inlined_call_operand.vmem [shape: f32[2,6,256], index: 15, kind: output, shape index: {0}]   ;;  %s17008_s16 = inlined_call_operand.vmem [shape: f32[2,1,256], index: 16, kind: output, shape index: {1}]  }
   0x1   :  { %17251 = sst [smem:[#allocation191_spill]] %s16992_s0 }
   0x2   :  { %17252 = sst [smem:[#allocation192_spill]] %s16995_s3 }
   0x3   :  { %17253 = sst [smem:[#allocation193_spill]] %s16999_s7 }
   0x4   :  { %22 = vsyncpa [#allocation4], 0 }
   0x5   :  { %23 = vsyncpa [#allocation6], 0  ;;  %s11645_s21 = smov 0  }
   0x6 LB: > { %17254 = sst [smem:[#allocation10_spill]] %s11540_s21  ;;  %s11654_s25 = sadd.s32 4294967295, %s11540_s21   ;;  %s11540_s21 = sphi %s11645_s21, %s29_s21  }
   0x7   : > { %s17255_s7 = sld [smem:[#allocation193_spill]]  ;;  %p9881_p0 = scmp.ge.s32.totalorder %s11540_s21, 1 }
   0x8   : > { %p406_p1 = scmp.lt.s32.totalorder %s11540_s21, 3  ;;  %p10627_p2 = scmp.eq.s32.totalorder %s11654_s25, 0 }
   0x9   : > { %s11542_s27 = smov [#allocation5]   ;;  %s17257_s3 = sld [smem:[#allocation192_spill]] }
   0xa   : > { %p11659_p3 = pnand %p9881_p0, %p406_p1  ;;  %s448_s28 = sshll.u32 %s11542_s27, 4  ;;  %s449_s28 = int_to_ptr.vmem [resolvable:$true] %s448_s28 }
   0xb   : > { %s11543_s18 = smov [#allocation3]   ;;  %s11544_s20 = smov 128  }
   0xc   : > { %p10617_p4 = pneg %p11659_p3  ;;  %s425_s19 = sshll.u32 %s11543_s18, 4  ;;  %s426_s19 = int_to_ptr.vmem [resolvable:$true] %s425_s19 }
   0xd   : > { %s446_s24 = sshll.u32 %s17255_s7, 4  ;;  %s11545_s22 = smov 8   ;;  %s447_s24 = int_to_ptr.hbm [resolvable:$true] %s446_s24 }
   0xe   : > { %p11670_p5 = pnand %p10627_p2, %p10617_p4  ;;  %s463_s29 = sshll.u32 %s17001_s9, 4  ;;  %s464_s29 = int_to_ptr.hbm [resolvable:$true] %s463_s29 }
   0xf   : > { %s423_s0 = sshll.u32 %s17257_s3, 4  ;;  %s11546_s30 = smov 64   ;;  %s424_s0 = int_to_ptr.hbm [resolvable:$true] %s423_s0 }
  0x10   : > { %10623 = dma.hbm_to_vmem [thread:$0]  (!%p11670_p5), %s447_s24, 4096, %s449_s28, [#allocation6], %s11544_s20, %s11544_s20, %s11545_s22  }
  0x11   : > { %s11547_s3 = smov 4   ;;  %s11548_s7 = smov [#allocation7]  }
  0x12   : > { %10620 = dma.hbm_to_vmem [thread:$0]  (!%p11670_p5), %s424_s0, 2048, %s426_s19, [#allocation4], %s11546_s30, %s11546_s30, %s11547_s3  }
  0x13   : > { %s465_s21 = sshll.u32 %s11548_s7, 4  ;;  %504 = sbr.rel (%p11659_p3) target bundleno = 6495 (0x195f), region = 80  ;;  %s466_s21 = int_to_ptr.vmem [resolvable:$true] %s465_s21 }
  0x14   : > { %10626 = dma.hbm_to_vmem [thread:$0]  (!%p11670_p5), %s464_s29, 4096, %s466_s21, [#allocation6], %s11546_s30, %s11546_s30, %s11547_s3  }
  0x18   : > { %11531 = dma.done.wait (%p10627_p2), [#allocation4], 2048  }
  0x19   : > { %11533 = vsyncadd (%p10627_p2), [#allocation4], 4294965248 }
  0x1a   : > { %11535 = dma.done.wait (%p10627_p2), [#allocation6], 8192  }
  0x1b   : > { %11537 = vsyncadd (%p10627_p2), [#allocation6], 4294959104  ;;  %v9981_v0 = vld [vmem:[%s16993_s1 + $0xa8] sm:$0xf]  ;;  %v10497_v1 = vld [vmem:[%s16993_s1 + $0xb0] sm:$0xf0] }
  0x1c   : > { %v10496_v2 = vld [vmem:[%s16993_s1 + $0xac] sm:$0xf]  ;;  %v9982_v3 = vor.u32 %v10497_v1, %v9981_v0  ;;  %v9983_v4 = vld [vmem:[%s16993_s1 + $0xb4] sm:$0xf0]  ;;  %v9969_v5 = vld [vmem:[%s16993_s1 + $0x90] sm:$0xf] }
  0x1d   : > { %v10494_v6 = vld [vmem:[%s16993_s1 + $0x98] sm:$0xf0]  ;;  %v9986_v7 = vor.u32 %v10496_v2, %v9983_v4  ;;  %v10493_v8 = vld [vmem:[%s16993_s1 + $0x94] sm:$0xf]  ;;  %v9971_v9 = vld [vmem:[%s16993_s1 + $0x9c] sm:$0xf0] }
  0x1e   : > { %755 = vmatpush.bf16.msra.mxu0 %v9982_v3  ;;  %v9970_v10 = vor.u32 %v10494_v6, %v9969_v5  ;;  %v9974_v11 = vor.u32 %v10493_v8, %v9971_v9  ;;  %v9957_v12 = vld [vmem:[%s16993_s1 + $0x78] sm:$0xf]  ;;  %v10491_v13 = vld [vmem:[%s16993_s1 + $0x80] sm:$0xf0]  ;;  %v10490_v14 = vld [vmem:[%s16993_s1 + $0x7c] sm:$0xf] }
  0x1f   : > { %769 = vmatpush.bf16.msra.mxu1 %v9986_v7  ;;  %v9959_v15 = vld [vmem:[%s16993_s1 + $0x84] sm:$0xf0]  ;;  %p569_p6 = scmp.lt.s32.totalorder %s11654_s25, 1  ;;  %v9958_v16 = vor.u32 %v10491_v13, %v9957_v12  ;;  %v9945_v18 = vld [vmem:[%s16993_s1 + $0x60] sm:$0xf]  ;;  %s17259_s23 = sld [smem:[#allocation191_spill]] }
  0x20   : > { %v9962_v17 = vor.u32 %v10490_v14, %v9959_v15  ;;  %v10488_v19 = vld [vmem:[%s16993_s1 + $0x68] sm:$0xf0]  ;;  %v10487_v20 = vld [vmem:[%s16993_s1 + $0x64] sm:$0xf]  ;;  %v9947_v21 = vld [vmem:[%s16993_s1 + $0x6c] sm:$0xf0] }
  0x21   : > { %s17911_s25 = smov (!%p569_p6, %s11654_s25), 1  ;;  %v9946_v22 = vor.u32 %v10488_v19, %v9945_v18  ;;  %v9933_v23 = vld [vmem:[%s16993_s1 + $0x48] sm:$0xf]  ;;  %v9989_v24 = vld [vmem:[%s16993_s1 + $0xb0] sm:$0xf]  ;;  %v9950_v26 = vor.u32 %v10487_v20, %v9947_v21  ;;  %vm800_vm0 = vcmask 261120  }
  0x22   : > { %756 = vmatpush.bf16.msra.mxu0 %v9970_v10  ;;  %v10498_v25 = vld [vmem:[%s16993_s1 + $0xb8] sm:$0xf0]  ;;  %v10485_v27 = vld [vmem:[%s16993_s1 + $0x50] sm:$0xf0]  ;;  %v9977_v29 = vld [vmem:[%s16993_s1 + $0x98] sm:$0xf] }
  0x23   : > { %770 = vmatpush.bf16.msra.mxu1 %v9974_v11  ;;  %v9990_v28 = vor.u32 %v10498_v25, %v9989_v24  ;;  %v10495_v30 = vld [vmem:[%s16993_s1 + $0xa0] sm:$0xf0]  ;;  %v10484_v31 = vld [vmem:[%s16993_s1 + $0x4c] sm:$0xf]  ;;  %v9935_v32 = vld [vmem:[%s16993_s1 + $0x54] sm:$0xf0]  ;;  %v9934_v34 = vor.u32 %v10485_v27, %v9933_v23 }
  0x24   : > { %s10473_s24 = sshll.u32 %s17911_s25, 4  ;;  %v9978_v33 = vor.u32 %v10495_v30, %v9977_v29  ;;  %v9921_v35 = vld [vmem:[%s16993_s1 + $0x30] sm:$0xf]  ;;  %v9965_v36 = vld [vmem:[%s16993_s1 + $0x80] sm:$0xf]  ;;  %v9938_v38 = vor.u32 %v10484_v31, %v9935_v32  ;;  %s11549_s20 = smov 96  }
  0x25   : > { %783 = vmatpush.bf16.msra.mxu2 %v9990_v28  ;;  %v10492_v37 = vld [vmem:[%s16993_s1 + $0x88] sm:$0xf0]  ;;  %v10482_v39 = vld [vmem:[%s16993_s1 + $0x38] sm:$0xf0]  ;;  %v10481_v40 = vld [vmem:[%s16993_s1 + $0x34] sm:$0xf]  ;;  %s573_s27 = scalar_lea.vmem %s17259_s23, %s10473_s24  ;;  %s578_s30 = scalar_lea.vmem %s17007_s15, %s10473_s24 }
  0x26   : > { %757 = vmatpush.bf16.msra.mxu0 %v9958_v16  ;;  %v9923_v41 = vld [vmem:[%s16993_s1 + $0x3c] sm:$0xf0]  ;;  %v9953_v42 = vld [vmem:[%s16993_s1 + $0x68] sm:$0xf]  ;;  %v10489_v43 = vld [vmem:[%s16993_s1 + $0x70] sm:$0xf0]  ;;  %v9966_v46 = vor.u32 %v10492_v37, %v9965_v36  ;;  %v9922_v47 = vor.u32 %v10482_v39, %v9921_v35 }
  0x27   : > { %771 = vmatpush.bf16.msra.mxu1 %v9962_v17  ;;  %v9909_v44 = vld [vmem:[%s16993_s1 + $0x18] sm:$0xf]  ;;  %v10479_v45 = vld [vmem:[%s16993_s1 + $0x20] sm:$0xf0]  ;;  %v9926_v48 = vor.u32 %v10481_v40, %v9923_v41  ;;  %v10478_v49 = vld [vmem:[%s16993_s1 + $0x1c] sm:$0xf]  ;;  %v9954_v51 = vor.u32 %v10489_v43, %v9953_v42 }
  0x28   : > { %v9911_v50 = vld [vmem:[%s16993_s1 + $0x24] sm:$0xf0]  ;;  %v9910_v52 = vor.u32 %v10479_v45, %v9909_v44  ;;  %v9941_v53 = vld [vmem:[%s16993_s1 + $0x50] sm:$0xf]  ;;  %v10486_v54 = vld [vmem:[%s16993_s1 + $0x58] sm:$0xf0] }
  0x29   : > { %784 = vmatpush.bf16.msra.mxu2 %v9978_v33  ;;  %v9914_v55 = vor.u32 %v10478_v49, %v9911_v50  ;;  %v9897_v56 = vld [vmem:[%s16993_s1] sm:$0xf]  ;;  %v10476_v57 = vld [vmem:[%s16993_s1 + $0x8] sm:$0xf0]  ;;  %v10475_v58 = vld [vmem:[%s16993_s1 + $0x4] sm:$0xf]  ;;  %v9942_v61 = vor.u32 %v10486_v54, %v9941_v53 }
  0x2a   : > { %758 = vmatpush.bf16.msra.mxu0 %v9946_v22  ;;  %v9899_v59 = vld [vmem:[%s16993_s1 + $0xc] sm:$0xf0]  ;;  %v11829_v60 = vld [vmem:[%s573_s27] sm:$0xff]  ;;  %v9898_v62 = vor.u32 %v10476_v57, %v9897_v56  ;;  %v11831_v63 = vld [vmem:[%s573_s27 + $0x8] sm:$0xff]  ;;  %s11550_s22 = smov 64   ;;  %s11551_s23 = smov 32  }
  0x2b   : > { %772 = vmatpush.bf16.msra.mxu1 %v9950_v26  ;;  %v9929_v0 = vld [vmem:[%s16993_s1 + $0x38] sm:$0xf]  ;;  %v10483_v1 = vld [vmem:[%s16993_s1 + $0x40] sm:$0xf0]  ;;  %v9902_v2 = vor.u32 %v10475_v58, %v9899_v59  ;;  %v586_v3 = vpack.c.bf16 %v11831_v63, %v11829_v60  ;;  %v9917_v5 = vld [vmem:[%s16993_s1 + $0x20] sm:$0xf] }
  0x2c   : > { %v9930_v4 = vor.u32 %v10483_v1, %v9929_v0  ;;  %v10480_v6 = vld [vmem:[%s16993_s1 + $0x28] sm:$0xf0]  ;;  %v9905_v8 = vld [vmem:[%s16993_s1 + $0x8] sm:$0xf]  ;;  %v10477_v9 = vld [vmem:[%s16993_s1 + $0x10] sm:$0xf0] }
  0x2d   : > { %785 = vmatpush.bf16.msra.mxu2 %v9966_v46  ;;  %v9918_v7 = vor.u32 %v10480_v6, %v9917_v5  ;;  %v9906_v10 = vor.u32 %v10477_v9, %v9905_v8  ;;  %v619_v12 = vld [vmem:[%s16994_s2] sm:$0x7]  ;;  %vm823_vm1 = vcmask 130048   ;;  %vm866_vm2 = vcmask 257024   ;;  %s11555_s26 = smov 48   ;;  %s11556_s28 = smov 16  }
  0x2e   : > { %759 = vmatpush.bf16.msra.mxu0 %v9934_v34  ;;  %v622_v14 = vperm.slane %v619_v12, 1  ;;  %v621_v18 = vperm.slane %v619_v12, 0  ;;  %v623_v26 = vperm.slane %v619_v12, 2  ;;  %vm951_vm3 = vcmask 519424   ;;  %s11557_s0 = smov 112   ;;  %s11558_s17 = smov 80  }
  0x2f   : > { %773 = vmatpush.bf16.msra.mxu1 %v9938_v38  ;;  %vm1033_vm4 = vcmask 781824   ;;  %vm1115_vm5 = vcmask 1044224   ;;  %s9894_s7 = sshll.u32 %s17911_s25, 1 }
  0x30   : > { %s582_s21 = scalar_lea.vmem %s17008_s16, %s9894_s7 }
  0x31   : > { %786 = vmatpush.bf16.msra.mxu2 %v9954_v51 }
  0x32   : > { %760 = vmatpush.bf16.msra.mxu0 %v9922_v47 }
  0x33   : > { %774 = vmatpush.bf16.msra.mxu1 %v9926_v48 }
  0x35   : > { %787 = vmatpush.bf16.msra.mxu2 %v9942_v61 }
  0x36   : > { %761 = vmatpush.bf16.msra.mxu0 %v9910_v52 }
  0x37   : > { %775 = vmatpush.bf16.msra.mxu1 %v9914_v55 }
  0x39   : > { %788 = vmatpush.bf16.msra.mxu2 %v9930_v4 }
  0x3a   : > { %762 = vmatpush.bf16.msra.mxu0 %v9898_v62 }
  0x3b   : > { %776 = vmatpush.bf16.msra.mxu1 %v9902_v2 }
  0x3d   : > { %763 = vmatmul.bf16.vlgmr.msra.gmra.mxu0 %v586_v3  ;;  %789 = vmatpush.bf16.msra.mxu2 %v9918_v7 }
  0x3e   : > { %777 = vmatmul.bf16.vlgmr.msra.gmra.mxu1 %v586_v3 }
  0x41   : > { %790 = vmatpush.bf16.msra.mxu2 %v9906_v10 }
  0x44   : > { %791 = vmatmul.bf16.vlgmr.msra.gmra.mxu2 %v586_v3 }
  0xba   : > { %v764_v13 = vpop.f32.mrf.mxu0 }
  0xbb   : > { %v778_v11 = vpop.f32.mrf.mxu1  ;;  %v765_v22 = vadd.f32 %v764_v13, %v621_v18 }
  0xbc   : > { %v779_v16 = vadd.f32 %v778_v11, %v622_v14 }
  0xc2   : > { %v766_v20 = vpop.f32.mrf.mxu0 }
  0xc3   : > { %v780_v15 = vpop.f32.mrf.mxu1  ;;  %v767_v23 = vadd.f32 %v766_v20, %v621_v18 }
  0xc4   : > { %v781_v17 = vadd.f32 %v780_v15, %v622_v14 }
  0xc5   : > { %v797_v25 = vpack.c.bf16 %v767_v23, %v765_v22 }
  0xc6   : > { %v798_v19 = vpack.c.bf16 %v781_v17, %v779_v16 }
  0xc7   : > { %v792_v24 = vpop.f32.mrf.mxu2 }
  0xc8   : > { %873 = vrot.lane.b32.xlu2 %v798_v19, %s11549_s20  ;;  %v805_v21 = vsel %vm800_vm0, %v798_v19, 0  ;;  %v793_v27 = vadd.f32 %v792_v24, %v623_v26 }
  0xc9   : > { %814 = vmatpush.bf16.xpose.msrb.mxu0 %v805_v21 }
  0xcf   : > { %v794_v28 = vpop.f32.mrf.mxu2 }
  0xd0   : > { %870 = vrot.lane.b32.xlu2 %v797_v25, %s11549_s20  ;;  %9991 = vmatmul.msk.bf16.vlgmr.msrb.gmra.mxu0 %vm800_vm0, %v797_v25  ;;  %v795_v29 = vadd.f32 %v794_v28, %v623_v26 }
  0xd2   : > { %v11860_v30 = vpack.c.bf16 %v795_v29, %v793_v27 }
  0xd4   : > { %857 = vmatpush.bf16.msra.mxu3 %v11860_v30 }
  0xd8   : > { %954 = vrot.lane.b32.xlu2 %v797_v25, %s11550_s22 }
  0xe0   : > { %1036 = vrot.lane.b32.xlu2 %v797_v25, %s11551_s23 }
 0x122   : > { %v874_v31 = vpop.permute.xlu2 %873 }
 0x123   : > { %v879_v32 = vsel %vm800_vm0, %v874_v31, 0 }
 0x124   : > { %888 = vmatpush.bf16.xpose.msrb.mxu3 %v879_v32 }
 0x12a   : > { %v871_v49 = vpop.permute.xlu2 %870 }
 0x132   : > { %v955_v52 = vpop.permute.xlu2 %954 }
 0x13a   : > { %v1037_v8 = vpop.permute.xlu2 %1036 }
 0x14d   : > { %v816_v33 = vpop.f32.mrf.mxu0 }
 0x14e   : > { %v821_v34 = vmul.f32 0.17677669, %v816_v33 }
 0x150   : > { %v824_v35 = vsel %vm823_vm1, %v821_v34, -inf }
 0x151   : > { %825 = vmax.xlane.f32.xlu0 %v824_v35 }
 0x155   : > { %v818_v36 = vpop.f32.mrf.mxu0 }
 0x156   : > { %v822_v37 = vmul.f32 0.17677669, %v818_v36 }
 0x158   : > { %v827_v38 = vsel %vm823_vm1, %v822_v37, -inf }
 0x159   : > { %828 = vmax.xlane.f32.xlu0 %v827_v38 }
 0x16d   : > { %956 = vrot.lane.b32.xlu0 %v798_v19, %s11550_s22 }
 0x175   : > { %921 = vrot.lane.b32.xlu0 %v11860_v30, %s11549_s20 }
 0x1c4   : > { %v826_v39 = vpop.xlane.xlu0 %825 }
 0x1c5   : > { %v830_v40 = vsub.f32 %v821_v34, %v826_v39 }
 0x1c7   : > { %v832_v41 = vmul.f32 1.442695, %v830_v40 }
 0x1c9   : > { %11354 = vpow2.f32 %v832_v41 }
 0x1cc   : > { %v829_v42 = vpop.xlane.xlu0 %828 }
 0x1cd   : > { %v831_v43 = vsub.f32 %v822_v37, %v829_v42 }
 0x1cf   : > { %v11355_v44 = vpop.eup %11354  ;;  %v834_v45 = vmul.f32 1.442695, %v831_v43 }
 0x1d0   : > { %v836_v46 = vsel %vm823_vm1, %v11355_v44, 0.0 }
 0x1d1   : > { %11356 = vpow2.f32 %v834_v45  ;;  %837 = vadd.xlane.f32.xlu1 %v836_v46 }
 0x1d7   : > { %v11357_v47 = vpop.eup %11356 }
 0x1d8   : > { %v839_v48 = vsel %vm823_vm1, %v11357_v47, 0.0 }
 0x1d9   : > { %840 = vadd.xlane.f32.xlu1 %v839_v48 }
 0x1df   : > { %v957_v50 = vpop.permute.xlu0 %956 }
 0x1e0   : > { %v962_v51 = vsel %vm800_vm0, %v957_v50, 0 }
 0x1e1   : > { %971 = vmatpush.bf16.xpose.msrb.mxu1 %v962_v51 }
 0x1e7   : > { %v922_v61 = vpop.permute.xlu0 %921 }
 0x1e8   : > { %9995 = vmatmul.msk.bf16.vlgmr.msrb.gmra.mxu1 %vm800_vm0, %v955_v52  ;;  %934 = vmatpush.bf16.msra.mxu0 %v922_v61 }
 0x1f2   : > { %1038 = vrot.lane.b32.xlu1 %v798_v19, %s11551_s23 }
 0x1fa   : > { %1003 = vrot.lane.b32.xlu1 %v11860_v30, %s11550_s22 }
 0x244   : > { %v838_v53 = vpop.xlane.xlu1 %837 }
 0x245   : > { %11358 = vrcp.f32 %v838_v53 }
 0x24b   : > { %v11359_v55 = vpop.eup %11358 }
 0x24c   : > { %v841_v54 = vpop.xlane.xlu1 %840  ;;  %v844_v57 = vmul.f32 %v11359_v55, %v11355_v44 }
 0x24d   : > { %11360 = vrcp.f32 %v841_v54 }
 0x253   : > { %v11361_v56 = vpop.eup %11360 }
 0x254   : > { %v845_v58 = vmul.f32 %v11361_v56, %v11357_v47 }
 0x256   : > { %v846_v59 = vpack.c.bf16 %v845_v58, %v844_v57 }
 0x258   : > { %9992 = vmatmul.msk.bf16.vlgmr.msra.gmra.mxu3 %vm823_vm1, %v846_v59 }
 0x264   : > { %v1039_v62 = vpop.permute.xlu1 %1038 }
 0x265   : > { %v1044_v0 = vsel %vm800_vm0, %v1039_v62, 0  ;;  %v973_v1 = vpop.f32.mrf.mxu1 }
 0x266   : > { %v978_v2 = vmul.f32 0.17677669, %v973_v1  ;;  %1053 = vmatpush.bf16.xpose.msra.mxu3 %v1044_v0 }
 0x268   : > { %9993 = vmatmul.msk.bf16.vlgmr.msrb.gmra.mxu3 %vm800_vm0, %v871_v49  ;;  %v980_v3 = vsel %vm823_vm1, %v978_v2, -inf }
 0x269   : > { %981 = vmax.xlane.f32.xlu0 %v980_v3 }
 0x26c   : > { %v1004_v4 = vpop.permute.xlu1 %1003 }
 0x26d   : > { %v975_v5 = vpop.f32.mrf.mxu1  ;;  %1016 = vmatpush.bf16.msrb.mxu2 %v1004_v4 }
 0x26e   : > { %v979_v6 = vmul.f32 0.17677669, %v975_v5 }
 0x270   : > { %v983_v7 = vsel %vm823_vm1, %v979_v6, -inf }
 0x271   : > { %984 = vmax.xlane.f32.xlu2 %v983_v7 }
 0x278   : > { %9997 = vmatmul.msk.bf16.vlgmr.msra.gmra.mxu3 %vm800_vm0, %v1037_v8 }
 0x2db   : > { %v859_v9 = vpop.f32.mrf.mxu3 }
 0x2dc   : > { %v864_v10 = vpack.c.bf16 %v859_v9, %v859_v9  ;;  %v982_v11 = vpop.xlane.xlu0 %981 }
 0x2dd   : > { %v986_v12 = vsub.f32 %v978_v2, %v982_v11 }
 0x2de   : > { %867 = vst.msk [vmem:[#allocation2] sm:$0xf] %vm866_vm2, %v864_v10 }
 0x2df   : > { %v988_v13 = vmul.f32 1.442695, %v986_v12 }
 0x2e1   : > { %11362 = vpow2.f32 %v988_v13 }
 0x2e3   : > { %v861_v14 = vpop.f32.mrf.mxu3 }
 0x2e4   : > { %v865_v15 = vpack.c.bf16 %v861_v14, %v861_v14  ;;  %v985_v16 = vpop.xlane.xlu2 %984 }
 0x2e5   : > { %v987_v17 = vsub.f32 %v979_v6, %v985_v16 }
 0x2e6   : > { %868 = vst.msk [vmem:[#allocation2 + $0x4] sm:$0xf] %vm866_vm2, %v865_v15 }
 0x2e7   : > { %v11363_v18 = vpop.eup %11362  ;;  %v990_v19 = vmul.f32 1.442695, %v987_v17 }
 0x2e8   : > { %v992_v20 = vsel %vm823_vm1, %v11363_v18, 0.0 }
 0x2e9   : > { %11364 = vpow2.f32 %v990_v19  ;;  %993 = vadd.xlane.f32.xlu2 %v992_v20 }
 0x2eb   : > { %v890_v21 = vpop.f32.mrf.mxu3 }
 0x2ec   : > { %v895_v22 = vmul.f32 0.17677669, %v890_v21 }
 0x2ee   : > { %v897_v25 = vsel %vm823_vm1, %v895_v22, -inf }
 0x2ef   : > { %v11365_v23 = vpop.eup %11364 }
 0x2f0   : > { %v995_v24 = vsel %vm823_vm1, %v11365_v23, 0.0 }
 0x2f1   : > { %996 = vadd.xlane.f32.xlu0 %v995_v24  ;;  %898 = vmax.xlane.f32.xlu2 %v897_v25 }
 0x2f3   : > { %v892_v26 = vpop.f32.mrf.mxu3 }
 0x2f4   : > { %v896_v27 = vmul.f32 0.17677669, %v892_v26 }
 0x2f6   : > { %v900_v28 = vsel %vm823_vm1, %v896_v27, -inf }
 0x2f9   : > { %901 = vmax.xlane.f32.xlu0 %v900_v28  ;;  %v10506_v28 = vld [vmem:[#allocation3 + $0x30] sm:$0xff] }
 0x2fb   : > { %v1055_v29 = vpop.f32.mrf.mxu3 }
 0x2fc   : > { %v11890_v31 = vmul.f32 0.17677669, %v1055_v29  ;;  %v10505_v29 = vld [vmem:[#allocation3 + $0x28] sm:$0xff] }
 0x2fe   : > { %v1062_v32 = vsel %vm823_vm1, %v11890_v31, -inf }
 0x2ff   : > { %1063 = vmax.xlane.f32.xlu1 %v1062_v32 }
 0x303   : > { %v1057_v33 = vpop.f32.mrf.mxu3 }
 0x304   : > { %v1061_v34 = vmul.f32 0.17677669, %v1057_v33 }
 0x306   : > { %v1065_v35 = vsel %vm823_vm1, %v1061_v34, -inf }
 0x307   : > { %1066 = vmax.xlane.f32.xlu0 %v1065_v35 }
 0x35c   : > { %v994_v36 = vpop.xlane.xlu2 %993 }
 0x35d   : > { %11366 = vrcp.f32 %v994_v36  ;;  %v10503_v36 = vld [vmem:[#allocation3 + $0x18] sm:$0xff] }
 0x363   : > { %v11367_v41 = vpop.eup %11366 }
 0x364   : > { %v899_v37 = vpop.xlane.xlu2 %898  ;;  %v997_v38 = vpop.xlane.xlu0 %996  ;;  %v1000_v43 = vmul.f32 %v11367_v41, %v11363_v18 }
 0x365   : > { %v903_v39 = vsub.f32 %v895_v22, %v899_v37  ;;  %11368 = vrcp.f32 %v997_v38  ;;  %v10502_v37 = vld [vmem:[#allocation3 + $0x10] sm:$0xff]  ;;  %v10501_v38 = vld [vmem:[#allocation3 + $0x8] sm:$0xff] }
 0x367   : > { %v905_v40 = vmul.f32 1.442695, %v903_v39  ;;  %v10500_v39 = vld [vmem:[#allocation3] sm:$0xff] }
 0x369   : > { %11370 = vpow2.f32 %v905_v40 }
 0x36b   : > { %v11369_v42 = vpop.eup %11368 }
 0x36c   : > { %v1001_v44 = vmul.f32 %v11369_v42, %v11365_v23  ;;  %v902_v52 = vpop.xlane.xlu0 %901 }
 0x36d   : > { %v904_v53 = vsub.f32 %v896_v27, %v902_v52  ;;  %v10507_v27 = vld [vmem:[#allocation3 + $0x38] sm:$0xff] }
 0x36e   : > { %v1002_v45 = vpack.c.bf16 %v1001_v44, %v1000_v43  ;;  %1194 = vmatpush.bf16.msra.mxu1 %v10507_v27  ;;  %v11342_v43 = vld [vmem:[%s16996_s4] ss:$0 sm:$0xff] }
 0x36f   : > { %v11371_v46 = vpop.eup %11370  ;;  %v907_v54 = vmul.f32 1.442695, %v904_v53 }
 0x370   : > { %9996 = vmatmul.msk.bf16.vlgmr.msrb.gmra.mxu2 %vm823_vm1, %v1002_v45  ;;  %v909_v47 = vsel %vm823_vm1, %v11371_v46, 0.0 }
 0x371   : > { %910 = vadd.xlane.f32.xlu1 %v909_v47  ;;  %11372 = vpow2.f32 %v907_v54 }
 0x372   : > { %v1064_v0 = vpop.xlane.xlu1 %1063  ;;  %1195 = vmatpush.bf16.msra.mxu1 %v10506_v28  ;;  %v10063_v28 = vld [vmem:[#allocation5 + $0x38] sm:$0xf0] }
 0x373   : > { %v1068_v13 = vsub.f32 %v11890_v31, %v1064_v0  ;;  %v10504_v31 = vld [vmem:[#allocation3 + $0x20] sm:$0xff] }
 0x375   : > { %v1070_v14 = vmul.f32 1.442695, %v1068_v13  ;;  %v10077_v13 = vld [vmem:[#allocation5 + $0x50] sm:$0xf] }
 0x376   : > { %1196 = vmatpush.bf16.msra.mxu1 %v10505_v29 }
 0x377   : > { %v11373_v58 = vpop.eup %11372 }
 0x378   : > { %v912_v59 = vsel %vm823_vm1, %v11373_v58, 0.0 }
 0x37a   : > { %v1067_v55 = vpop.xlane.xlu0 %1066  ;;  %1197 = vmatpush.bf16.msra.mxu1 %v10504_v31  ;;  %v10053_v31 = vld [vmem:[#allocation5 + $0x20] sm:$0xf] }
 0x37b   : > { %v1069_v56 = vsub.f32 %v1061_v34, %v1067_v55 }
 0x37d   : > { %v1072_v57 = vmul.f32 1.442695, %v1069_v56 }
 0x37e   : > { %1198 = vmatpush.bf16.msra.mxu1 %v10503_v36 }
 0x37f   : > { %11374 = vpow2.f32 %v1072_v57 }
 0x382   : > { %1199 = vmatpush.bf16.msra.mxu1 %v10502_v37  ;;  %v10045_v37 = vld [vmem:[#allocation5 + $0x10] sm:$0xf] }
 0x385   : > { %v11375_v61 = vpop.eup %11374 }
 0x386   : > { %v1077_v62 = vsel %vm823_vm1, %v11375_v61, 0.0  ;;  %1200 = vmatpush.bf16.msra.mxu1 %v10501_v38  ;;  %v10511_v38 = vld [vmem:[#allocation5 + $0x14] sm:$0xf0] }
 0x38a   : > { %1201 = vmatpush.bf16.msra.mxu1 %v10500_v39  ;;  %v10510_v39 = vld [vmem:[#allocation5 + $0x14] sm:$0xf] }
 0x3e4   : > { %v911_v2 = vpop.xlane.xlu1 %910 }
 0x3e5   : > { %11376 = vrcp.f32 %v911_v2  ;;  %v10523_v2 = vld [vmem:[#allocation5 + $0x74] sm:$0xf0] }
 0x3eb   : > { %v11377_v4 = vpop.eup %11376 }
 0x3ec   : > { %v917_v6 = vmul.f32 %v11377_v4, %v11371_v46 }
 0x3f3   : > { %v1018_v48 = vpop.f32.mrf.mxu2 }
 0x3f4   : > { %v1023_v49 = vpack.c.bf16 %v1018_v48, %v1018_v48 }
 0x3f6   : > { %1027 = vrot.lane.b32.xlu2 %v1023_v49, %s11550_s22 }
 0x3fb   : > { %v1020_v50 = vpop.f32.mrf.mxu2 }
 0x3fc   : > { %v1024_v51 = vpack.c.bf16 %v1020_v50, %v1020_v50  ;;  %v11552_v50 = vmov 128.0  }
 0x3fe   : > { %1029 = vrot.lane.b32.xlu0 %v1024_v51, %s11550_s22 }
 0x41f   : > { %913 = vadd.xlane.f32.xlu2 %v912_v59 }
 0x428   : > { %1078 = vadd.xlane.f32.xlu0 %v1077_v62 }
 0x450   : > { %v1028_v1 = vpop.permute.xlu2 %1027 }
 0x470   : > { %v1030_v19 = vpop.permute.xlu0 %1029 }
 0x492   : > { %v914_v3 = vpop.xlane.xlu2 %913 }
 0x493   : > { %11378 = vrcp.f32 %v914_v3  ;;  %v10522_v3 = vld [vmem:[#allocation5 + $0x74] sm:$0xf] }
 0x494   : > { %11380 = vpow2.f32 %v1070_v14  ;;  %v10519_v14 = vld [vmem:[#allocation5 + $0x54] sm:$0xf0] }
 0x499   : > { %v11379_v5 = vpop.eup %11378 }
 0x49a   : > { %v918_v7 = vmul.f32 %v11379_v5, %v11373_v58  ;;  %v11381_v15 = vpop.eup %11380  ;;  %v10095_v5 = vld [vmem:[#allocation5 + $0x78] sm:$0xf0] }
 0x49b   : > { %v1074_v16 = vsel %vm823_vm1, %v11381_v15, 0.0  ;;  %v1079_v20 = vpop.xlane.xlu0 %1078 }
 0x49c   : > { %v919_v8 = vpack.c.bf16 %v918_v7, %v917_v6  ;;  %11382 = vrcp.f32 %v1079_v20  ;;  %v10098_v6 = vor.u32 %v10522_v3, %v10095_v5  ;;  %v10085_v7 = vld [vmem:[#allocation5 + $0x60] sm:$0xf]  ;;  %v10516_v20 = vld [vmem:[#allocation5 + $0x44] sm:$0xf] }
 0x49d   : > { %v10536_v5 = vld [vmem:[#allocation7 + $0x60] sm:$0xff] }
 0x49e   : > { %9994 = vmatmul.msk.bf16.vlgmr.msra.gmra.mxu0 %vm823_vm1, %v919_v8  ;;  %1386 = vmatpush.bf16.msrb.mxu3 %v10098_v6  ;;  %v10521_v8 = vld [vmem:[#allocation5 + $0x64] sm:$0xf0] }
 0x4a2   : > { %v11383_v22 = vpop.eup %11382 }
 0x4a3   : > { %v1083_v24 = vmul.f32 %v11383_v22, %v11375_v61  ;;  %v10071_v22 = vld [vmem:[#allocation5 + $0x48] sm:$0xf0] }
 0x51b   : > { %v936_v9 = vpop.f32.mrf.mxu0 }
 0x51c   : > { %v941_v10 = vpack.c.bf16 %v936_v9, %v936_v9  ;;  %v10520_v9 = vld [vmem:[#allocation5 + $0x64] sm:$0xf] }
 0x51e   : > { %945 = vrot.lane.b32.xlu2 %v941_v10, %s11551_s23  ;;  %v10086_v10 = vor.u32 %v10521_v8, %v10085_v7 }
 0x523   : > { %v938_v11 = vpop.f32.mrf.mxu0 }
 0x524   : > { %v942_v12 = vpack.c.bf16 %v938_v11, %v938_v11  ;;  %v10087_v11 = vld [vmem:[#allocation5 + $0x68] sm:$0xf0] }
 0x526   : > { %1085 = vrot.lane.b32.xlu2 %v11860_v30, %s11551_s23  ;;  %947 = vrot.lane.b32.xlu1 %v942_v12, %s11551_s23  ;;  %v10090_v12 = vor.u32 %v10520_v9, %v10087_v11 }
 0x528   : > { %1387 = vmatpush.bf16.msrb.mxu3 %v10090_v12 }
 0x550   : > { %1075 = vadd.xlane.f32.xlu1 %v1074_v16  ;;  %v10078_v16 = vor.u32 %v10519_v14, %v10077_v13 }
 0x578   : > { %v946_v17 = vpop.permute.xlu2 %945 }
 0x579   : > { %952 = vst.msk [vmem:[#allocation2] sm:$0xf] %vm951_vm3, %v946_v17  ;;  %v10079_v17 = vld [vmem:[#allocation5 + $0x58] sm:$0xf0] }
 0x57a   : > { %1034 = vst.msk [vmem:[#allocation2] sm:$0xf] %vm1033_vm4, %v1028_v1  ;;  %v10093_v1 = vld [vmem:[#allocation5 + $0x70] sm:$0xf] }
 0x57b   : > { %v10094_v4 = vor.u32 %v10523_v2, %v10093_v1  ;;  %v10537_v1 = vld [vmem:[#allocation7 + $0x68] sm:$0xff] }
 0x57d   : > { %1372 = vmatpush.bf16.msra.mxu2 %v10094_v4  ;;  %v10528_v4 = vld [vmem:[#allocation7 + $0x20] sm:$0xff] }
 0x580   : > { %v1086_v18 = vpop.permute.xlu2 %1085 }
 0x581   : > { %1098 = vmatpush.bf16.msrb.mxu0 %v1086_v18  ;;  %1373 = vmatpush.bf16.msra.mxu2 %v10086_v10 }
 0x585   : > { %1374 = vmatpush.bf16.msra.mxu2 %v10078_v16 }
 0x598   : > { %v948_v30 = vpop.permute.xlu1 %947 }
 0x599   : > { %953 = vst.msk [vmem:[#allocation2 + $0x4] sm:$0xf] %vm951_vm3, %v948_v30  ;;  %v10069_v30 = vld [vmem:[#allocation5 + $0x40] sm:$0xf] }
 0x59a   : > { %1035 = vst.msk [vmem:[#allocation2 + $0x4] sm:$0xf] %vm1033_vm4, %v1030_v19  ;;  %v10517_v19 = vld [vmem:[#allocation5 + $0x44] sm:$0xf0] }
 0x5c3   : > { %v1076_v21 = vpop.xlane.xlu1 %1075 }
 0x5c4   : > { %11384 = vrcp.f32 %v1076_v21  ;;  %v10070_v21 = vor.u32 %v10517_v19, %v10069_v30  ;;  %v11344_v19 = vld [vmem:[%s16998_s6] ss:$0 sm:$0xff] }
 0x5c5   : > { %11386 = vrcp.f32 %v11552_v50 }
 0x5c6   : > { %1375 = vmatpush.bf16.msra.mxu2 %v10070_v21 }
 0x5ca   : > { %v11385_v23 = vpop.eup %11384 }
 0x5cb   : > { %v1082_v25 = vmul.f32 %v11385_v23, %v11381_v15  ;;  %v11387_v51 = vpop.eup %11386  ;;  %v10518_v15 = vld [vmem:[#allocation5 + $0x54] sm:$0xf]  ;;  %v10074_v23 = vor.u32 %v10516_v20, %v10071_v22 }
 0x5cc   : > { %v1215_v52 = vmul.f32 128.0, %v11387_v51  ;;  %vm1219_vm6 = vweird.f32 %v11387_v51  ;;  %v10082_v18 = vor.u32 %v10518_v15, %v10079_v17  ;;  %v11343_v15 = vld [vmem:[%s16997_s5] ss:$0 sm:$0xff] }
 0x5cd   : > { %v1084_v26 = vpack.c.bf16 %v1083_v24, %v1082_v25  ;;  %v10061_v24 = vld [vmem:[#allocation5 + $0x30] sm:$0xf]  ;;  %v10515_v25 = vld [vmem:[#allocation5 + $0x34] sm:$0xf0] }
 0x5ce   : > { %v1216_v53 = vsub.f32 1.0, %v1215_v52  ;;  %1388 = vmatpush.bf16.msrb.mxu3 %v10082_v18  ;;  %v10062_v27 = vor.u32 %v10515_v25, %v10061_v24  ;;  %v10531_v52 = vld [vmem:[#allocation7 + $0x38] sm:$0xff]  ;;  %v10526_v25 = vld [vmem:[#allocation7 + $0x10] sm:$0xff] }
 0x5cf   : > { %9998 = vmatmul.msk.bf16.vlgmr.msrb.gmra.mxu0 %vm823_vm1, %v1084_v26  ;;  %v10514_v26 = vld [vmem:[#allocation5 + $0x34] sm:$0xf]  ;;  %v10535_v24 = vld [vmem:[#allocation7 + $0x58] sm:$0xff] }
 0x5d0   : > { %v1217_v54 = vmul.f32 %v11387_v51, %v1216_v53  ;;  %v10066_v29 = vor.u32 %v10514_v26, %v10063_v28  ;;  %1376 = vmatpush.bf16.msra.mxu2 %v10062_v27  ;;  %v10539_v53 = vld [vmem:[#allocation7 + $0x78] sm:$0xff]  ;;  %1538 = vmatpush.bf16.msra.mxu0 %v10531_v52  ;;  %v10534_v26 = vld [vmem:[#allocation7 + $0x50] sm:$0xff]  ;;  %v10533_v27 = vld [vmem:[#allocation7 + $0x48] sm:$0xff] }
 0x5d1   : > { %1552 = vmatpush.bf16.msrb.mxu1 %v10539_v53  ;;  %v10524_v28 = vld [vmem:[#allocation7] sm:$0xff] }
 0x5d2   : > { %v1218_v55 = vadd.f32 %v11387_v51, %v1217_v54  ;;  %1389 = vmatpush.bf16.msrb.mxu3 %v10074_v23 }
 0x5d4   : > { %v11922_v56 = vsel %vm1219_vm6, %v11387_v51, %v1218_v55 }
 0x5d6   : > { %1390 = vmatpush.bf16.msrb.mxu3 %v10066_v29  ;;  %v10532_v29 = vld [vmem:[#allocation7 + $0x40] sm:$0xff] }
 0x64c   : > { %v1100_v32 = vpop.f32.mrf.mxu0 }
 0x64d   : > { %v1105_v33 = vpack.c.bf16 %v1100_v32, %v1100_v32  ;;  %v10513_v32 = vld [vmem:[#allocation5 + $0x24] sm:$0xf0] }
 0x64f   : > { %1109 = vrot.lane.b32.xlu2 %v1105_v33, %s11549_s20  ;;  %v10512_v33 = vld [vmem:[#allocation5 + $0x24] sm:$0xf] }
 0x654   : > { %v1102_v34 = vpop.f32.mrf.mxu0 }
 0x655   : > { %v1106_v35 = vpack.c.bf16 %v1102_v34, %v1102_v34  ;;  %v10054_v34 = vor.u32 %v10513_v32, %v10053_v31  ;;  %v1286_v31 = vld [vmem:[%s17000_s8] sm:$0x3] }
 0x657   : > { %1111 = vrot.lane.b32.xlu2 %v1106_v35, %s11549_s20  ;;  %v10055_v35 = vld [vmem:[#allocation5 + $0x28] sm:$0xf0]  ;;  %1377 = vmatpush.bf16.msra.mxu2 %v10054_v34  ;;  %v1288_v34 = vperm.slane %v1286_v31, 0 }
 0x658   : > { %v10058_v36 = vor.u32 %v10512_v33, %v10055_v35  ;;  %v1289_v35 = vperm.slane %v1286_v31, 1  ;;  %v10246_v31 = vld [vmem:[%s16993_s1 + $0x120] sm:$0xf] }
 0x65a   : > { %1391 = vmatpush.bf16.msrb.mxu3 %v10058_v36 }
 0x6a9   : > { %v1110_v40 = vpop.permute.xlu2 %1109 }
 0x6aa   : > { %1116 = vst.msk [vmem:[#allocation2] sm:$0xf] %vm1115_vm5, %v1110_v40  ;;  %v10046_v40 = vor.u32 %v10511_v38, %v10045_v37 }
 0x6ac   : > { %1378 = vmatpush.bf16.msra.mxu2 %v10046_v40 }
 0x6b1   : > { %v1112_v41 = vpop.permute.xlu2 %1111 }
 0x6b2   : > { %1117 = vst.msk [vmem:[#allocation2 + $0x4] sm:$0xf] %vm1115_vm5, %v1112_v41  ;;  %v10047_v41 = vld [vmem:[#allocation5 + $0x18] sm:$0xf0] }
 0x6b9   : > { %v10499_v42 = vld [vmem:[#allocation2] sm:$0xff] }
 0x6ba   : > { %1202 = vmatmul.bf16.vlgmr.msra.gmra.mxu1 %v10499_v42  ;;  %v10050_v42 = vor.u32 %v10510_v39, %v10047_v41 }
 0x6bc   : > { %1392 = vmatpush.bf16.msrb.mxu3 %v10050_v42 }
 0x737   : > { %v1203_v44 = vpop.f32.mrf.mxu1 }
 0x738   : > { %v1204_v45 = vadd.f32 %v11342_v43, %v1203_v44  ;;  %v10509_v44 = vld [vmem:[#allocation5 + $0x4] sm:$0xf0] }
 0x73a   : > { %v1208_v46 = vadd.f32 %v1204_v45, %v11829_v60  ;;  %v10508_v45 = vld [vmem:[#allocation5 + $0x4] sm:$0xf] }
 0x73c   : > { %1210 = vadd.xlane.f32.xlu2 %v1208_v46 }
 0x73f   : > { %v1205_v47 = vpop.f32.mrf.mxu1 }
 0x740   : > { %v1206_v48 = vadd.f32 %v11342_v43, %v1205_v47  ;;  %v10037_v43 = vld [vmem:[#allocation5] sm:$0xf] }
 0x741   : > { %v10038_v47 = vor.u32 %v10509_v44, %v10037_v43 }
 0x742   : > { %v1209_v49 = vadd.f32 %v1206_v48, %v11831_v63  ;;  %v10039_v48 = vld [vmem:[#allocation5 + $0x8] sm:$0xf0] }
 0x743   : > { %v10042_v50 = vor.u32 %v10508_v45, %v10039_v48  ;;  %1379 = vmatpush.bf16.msra.mxu2 %v10038_v47  ;;  %v11345_v48 = vld [vmem:[%s17002_s10] ss:$0 sm:$0xff] }
 0x744   : > { %1212 = vadd.xlane.f32.xlu1 %v1209_v49 }
 0x745   : > { %1393 = vmatpush.bf16.msrb.mxu3 %v10042_v50 }
 0x7af   : > { %v1211_v57 = vpop.xlane.xlu2 %1210 }
 0x7b0   : > { %v1221_v58 = vmul.f32 %v11922_v56, %v1211_v57  ;;  %v10530_v57 = vld [vmem:[#allocation7 + $0x30] sm:$0xff] }
 0x7b1   : > { %1539 = vmatpush.bf16.msra.mxu0 %v10530_v57 }
 0x7b2   : > { %v11925_v60 = vsub.f32 %v1208_v46, %v1221_v58  ;;  %v10538_v58 = vld [vmem:[#allocation7 + $0x70] sm:$0xff] }
 0x7b3   : > { %1553 = vmatpush.bf16.msrb.mxu1 %v10538_v58 }
 0x7b4   : > { %v1225_v59 = vmul.f32 %v11925_v60, %v11925_v60 }
 0x7b6   : > { %1227 = vadd.xlane.f32.xlu0 %v1225_v59 }
 0x7b7   : > { %v1213_v63 = vpop.xlane.xlu1 %1212  ;;  %1554 = vmatpush.bf16.msrb.mxu1 %v10537_v1 }
 0x7b8   : > { %v1222_v61 = vmul.f32 %v11922_v56, %v1213_v63 }
 0x7ba   : > { %v11930_v62 = vsub.f32 %v1209_v49, %v1222_v61 }
 0x7bb   : > { %1555 = vmatpush.bf16.msrb.mxu1 %v10536_v5 }
 0x7bc   : > { %v1226_v0 = vmul.f32 %v11930_v62, %v11930_v62 }
 0x7be   : > { %1229 = vadd.xlane.f32.xlu1 %v1226_v0  ;;  %v10529_v0 = vld [vmem:[#allocation7 + $0x28] sm:$0xff] }
 0x7bf   : > { %1540 = vmatpush.bf16.msra.mxu0 %v10529_v0  ;;  %1556 = vmatpush.bf16.msrb.mxu1 %v10535_v24  ;;  %v10555_v24 = vld [vmem:[%s16993_s1 + $0x13c] sm:$0xf] }
 0x7c3   : > { %1541 = vmatpush.bf16.msra.mxu0 %v10528_v4  ;;  %1557 = vmatpush.bf16.msrb.mxu1 %v10534_v26  ;;  %v10260_v26 = vld [vmem:[%s16993_s1 + $0x144] sm:$0xf0] }
 0x7c7   : > { %1558 = vmatpush.bf16.msrb.mxu1 %v10533_v27  ;;  %v10557_v27 = vld [vmem:[%s16993_s1 + $0x148] sm:$0xf0] }
 0x7cb   : > { %1559 = vmatpush.bf16.msrb.mxu1 %v10532_v29 }
 0x829   : > { %v1228_v46 = vpop.xlane.xlu0 %1227 }
 0x82a   : > { %v1231_v49 = vmul.f32 %v1228_v46, %v11922_v56 }
 0x82c   : > { %v1233_v51 = vadd.f32 1e-05, %v1231_v49 }
 0x82e   : > { %11388 = vrsqrt.f32 %v1233_v51  ;;  %vm1241_vm8 = vweird.f32 %v1233_v51 }
 0x831   : > { %v1230_v54 = vpop.xlane.xlu1 %1229 }
 0x832   : > { %v1232_v55 = vmul.f32 %v1230_v54, %v11922_v56 }
 0x834   : > { %v11389_v59 = vpop.eup %11388  ;;  %v1234_v63 = vadd.f32 1e-05, %v1232_v55 }
 0x835   : > { %v1236_v61 = vmul.f32 %v11389_v59, %v1233_v51  ;;  %vm1242_vm7 = vweird.f32 %v11389_v59 }
 0x836   : > { %11390 = vrsqrt.f32 %v1234_v63  ;;  %vm1243_vm9 = vmor %vm1241_vm8, %vm1242_vm7  ;;  %vm1251_vm11 = vweird.f32 %v1234_v63 }
 0x837   : > { %v1237_v2 = vmul.f32 %v11389_v59, %v1236_v61 }
 0x839   : > { %v1238_v3 = vmul.f32 0.5, %v1237_v2 }
 0x83b   : > { %v1239_v6 = vsub.f32 1.5, %v1238_v3 }
 0x83c   : > { %v11391_v7 = vpop.eup %11390 }
 0x83d   : > { %v1240_v8 = vmul.f32 %v11389_v59, %v1239_v6  ;;  %v1246_v9 = vmul.f32 %v11391_v7, %v1234_v63  ;;  %vm1252_vm10 = vweird.f32 %v11391_v7  ;;  %v10282_v6 = vld [vmem:[%s16993_s1 + $0x168] sm:$0xf] }
 0x83e   : > { %vm1253_vm12 = vmor %vm1251_vm11, %vm1252_vm10 }
 0x83f   : > { %v1247_v10 = vmul.f32 %v11391_v7, %v1246_v9  ;;  %v1244_v11 = vsel %vm1243_vm9, %v11389_v59, %v1240_v8  ;;  %v10561_v8 = vld [vmem:[%s16993_s1 + $0x16c] sm:$0xf] }
 0x840   : > { %v1255_v14 = vmul.f32 %v1244_v11, %v11925_v60  ;;  %v10527_v60 = vld [vmem:[#allocation7 + $0x18] sm:$0xff]  ;;  %v10290_v11 = vld [vmem:[%s16993_s1 + $0x170] sm:$0xf] }
 0x841   : > { %v1248_v12 = vmul.f32 0.5, %v1247_v10  ;;  %1542 = vmatpush.bf16.msra.mxu0 %v10527_v60  ;;  %v10284_v10 = vld [vmem:[%s16993_s1 + $0x174] sm:$0xf0]  ;;  %v10556_v60 = vld [vmem:[%s16993_s1 + $0x140] sm:$0xf0] }
 0x842   : > { %v1261_v30 = vmul.f32 %v11343_v15, %v1255_v14 }
 0x843   : > { %v1249_v13 = vsub.f32 1.5, %v1248_v12  ;;  %v10563_v12 = vld [vmem:[%s16993_s1 + $0x178] sm:$0xf0] }
 0x844   : > { %v1267_v21 = vadd.f32 %v11344_v19, %v1261_v30  ;;  %v10291_v14 = vor.u32 %v10563_v12, %v10290_v11  ;;  %v10272_v30 = vld [vmem:[%s16993_s1 + $0x15c] sm:$0xf0] }
 0x845   : > { %v1250_v16 = vmul.f32 %v11391_v7, %v1249_v13  ;;  %1543 = vmatpush.bf16.msra.mxu0 %v10526_v25  ;;  %v10287_v13 = vor.u32 %v10561_v8, %v10284_v10  ;;  %v10198_v8 = vld [vmem:[%s16993_s1 + $0xc0] sm:$0xf]  ;;  %v10540_v10 = vld [vmem:[%s16993_s1 + $0xc4] sm:$0xf] }
 0x847   : > { %v1254_v17 = vsel %vm1253_vm12, %v11391_v7, %v1250_v16  ;;  %v10562_v7 = vld [vmem:[%s16993_s1 + $0x170] sm:$0xf0]  ;;  %1805 = vmatpush.bf16.msra.mxu3 %v10287_v13  ;;  %v10559_v16 = vld [vmem:[%s16993_s1 + $0x158] sm:$0xf0]  ;;  %v10200_v13 = vld [vmem:[%s16993_s1 + $0xcc] sm:$0xf0] }
 0x848   : > { %v1256_v18 = vmul.f32 %v1254_v17, %v11930_v62  ;;  %v10525_v62 = vld [vmem:[#allocation7 + $0x8] sm:$0xff]  ;;  %v10283_v9 = vor.u32 %v10562_v7, %v10282_v6  ;;  %v10558_v17 = vld [vmem:[%s16993_s1 + $0x154] sm:$0xf] }
 0x849   : > { %1544 = vmatpush.bf16.msra.mxu0 %v10525_v62  ;;  %v10266_v62 = vld [vmem:[%s16993_s1 + $0x140] sm:$0xf] }
 0x84a   : > { %v1262_v20 = vmul.f32 %v11343_v15, %v1256_v18  ;;  %1791 = vmatpush.bf16.msrb.mxu2 %v10283_v9  ;;  %v10270_v15 = vld [vmem:[%s16993_s1 + $0x150] sm:$0xf]  ;;  %v10267_v29 = vor.u32 %v10557_v27, %v10266_v62  ;;  %v10541_v9 = vld [vmem:[%s16993_s1 + $0xc8] sm:$0xf0] }
 0x84b   : > { %v10271_v18 = vor.u32 %v10559_v16, %v10270_v15  ;;  %v10199_v12 = vor.u32 %v10541_v9, %v10198_v8  ;;  %v10542_v15 = vld [vmem:[%s16993_s1 + $0xd0] sm:$0xf0] }
 0x84c   : > { %v1268_v22 = vadd.f32 %v11344_v19, %v1262_v20  ;;  %v10278_v19 = vld [vmem:[%s16993_s1 + $0x158] sm:$0xf]  ;;  %v10560_v20 = vld [vmem:[%s16993_s1 + $0x160] sm:$0xf0] }
 0x84d   : > { %1545 = vmatpush.bf16.msra.mxu0 %v10524_v28  ;;  %v10263_v28 = vor.u32 %v10555_v24, %v10260_v26 }
 0x84e   : > { %v1269_v23 = vpack.c.bf16 %v1268_v22, %v1267_v21  ;;  %1792 = vmatpush.bf16.msrb.mxu2 %v10271_v18 }
 0x850   : > { %1380 = vmatmul.bf16.vlgmr.msra.gmra.mxu2 %v1269_v23  ;;  %1394 = vmatmul.bf16.vlgmr.msrb.gmra.mxu3 %v1269_v23  ;;  %v10258_v23 = vld [vmem:[%s16993_s1 + $0x138] sm:$0xf] }
 0x851   : > { %1819 = vmatpush.bf16.msrb.mxu0 %v10291_v14  ;;  %v10259_v25 = vor.u32 %v10556_v60, %v10258_v23  ;;  %v10206_v14 = vld [vmem:[%s16993_s1 + $0xc8] sm:$0xf] }
 0x852   : > { %v10207_v18 = vor.u32 %v10542_v15, %v10206_v14 }
 0x853   : > { %1793 = vmatpush.bf16.msrb.mxu2 %v10259_v25 }
 0x8d3   : > { %v1381_v32 = vpop.f32.mrf.mxu2  ;;  %v1395_v33 = vpop.f32.mrf.mxu3 }
 0x8d4   : > { %v1382_v36 = vadd.f32 %v1381_v32, %v1288_v34  ;;  %v1396_v37 = vadd.f32 %v1395_v33, %v1289_v35  ;;  %v10553_v32 = vld [vmem:[%s16993_s1 + $0x128] sm:$0xf0]  ;;  %v10552_v33 = vld [vmem:[%s16993_s1 + $0x124] sm:$0xf] }
 0x8d6   : > { %v1400_v42 = vmax.f32 %v1382_v36, 0.0  ;;  %v1401_v43 = vmax.f32 %v1396_v37, 0.0  ;;  %v10254_v36 = vld [vmem:[%s16993_s1 + $0x128] sm:$0xf]  ;;  %v10554_v37 = vld [vmem:[%s16993_s1 + $0x130] sm:$0xf0] }
 0x8db   : > { %v1383_v38 = vpop.f32.mrf.mxu2  ;;  %v1397_v39 = vpop.f32.mrf.mxu3 }
 0x8dc   : > { %v1384_v40 = vadd.f32 %v1383_v38, %v1288_v34  ;;  %v1398_v41 = vadd.f32 %v1397_v39, %v1289_v35  ;;  %v10247_v34 = vor.u32 %v10553_v32, %v10246_v31  ;;  %v10248_v35 = vld [vmem:[%s16993_s1 + $0x12c] sm:$0xf0]  ;;  %v10255_v39 = vor.u32 %v10554_v37, %v10254_v36 }
 0x8dd   : > { %v10251_v38 = vor.u32 %v10552_v33, %v10248_v35 }
 0x8de   : > { %v1402_v44 = vmax.f32 %v1384_v40, 0.0  ;;  %v1403_v45 = vmax.f32 %v1398_v41, 0.0  ;;  %1794 = vmatpush.bf16.msrb.mxu2 %v10247_v34  ;;  %v10234_v40 = vld [vmem:[%s16993_s1 + $0x108] sm:$0xf]  ;;  %v10550_v41 = vld [vmem:[%s16993_s1 + $0x110] sm:$0xf0] }
 0x8df   : > { %v11346_v34 = vld [vmem:[%s17003_s11] ss:$0 sm:$0xff] }
 0x8e0   : > { %v1404_v46 = vpack.c.bf16 %v1402_v44, %v1400_v42  ;;  %v1405_v47 = vpack.c.bf16 %v1403_v45, %v1401_v43  ;;  %v10549_v42 = vld [vmem:[%s16993_s1 + $0x10c] sm:$0xf]  ;;  %v10235_v43 = vor.u32 %v10550_v41, %v10234_v40  ;;  %v10236_v44 = vld [vmem:[%s16993_s1 + $0x114] sm:$0xf0]  ;;  %v10242_v45 = vld [vmem:[%s16993_s1 + $0x110] sm:$0xf] }
 0x8e2   : > { %1546 = vmatmul.bf16.vlgmr.msra.gmra.mxu0 %v1404_v46  ;;  %1560 = vmatmul.bf16.vlgmr.msrb.gmra.mxu1 %v1405_v47  ;;  %v10551_v46 = vld [vmem:[%s16993_s1 + $0x118] sm:$0xf0]  ;;  %v10239_v47 = vor.u32 %v10549_v42, %v10236_v44 }
 0x8e3   : > { %1795 = vmatpush.bf16.msrb.mxu2 %v10235_v43 }
 0x95f   : > { %v1547_v49 = vpop.f32.mrf.mxu0  ;;  %v1561_v50 = vpop.f32.mrf.mxu1 }
 0x960   : > { %v1548_v51 = vadd.f32 %v11345_v48, %v1547_v49  ;;  %v10222_v49 = vld [vmem:[%s16993_s1 + $0xf0] sm:$0xf] }
 0x962   : > { %v1562_v52 = vadd.f32 %v1561_v50, %v1548_v51  ;;  %v10547_v50 = vld [vmem:[%s16993_s1 + $0xf8] sm:$0xf0]  ;;  %v10546_v51 = vld [vmem:[%s16993_s1 + $0xf4] sm:$0xf] }
 0x964   : > { %v1566_v53 = vadd.f32 %v1562_v52, %v1267_v21  ;;  %v10275_v21 = vor.u32 %v10558_v17, %v10272_v30  ;;  %v10223_v52 = vor.u32 %v10547_v50, %v10222_v49  ;;  %v10203_v17 = vor.u32 %v10540_v10, %v10200_v13 }
 0x966   : > { %1568 = vadd.xlane.f32.xlu0 %v1566_v53  ;;  %1806 = vmatpush.bf16.msra.mxu3 %v10275_v21 }
 0x967   : > { %v1549_v54 = vpop.f32.mrf.mxu0  ;;  %v1563_v57 = vpop.f32.mrf.mxu1  ;;  %1796 = vmatpush.bf16.msrb.mxu2 %v10223_v52 }
 0x968   : > { %v1550_v55 = vadd.f32 %v11345_v48, %v1549_v54  ;;  %v10243_v48 = vor.u32 %v10551_v46, %v10242_v45  ;;  %v10230_v54 = vld [vmem:[%s16993_s1 + $0xf8] sm:$0xf] }
 0x96a   : > { %v1564_v58 = vadd.f32 %v1563_v57, %v1550_v55  ;;  %1807 = vmatpush.bf16.msra.mxu3 %v10263_v28  ;;  %v10548_v55 = vld [vmem:[%s16993_s1 + $0x100] sm:$0xf0] }
 0x96c   : > { %v1567_v59 = vadd.f32 %v1564_v58, %v1268_v22  ;;  %v10279_v22 = vor.u32 %v10560_v20, %v10278_v19  ;;  %v10231_v58 = vor.u32 %v10548_v55, %v10230_v54 }
 0x96e   : > { %1570 = vadd.xlane.f32.xlu1 %v1567_v59  ;;  %1820 = vmatpush.bf16.msrb.mxu0 %v10279_v22 }
 0x96f   : > { %1808 = vmatpush.bf16.msra.mxu3 %v10251_v38 }
 0x972   : > { %1821 = vmatpush.bf16.msrb.mxu0 %v10267_v29 }
 0x973   : > { %1809 = vmatpush.bf16.msra.mxu3 %v10239_v47 }
 0x976   : > { %1822 = vmatpush.bf16.msrb.mxu0 %v10255_v39  ;;  %v11347_v39 = vld [vmem:[%s17004_s12] ss:$0 sm:$0xff] }
 0x97a   : > { %1823 = vmatpush.bf16.msrb.mxu0 %v10243_v48 }
 0x97e   : > { %1824 = vmatpush.bf16.msrb.mxu0 %v10231_v58 }
 0x9d9   : > { %v1569_v63 = vpop.xlane.xlu0 %1568 }
 0x9da   : > { %v1572_v61 = vmul.f32 %v1569_v63, %v11922_v56  ;;  %v10544_v63 = vld [vmem:[%s16993_s1 + $0xe0] sm:$0xf0] }
 0x9dc   : > { %v11951_v0 = vsub.f32 %v1566_v53, %v1572_v61  ;;  %v10224_v53 = vld [vmem:[%s16993_s1 + $0xfc] sm:$0xf0]  ;;  %v10543_v61 = vld [vmem:[%s16993_s1 + $0xdc] sm:$0xf] }
 0x9dd   : > { %v10227_v57 = vor.u32 %v10546_v51, %v10224_v53 }
 0x9de   : > { %v1576_v1 = vmul.f32 %v11951_v0, %v11951_v0 }
 0x9df   : > { %1810 = vmatpush.bf16.msra.mxu3 %v10227_v57 }
 0x9e0   : > { %1578 = vadd.xlane.f32.xlu0 %v1576_v1 }
 0x9e1   : > { %v1571_v2 = vpop.xlane.xlu1 %1570 }
 0x9e2   : > { %v1573_v3 = vmul.f32 %v1571_v2, %v11922_v56  ;;  %v10212_v2 = vld [vmem:[%s16993_s1 + $0xe4] sm:$0xf0] }
 0x9e3   : > { %v10215_v6 = vor.u32 %v10543_v61, %v10212_v2 }
 0x9e4   : > { %v11956_v4 = vsub.f32 %v1567_v59, %v1573_v3  ;;  %v10210_v59 = vld [vmem:[%s16993_s1 + $0xd8] sm:$0xf]  ;;  %v10218_v3 = vld [vmem:[%s16993_s1 + $0xe0] sm:$0xf] }
 0x9e5   : > { %v10211_v1 = vor.u32 %v10544_v63, %v10210_v59  ;;  %1811 = vmatpush.bf16.msra.mxu3 %v10215_v6 }
 0x9e6   : > { %v1577_v5 = vmul.f32 %v11956_v4, %v11956_v4 }
 0x9e7   : > { %1797 = vmatpush.bf16.msrb.mxu2 %v10211_v1 }
 0x9e8   : > { %1580 = vadd.xlane.f32.xlu1 %v1577_v5  ;;  %v10545_v5 = vld [vmem:[%s16993_s1 + $0xe8] sm:$0xf0] }
 0x9e9   : > { %v10219_v7 = vor.u32 %v10545_v5, %v10218_v3  ;;  %1812 = vmatpush.bf16.msra.mxu3 %v10203_v17 }
 0x9eb   : > { %1825 = vmatpush.bf16.msrb.mxu0 %v10219_v7  ;;  %1798 = vmatpush.bf16.msrb.mxu2 %v10199_v12 }
 0x9ef   : > { %1826 = vmatpush.bf16.msrb.mxu0 %v10207_v18 }
 0xa53   : > { %v1579_v11 = vpop.xlane.xlu0 %1578 }
 0xa54   : > { %v1582_v16 = vmul.f32 %v1579_v11, %v11922_v56 }
 0xa56   : > { %v1584_v30 = vadd.f32 1e-05, %v1582_v16 }
 0xa58   : > { %11392 = vrsqrt.f32 %v1584_v30  ;;  %vm1592_vm14 = vweird.f32 %v1584_v30 }
 0xa5b   : > { %v1581_v19 = vpop.xlane.xlu1 %1580 }
 0xa5c   : > { %v1583_v20 = vmul.f32 %v1581_v19, %v11922_v56 }
 0xa5e   : > { %v11393_v21 = vpop.eup %11392  ;;  %v1585_v22 = vadd.f32 1e-05, %v1583_v20 }
 0xa5f   : > { %v1587_v23 = vmul.f32 %v11393_v21, %v1584_v30  ;;  %vm1593_vm13 = vweird.f32 %v11393_v21 }
 0xa60   : > { %11394 = vrsqrt.f32 %v1585_v22  ;;  %vm1594_vm15 = vmor %vm1592_vm14, %vm1593_vm13  ;;  %vm1602_vm7 = vweird.f32 %v1585_v22 }
 0xa61   : > { %v1588_v60 = vmul.f32 %v11393_v21, %v1587_v23 }
 0xa63   : > { %v1589_v24 = vmul.f32 0.5, %v1588_v60 }
 0xa65   : > { %v1590_v25 = vsub.f32 1.5, %v1589_v24 }
 0xa66   : > { %v11395_v26 = vpop.eup %11394 }
 0xa67   : > { %v1591_v62 = vmul.f32 %v11393_v21, %v1590_v25  ;;  %v1597_v27 = vmul.f32 %v11395_v26, %v1585_v22  ;;  %vm1603_vm6 = vweird.f32 %v11395_v26 }
 0xa68   : > { %vm1604_vm8 = vmor %vm1602_vm7, %vm1603_vm6  ;;  %vm4990_vm7 = vcmask 1047556  }
 0xa69   : > { %v1598_v28 = vmul.f32 %v11395_v26, %v1597_v27  ;;  %v1595_v29 = vsel %vm1594_vm15, %v11393_v21, %v1591_v62 }
 0xa6a   : > { %v1606_v33 = vmul.f32 %v1595_v29, %v11951_v0 }
 0xa6b   : > { %v1599_v31 = vmul.f32 0.5, %v1598_v28 }
 0xa6c   : > { %v1612_v38 = vmul.f32 %v11346_v34, %v1606_v33 }
 0xa6d   : > { %v1600_v32 = vsub.f32 1.5, %v1599_v31 }
 0xa6e   : > { %v12114_v41 = vadd.f32 %v11347_v39, %v1612_v38 }
 0xa6f   : > { %v1601_v35 = vmul.f32 %v11395_v26, %v1600_v32 }
 0xa71   : > { %v1605_v36 = vsel %vm1604_vm8, %v11395_v26, %v1601_v35  ;;  %vm9502_vm8 = vcmask 392192  }
 0xa72   : > { %v1607_v37 = vmul.f32 %v1605_v36, %v11956_v4  ;;  %v10195_v4 = vld [vmem:[%s16994_s2 + $0x3] sm:$0x7] }
 0xa73   : > { %v1659_v44 = vperm.slane %v10195_v4, 2  ;;  %v1658_v50 = vperm.slane %v10195_v4, 1  ;;  %v1657_v52 = vperm.slane %v10195_v4, 0 }
 0xa74   : > { %v1613_v40 = vmul.f32 %v11346_v34, %v1607_v37 }
 0xa76   : > { %v12116_v42 = vadd.f32 %v11347_v39, %v1613_v40 }
 0xa78   : > { %v1620_v0 = vpack.c.bf16 %v12116_v42, %v12114_v41 }
 0xa7a   : > { %1799 = vmatmul.bf16.vlgmr.msrb.gmra.mxu2 %v1620_v0  ;;  %1813 = vmatmul.bf16.vlgmr.msra.gmra.mxu3 %v1620_v0 }
 0xa7b   : > { %1827 = vmatmul.bf16.vlgmr.msrb.gmra.mxu0 %v1620_v0 }
 0xaf8   : > { %v1828_v43 = vpop.f32.mrf.mxu0 }
 0xaf9   : > { %v1829_v48 = vadd.f32 %v1828_v43, %v1659_v44 }
 0xafd   : > { %v1800_v45 = vpop.f32.mrf.mxu2  ;;  %v1814_v46 = vpop.f32.mrf.mxu3 }
 0xafe   : > { %v1815_v55 = vadd.f32 %v1814_v46, %v1658_v50  ;;  %v1801_v63 = vadd.f32 %v1800_v45, %v1657_v52 }
 0xb00   : > { %v1830_v47 = vpop.f32.mrf.mxu0 }
 0xb01   : > { %v1831_v49 = vadd.f32 %v1830_v47, %v1659_v44 }
 0xb03   : > { %v1835_v51 = vpack.c.bf16 %v1831_v49, %v1829_v48 }
 0xb05   : > { %2035 = vrot.lane.b32.xlu2 %v1835_v51, %s11550_s22  ;;  %1954 = vrot.lane.b32.xlu0 %v1835_v51, %s11549_s20  ;;  %v1802_v53 = vpop.f32.mrf.mxu2  ;;  %v1816_v54 = vpop.f32.mrf.mxu3 }
 0xb06   : > { %1891 = vmatpush.bf16.msra.mxu2 %v1835_v51  ;;  %v1817_v57 = vadd.f32 %v1816_v54, %v1658_v50  ;;  %v1803_v58 = vadd.f32 %v1802_v53, %v1657_v52 }
 0xb08   : > { %v1834_v59 = vpack.c.bf16 %v1817_v57, %v1815_v55  ;;  %v1833_v1 = vpack.c.bf16 %v1803_v58, %v1801_v63 }
 0xb0a   : > { %1906 = vrot.lane.b32.xlu1 %v1834_v59, %s11549_s20  ;;  %v1840_v61 = vsel %vm800_vm0, %v1834_v59, 0 }
 0xb0b   : > { %1849 = vmatpush.bf16.xpose.msra.mxu1 %v1840_v61 }
 0xb0d   : > { %2116 = vrot.lane.b32.xlu0 %v1835_v51, %s11551_s23  ;;  %1903 = vrot.lane.b32.xlu2 %v1833_v1, %s11549_s20 }
 0xb12   : > { %1986 = vrot.lane.b32.xlu1 %v1833_v1, %s11550_s22  ;;  %10292 = vmatmul.msk.bf16.vlgmr.msra.gmra.mxu1 %vm800_vm0, %v1833_v1 }
 0xb15   : > { %1988 = vrot.lane.b32.xlu0 %v1834_v59, %s11550_s22  ;;  %2067 = vrot.lane.b32.xlu2 %v1833_v1, %s11551_s23 }
 0xb1d   : > { %2069 = vrot.lane.b32.xlu2 %v1834_v59, %s11551_s23 }
 0xb5f   : > { %v2036_v2 = vpop.permute.xlu2 %2035 }
 0xb60   : > { %2048 = vmatpush.bf16.msrb.mxu2 %v2036_v2 }
 0xb67   : > { %v1904_v3 = vpop.permute.xlu2 %1903 }
 0xb6f   : > { %v2068_v5 = vpop.permute.xlu2 %2067 }
 0xb77   : > { %v1955_v6 = vpop.permute.xlu0 %1954  ;;  %v2070_v7 = vpop.permute.xlu2 %2069 }
 0xb78   : > { %1967 = vmatpush.bf16.msra.mxu0 %v1955_v6  ;;  %v2075_v10 = vsel %vm800_vm0, %v2070_v7, 0 }
 0xb7c   : > { %v1907_v8 = vpop.permute.xlu1 %1906 }
 0xb7d   : > { %v1912_v9 = vsel %vm800_vm0, %v1907_v8, 0 }
 0xb7e   : > { %1921 = vmatpush.bf16.xpose.msrb.mxu3 %v1912_v9 }
 0xb7f   : > { %v2117_v11 = vpop.permute.xlu0 %2116 }
 0xb80   : > { %2129 = vmatpush.bf16.msrb.mxu0 %v2117_v11 }
 0xb84   : > { %v1987_v14 = vpop.permute.xlu1 %1986 }
 0xb85   : > { %10294 = vmatmul.msk.bf16.vlgmr.msrb.gmra.mxu3 %vm800_vm0, %v1904_v3 }
 0xb86   : > { %2084 = vmatpush.bf16.xpose.msra.mxu3 %v2075_v10 }
 0xb87   : > { %v1989_v12 = vpop.permute.xlu0 %1988 }
 0xb88   : > { %v1994_v13 = vsel %vm800_vm0, %v1989_v12, 0 }
 0xb89   : > { %2003 = vmatpush.bf16.xpose.msrb.mxu1 %v1994_v13 }
 0xb8f   : > { %v1851_v15 = vpop.f32.mrf.mxu1 }
 0xb90   : > { %v1856_v16 = vmul.f32 0.17677669, %v1851_v15  ;;  %10296 = vmatmul.msk.bf16.vlgmr.msrb.gmra.mxu1 %vm800_vm0, %v1987_v14 }
 0xb92   : > { %v1858_v17 = vsel %vm823_vm1, %v1856_v16, -inf }
 0xb93   : > { %1859 = vmax.xlane.f32.xlu0 %v1858_v17 }
 0xb95   : > { %10298 = vmatmul.msk.bf16.vlgmr.msra.gmra.mxu3 %vm800_vm0, %v2068_v5 }
 0xb97   : > { %v1853_v18 = vpop.f32.mrf.mxu1 }
 0xb98   : > { %v1857_v30 = vmul.f32 0.17677669, %v1853_v18 }
 0xb9a   : > { %v1861_v19 = vsel %vm823_vm1, %v1857_v30, -inf }
 0xb9b   : > { %1862 = vmax.xlane.f32.xlu2 %v1861_v19 }
 0xc06   : > { %v1860_v20 = vpop.xlane.xlu0 %1859 }
 0xc07   : > { %v1864_v21 = vsub.f32 %v1856_v16, %v1860_v20 }
 0xc08   : > { %v1923_v22 = vpop.f32.mrf.mxu3 }
 0xc09   : > { %v1928_v23 = vmul.f32 0.17677669, %v1923_v22  ;;  %v1866_v60 = vmul.f32 1.442695, %v1864_v21 }
 0xc0b   : > { %v1930_v24 = vsel %vm823_vm1, %v1928_v23, -inf  ;;  %11396 = vpow2.f32 %v1866_v60 }
 0xc0c   : > { %1931 = vmax.xlane.f32.xlu0 %v1930_v24 }
 0xc0d   : > { %v2005_v25 = vpop.f32.mrf.mxu1 }
 0xc0e   : > { %v2010_v26 = vmul.f32 0.17677669, %v2005_v25  ;;  %v1863_v28 = vpop.xlane.xlu2 %1862 }
 0xc0f   : > { %v1865_v33 = vsub.f32 %v1857_v30, %v1863_v28 }
 0xc10   : > { %v1925_v62 = vpop.f32.mrf.mxu3  ;;  %v2012_v27 = vsel %vm823_vm1, %v2010_v26, -inf }
 0xc11   : > { %2013 = vmax.xlane.f32.xlu1 %v2012_v27  ;;  %v11397_v29 = vpop.eup %11396  ;;  %v1868_v37 = vmul.f32 1.442695, %v1865_v33  ;;  %v1929_v38 = vmul.f32 0.17677669, %v1925_v62 }
 0xc12   : > { %v1870_v35 = vsel %vm823_vm1, %v11397_v29, 0.0 }
 0xc13   : > { %11398 = vpow2.f32 %v1868_v37  ;;  %v1933_v40 = vsel %vm823_vm1, %v1929_v38, -inf }
 0xc15   : > { %v2007_v31 = vpop.f32.mrf.mxu1 }
 0xc16   : > { %v2011_v32 = vmul.f32 0.17677669, %v2007_v31 }
 0xc18   : > { %v2086_v34 = vpop.f32.mrf.mxu3  ;;  %v2015_v36 = vsel %vm823_vm1, %v2011_v32, -inf }
 0xc19   : > { %1871 = vadd.xlane.f32.xlu1 %v1870_v35  ;;  %2016 = vmax.xlane.f32.xlu0 %v2015_v36  ;;  %v11399_v4 = vpop.eup %11398  ;;  %v2091_v45 = vmul.f32 0.17677669, %v2086_v34 }
 0xc1a   : > { %v1873_v44 = vsel %vm823_vm1, %v11399_v4, 0.0 }
 0xc1b   : > { %v2093_v46 = vsel %vm823_vm1, %v2091_v45, -inf }
 0xc20   : > { %v2088_v39 = vpop.f32.mrf.mxu3 }
 0xc21   : > { %v2092_v0 = vmul.f32 0.17677669, %v2088_v39  ;;  %1934 = vmax.xlane.f32.xlu0 %v1933_v40 }
 0xc23   : > { %v2096_v43 = vsel %vm823_vm1, %v2092_v0, -inf }
 0xc24   : > { %2097 = vmax.xlane.f32.xlu2 %v2096_v43 }
 0xc29   : > { %1874 = vadd.xlane.f32.xlu0 %v1873_v44 }
 0xc31   : > { %2094 = vmax.xlane.f32.xlu0 %v2093_v46 }
 0xc7f   : > { %v1932_v47 = vpop.xlane.xlu0 %1931 }
 0xc80   : > { %v1936_v48 = vsub.f32 %v1928_v23, %v1932_v47 }
 0xc82   : > { %v1938_v49 = vmul.f32 1.442695, %v1936_v48 }
 0xc84   : > { %11400 = vpow2.f32 %v1938_v49  ;;  %v2014_v50 = vpop.xlane.xlu1 %2013 }
 0xc85   : > { %v2018_v51 = vsub.f32 %v2010_v26, %v2014_v50 }
 0xc87   : > { %v2020_v52 = vmul.f32 1.442695, %v2018_v51 }
 0xc89   : > { %11402 = vpow2.f32 %v2020_v52 }
 0xc8a   : > { %v11401_v53 = vpop.eup %11400 }
 0xc8b   : > { %v1942_v54 = vsel %vm823_vm1, %v11401_v53, 0.0 }
 0xc8c   : > { %v2017_v55 = vpop.xlane.xlu0 %2016  ;;  %1943 = vadd.xlane.f32.xlu0 %v1942_v54  ;;  %v1872_v6 = vpop.xlane.xlu1 %1871 }
 0xc8d   : > { %v2019_v57 = vsub.f32 %v2011_v32, %v2017_v55 }
 0xc8f   : > { %v11403_v58 = vpop.eup %11402  ;;  %v2022_v59 = vmul.f32 1.442695, %v2019_v57 }
 0xc90   : > { %v2024_v63 = vsel %vm823_vm1, %v11403_v58, 0.0 }
 0xc91   : > { %11404 = vpow2.f32 %v2022_v59  ;;  %2025 = vadd.xlane.f32.xlu2 %v2024_v63 }
 0xc94   : > { %v1935_v61 = vpop.xlane.xlu0 %1934 }
 0xc95   : > { %v1937_v1 = vsub.f32 %v1929_v38, %v1935_v61  ;;  %v10572_v61 = vld [vmem:[#allocation3 + $0x78] sm:$0xff] }
 0xc96   : > { %2226 = vmatpush.bf16.msra.mxu1 %v10572_v61 }
 0xc97   : > { %v11405_v2 = vpop.eup %11404  ;;  %v1940_v3 = vmul.f32 1.442695, %v1937_v1  ;;  %v2098_v5 = vpop.xlane.xlu2 %2097  ;;  %v10571_v1 = vld [vmem:[#allocation3 + $0x70] sm:$0xff] }
 0xc98   : > { %v2100_v7 = vsub.f32 %v2092_v0, %v2098_v5  ;;  %v2027_v8 = vsel %vm823_vm1, %v11405_v2, 0.0  ;;  %v10568_v5 = vld [vmem:[#allocation3 + $0x58] sm:$0xff] }
 0xc99   : > { %11406 = vpow2.f32 %v1940_v3  ;;  %2028 = vadd.xlane.f32.xlu2 %v2027_v8  ;;  %v10569_v3 = vld [vmem:[#allocation3 + $0x60] sm:$0xff] }
 0xc9a   : > { %11408 = vrcp.f32 %v1872_v6  ;;  %v2103_v9 = vmul.f32 1.442695, %v2100_v7  ;;  %2227 = vmatpush.bf16.msra.mxu1 %v10571_v1  ;;  %v10567_v6 = vld [vmem:[#allocation3 + $0x50] sm:$0xff]  ;;  %v10566_v7 = vld [vmem:[#allocation3 + $0x48] sm:$0xff]  ;;  %v10565_v8 = vld [vmem:[#allocation3 + $0x40] sm:$0xff] }
 0xc9b   : > { %v10360_v1 = vld [vmem:[#allocation5 + $0xa8] sm:$0xf0] }
 0xc9c   : > { %v1875_v10 = vpop.xlane.xlu0 %1874 }
 0xc9d   : > { %11410 = vrcp.f32 %v1875_v10 }
 0xc9e   : > { %11412 = vpow2.f32 %v2103_v9 }
 0xc9f   : > { %v11407_v11 = vpop.eup %11406 }
 0xca0   : > { %v1945_v12 = vsel %vm823_vm1, %v11407_v11, 0.0  ;;  %v11409_v13 = vpop.eup %11408 }
 0xca1   : > { %1946 = vadd.xlane.f32.xlu2 %v1945_v12  ;;  %v1878_v15 = vmul.f32 %v11409_v13, %v11397_v29 }
 0xca3   : > { %v11411_v14 = vpop.eup %11410 }
 0xca4   : > { %v1879_v16 = vmul.f32 %v11411_v14, %v11399_v4  ;;  %v2095_v17 = vpop.xlane.xlu0 %2094  ;;  %v11413_v18 = vpop.eup %11412 }
 0xca5   : > { %v2099_v30 = vsub.f32 %v2091_v45, %v2095_v17  ;;  %v2108_v21 = vsel %vm823_vm1, %v11413_v18, 0.0 }
 0xca6   : > { %v1880_v19 = vpack.c.bf16 %v1879_v16, %v1878_v15  ;;  %v11348_v16 = vld [vmem:[%s16996_s4 + $0x1] ss:$0 sm:$0xff] }
 0xca7   : > { %v2101_v20 = vmul.f32 1.442695, %v2099_v30 }
 0xca8   : > { %10293 = vmatmul.msk.bf16.vlgmr.msra.gmra.mxu2 %vm823_vm1, %v1880_v19 }
 0xca9   : > { %11414 = vpow2.f32 %v2101_v20  ;;  %2109 = vadd.xlane.f32.xlu2 %v2108_v21 }
 0xcaf   : > { %v11415_v22 = vpop.eup %11414 }
 0xcb0   : > { %v2105_v23 = vsel %vm823_vm1, %v11415_v22, 0.0 }
 0xcb1   : > { %2106 = vadd.xlane.f32.xlu1 %v2105_v23 }
 0xcff   : > { %v1944_v25 = vpop.xlane.xlu0 %1943 }
 0xd04   : > { %v2026_v60 = vpop.xlane.xlu2 %2025 }
 0xd05   : > { %11416 = vrcp.f32 %v2026_v60 }
 0xd0b   : > { %v11417_v26 = vpop.eup %11416 }
 0xd0c   : > { %v2029_v24 = vpop.xlane.xlu2 %2028  ;;  %v2032_v27 = vmul.f32 %v11417_v26, %v11403_v58 }
 0xd0d   : > { %11418 = vrcp.f32 %v2029_v24 }
 0xd0e   : > { %11420 = vrcp.f32 %v1944_v25 }
 0xd13   : > { %v11419_v62 = vpop.eup %11418 }
 0xd14   : > { %v2033_v28 = vmul.f32 %v11419_v62, %v11405_v2  ;;  %v1947_v29 = vpop.xlane.xlu2 %1946  ;;  %v11421_v32 = vpop.eup %11420  ;;  %v10570_v2 = vld [vmem:[#allocation3 + $0x68] sm:$0xff] }
 0xd15   : > { %11422 = vrcp.f32 %v1947_v29  ;;  %v1950_v34 = vmul.f32 %v11421_v32, %v11401_v53  ;;  %2228 = vmatpush.bf16.msra.mxu1 %v10570_v2 }
 0xd16   : > { %v2034_v31 = vpack.c.bf16 %v2033_v28, %v2032_v27  ;;  %v10588_v27 = vld [vmem:[#allocation5 + $0xf4] sm:$0xf0]  ;;  %v10587_v28 = vld [vmem:[#allocation5 + $0xf4] sm:$0xf] }
 0xd18   : > { %10297 = vmatmul.msk.bf16.vlgmr.msrb.gmra.mxu2 %vm823_vm1, %v2034_v31  ;;  %v10400_v31 = vld [vmem:[#allocation5 + $0xf8] sm:$0xf0] }
 0xd19   : > { %2229 = vmatpush.bf16.msra.mxu1 %v10569_v3  ;;  %v10403_v32 = vor.u32 %v10587_v28, %v10400_v31  ;;  %v10350_v3 = vld [vmem:[#allocation5 + $0x90] sm:$0xf]  ;;  %v10601_v31 = vld [vmem:[#allocation7 + $0xe0] sm:$0xff] }
 0xd1b   : > { %v11423_v33 = vpop.eup %11422  ;;  %2415 = vmatpush.bf16.msrb.mxu3 %v10403_v32 }
 0xd1c   : > { %v1951_v35 = vmul.f32 %v11423_v33, %v11407_v11  ;;  %v2110_v37 = vpop.xlane.xlu2 %2109  ;;  %v10390_v33 = vld [vmem:[#allocation5 + $0xe0] sm:$0xf] }
 0xd1d   : > { %11424 = vrcp.f32 %v2110_v37  ;;  %2230 = vmatpush.bf16.msra.mxu1 %v10568_v5  ;;  %v10392_v37 = vld [vmem:[#allocation5 + $0xe8] sm:$0xf0]  ;;  %v10576_v5 = vld [vmem:[#allocation5 + $0x94] sm:$0xf0] }
 0xd1e   : > { %v1952_v36 = vpack.c.bf16 %v1951_v35, %v1950_v34  ;;  %v10586_v34 = vld [vmem:[#allocation5 + $0xe4] sm:$0xf0]  ;;  %v10585_v35 = vld [vmem:[#allocation5 + $0xe4] sm:$0xf] }
 0xd20   : > { %10295 = vmatmul.msk.bf16.vlgmr.msra.gmra.mxu0 %vm823_vm1, %v1952_v36  ;;  %v10391_v36 = vor.u32 %v10586_v34, %v10390_v33 }
 0xd21   : > { %2231 = vmatpush.bf16.msra.mxu1 %v10567_v6  ;;  %v10575_v6 = vld [vmem:[#allocation5 + $0x94] sm:$0xf] }
 0xd23   : > { %v11425_v39 = vpop.eup %11424 }
 0xd24   : > { %v2107_v38 = vpop.xlane.xlu1 %2106  ;;  %v2114_v43 = vmul.f32 %v11425_v39, %v11413_v18  ;;  %v10382_v39 = vld [vmem:[#allocation5 + $0xd0] sm:$0xf] }
 0xd25   : > { %11426 = vrcp.f32 %v2107_v38  ;;  %2232 = vmatpush.bf16.msra.mxu1 %v10566_v7  ;;  %v10395_v38 = vor.u32 %v10585_v35, %v10392_v37  ;;  %v10351_v7 = vor.u32 %v10576_v5, %v10350_v3 }
 0xd27   : > { %2416 = vmatpush.bf16.msrb.mxu3 %v10395_v38 }
 0xd29   : > { %2233 = vmatpush.bf16.msra.mxu1 %v10565_v8  ;;  %v10352_v8 = vld [vmem:[#allocation5 + $0x98] sm:$0xf0] }
 0xd2b   : > { %v11427_v40 = vpop.eup %11426  ;;  %v1893_v0 = vpop.f32.mrf.mxu2 }
 0xd2c   : > { %v2113_v4 = vmul.f32 %v11427_v40, %v11415_v22  ;;  %v1898_v44 = vpack.c.bf16 %v1893_v0, %v1893_v0  ;;  %v10584_v40 = vld [vmem:[#allocation5 + $0xd4] sm:$0xf0]  ;;  %v10583_v0 = vld [vmem:[#allocation5 + $0xd4] sm:$0xf] }
 0xd2e   : > { %v2115_v45 = vpack.c.bf16 %v2114_v43, %v2113_v4  ;;  %1900 = vst.msk [vmem:[#allocation2] sm:$0xf] %vm866_vm2, %v1898_v44  ;;  %v10383_v43 = vor.u32 %v10584_v40, %v10382_v39  ;;  %v10384_v4 = vld [vmem:[#allocation5 + $0xd8] sm:$0xf0] }
 0xd2f   : > { %v10387_v44 = vor.u32 %v10583_v0, %v10384_v4  ;;  %v11349_v0 = vld [vmem:[%s16997_s5 + $0x1] ss:$0 sm:$0xff] }
 0xd30   : > { %10299 = vmatmul.msk.bf16.vlgmr.msrb.gmra.mxu0 %vm823_vm1, %v2115_v45  ;;  %v10374_v45 = vld [vmem:[#allocation5 + $0xc0] sm:$0xf] }
 0xd31   : > { %2417 = vmatpush.bf16.msrb.mxu3 %v10387_v44 }
 0xd33   : > { %v1895_v46 = vpop.f32.mrf.mxu2 }
 0xd34   : > { %v1899_v47 = vpack.c.bf16 %v1895_v46, %v1895_v46  ;;  %v10582_v46 = vld [vmem:[#allocation5 + $0xc4] sm:$0xf0] }
 0xd36   : > { %1901 = vst.msk [vmem:[#allocation2 + $0x4] sm:$0xf] %vm866_vm2, %v1899_v47  ;;  %v10581_v47 = vld [vmem:[#allocation5 + $0xc4] sm:$0xf] }
 0xd9b   : > { %v2050_v48 = vpop.f32.mrf.mxu2 }
 0xd9c   : > { %v2055_v54 = vpack.c.bf16 %v2050_v48, %v2050_v48  ;;  %v10375_v48 = vor.u32 %v10582_v46, %v10374_v45  ;;  %v11350_v46 = vld [vmem:[%s16998_s6 + $0x1] ss:$0 sm:$0xff] }
 0xd9d   : > { %v1969_v49 = vpop.f32.mrf.mxu0 }
 0xd9e   : > { %v1974_v50 = vpack.c.bf16 %v1969_v49, %v1969_v49  ;;  %v10376_v49 = vld [vmem:[#allocation5 + $0xc8] sm:$0xf0] }
 0xda0   : > { %1978 = vrot.lane.b32.xlu1 %v1974_v50, %s11551_s23  ;;  %v10379_v50 = vor.u32 %v10581_v47, %v10376_v49 }
 0xda2   : > { %2418 = vmatpush.bf16.msrb.mxu3 %v10379_v50 }
 0xda3   : > { %v2052_v51 = vpop.f32.mrf.mxu2 }
 0xda4   : > { %v2056_v52 = vpack.c.bf16 %v2052_v51, %v2052_v51  ;;  %v10366_v51 = vld [vmem:[#allocation5 + $0xb0] sm:$0xf] }
 0xda5   : > { %v1971_v53 = vpop.f32.mrf.mxu0 }
 0xda6   : > { %2061 = vrot.lane.b32.xlu0 %v2056_v52, %s11550_s22  ;;  %v1975_v57 = vpack.c.bf16 %v1971_v53, %v1971_v53  ;;  %v10580_v52 = vld [vmem:[#allocation5 + $0xb4] sm:$0xf0]  ;;  %v10579_v53 = vld [vmem:[#allocation5 + $0xb4] sm:$0xf] }
 0xda8   : > { %2059 = vrot.lane.b32.xlu1 %v2055_v54, %s11550_s22  ;;  %v10367_v54 = vor.u32 %v10580_v52, %v10366_v51  ;;  %v10600_v51 = vld [vmem:[#allocation7 + $0xd8] sm:$0xff]  ;;  %v10591_v52 = vld [vmem:[#allocation7 + $0x90] sm:$0xff] }
 0xdad   : > { %v2131_v55 = vpop.f32.mrf.mxu0 }
 0xdae   : > { %v2136_v59 = vpack.c.bf16 %v2131_v55, %v2131_v55  ;;  %v10368_v55 = vld [vmem:[#allocation5 + $0xb8] sm:$0xf0] }
 0xdb0   : > { %1980 = vrot.lane.b32.xlu1 %v1975_v57, %s11551_s23  ;;  %v10371_v57 = vor.u32 %v10579_v53, %v10368_v55  ;;  %v10599_v53 = vld [vmem:[#allocation7 + $0xd0] sm:$0xff]  ;;  %v10589_v55 = vld [vmem:[#allocation7 + $0x80] sm:$0xff] }
 0xdb2   : > { %2419 = vmatpush.bf16.msrb.mxu3 %v10371_v57  ;;  %v10597_v57 = vld [vmem:[#allocation7 + $0xc0] sm:$0xff] }
 0xdb5   : > { %v2133_v58 = vpop.f32.mrf.mxu0 }
 0xdb6   : > { %v2137_v63 = vpack.c.bf16 %v2133_v58, %v2133_v58  ;;  %v10358_v58 = vld [vmem:[#allocation5 + $0xa0] sm:$0xf] }
 0xdb8   : > { %2140 = vrot.lane.b32.xlu1 %v2136_v59, %s11549_s20  ;;  %2142 = vrot.lane.b32.xlu2 %v2137_v63, %s11549_s20  ;;  %v10578_v59 = vld [vmem:[#allocation5 + $0xa4] sm:$0xf0]  ;;  %v10577_v63 = vld [vmem:[#allocation5 + $0xa4] sm:$0xf] }
 0xdb9   : > { %v10359_v61 = vor.u32 %v10578_v59, %v10358_v58  ;;  %v10363_v2 = vor.u32 %v10577_v63, %v10360_v1  ;;  %v10339_v58 = vld [vmem:[%s17000_s8 + $0x2] sm:$0x3] }
 0xdba   : > { %v2318_v1 = vperm.slane %v10339_v58, 1 }
 0xdbb   : > { %2420 = vmatpush.bf16.msrb.mxu3 %v10363_v2 }
 0xe12   : > { %v1979_v9 = vpop.permute.xlu1 %1978  ;;  %v2143_v13 = vpop.permute.xlu2 %2142 }
 0xe13   : > { %1984 = vst.msk [vmem:[#allocation2] sm:$0xf] %vm951_vm3, %v1979_v9  ;;  %v10342_v9 = vld [vmem:[#allocation5 + $0x80] sm:$0xf] }
 0xe18   : > { %v2062_v12 = vpop.permute.xlu0 %2061 }
 0xe1a   : > { %v2060_v10 = vpop.permute.xlu1 %2059 }
 0xe1b   : > { %2065 = vst.msk [vmem:[#allocation2] sm:$0xf] %vm1033_vm4, %v2060_v10  ;;  %v10574_v10 = vld [vmem:[#allocation5 + $0x84] sm:$0xf0] }
 0xe22   : > { %v1981_v11 = vpop.permute.xlu1 %1980 }
 0xe23   : > { %1985 = vst.msk [vmem:[#allocation2 + $0x4] sm:$0xf] %vm951_vm3, %v1981_v11 }
 0xe24   : > { %2066 = vst.msk [vmem:[#allocation2 + $0x4] sm:$0xf] %vm1033_vm4, %v2062_v12  ;;  %v10355_v12 = vor.u32 %v10575_v6, %v10352_v8 }
 0xe25   : > { %2147 = vst.msk [vmem:[#allocation2 + $0x4] sm:$0xf] %vm1115_vm5, %v2143_v13  ;;  %v10573_v13 = vld [vmem:[#allocation5 + $0x84] sm:$0xf] }
 0xe26   : > { %2421 = vmatpush.bf16.msrb.mxu3 %v10355_v12 }
 0xe2a   : > { %v2141_v14 = vpop.permute.xlu1 %2140 }
 0xe2b   : > { %2146 = vst.msk [vmem:[#allocation2] sm:$0xf] %vm1115_vm5, %v2141_v14  ;;  %v10344_v14 = vld [vmem:[#allocation5 + $0x88] sm:$0xf0] }
 0xe32   : > { %v10564_v15 = vld [vmem:[#allocation2] sm:$0xff] }
 0xe33   : > { %2234 = vmatmul.bf16.vlgmr.msra.gmra.mxu1 %v10564_v15 }
 0xeb0   : > { %v2235_v17 = vpop.f32.mrf.mxu1 }
 0xeb1   : > { %v2236_v18 = vadd.f32 %v11348_v16, %v2235_v17  ;;  %v10347_v17 = vor.u32 %v10573_v13, %v10344_v14 }
 0xeb3   : > { %v2240_v30 = vadd.f32 %v2236_v18, %v12114_v41  ;;  %2422 = vmatpush.bf16.msrb.mxu3 %v10347_v17 }
 0xeb5   : > { %2242 = vadd.xlane.f32.xlu0 %v2240_v30 }
 0xeb8   : > { %v2237_v19 = vpop.f32.mrf.mxu1 }
 0xeb9   : > { %v2238_v20 = vadd.f32 %v11348_v16, %v2237_v19  ;;  %v10343_v16 = vor.u32 %v10574_v10, %v10342_v9  ;;  %v10604_v19 = vld [vmem:[#allocation7 + $0xf8] sm:$0xff] }
 0xeba   : > { %2583 = vmatpush.bf16.msrb.mxu1 %v10604_v19 }
 0xebb   : > { %v2241_v21 = vadd.f32 %v2238_v20, %v12116_v42  ;;  %v10398_v42 = vld [vmem:[#allocation5 + $0xf0] sm:$0xf] }
 0xebc   : > { %v10399_v29 = vor.u32 %v10588_v27, %v10398_v42  ;;  %v10602_v42 = vld [vmem:[#allocation7 + $0xe8] sm:$0xff] }
 0xebd   : > { %2244 = vadd.xlane.f32.xlu1 %v2241_v21 }
 0xebe   : > { %2401 = vmatpush.bf16.msra.mxu2 %v10399_v29  ;;  %v10593_v29 = vld [vmem:[#allocation7 + $0xa0] sm:$0xff] }
 0xec2   : > { %2402 = vmatpush.bf16.msra.mxu2 %v10391_v36 }
 0xec6   : > { %2403 = vmatpush.bf16.msra.mxu2 %v10383_v43 }
 0xeca   : > { %2404 = vmatpush.bf16.msra.mxu2 %v10375_v48 }
 0xece   : > { %2405 = vmatpush.bf16.msra.mxu2 %v10367_v54  ;;  %v10598_v54 = vld [vmem:[#allocation7 + $0xc8] sm:$0xff] }
 0xed2   : > { %2406 = vmatpush.bf16.msra.mxu2 %v10359_v61  ;;  %v2317_v61 = vperm.slane %v10339_v58, 0 }
 0xed6   : > { %2407 = vmatpush.bf16.msra.mxu2 %v10351_v7 }
 0xeda   : > { %2408 = vmatpush.bf16.msra.mxu2 %v10343_v16 }
 0xf28   : > { %v2243_v22 = vpop.xlane.xlu0 %2242 }
 0xf29   : > { %v2246_v23 = vmul.f32 %v2243_v22, %v11922_v56  ;;  %v10595_v22 = vld [vmem:[#allocation7 + $0xb0] sm:$0xff] }
 0xf2b   : > { %v12180_v60 = vsub.f32 %v2240_v30, %v2246_v23  ;;  %v10596_v30 = vld [vmem:[#allocation7 + $0xb8] sm:$0xff]  ;;  %v10603_v23 = vld [vmem:[#allocation7 + $0xf0] sm:$0xff] }
 0xf2c   : > { %2569 = vmatpush.bf16.msra.mxu0 %v10596_v30  ;;  %2584 = vmatpush.bf16.msrb.mxu1 %v10603_v23 }
 0xf2d   : > { %v2250_v24 = vmul.f32 %v12180_v60, %v12180_v60 }
 0xf2f   : > { %2252 = vadd.xlane.f32.xlu2 %v2250_v24 }
 0xf30   : > { %v2245_v25 = vpop.xlane.xlu1 %2244  ;;  %2570 = vmatpush.bf16.msra.mxu0 %v10595_v22  ;;  %2585 = vmatpush.bf16.msrb.mxu1 %v10602_v42 }
 0xf31   : > { %v2247_v26 = vmul.f32 %v2245_v25, %v11922_v56 }
 0xf33   : > { %v12185_v62 = vsub.f32 %v2241_v21, %v2247_v26 }
 0xf34   : > { %2586 = vmatpush.bf16.msrb.mxu1 %v10601_v31 }
 0xf35   : > { %v2251_v41 = vmul.f32 %v12185_v62, %v12185_v62 }
 0xf37   : > { %2254 = vadd.xlane.f32.xlu0 %v2251_v41  ;;  %v10594_v41 = vld [vmem:[#allocation7 + $0xa8] sm:$0xff] }
 0xf38   : > { %2571 = vmatpush.bf16.msra.mxu0 %v10594_v41  ;;  %2587 = vmatpush.bf16.msrb.mxu1 %v10600_v51  ;;  %v11353_v51 = vld [vmem:[%s17004_s12 + $0x1] ss:$0 sm:$0xff] }
 0xf3c   : > { %2572 = vmatpush.bf16.msra.mxu0 %v10593_v29  ;;  %2588 = vmatpush.bf16.msrb.mxu1 %v10599_v53 }
 0xf40   : > { %2589 = vmatpush.bf16.msrb.mxu1 %v10598_v54 }
 0xf44   : > { %2590 = vmatpush.bf16.msrb.mxu1 %v10597_v57 }
 0xfa2   : > { %v2253_v11 = vpop.xlane.xlu2 %2252 }
 0xfa3   : > { %v2256_v15 = vmul.f32 %v2253_v11, %v11922_v56 }
 0xfa5   : > { %v2258_v18 = vadd.f32 1e-05, %v2256_v15  ;;  %v11351_v15 = vld [vmem:[%s17002_s10 + $0x1] ss:$0 sm:$0xff] }
 0xfa7   : > { %11428 = vrsqrt.f32 %v2258_v18  ;;  %vm2266_vm3 = vweird.f32 %v2258_v18 }
 0xfaa   : > { %v2255_v20 = vpop.xlane.xlu0 %2254 }
 0xfab   : > { %v2257_v21 = vmul.f32 %v2255_v20, %v11922_v56 }
 0xfad   : > { %v11429_v24 = vpop.eup %11428  ;;  %v2259_v25 = vadd.f32 1e-05, %v2257_v21 }
 0xfae   : > { %v2261_v26 = vmul.f32 %v11429_v24, %v2258_v18  ;;  %vm2267_vm2 = vweird.f32 %v11429_v24 }
 0xfaf   : > { %11430 = vrsqrt.f32 %v2259_v25  ;;  %vm2268_vm4 = vmor %vm2266_vm3, %vm2267_vm2  ;;  %vm2276_vm9 = vweird.f32 %v2259_v25  ;;  %vm9519_vm2 = vcmask 523264   ;;  %vm9536_vm3 = vcmask 654336  }
 0xfb0   : > { %v2262_v27 = vmul.f32 %v11429_v24, %v2261_v26 }
 0xfb2   : > { %v2263_v28 = vmul.f32 0.5, %v2262_v27 }
 0xfb4   : > { %v2264_v32 = vsub.f32 1.5, %v2263_v28 }
 0xfb5   : > { %v11431_v33 = vpop.eup %11430 }
 0xfb6   : > { %v2265_v34 = vmul.f32 %v11429_v24, %v2264_v32  ;;  %v2271_v35 = vmul.f32 %v11431_v33, %v2259_v25  ;;  %vm2277_vm5 = vweird.f32 %v11431_v33 }
 0xfb7   : > { %vm2278_vm10 = vmor %vm2276_vm9, %vm2277_vm5  ;;  %vm9570_vm5 = vcmask 916480  }
 0xfb8   : > { %v2272_v36 = vmul.f32 %v11431_v33, %v2271_v35  ;;  %v2269_v37 = vsel %vm2268_vm4, %v11429_v24, %v2265_v34  ;;  %v17010_v35 = vlaneseq  ;;  %vm9553_vm4 = vcmask 785408  }
 0xfb9   : > { %v2280_v40 = vmul.f32 %v2269_v37, %v12180_v60  ;;  %v10592_v60 = vld [vmem:[#allocation7 + $0x98] sm:$0xff] }
 0xfba   : > { %v2273_v38 = vmul.f32 0.5, %v2272_v36  ;;  %2573 = vmatpush.bf16.msra.mxu0 %v10592_v60  ;;  %v12209_v36 = vshrl.u32 %v17010_v35, 7 }
 0xfbb   : > { %v2287_v45 = vmul.f32 %v11349_v0, %v2280_v40 }
 0xfbc   : > { %v2274_v39 = vsub.f32 1.5, %v2273_v38  ;;  %10660 = vset.pattern.permute.xlu2 %v12209_v36 }
 0xfbd   : > { %v2294_v48 = vadd.f32 %v11350_v46, %v2287_v45 }
 0xfbe   : > { %v2275_v43 = vmul.f32 %v11431_v33, %v2274_v39  ;;  %2574 = vmatpush.bf16.msra.mxu0 %v10591_v52  ;;  %v12214_v39 = vadd.s32 8, %v12209_v36 }
 0xfc0   : > { %v2279_v4 = vsel %vm2278_vm10, %v11431_v33, %v2275_v43  ;;  %10661 = vset.pattern.permute.xlu1 %v12214_v39 }
 0xfc1   : > { %v2281_v44 = vmul.f32 %v2279_v4, %v12185_v62  ;;  %v10590_v62 = vld [vmem:[#allocation7 + $0x88] sm:$0xff] }
 0xfc2   : > { %2575 = vmatpush.bf16.msra.mxu0 %v10590_v62 }
 0xfc3   : > { %v2288_v47 = vmul.f32 %v11349_v0, %v2281_v44 }
 0xfc5   : > { %v2295_v49 = vadd.f32 %v11350_v46, %v2288_v47 }
 0xfc6   : > { %2576 = vmatpush.bf16.msra.mxu0 %v10589_v55 }
 0xfc7   : > { %v2296_v50 = vpack.c.bf16 %v2295_v49, %v2294_v48 }
 0xfc9   : > { %2409 = vmatmul.bf16.vlgmr.msra.gmra.mxu2 %v2296_v50  ;;  %2423 = vmatmul.bf16.vlgmr.msrb.gmra.mxu3 %v2296_v50 }
0x104c   : > { %v2410_v59 = vpop.f32.mrf.mxu2  ;;  %v2424_v63 = vpop.f32.mrf.mxu3 }
0x104d   : > { %v2411_v2 = vadd.f32 %v2410_v59, %v2317_v61  ;;  %v2425_v3 = vadd.f32 %v2424_v63, %v2318_v1 }
0x104f   : > { %v2429_v9 = vmax.f32 %v2411_v2, 0.0  ;;  %v2430_v10 = vmax.f32 %v2425_v3, 0.0 }
0x1054   : > { %v2412_v5 = vpop.f32.mrf.mxu2  ;;  %v2426_v6 = vpop.f32.mrf.mxu3 }
0x1055   : > { %v2413_v7 = vadd.f32 %v2412_v5, %v2317_v61  ;;  %v2427_v8 = vadd.f32 %v2426_v6, %v2318_v1 }
0x1057   : > { %v2431_v11 = vmax.f32 %v2413_v7, 0.0  ;;  %v2432_v12 = vmax.f32 %v2427_v8, 0.0 }
0x1059   : > { %v2433_v13 = vpack.c.bf16 %v2431_v11, %v2429_v9  ;;  %v2434_v14 = vpack.c.bf16 %v2432_v12, %v2430_v10 }
0x105b   : > { %2577 = vmatmul.bf16.vlgmr.msra.gmra.mxu0 %v2433_v13  ;;  %2591 = vmatmul.bf16.vlgmr.msrb.gmra.mxu1 %v2434_v14 }
0x10d8   : > { %v2578_v16 = vpop.f32.mrf.mxu0  ;;  %v2592_v17 = vpop.f32.mrf.mxu1 }
0x10d9   : > { %v2579_v18 = vadd.f32 %v11351_v15, %v2578_v16 }
0x10db   : > { %v2593_v30 = vadd.f32 %v2592_v17, %v2579_v18 }
0x10dd   : > { %v2597_v19 = vadd.f32 %v2593_v30, %v2294_v48 }
0x10df   : > { %2599 = vadd.xlane.f32.xlu1 %v2597_v19 }
0x10e0   : > { %v2580_v20 = vpop.f32.mrf.mxu0  ;;  %v2594_v22 = vpop.f32.mrf.mxu1 }
0x10e1   : > { %v2581_v21 = vadd.f32 %v11351_v15, %v2580_v20 }
0x10e3   : > { %v2595_v23 = vadd.f32 %v2594_v22, %v2581_v21 }
0x10e5   : > { %v2598_v24 = vadd.f32 %v2595_v23, %v2295_v49 }
0x10e7   : > { %2601 = vadd.xlane.f32.xlu0 %v2598_v24 }
0x1152   : > { %v2600_v25 = vpop.xlane.xlu1 %2599 }
0x1153   : > { %v2603_v26 = vmul.f32 %v2600_v25, %v11922_v56 }
0x1155   : > { %v2605_v41 = vsub.f32 %v2597_v19, %v2603_v26 }
0x1157   : > { %v2607_v42 = vmul.f32 %v2605_v41, %v2605_v41 }
0x1159   : > { %2609 = vadd.xlane.f32.xlu2 %v2607_v42 }
0x115a   : > { %v2602_v27 = vpop.xlane.xlu0 %2601 }
0x115b   : > { %v2604_v28 = vmul.f32 %v2602_v27, %v11922_v56 }
0x115d   : > { %v2606_v29 = vsub.f32 %v2598_v24, %v2604_v28 }
0x115f   : > { %v2608_v31 = vmul.f32 %v2606_v29, %v2606_v29 }
0x1161   : > { %2611 = vadd.xlane.f32.xlu1 %v2608_v31 }
0x11cc   : > { %v2610_v32 = vpop.xlane.xlu2 %2609 }
0x11cd   : > { %v2613_v33 = vmul.f32 %v2610_v32, %v11922_v56 }
0x11cf   : > { %v2615_v34 = vadd.f32 1e-05, %v2613_v33 }
0x11d1   : > { %11432 = vrsqrt.f32 %v2615_v34  ;;  %vm2623_vm12 = vweird.f32 %v2615_v34 }
0x11d4   : > { %v2612_v37 = vpop.xlane.xlu1 %2611 }
0x11d5   : > { %v2614_v38 = vmul.f32 %v2612_v37, %v11922_v56  ;;  %v11352_v56 = vld [vmem:[%s17003_s11 + $0x1] ss:$0 sm:$0xff] }
0x11d7   : > { %v11433_v40 = vpop.eup %11432  ;;  %v2616_v0 = vadd.f32 1e-05, %v2614_v38 }
0x11d8   : > { %v2618_v43 = vmul.f32 %v11433_v40, %v2615_v34  ;;  %vm2624_vm11 = vweird.f32 %v11433_v40 }
0x11d9   : > { %11434 = vrsqrt.f32 %v2616_v0  ;;  %vm2625_vm13 = vmor %vm2623_vm12, %vm2624_vm11  ;;  %vm2633_vm15 = vweird.f32 %v2616_v0 }
0x11da   : > { %v2619_v4 = vmul.f32 %v11433_v40, %v2618_v43 }
0x11dc   : > { %v2620_v44 = vmul.f32 0.5, %v2619_v4 }
0x11de   : > { %v2621_v45 = vsub.f32 1.5, %v2620_v44 }
0x11df   : > { %v11435_v46 = vpop.eup %11434 }
0x11e0   : > { %v2628_v47 = vmul.f32 %v11435_v46, %v2616_v0  ;;  %v2622_v48 = vmul.f32 %v11433_v40, %v2621_v45  ;;  %vm2634_vm14 = vweird.f32 %v11435_v46  ;;  %v11553_v0 = vmov 1983009808  }
0x11e1   : > { %vm2635_vm6 = vmor %vm2633_vm15, %vm2634_vm14  ;;  %v4995_v43 = vunpack.c.l.s4 %v11553_v0 }
0x11e2   : > { %v2629_v49 = vmul.f32 %v11435_v46, %v2628_v47  ;;  %v2626_v50 = vsel %vm2625_vm13, %v11433_v40, %v2622_v48 }
0x11e3   : > { %v2637_v60 = vmul.f32 %v2626_v50, %v2605_v41  ;;  %v12287_v50 = vunpack.c.0.s8 %v4995_v43 }
0x11e4   : > { %v2630_v52 = vmul.f32 0.5, %v2629_v49 }
0x11e5   : > { %v2644_v53 = vmul.f32 %v11352_v56, %v2637_v60 }
0x11e6   : > { %v2631_v62 = vsub.f32 1.5, %v2630_v52 }
0x11e7   : > { %v2651_v54 = vadd.f32 %v11353_v51, %v2644_v53 }
0x11e8   : > { %v2632_v55 = vmul.f32 %v11435_v46, %v2631_v62 }
0x11e9   : > { %2653 = vxpose.xlu0.b32.start [1/2] (short) %v2651_v54, 128 }
0x11ea   : > { %v2636_v57 = vsel %vm2635_vm6, %v11435_v46, %v2632_v55 }
0x11eb   : > { %v2638_v58 = vmul.f32 %v2636_v57, %v2606_v29 }
0x11ed   : > { %v2645_v59 = vmul.f32 %v11352_v56, %v2638_v58 }
0x11ef   : > { %v2652_v63 = vadd.f32 %v11353_v51, %v2645_v59 }
0x11f1   : > { %2654 = vxpose.xlu0.b32.end [2/2] (short) %v2652_v63, 128 }
0x1258   : > { %10662 = vset.pattern.permute.xlu0 %v12209_v36 }
0x128d   : > { %v12224_v61 = vpop.trf.xlu0 }
0x128e   : > { %v12227_v1 = vperm.slane %v12224_v61, 0  ;;  %v2698_v2 = vperm.slane %v12224_v61, 1  ;;  %v2711_v3 = vperm.slane %v12224_v61, 2  ;;  %v2724_v5 = vperm.slane %v12224_v61, 3 }
0x128f   : > { %v2750_v7 = vperm.slane %v12224_v61, 5  ;;  %v2737_v8 = vperm.slane %v12224_v61, 4  ;;  %v2763_v10 = vperm.slane %v12224_v61, 6  ;;  %v2776_v12 = vperm.slane %v12224_v61, 7 }
0x1290   : > { %2696 = vperm.xlu1 %10661, %v12227_v1   ;;  %2690 = vperm.xlu2 %10660, %v12227_v1   ;;  %v4365_v42 = vrot.slane %v12224_v61, 1  ;;  %v4366_v27 = vrot.slane %v12224_v61, 2  ;;  %v4367_v33 = vrot.slane %v12224_v61, 3 }
0x1292   : > { %v4478_v31 = vperm.slane %v4365_v42, 0  ;;  %v4479_v32 = vperm.slane %v4366_v27, 0  ;;  %v4480_v4 = vperm.slane %v4367_v33, 0 }
0x1295   : > { %v12234_v6 = vpop.trf.xlu0 }
0x1296   : > { %v12249_v14 = vperm.slane %v12234_v6, 0  ;;  %v2802_v17 = vperm.slane %v12234_v6, 1  ;;  %v2815_v30 = vperm.slane %v12234_v6, 2  ;;  %v2828_v20 = vperm.slane %v12234_v6, 3 }
0x1297   : > { %v2841_v23 = vperm.slane %v12234_v6, 4  ;;  %v2854_v41 = vperm.slane %v12234_v6, 5  ;;  %v2867_v34 = vperm.slane %v12234_v6, 6  ;;  %v2880_v54 = vperm.slane %v12234_v6, 7 }
0x1298   : > { %2709 = vperm.xlu1 %10661, %v2698_v2   ;;  %2703 = vperm.xlu2 %10660, %v2698_v2  }
0x129d   : > { %v12240_v9 = vpop.trf.xlu0 }
0x129e   : > { %v2906_v42 = vperm.slane %v12240_v9, 1 }
0x12a0   : > { %2722 = vperm.xlu1 %10661, %v2711_v3   ;;  %2716 = vperm.xlu2 %10660, %v2711_v3  }
0x12a5   : > { %v12243_v11 = vpop.trf.xlu0 }
0x12a8   : > { %2735 = vperm.xlu1 %10661, %v2724_v5   ;;  %2729 = vperm.xlu2 %10660, %v2724_v5  }
0x12ad   : > { %v12246_v13 = vpop.trf.xlu0 }
0x12ae   : > { %v12253_v15 = vperm.slane %v12246_v13, 0  ;;  %v17016_v19 = vperm.slane %v12246_v13, 1  ;;  %v17015_v26 = vperm.slane %v12246_v13, 4  ;;  %v17014_v46 = vperm.slane %v12246_v13, 6 }
0x12b0   : > { %10664 = vset.pattern.permute.xlu1 %v12209_v36  ;;  %10663 = vset.pattern.permute.xlu2 %v12214_v39 }
0x12b5   : > { %v12255_v16 = vpop.trf.xlu0 }
0x12b6   : > { %17260 = vst [vmem:[#allocation11_spill] sm:$0xff] %v12255_v16 }
0x12b8   : > { %2755 = vperm.xlu1 %10664, %v2750_v7   ;;  %2748 = vperm.xlu2 %10663, %v2737_v8  }
0x12bd   : > { %v12260_v18 = vpop.trf.xlu0 }
0x12be   : > { %17261 = vst [vmem:[#allocation12_spill] sm:$0xff] %v12260_v18 }
0x12c0   : > { %2768 = vperm.xlu1 %10664, %v2763_v10   ;;  %2761 = vperm.xlu2 %10663, %v2750_v7  }
0x12c5   : > { %v12268_v21 = vpop.trf.xlu0 }
0x12c8   : > { %2781 = vperm.xlu1 %10664, %v2776_v12   ;;  %2774 = vperm.xlu2 %10663, %v2763_v10   ;;  %v12321_v10 = vperm.slane %v12240_v9, 0 }
0x12cd   : > { %v12272_v24 = vpop.trf.xlu0 }
0x12cf   : > { %2742 = vperm.xlu0 %10662, %v2737_v8  }
0x12d0   : > { %2787 = vperm.xlu2 %10663, %v2776_v12   ;;  %2794 = vperm.xlu1 %10664, %v12249_v14  }
0x12d5   : > { %v12280_v29 = vpop.trf.xlu0 }
0x12d6   : > { %17262 = vst [vmem:[#allocation13_spill] sm:$0xff] %v12280_v29 }
0x12d7   : > { %3106 = vperm.xlu0 %10662, %v12253_v15  }
0x12d8   : > { %2800 = vperm.xlu2 %10663, %v12249_v14   ;;  %2807 = vperm.xlu1 %10664, %v2802_v17  }
0x12dd   : > { %v12291_v53 = vpop.trf.xlu0 }
0x12de   : > { %17263 = vst [vmem:[#allocation14_spill] sm:$0xff] %v12291_v53 }
0x12df   : > { %10667 = vset.pattern.permute.xlu0 %v12214_v39 }
0x12e0   : > { %2813 = vperm.xlu2 %10663, %v2802_v17   ;;  %2820 = vperm.xlu1 %10664, %v2815_v30  }
0x12e5   : > { %v12325_v17 = vpop.trf.xlu0 }
0x12e6   : > { %17264 = vst [vmem:[#allocation15_spill] sm:$0xff] %v12325_v17  ;;  %v3036_v17 = vperm.slane %v12243_v11, 3 }
0x12e7   : > { %3125 = vperm.xlu0 %10667, %v17016_v19  }
0x12e8   : > { %2826 = vperm.xlu2 %10663, %v2815_v30   ;;  %2833 = vperm.xlu1 %10664, %v2828_v20  }
0x12ea   : > { %v2691_v22 = vpop.permute.xlu2 %2690 }
0x12eb   : > { %v4733_v37 = vmul.f32 %v2691_v22, %v12227_v1 }
0x12ed   : > { %v4992_v47 = vrot.slane %v4733_v37, 4 }
0x12ef   : > { %10670 = vset.pattern.permute.xlu0 %v12209_v36 }
0x12f0   : > { %2839 = vperm.xlu2 %10663, %v2828_v20   ;;  %2846 = vperm.xlu1 %10664, %v2841_v23  }
0x12f2   : > { %v2704_v25 = vpop.permute.xlu2 %2703 }
0x12f3   : > { %v4735_v38 = vmul.f32 %v4478_v31, %v2704_v25  ;;  %v17013_v25 = vperm.slane %v12255_v16, 1 }
0x12f5   : > { %v5004_v48 = vrot.slane %v4735_v38, 4 }
0x12f7   : > { %3158 = vperm.xlu0 %10670, %v17015_v26  }
0x12f8   : > { %2852 = vperm.xlu2 %10663, %v2841_v23   ;;  %2859 = vperm.xlu1 %10664, %v2854_v41  }
0x12fa   : > { %v2717_v28 = vpop.permute.xlu2 %2716 }
0x12fb   : > { %v4737_v40 = vmul.f32 %v4479_v32, %v2717_v28  ;;  %v12335_v28 = vpop.trf.xlu0 }
0x12fc   : > { %17265 = vst [vmem:[#allocation16_spill] sm:$0xff] %v12335_v28  ;;  %v4378_v28 = vrot.slane %v12234_v6, 7 }
0x12fd   : > { %v4989_v56 = vrot.slane %v4737_v40, 4  ;;  %v4993_v60 = vsel %vm4990_vm7, %v4737_v40, %v4992_v47 }
0x12fe   : > { %v12302_v58 = vperm.slane %v4993_v60, %v12287_v50 }
0x12ff   : > { %10673 = vset.pattern.permute.xlu0 %v12214_v39  ;;  %v4991_v55 = vsel %vm4990_vm7, %v4989_v56, %v4733_v37 }
0x1300   : > { %2865 = vperm.xlu2 %10663, %v2854_v41   ;;  %2872 = vperm.xlu1 %10664, %v2867_v34   ;;  %v12309_v2 = vperm.slane %v4991_v55, %v12287_v50 }
0x1302   : > { %v2697_v44 = vpop.permute.xlu1 %2696  ;;  %v2730_v45 = vpop.permute.xlu2 %2729 }
0x1303   : > { %v4739_v49 = vmul.f32 %v4480_v4, %v2730_v45  ;;  %v4734_v12 = vmul.f32 %v2697_v44, %v12227_v1  ;;  %v4368_v1 = vrot.slane %v12224_v61, 4  ;;  %v4370_v44 = vrot.slane %v12224_v61, 6 }
0x1305   : > { %v5002_v51 = vrot.slane %v4739_v49, 4  ;;  %v5005_v52 = vsel %vm4990_vm7, %v4739_v49, %v5004_v48  ;;  %v6784_v22 = vrot.slane %v4734_v12, 4  ;;  %v12338_v0 = vperm.slane %v4368_v1, 0 }
0x1306   : > { %v12294_v62 = vperm.slane %v5005_v52, %v12287_v50  ;;  %v2919_v48 = vperm.slane %v12240_v9, 2  ;;  %v12351_v55 = vperm.slane %v4370_v44, 0  ;;  %v4371_v1 = vrot.slane %v12224_v61, 7 }
0x1307   : > { %v5003_v57 = vsel %vm4990_vm7, %v5002_v51, %v4735_v38  ;;  %3190 = vperm.xlu0 %10673, %v17014_v46  }
0x1308   : > { %v12305_v59 = vperm.slane %v5003_v57, %v12287_v50  ;;  %v5050_v63 = vrot.slane %v12294_v62, 4  ;;  %2878 = vperm.xlu2 %10663, %v2867_v34   ;;  %2885 = vperm.xlu1 %10664, %v2880_v54  }
0x130a   : > { %v5038_v3 = vrot.slane %v12305_v59, 4  ;;  %v12314_v5 = vsel %vm4990_vm7, %v5050_v63, %v12302_v58  ;;  %v2710_v7 = vpop.permute.xlu1 %2709 }
0x130b   : > { %v4736_v27 = vmul.f32 %v4478_v31, %v2710_v7 }
0x130c   : > { %v12318_v8 = vsel %vm4990_vm7, %v5038_v3, %v12309_v2 }
0x130d   : > { %v6796_v37 = vrot.slane %v4736_v27, 4 }
0x130f   : > { %10676 = vset.pattern.permute.xlu0 %v12209_v36 }
0x1310   : > { %2891 = vperm.xlu2 %10663, %v2880_v54   ;;  %2898 = vperm.xlu1 %10664, %v12321_v10   ;;  %v4369_v54 = vrot.slane %v12224_v61, 5  ;;  %v11554_v61 = vmov 1934713408  }
0x1312   : > { %v2723_v30 = vpop.permute.xlu1 %2722  ;;  %v2749_v20 = vpop.permute.xlu2 %2748 }
0x1313   : > { %v4738_v23 = vmul.f32 %v4479_v32, %v2723_v30  ;;  %v4742_v49 = vmul.f32 %v12338_v0, %v2749_v20  ;;  %v17012_v20 = vperm.slane %v12255_v16, 3 }
0x1315   : > { %v6785_v41 = vsel %vm4990_vm7, %v4738_v23, %v6784_v22  ;;  %v6782_v38 = vrot.slane %v4738_v23, 4  ;;  %v12357_v22 = vpop.trf.xlu0 }
0x1316   : > { %v6793_v33 = vperm.slane %v6785_v41, %v12287_v50  ;;  %17266 = vst [vmem:[#allocation17_spill] sm:$0xff] %v12357_v22  ;;  %v4482_v41 = vperm.slane %v4369_v54, 0 }
0x1317   : > { %3223 = vperm.xlu0 %10676, %v17013_v25   ;;  %v6783_v56 = vsel %vm4990_vm7, %v6782_v38, %v4734_v12  ;;  %v6808_v12 = vrot.slane %v4742_v49, 4  ;;  %v4484_v38 = vperm.slane %v4371_v1, 0 }
0x1318   : > { %2904 = vperm.xlu2 %10663, %v12321_v10   ;;  %2911 = vperm.xlu1 %10664, %v2906_v42   ;;  %v6844_v45 = vrot.slane %v6793_v33, 4  ;;  %v6789_v57 = vperm.slane %v6783_v56, %v12287_v50  ;;  %v5043_v56 = vunpack.c.l.s4 %v11554_v61 }
0x131a   : > { %v2736_v32 = vpop.permute.xlu1 %2735  ;;  %v2762_v34 = vpop.permute.xlu2 %2761  ;;  %v12378_v1 = vunpack.c.0.s8 %v5043_v56 }
0x131b   : > { %v4740_v40 = vmul.f32 %v4480_v4, %v2736_v32  ;;  %v2932_v32 = vperm.slane %v12240_v9, 3 }
0x131d   : > { %v6794_v31 = vrot.slane %v4740_v40, 4  ;;  %v6797_v43 = vsel %vm4990_vm7, %v4740_v40, %v6796_v37  ;;  %v4744_v37 = vmul.f32 %v4482_v41, %v2762_v34  ;;  %v12369_v54 = vpop.trf.xlu0 }
0x131e   : > { %v6805_v47 = vperm.slane %v6797_v43, %v12287_v50  ;;  %17267 = vst [vmem:[#allocation18_spill] sm:$0xff] %v12369_v54 }
0x131f   : > { %v6795_v60 = vsel %vm4990_vm7, %v6794_v31, %v4736_v27  ;;  %10679 = vset.pattern.permute.xlu0 %v12214_v39  ;;  %v6820_v44 = vrot.slane %v4744_v37, 4 }
0x1320   : > { %v6801_v4 = vperm.slane %v6795_v60, %v12287_v50  ;;  %v6842_v51 = vrot.slane %v6805_v47, 4  ;;  %v6845_v52 = vsel %vm4990_vm7, %v6805_v47, %v6844_v45  ;;  %2917 = vperm.xlu2 %10663, %v2906_v42   ;;  %2924 = vperm.xlu1 %10664, %v2919_v48   ;;  %v6832_v60 = vrot.slane %v6789_v57, 4 }
0x1322   : > { %v6830_v63 = vrot.slane %v6801_v4, 4  ;;  %v6843_v3 = vsel %vm4990_vm7, %v6842_v51, %v6793_v33  ;;  %v2775_v7 = vpop.permute.xlu2 %2774 }
0x1323   : > { %v4746_v30 = vmul.f32 %v12351_v55, %v2775_v7  ;;  %v6833_v7 = vsel %vm4990_vm7, %v6801_v4, %v6832_v60  ;;  %v6849_v61 = vperm.slane %v6843_v3, %v12378_v1  ;;  %v6853_v60 = vperm.slane %v6845_v52, %v12378_v1 }
0x1324   : > { %v6831_v23 = vsel %vm4990_vm7, %v6830_v63, %v6789_v57  ;;  %v2945_v63 = vperm.slane %v12240_v9, 4 }
0x1325   : > { %v6806_v42 = vrot.slane %v4746_v30, 4  ;;  %v6809_v27 = vsel %vm4990_vm7, %v4746_v30, %v6808_v12  ;;  %v6837_v56 = vperm.slane %v6831_v23, %v12378_v1  ;;  %v6888_v52 = vrot.slane %v6849_v61, 4 }
0x1326   : > { %v6817_v40 = vperm.slane %v6809_v27, %v12287_v50  ;;  %v6892_v3 = vrot.slane %v6853_v60, 4 }
0x1327   : > { %3255 = vperm.xlu0 %10679, %v17012_v20   ;;  %v6807_v33 = vsel %vm4990_vm7, %v6806_v42, %v4742_v49 }
0x1328   : > { %2930 = vperm.xlu2 %10663, %v2919_v48   ;;  %2937 = vperm.xlu1 %10664, %v2932_v32   ;;  %v6813_v47 = vperm.slane %v6807_v33, %v12287_v50  ;;  %v6868_v48 = vrot.slane %v6817_v40, 4 }
0x132a   : > { %v2756_v31 = vpop.permute.xlu1 %2755  ;;  %v2788_v43 = vpop.permute.xlu2 %2787  ;;  %v6856_v30 = vrot.slane %v6813_v47, 4 }
0x132b   : > { %v4748_v45 = vmul.f32 %v4484_v38, %v2788_v43 }
0x132d   : > { %v6818_v34 = vrot.slane %v4748_v45, 4  ;;  %v6821_v51 = vsel %vm4990_vm7, %v4748_v45, %v6820_v44  ;;  %v12384_v45 = vperm.slane %v6833_v7, %v12378_v1  ;;  %v4743_v7 = vmul.f32 %v4482_v41, %v2756_v31 }
0x132e   : > { %v6829_v49 = vperm.slane %v6821_v51, %v12287_v50 }
0x132f   : > { %v6819_v12 = vsel %vm4990_vm7, %v6818_v34, %v4744_v37  ;;  %10682 = vset.pattern.permute.xlu0 %v12209_v36  ;;  %v17011_v37 = vperm.slane %v12255_v16, 6  ;;  %17268 = vst [vmem:[#allocation19_spill] sm:$0xff] %v12384_v45 }
0x1330   : > { %v6825_v42 = vperm.slane %v6819_v12, %v12287_v50  ;;  %v6866_v57 = vrot.slane %v6829_v49, 4  ;;  %v6869_v27 = vsel %vm4990_vm7, %v6829_v49, %v6868_v48  ;;  %2943 = vperm.xlu2 %10663, %v2932_v32   ;;  %2950 = vperm.xlu1 %10664, %v2945_v63   ;;  %v12396_v48 = vpop.trf.xlu0  ;;  %v6884_v49 = vrot.slane %v12384_v45, 4 }
0x1331   : > { %v6877_v51 = vperm.slane %v6869_v27, %v12378_v1  ;;  %17270 = vst [vmem:[#allocation21_spill] sm:$0xff] %v12396_v48 }
0x1332   : > { %v6857_v33 = vsel %vm4990_vm7, %v6825_v42, %v6856_v30  ;;  %v6867_v43 = vsel %vm4990_vm7, %v6866_v57, %v6817_v40  ;;  %v2769_v44 = vpop.permute.xlu1 %2768  ;;  %v2801_v4 = vpop.permute.xlu2 %2800  ;;  %v6854_v34 = vrot.slane %v6825_v42, 4  ;;  %v2958_v40 = vperm.slane %v12240_v9, 5 }
0x1333   : > { %v12389_v32 = vperm.slane %v6857_v33, %v12378_v1  ;;  %v6880_v30 = vrot.slane %v6837_v56, 4  ;;  %v6873_v33 = vperm.slane %v6867_v43, %v12378_v1  ;;  %v6890_v35 = vrot.slane %v6877_v51, 4 }
0x1334   : > { %v6855_v12 = vsel %vm4990_vm7, %v6854_v34, %v6813_v47  ;;  %v5028_v43 = vrot.slane %v4743_v7, 4  ;;  %v4745_v25 = vmul.f32 %v12351_v55, %v2769_v44  ;;  %v4372_v44 = vrot.slane %v12234_v6, 1 }
0x1335   : > { %17269 = vst [vmem:[#allocation20_spill] sm:$0xff] %v12389_v32  ;;  %v12402_v23 = vsel %vm4990_vm7, %v12389_v32, %v6884_v49  ;;  %v6861_v27 = vperm.slane %v6855_v12, %v12378_v1  ;;  %v12413_v47 = vsel %vm4990_vm7, %v6873_v33, %v6888_v52  ;;  %v12416_v34 = vsel %vm4990_vm7, %v6890_v35, %v6853_v60 }
0x1336   : > { %17271 = vst [vmem:[#allocation22_spill] sm:$0xff] %v12402_v23  ;;  %v4373_v12 = vrot.slane %v12234_v6, 2  ;;  %v6886_v20 = vrot.slane %v6873_v33, 4  ;;  %v12474_v32 = vperm.slane %v12243_v11, 0 }
0x1337   : > { %3288 = vperm.xlu0 %10682, %v17011_v37   ;;  %v12410_v41 = vsel %vm4990_vm7, %v6861_v27, %v6880_v30  ;;  %v6878_v31 = vrot.slane %v6861_v27, 4  ;;  %17274 = vst [vmem:[#allocation25_spill] sm:$0xff] %v12413_v47 }
0x1338   : > { %2956 = vperm.xlu2 %10663, %v2945_v63   ;;  %2963 = vperm.xlu1 %10664, %v2958_v40   ;;  %v12407_v63 = vsel %vm4990_vm7, %v6877_v51, %v6892_v3  ;;  %17273 = vst [vmem:[#allocation24_spill] sm:$0xff] %v12410_v41  ;;  %v2971_v51 = vperm.slane %v12240_v9, 6  ;;  %v4750_v3 = vmul.f32 %v2801_v4, %v12249_v14  ;;  %v12435_v30 = vperm.slane %v4373_v12, 0 }
0x1339   : > { %17272 = vst [vmem:[#allocation23_spill] sm:$0xff] %v12407_v63  ;;  %v12428_v35 = vsel %vm4990_vm7, %v6886_v20, %v6849_v61  ;;  %v5014_v4 = vrot.slane %v4745_v25, 4  ;;  %v12443_v61 = vperm.slane %v12260_v18, 0  ;;  %v5045_v12 = vperm.slane %v12318_v8, %v12378_v1 }
0x133a   : > { %v2782_v42 = vpop.permute.xlu1 %2781  ;;  %v2814_v57 = vpop.permute.xlu2 %2813  ;;  %17275 = vst [vmem:[#allocation26_spill] sm:$0xff] %v12416_v34  ;;  %v6896_v33 = vrot.slane %v4750_v3, 4 }
0x133b   : > { %v4747_v37 = vmul.f32 %v4484_v38, %v2782_v42  ;;  %v12422_v38 = vsel %vm4990_vm7, %v6878_v31, %v6837_v56  ;;  %17277 = vst [vmem:[#allocation28_spill] sm:$0xff] %v12428_v35 }
0x133c   : > { %17276 = vst [vmem:[#allocation27_spill] sm:$0xff] %v12422_v38 }
0x133d   : > { %v5026_v49 = vrot.slane %v4747_v37, 4  ;;  %v5029_v60 = vsel %vm4990_vm7, %v4747_v37, %v5028_v43  ;;  %17278 = vst [vmem:[#allocation29_spill] sm:$0xff] %v12443_v61  ;;  %v4486_v43 = vperm.slane %v4372_v44, 0 }
0x133e   : > { %v12439_v20 = vperm.slane %v5029_v60, %v12287_v50  ;;  %17280 = vst [vmem:[#allocation31_spill] sm:$0xff] %v12474_v32 }
0x133f   : > { %v5027_v52 = vsel %vm4990_vm7, %v5026_v49, %v4743_v7  ;;  %10685 = vset.pattern.permute.xlu0 %v12214_v39  ;;  %v4374_v49 = vrot.slane %v12234_v6, 3  ;;  %v4752_v46 = vmul.f32 %v4486_v43, %v2814_v57 }
0x1340   : > { %2969 = vperm.xlu2 %10663, %v2958_v40   ;;  %2976 = vperm.xlu1 %10664, %v2971_v51   ;;  %v12432_v55 = vperm.slane %v5027_v52, %v12287_v50 }
0x1341   : > { %v2743_v56 = vpop.permute.xlu0 %2742  ;;  %v6908_v38 = vrot.slane %v4752_v46, 4 }
0x1342   : > { %v4741_v7 = vmul.f32 %v12338_v0, %v2743_v56  ;;  %v2827_v42 = vpop.permute.xlu2 %2826  ;;  %v2795_v27 = vpop.permute.xlu1 %2794  ;;  %v5062_v0 = vrot.slane %v12432_v55, 4  ;;  %v5057_v56 = vperm.slane %v12314_v5, %v12378_v1  ;;  %v5088_v5 = vrot.slane %v5045_v12, 4 }
0x1343   : > { %v4754_v37 = vmul.f32 %v12435_v30, %v2827_v42 }
0x1344   : > { %v5015_v40 = vsel %vm4990_vm7, %v5014_v4, %v4741_v7  ;;  %v5016_v31 = vrot.slane %v4741_v7, 4  ;;  %v2984_v4 = vperm.slane %v12240_v9, 7  ;;  %v5074_v7 = vrot.slane %v12439_v20, 4 }
0x1345   : > { %v12451_v52 = vperm.slane %v5015_v40, %v12287_v50  ;;  %v6897_v60 = vsel %vm4990_vm7, %v4754_v37, %v6896_v33  ;;  %v4488_v40 = vperm.slane %v4374_v49, 0  ;;  %v5096_v19 = vrot.slane %v5057_v56, 4 }
0x1346   : > { %v5017_v42 = vsel %vm4990_vm7, %v4745_v25, %v5016_v31  ;;  %v6905_v31 = vperm.slane %v6897_v60, %v12287_v50  ;;  %v6894_v45 = vrot.slane %v4754_v37, 4 }
0x1347   : > { %v12460_v8 = vperm.slane %v5017_v42, %v12287_v50  ;;  %v5063_v44 = vsel %vm4990_vm7, %v5062_v0, %v12451_v52  ;;  %3320 = vperm.xlu0 %10685, %v12443_v61   ;;  %v12556_v61 = vperm.slane %v4378_v28, 0 }
0x1348   : > { %v5069_v33 = vperm.slane %v5063_v44, %v12378_v1  ;;  %2982 = vperm.xlu2 %10663, %v2971_v51   ;;  %2989 = vperm.xlu1 %10664, %v2984_v4   ;;  %v6956_v54 = vrot.slane %v6905_v31, 4 }
0x1349   : > { %v5075_v25 = vsel %vm4990_vm7, %v5074_v7, %v12460_v8 }
0x134a   : > { %v2840_v57 = vpop.permute.xlu2 %2839  ;;  %v2808_v26 = vpop.permute.xlu1 %2807  ;;  %v12470_v42 = vsel %vm4990_vm7, %v5069_v33, %v5088_v5  ;;  %v5081_v0 = vperm.slane %v5075_v25, %v12378_v1  ;;  %v5086_v51 = vrot.slane %v5069_v33, 4  ;;  %v6895_v25 = vsel %vm4990_vm7, %v6894_v45, %v4750_v3 }
0x134b   : > { %17279 = vst [vmem:[#allocation30_spill] sm:$0xff] %v12470_v42  ;;  %v4756_v44 = vmul.f32 %v4488_v40, %v2840_v57 }
0x134c   : > { %v12477_v7 = vsel %vm4990_vm7, %v5081_v0, %v5096_v19  ;;  %v5094_v48 = vrot.slane %v5081_v0, 4  ;;  %v12488_v33 = vsel %vm4990_vm7, %v5086_v51, %v5045_v12  ;;  %v4751_v0 = vmul.f32 %v4486_v43, %v2808_v26 }
0x134d   : > { %17281 = vst [vmem:[#allocation32_spill] sm:$0xff] %v12477_v7  ;;  %v6906_v49 = vrot.slane %v4756_v44, 4  ;;  %v6909_v60 = vsel %vm4990_vm7, %v4756_v44, %v6908_v38 }
0x134e   : > { %v6917_v5 = vperm.slane %v6909_v60, %v12287_v50  ;;  %v12485_v37 = vsel %vm4990_vm7, %v5094_v48, %v5057_v56  ;;  %17283 = vst [vmem:[#allocation34_spill] sm:$0xff] %v12488_v33 }
0x134f   : > { %v6907_v22 = vsel %vm4990_vm7, %v6906_v49, %v4752_v46  ;;  %10688 = vset.pattern.permute.xlu0 %v12209_v36  ;;  %17282 = vst [vmem:[#allocation33_spill] sm:$0xff] %v12485_v37  ;;  %v12498_v46 = vperm.slane %v6895_v25, %v12287_v50 }
0x1350   : > { %v12491_v19 = vperm.slane %v6907_v22, %v12287_v50  ;;  %v6954_v38 = vrot.slane %v6917_v5, 4  ;;  %v12494_v57 = vsel %vm4990_vm7, %v6917_v5, %v6956_v54  ;;  %2995 = vperm.xlu2 %10663, %v2984_v4   ;;  %3002 = vperm.xlu1 %10664, %v12474_v32   ;;  %v17022_v22 = vperm.slane %v12260_v18, 3 }
0x1351   : > { %v3010_v54 = vperm.slane %v12243_v11, 1  ;;  %v4749_v4 = vmul.f32 %v2795_v27, %v12249_v14  ;;  %v5116_v5 = vrot.slane %v4751_v0, 4  ;;  %v12567_v28 = vperm.slane %v12494_v57, %v12378_v1 }
0x1352   : > { %v6942_v45 = vrot.slane %v12491_v19, 4  ;;  %v12502_v48 = vsel %vm4990_vm7, %v6954_v38, %v6905_v31  ;;  %v2853_v3 = vpop.permute.xlu2 %2852  ;;  %v2821_v12 = vpop.permute.xlu1 %2820  ;;  %v4375_v31 = vrot.slane %v12234_v6, 4 }
0x1353   : > { %v4753_v44 = vmul.f32 %v12435_v30, %v2821_v12  ;;  %v5104_v60 = vrot.slane %v4749_v4, 4  ;;  %v3023_v12 = vperm.slane %v12243_v11, 2 }
0x1354   : > { %v12507_v56 = vsel %vm4990_vm7, %v6942_v45, %v12498_v46  ;;  %v4377_v45 = vrot.slane %v12234_v6, 6  ;;  %v12517_v14 = vperm.slane %v4375_v31, 0 }
0x1355   : > { %v5102_v25 = vrot.slane %v4753_v44, 4  ;;  %v5105_v26 = vsel %vm4990_vm7, %v4753_v44, %v5104_v60  ;;  %v4376_v60 = vrot.slane %v12234_v6, 5 }
0x1356   : > { %v12530_v31 = vperm.slane %v5105_v26, %v12287_v50 }
0x1357   : > { %3353 = vperm.xlu0 %10688, %v17022_v22   ;;  %v4758_v22 = vmul.f32 %v12517_v14, %v2853_v3  ;;  %v5103_v33 = vsel %vm4990_vm7, %v5102_v25, %v4749_v4 }
0x1358   : > { %3008 = vperm.xlu2 %10663, %v12474_v32   ;;  %3015 = vperm.xlu1 %10664, %v3010_v54   ;;  %v12538_v3 = vperm.slane %v5103_v33, %v12287_v50  ;;  %v3062_v32 = vperm.slane %v12243_v11, 5 }
0x1359   : > { %v6920_v26 = vrot.slane %v4758_v22, 4 }
0x135a   : > { %v2866_v51 = vpop.permute.xlu2 %2865  ;;  %v2834_v49 = vpop.permute.xlu1 %2833 }
0x135b   : > { %v4755_v38 = vmul.f32 %v4488_v40, %v2834_v49 }
0x135d   : > { %v5114_v30 = vrot.slane %v4755_v38, 4  ;;  %v5117_v27 = vsel %vm4990_vm7, %v4755_v38, %v5116_v5  ;;  %v4491_v5 = vperm.slane %v4377_v45, 0  ;;  %v4490_v45 = vperm.slane %v4376_v60, 0 }
0x135e   : > { %v12522_v43 = vperm.slane %v5117_v27, %v12287_v50  ;;  %v17028_v27 = vperm.slane %v12260_v18, 5 }
0x135f   : > { %v5115_v40 = vsel %vm4990_vm7, %v5114_v30, %v4751_v0  ;;  %10691 = vset.pattern.permute.xlu0 %v12214_v39 }
0x1360   : > { %v12533_v44 = vperm.slane %v5115_v40, %v12287_v50  ;;  %v5162_v49 = vrot.slane %v12522_v43, 4  ;;  %3021 = vperm.xlu2 %10663, %v3010_v54   ;;  %3028 = vperm.xlu1 %10664, %v3023_v12  }
0x1362   : > { %v5150_v4 = vrot.slane %v12533_v44, 4  ;;  %v12543_v0 = vsel %vm4990_vm7, %v5162_v49, %v12530_v31  ;;  %v2879_v25 = vpop.permute.xlu2 %2878  ;;  %v2847_v38 = vpop.permute.xlu1 %2846  ;;  %v4760_v49 = vmul.f32 %v4490_v45, %v2866_v51 }
0x1363   : > { %v4762_v30 = vmul.f32 %v4491_v5, %v2879_v25 }
0x1364   : > { %v12548_v54 = vsel %vm4990_vm7, %v5150_v4, %v12538_v3  ;;  %v6944_v4 = vrot.slane %v12498_v46, 4 }
0x1365   : > { %v6918_v40 = vrot.slane %v4762_v30, 4  ;;  %v6921_v33 = vsel %vm4990_vm7, %v4762_v30, %v6920_v26  ;;  %v6932_v30 = vrot.slane %v4760_v49, 4 }
0x1366   : > { %v6929_v60 = vperm.slane %v6921_v33, %v12287_v50  ;;  %v6945_v51 = vsel %vm4990_vm7, %v12491_v19, %v6944_v4 }
0x1367   : > { %3385 = vperm.xlu0 %10691, %v17028_v27   ;;  %v6919_v25 = vsel %vm4990_vm7, %v6918_v40, %v4758_v22  ;;  %v3049_v40 = vperm.slane %v12243_v11, 4  ;;  %v12575_v19 = vperm.slane %v6945_v51, %v12378_v1 }
0x1368   : > { %3034 = vperm.xlu2 %10663, %v3023_v12   ;;  %3041 = vperm.xlu1 %10664, %v3036_v17   ;;  %v6925_v27 = vperm.slane %v6919_v25, %v12287_v50  ;;  %v6980_v46 = vrot.slane %v6929_v60, 4 }
0x1369   : > { %17284 = vst [vmem:[#allocation35_spill] sm:$0xff] %v12575_v19 }
0x136a   : > { %v2892_v53 = vpop.permute.xlu2 %2891  ;;  %v2860_v26 = vpop.permute.xlu1 %2859  ;;  %v6968_v25 = vrot.slane %v6925_v27, 4 }
0x136b   : > { %v4764_v6 = vmul.f32 %v12556_v61, %v2892_v53  ;;  %v4379_v53 = vrot.slane %v12240_v9, 1 }
0x136d   : > { %v6930_v12 = vrot.slane %v4764_v6, 4  ;;  %v6933_v18 = vsel %vm4990_vm7, %v4764_v6, %v6932_v30  ;;  %v4757_v6 = vmul.f32 %v12517_v14, %v2847_v38  ;;  %v4380_v38 = vrot.slane %v12240_v9, 2 }
0x136e   : > { %v6941_v22 = vperm.slane %v6933_v18, %v12287_v50  ;;  %v5064_v18 = vrot.slane %v12451_v52, 4 }
0x136f   : > { %v6931_v33 = vsel %vm4990_vm7, %v6930_v12, %v4760_v49  ;;  %10694 = vset.pattern.permute.xlu0 %v12209_v36  ;;  %v12582_v49 = vperm.slane %v12502_v48, %v12378_v1  ;;  %v12595_v48 = vperm.slane %v12268_v21, 0 }
0x1370   : > { %v6937_v4 = vperm.slane %v6931_v33, %v12287_v50  ;;  %v6978_v30 = vrot.slane %v6941_v22, 4  ;;  %v6981_v57 = vsel %vm4990_vm7, %v6941_v22, %v6980_v46  ;;  %3047 = vperm.xlu2 %10663, %v3036_v17   ;;  %3054 = vperm.xlu1 %10664, %v3049_v40   ;;  %v7004_v17 = vrot.slane %v12567_v28, 4 }
0x1371   : > { %v12586_v12 = vperm.slane %v6981_v57, %v12378_v1  ;;  %v5052_v57 = vrot.slane %v12302_v58, 4 }
0x1372   : > { %v6966_v51 = vrot.slane %v6937_v4, 4  ;;  %v6969_v29 = vsel %vm4990_vm7, %v6937_v4, %v6968_v25  ;;  %v6979_v33 = vsel %vm4990_vm7, %v6978_v30, %v6929_v60  ;;  %v2873_v16 = vpop.permute.xlu1 %2872  ;;  %v2905_v46 = vpop.permute.xlu2 %2904  ;;  %v6996_v60 = vrot.slane %v12575_v19, 4 }
0x1373   : > { %v12592_v52 = vperm.slane %v6969_v29, %v12378_v1  ;;  %v4761_v22 = vmul.f32 %v4491_v5, %v2873_v16  ;;  %v12598_v14 = vperm.slane %v6979_v33, %v12378_v1  ;;  %v12605_v4 = vsel %vm4990_vm7, %v12586_v12, %v7004_v17 }
0x1374   : > { %v6967_v25 = vsel %vm4990_vm7, %v6966_v51, %v6925_v27  ;;  %17286 = vst [vmem:[#allocation37_spill] sm:$0xff] %v12605_v4  ;;  %v5128_v30 = vrot.slane %v4757_v6, 4  ;;  %v4381_v16 = vrot.slane %v12240_v9, 3  ;;  %v7000_v5 = vrot.slane %v12582_v49, 4 }
0x1375   : > { %17285 = vst [vmem:[#allocation36_spill] sm:$0xff] %v12592_v52  ;;  %v5126_v29 = vrot.slane %v4761_v22, 4  ;;  %v5065_v33 = vsel %vm4990_vm7, %v12432_v55, %v5064_v18  ;;  %v12615_v27 = vsel %vm4990_vm7, %v12592_v52, %v6996_v60  ;;  %v4759_v51 = vmul.f32 %v4490_v45, %v2860_v26 }
0x1376   : > { %17287 = vst [vmem:[#allocation38_spill] sm:$0xff] %v12615_v27  ;;  %v5129_v17 = vsel %vm4990_vm7, %v4761_v22, %v5128_v30  ;;  %v12623_v58 = vsel %vm4990_vm7, %v12598_v14, %v7000_v5  ;;  %v5053_v55 = vsel %vm4990_vm7, %v12294_v62, %v5052_v57  ;;  %v5076_v18 = vrot.slane %v12460_v8, 4 }
0x1377   : > { %3418 = vperm.xlu0 %10694, %v12595_v48   ;;  %17288 = vst [vmem:[#allocation39_spill] sm:$0xff] %v12623_v58  ;;  %v5164_v60 = vrot.slane %v12530_v31, 4  ;;  %v12629_v45 = vperm.slane %v4379_v53, 0  ;;  %v5040_v26 = vrot.slane %v12309_v2, 4  ;;  %v5127_v22 = vsel %vm4990_vm7, %v5126_v29, %v4757_v6 }
0x1378   : > { %3060 = vperm.xlu2 %10663, %v3049_v40   ;;  %3067 = vperm.xlu1 %10664, %v3062_v32   ;;  %v12633_v30 = vperm.slane %v4380_v38, 0  ;;  %v12635_v19 = vperm.slane %v4381_v16, 0  ;;  %v5137_v62 = vperm.slane %v5129_v17, %v12287_v50  ;;  %v12641_v31 = vperm.slane %v5065_v33, %v12378_v1 }
0x1379   : > { %v5165_v5 = vsel %vm4990_vm7, %v12522_v43, %v5164_v60  ;;  %v12645_v40 = vperm.slane %v12507_v56, %v12378_v1  ;;  %v5041_v2 = vsel %vm4990_vm7, %v12305_v59, %v5040_v26  ;;  %v12650_v53 = vperm.slane %v5053_v55, %v12378_v1 }
0x137a   : > { %v2886_v8 = vpop.permute.xlu1 %2885  ;;  %v2918_v57 = vpop.permute.xlu2 %2917  ;;  %v5140_v6 = vrot.slane %v4759_v51, 4  ;;  %v5077_v38 = vsel %vm4990_vm7, %v12439_v20, %v5076_v18  ;;  %v5152_v29 = vrot.slane %v12538_v3, 4  ;;  %v5133_v16 = vperm.slane %v5127_v22, %v12287_v50 }
0x137b   : > { %17289 = vst [vmem:[#allocation40_spill] sm:$0xff] %v12650_v53  ;;  %v4763_v43 = vmul.f32 %v12556_v61, %v2886_v8  ;;  %v3075_v33 = vperm.slane %v12243_v11, 6  ;;  %v12659_v56 = vperm.slane %v5165_v5, %v12378_v1  ;;  %v12663_v55 = vperm.slane %v6967_v25, %v12378_v1 }
0x137c   : > { %v5188_v60 = vrot.slane %v5137_v62, 4  ;;  %v5090_v20 = vrot.slane %v12641_v31, 4  ;;  %v6992_v3 = vrot.slane %v12645_v40, 4  ;;  %v5153_v18 = vsel %vm4990_vm7, %v12533_v44, %v5152_v29 }
0x137d   : > { %17290 = vst [vmem:[#allocation41_spill] sm:$0xff] %v12659_v56  ;;  %v5138_v17 = vrot.slane %v4763_v43, 4  ;;  %v5141_v59 = vsel %vm4990_vm7, %v4763_v43, %v5140_v6  ;;  %v5169_v26 = vperm.slane %v12543_v0, %v12378_v1  ;;  %v12673_v22 = vmul.f32 %v2905_v46, %v12321_v10 }
0x137e   : > { %v5149_v61 = vperm.slane %v5141_v59, %v12287_v50  ;;  %v5176_v25 = vrot.slane %v5133_v16, 4  ;;  %v5157_v0 = vperm.slane %v12548_v54, %v12378_v1  ;;  %v12686_v46 = vsel %vm4990_vm7, %v12663_v55, %v6992_v3 }
0x137f   : > { %v5139_v5 = vsel %vm4990_vm7, %v5138_v17, %v4759_v51  ;;  %10697 = vset.pattern.permute.xlu0 %v12214_v39  ;;  %17291 = vst [vmem:[#allocation42_spill] sm:$0xff] %v12686_v46  ;;  %v5212_v51 = vrot.slane %v12659_v56, 4  ;;  %v12702_v23 = vperm.slane %v5077_v38, %v12378_v1  ;;  %v12716_v3 = vperm.slane %v5153_v18, %v12378_v1 }
0x1380   : > { %v5145_v8 = vperm.slane %v5139_v5, %v12287_v50  ;;  %v5186_v6 = vrot.slane %v5149_v61, 4  ;;  %v5189_v43 = vsel %vm4990_vm7, %v5149_v61, %v5188_v60  ;;  %3073 = vperm.xlu2 %10663, %v3062_v32   ;;  %3080 = vperm.xlu1 %10664, %v3075_v33   ;;  %v7008_v5 = vrot.slane %v12673_v22, 4 }
0x1381   : > { %v12680_v44 = vperm.slane %v5189_v43, %v12378_v1  ;;  %v5208_v61 = vrot.slane %v5169_v26, 4  ;;  %v4768_v38 = vmul.f32 %v12629_v45, %v2918_v57  ;;  %v4384_v52 = vrot.slane %v12240_v9, 6 }
0x1382   : > { %v5174_v29 = vrot.slane %v5145_v8, 4  ;;  %v5177_v17 = vsel %vm4990_vm7, %v5145_v8, %v5176_v25  ;;  %v5187_v59 = vsel %vm4990_vm7, %v5186_v6, %v5137_v62  ;;  %v2931_v60 = vpop.permute.xlu2 %2930  ;;  %v12691_v32 = vpop.permute.xlu1 %2898  ;;  %v12711_v6 = vperm.slane %v5041_v2, %v12378_v1 }
0x1383   : > { %v4770_v54 = vmul.f32 %v12633_v30, %v2931_v60  ;;  %v12699_v43 = vperm.slane %v5177_v17, %v12378_v1  ;;  %v5193_v25 = vperm.slane %v5187_v59, %v12378_v1  ;;  %v12708_v8 = vsel %vm4990_vm7, %v12680_v44, %v5212_v51 }
0x1384   : > { %v5175_v62 = vsel %vm4990_vm7, %v5174_v29, %v5133_v16  ;;  %17292 = vst [vmem:[#allocation43_spill] sm:$0xff] %v12708_v8  ;;  %v5100_v17 = vrot.slane %v12650_v53, 4  ;;  %v3088_v16 = vperm.slane %v12243_v11, 7  ;;  %v17293_v51 = vperm.slane %v12268_v21, 2 }
0x1385   : > { %v7009_v60 = vsel %vm4990_vm7, %v4770_v54, %v7008_v5  ;;  %v5202_v29 = vrot.slane %v12699_v43, 4  ;;  %v12725_v2 = vsel %vm4990_vm7, %v5090_v20, %v12711_v6  ;;  %v5181_v59 = vperm.slane %v5175_v62, %v12378_v1 }
0x1386   : > { %17294 = vst [vmem:[#allocation44_spill] sm:$0xff] %v12725_v2  ;;  %v5200_v5 = vrot.slane %v5157_v0, 4  ;;  %v12729_v27 = vsel %vm4990_vm7, %v5193_v25, %v5208_v61  ;;  %v7017_v18 = vperm.slane %v7009_v60, %v12287_v50  ;;  %v7002_v20 = vrot.slane %v12586_v12, 4 }
0x1387   : > { %3450 = vperm.xlu0 %10697, %v17293_v51   ;;  %17295 = vst [vmem:[#allocation45_spill] sm:$0xff] %v12729_v27  ;;  %v12734_v57 = vsel %vm4990_vm7, %v5202_v29, %v12716_v3  ;;  %v12738_v51 = vsel %vm4990_vm7, %v12702_v23, %v5100_v17  ;;  %v5206_v60 = vrot.slane %v5193_v25, 4  ;;  %v7020_v41 = vrot.slane %v4768_v38, 4 }
0x1388   : > { %3086 = vperm.xlu2 %10663, %v3075_v33   ;;  %3093 = vperm.xlu1 %10664, %v3088_v16   ;;  %17296 = vst [vmem:[#allocation46_spill] sm:$0xff] %v12734_v57  ;;  %v12744_v61 = vsel %vm4990_vm7, %v5181_v59, %v5200_v5  ;;  %v5198_v12 = vrot.slane %v5181_v59, 4  ;;  %v7006_v53 = vrot.slane %v4770_v54, 4  ;;  %v6990_v2 = vrot.slane %v12663_v55, 4  ;;  %v17330_v57 = vld [vmem:[#allocation13_spill] sm:$0xff] }
0x1389   : > { %17297 = vst [vmem:[#allocation47_spill] sm:$0xff] %v12738_v51  ;;  %v12754_v5 = vsel %vm4990_vm7, %v5206_v60, %v5169_v26  ;;  %v12766_v59 = vsel %vm4990_vm7, %v7002_v20, %v12567_v28  ;;  %v7068_v54 = vrot.slane %v7017_v18, 4  ;;  %v17050_v25 = vperm.slane %v12268_v21, 7 }
0x138a   : > { %17298 = vst [vmem:[#allocation48_spill] sm:$0xff] %v12744_v61  ;;  %v2944_v46 = vpop.permute.xlu2 %2943  ;;  %v2912_v29 = vpop.permute.xlu1 %2911  ;;  %v12760_v33 = vsel %vm4990_vm7, %v5198_v12, %v5157_v0  ;;  %v12771_v55 = vsel %vm4990_vm7, %v6990_v2, %v12645_v40  ;;  %v6998_v12 = vrot.slane %v12598_v14, 4  ;;  %v7007_v28 = vsel %vm4990_vm7, %v7006_v53, %v12673_v22 }
0x138b   : > { %v4772_v62 = vmul.f32 %v12635_v19, %v2944_v46  ;;  %17299 = vst [vmem:[#allocation49_spill] sm:$0xff] %v12754_v5  ;;  %v12795_v22 = vperm.slane %v7007_v28, %v12287_v50  ;;  %v3127_v4 = vperm.slane %v12246_v13, 2  ;;  %v3166_v51 = vperm.slane %v12246_v13, 5  ;;  %v17329_v5 = vld [vmem:[#allocation11_spill] sm:$0xff] }
0x138c   : > { %17300 = vst [vmem:[#allocation50_spill] sm:$0xff] %v12760_v33  ;;  %v12790_v14 = vsel %vm4990_vm7, %v6998_v12, %v12582_v49  ;;  %v12812_v12 = vmul.f32 %v12691_v32, %v12321_v10  ;;  %v12828_v32 = vmul.f32 %v12629_v45, %v2912_v29  ;;  %v17304_v45 = vperm.slane %v12246_v13, 1 }
0x138d   : > { %17301 = vst [vmem:[#allocation51_spill] sm:$0xff] %v12766_v59  ;;  %v7018_v46 = vrot.slane %v4772_v62, 4  ;;  %v7021_v26 = vsel %vm4990_vm7, %v4772_v62, %v7020_v41  ;;  %v4383_v29 = vrot.slane %v12240_v9, 5  ;;  %v13045_v7 = vperm.slane %v17329_v5, 0 }
0x138e   : > { %17302 = vst [vmem:[#allocation52_spill] sm:$0xff] %v12771_v55  ;;  %v7029_v60 = vperm.slane %v7021_v26, %v12287_v50  ;;  %v17044_v26 = vperm.slane %v12268_v21, 5  ;;  %v4391_v27 = vrot.slane %v12243_v11, 6 }
0x138f   : > { %v7019_v20 = vsel %vm4990_vm7, %v7018_v46, %v4768_v38  ;;  %10700 = vset.pattern.permute.xlu0 %v12209_v36  ;;  %17303 = vst [vmem:[#allocation53_spill] sm:$0xff] %v12790_v14 }
0x1390   : > { %v12784_v41 = vperm.slane %v7019_v20, %v12287_v50  ;;  %v7066_v40 = vrot.slane %v7029_v60, 4  ;;  %v7069_v2 = vsel %vm4990_vm7, %v7029_v60, %v7068_v54  ;;  %3099 = vperm.xlu2 %10663, %v3088_v16   ;;  %10665 = vset.pattern.permute.xlu1 %v12214_v39 }
0x1392   : > { %v7054_v38 = vrot.slane %v12784_v41, 4  ;;  %v12799_v62 = vsel %vm4990_vm7, %v7066_v40, %v7017_v18  ;;  %v2957_v46 = vpop.permute.xlu2 %2956  ;;  %v2925_v54 = vpop.permute.xlu1 %2924 }
0x1393   : > { %v12802_v16 = vmul.f32 %v12633_v30, %v2925_v54  ;;  %v4382_v30 = vrot.slane %v12240_v9, 4 }
0x1394   : > { %v12807_v49 = vsel %vm4990_vm7, %v7054_v38, %v12795_v22 }
0x1395   : > { %v5214_v60 = vrot.slane %v12802_v16, 4  ;;  %v12830_v38 = vperm.slane %v4382_v30, 0  ;;  %v4499_v30 = vperm.slane %v4384_v52, 0 }
0x1397   : > { %3483 = vperm.xlu0 %10700, %v17044_v26   ;;  %v5215_v18 = vsel %vm4990_vm7, %v5214_v60, %v12812_v12  ;;  %v4774_v53 = vmul.f32 %v12830_v38, %v2957_v46 }
0x1398   : > { %10666 = vset.pattern.permute.xlu2 %v12209_v36  ;;  %3112 = vperm.xlu1 %10665, %v12253_v15   ;;  %v12825_v10 = vperm.slane %v5215_v18, %v12287_v50 }
0x1399   : > { %v7032_v0 = vrot.slane %v4774_v53, 4 }
0x139a   : > { %v2970_v28 = vpop.permute.xlu2 %2969  ;;  %v2938_v20 = vpop.permute.xlu1 %2937 }
0x139b   : > { %v12822_v40 = vmul.f32 %v12635_v19, %v2938_v20  ;;  %v5264_v19 = vrot.slane %v12825_v10, 4 }
0x139d   : > { %v5226_v54 = vrot.slane %v12822_v40, 4 }
0x139f   : > { %v5227_v60 = vsel %vm4990_vm7, %v5226_v54, %v12828_v32  ;;  %10703 = vset.pattern.permute.xlu0 %v12214_v39 }
0x13a0   : > { %v12840_v18 = vperm.slane %v5227_v60, %v12287_v50  ;;  %3119 = vperm.xlu2 %10666, %v17304_v45   ;;  %10668 = vset.pattern.permute.xlu1 %v12209_v36  ;;  %v4498_v60 = vperm.slane %v4383_v29, 0  ;;  %v4385_v45 = vrot.slane %v12240_v9, 7 }
0x13a2   : > { %v12848_v46 = vsel %vm4990_vm7, %v12840_v18, %v5264_v19  ;;  %v2983_v20 = vpop.permute.xlu2 %2982  ;;  %v2951_v54 = vpop.permute.xlu1 %2950  ;;  %v4776_v35 = vmul.f32 %v4498_v60, %v2970_v28  ;;  %v12858_v19 = vperm.slane %v4385_v45, 0  ;;  %v7077_v28 = vperm.slane %v7069_v2, %v12378_v1 }
0x13a3   : > { %v4778_v17 = vmul.f32 %v4499_v30, %v2983_v20 }
0x13a5   : > { %v7030_v26 = vrot.slane %v4778_v17, 4  ;;  %v7033_v63 = vsel %vm4990_vm7, %v4778_v17, %v7032_v0  ;;  %v7044_v17 = vrot.slane %v4776_v35, 4 }
0x13a6   : > { %v7041_v29 = vperm.slane %v7033_v63, %v12287_v50 }
0x13a7   : > { %3515 = vperm.xlu0 %10703, %v17050_v25   ;;  %v7031_v52 = vsel %vm4990_vm7, %v7030_v26, %v4774_v53  ;;  %v3140_v53 = vperm.slane %v12246_v13, 3  ;;  %v7056_v26 = vrot.slane %v12795_v22, 4  ;;  %v7073_v22 = vperm.slane %v12799_v62, %v12378_v1 }
0x13a8   : > { %10669 = vset.pattern.permute.xlu2 %v12214_v39  ;;  %3132 = vperm.xlu1 %10668, %v3127_v4   ;;  %v7037_v0 = vperm.slane %v7031_v52, %v12287_v50  ;;  %v7092_v59 = vrot.slane %v7041_v29, 4 }
0x13aa   : > { %v2996_v20 = vpop.permute.xlu2 %2995  ;;  %v2964_v14 = vpop.permute.xlu1 %2963  ;;  %v7080_v45 = vrot.slane %v7037_v0, 4 }
0x13ab   : > { %v4780_v9 = vmul.f32 %v12858_v19, %v2996_v20 }
0x13ad   : > { %v7042_v34 = vrot.slane %v4780_v9, 4  ;;  %v7045_v25 = vsel %vm4990_vm7, %v4780_v9, %v7044_v17  ;;  %v7057_v17 = vsel %vm4990_vm7, %v12784_v41, %v7056_v26  ;;  %v7116_v9 = vrot.slane %v7077_v28, 4 }
0x13ae   : > { %v7053_v47 = vperm.slane %v7045_v25, %v12287_v50  ;;  %v17054_v41 = vperm.slane %v12272_v24, 2 }
0x13af   : > { %v7043_v63 = vsel %vm4990_vm7, %v7042_v34, %v4776_v35  ;;  %10706 = vset.pattern.permute.xlu0 %v12209_v36 }
0x13b0   : > { %v7049_v20 = vperm.slane %v7043_v63, %v12287_v50  ;;  %v7090_v52 = vrot.slane %v7053_v47, 4  ;;  %v7093_v2 = vsel %vm4990_vm7, %v7053_v47, %v7092_v59  ;;  %3138 = vperm.xlu2 %10669, %v3127_v4   ;;  %3145 = vperm.xlu1 %10668, %v3140_v53   ;;  %v7061_v47 = vperm.slane %v12807_v49, %v12378_v1 }
0x13b1   : > { %v7101_v25 = vperm.slane %v7093_v2, %v12378_v1 }
0x13b2   : > { %v7078_v34 = vrot.slane %v7049_v20, 4  ;;  %v7081_v35 = vsel %vm4990_vm7, %v7049_v20, %v7080_v45  ;;  %v7091_v58 = vsel %vm4990_vm7, %v7090_v52, %v7041_v29  ;;  %v2977_v63 = vpop.permute.xlu1 %2976  ;;  %v3009_v55 = vpop.permute.xlu2 %3008  ;;  %v12891_v29 = vperm.slane %v7057_v17, %v12378_v1 }
0x13b3   : > { %v7097_v4 = vperm.slane %v7091_v58, %v12378_v1  ;;  %v4777_v59 = vmul.f32 %v4499_v30, %v2977_v63  ;;  %v12884_v26 = vperm.slane %v7081_v35, %v12378_v1  ;;  %v7114_v2 = vrot.slane %v7101_v25, 4 }
0x13b4   : > { %v7079_v62 = vsel %vm4990_vm7, %v7078_v34, %v7037_v0  ;;  %v12888_v45 = vsel %vm4990_vm7, %v7101_v25, %v7116_v9  ;;  %17307 = vst [vmem:[#allocation56_spill] sm:$0xff] %v12891_v29  ;;  %v7112_v52 = vrot.slane %v7073_v22, 4  ;;  %v7104_v30 = vrot.slane %v7061_v47, 4 }
0x13b5   : > { %17305 = vst [vmem:[#allocation54_spill] sm:$0xff] %v12884_v26  ;;  %v5238_v20 = vrot.slane %v4777_v59, 4  ;;  %v7106_v49 = vrot.slane %v12884_v26, 4  ;;  %v7085_v58 = vperm.slane %v7079_v62, %v12378_v1  ;;  %v12896_v63 = vsel %vm4990_vm7, %v7114_v2, %v7077_v28 }
0x13b6   : > { %17306 = vst [vmem:[#allocation55_spill] sm:$0xff] %v12888_v45  ;;  %v4773_v35 = vmul.f32 %v12830_v38, %v2951_v54  ;;  %v4775_v0 = vmul.f32 %v4498_v60, %v2964_v14  ;;  %v7110_v25 = vrot.slane %v7097_v4, 4  ;;  %v12902_v17 = vsel %vm4990_vm7, %v7097_v4, %v7112_v52 }
0x13b7   : > { %17308 = vst [vmem:[#allocation57_spill] sm:$0xff] %v12896_v63  ;;  %3548 = vperm.xlu0 %10706, %v17054_v41   ;;  %v5228_v9 = vrot.slane %v12828_v32, 4  ;;  %v12908_v34 = vsel %vm4990_vm7, %v7106_v49, %v12891_v29  ;;  %v12912_v14 = vsel %vm4990_vm7, %v7085_v58, %v7104_v30  ;;  %v7102_v38 = vrot.slane %v7085_v58, 4 }
0x13b8   : > { %17309 = vst [vmem:[#allocation58_spill] sm:$0xff] %v12902_v17  ;;  %3151 = vperm.xlu2 %10669, %v3140_v53   ;;  %10671 = vset.pattern.permute.xlu1 %v12214_v39  ;;  %v5239_v28 = vsel %vm4990_vm7, %v5238_v20, %v4773_v35  ;;  %v12915_v54 = vsel %vm4990_vm7, %v7110_v25, %v7073_v22  ;;  %v5216_v4 = vrot.slane %v12812_v12, 4  ;;  %v5252_v62 = vrot.slane %v4775_v0, 4 }
0x13b9   : > { %17310 = vst [vmem:[#allocation59_spill] sm:$0xff] %v12908_v34  ;;  %v5229_v60 = vsel %vm4990_vm7, %v12822_v40, %v5228_v9  ;;  %v12922_v52 = vsel %vm4990_vm7, %v7102_v38, %v7061_v47  ;;  %v5240_v20 = vrot.slane %v4773_v35, 4  ;;  %v5245_v49 = vperm.slane %v5239_v28, %v12287_v50  ;;  %v17314_v9 = vld [vmem:[#allocation31_spill] sm:$0xff] }
0x13ba   : > { %17311 = vst [vmem:[#allocation60_spill] sm:$0xff] %v12912_v14  ;;  %v2990_v32 = vpop.permute.xlu1 %2989  ;;  %v3022_v53 = vpop.permute.xlu2 %3021  ;;  %v4387_v58 = vrot.slane %v12243_v11, 2  ;;  %v5217_v22 = vsel %vm4990_vm7, %v12802_v16, %v5216_v4  ;;  %v5237_v40 = vperm.slane %v5229_v60, %v12287_v50  ;;  %v4386_v35 = vrot.slane %v12243_v11, 1  ;;  %v17354_v14 = vld [vmem:[#allocation12_spill] sm:$0xff] }
0x13bb   : > { %17312 = vst [vmem:[#allocation61_spill] sm:$0xff] %v12915_v54  ;;  %v4779_v2 = vmul.f32 %v12858_v19, %v2990_v32  ;;  %v5241_v12 = vsel %vm4990_vm7, %v4777_v59, %v5240_v20  ;;  %v4782_v19 = vmul.f32 %v3009_v55, %v17314_v9  ;;  %v5225_v28 = vperm.slane %v5217_v22, %v12287_v50  ;;  %v17351_v54 = vld [vmem:[#allocation14_spill] sm:$0xff] }
0x13bc   : > { %17313 = vst [vmem:[#allocation62_spill] sm:$0xff] %v12922_v52  ;;  %v5288_v38 = vrot.slane %v5245_v49, 4  ;;  %v17315_v32 = vperm.slane %v12246_v13, 4  ;;  %v5274_v59 = vrot.slane %v5237_v40, 4  ;;  %v5249_v55 = vperm.slane %v5241_v12, %v12287_v50 }
0x13bd   : > { %v5250_v30 = vrot.slane %v4779_v2, 4  ;;  %v5253_v25 = vsel %vm4990_vm7, %v4779_v2, %v5252_v62  ;;  %v7120_v20 = vrot.slane %v4782_v19, 4  ;;  %v12949_v41 = vperm.slane %v4386_v35, 0 }
0x13be   : > { %v5261_v60 = vperm.slane %v5253_v25, %v12287_v50  ;;  %v5276_v25 = vrot.slane %v5225_v28, 4  ;;  %v5262_v12 = vrot.slane %v12840_v18, 4  ;;  %v5300_v52 = vrot.slane %v5249_v55, 4 }
0x13bf   : > { %v5251_v47 = vsel %vm4990_vm7, %v5250_v30, %v4775_v0  ;;  %10709 = vset.pattern.permute.xlu0 %v12214_v39  ;;  %v12942_v0 = vperm.slane %v4387_v58, 0  ;;  %v5275_v58 = vsel %vm4990_vm7, %v5274_v59, %v5225_v28  ;;  %v4784_v8 = vmul.f32 %v12949_v41, %v3022_v53 }
0x13c0   : > { %v5257_v16 = vperm.slane %v5251_v47, %v12287_v50  ;;  %10672 = vset.pattern.permute.xlu2 %v12209_v36  ;;  %3164 = vperm.xlu1 %10671, %v17315_v32   ;;  %v5298_v47 = vrot.slane %v5261_v60, 4  ;;  %v4388_v32 = vrot.slane %v12243_v11, 3  ;;  %v5301_v30 = vsel %vm4990_vm7, %v5261_v60, %v5300_v52 }
0x13c1   : > { %v17316_v35 = vperm.slane %v12272_v24, 4  ;;  %v5273_v18 = vperm.slane %v12848_v46, %v12378_v1  ;;  %v12970_v53 = vperm.slane %v5301_v30, %v12378_v1 }
0x13c2   : > { %v5289_v4 = vsel %vm4990_vm7, %v5257_v16, %v5288_v38  ;;  %v3035_v62 = vpop.permute.xlu2 %3034  ;;  %v12945_v2 = vpop.permute.xlu1 %3002  ;;  %v5286_v33 = vrot.slane %v5257_v16, 4  ;;  %v5299_v28 = vsel %vm4990_vm7, %v5298_v47, %v5249_v55  ;;  %v12965_v16 = vperm.slane %v5275_v58, %v12378_v1 }
0x13c3   : > { %v4786_v22 = vmul.f32 %v12942_v0, %v3035_v62  ;;  %v5277_v62 = vsel %vm4990_vm7, %v5237_v40, %v5276_v25  ;;  %v5263_v40 = vsel %vm4990_vm7, %v5262_v12, %v12825_v10  ;;  %v4504_v52 = vperm.slane %v4388_v32, 0  ;;  %17318 = vst [vmem:[#allocation63_spill] sm:$0xff] %v12970_v53 }
0x13c4   : > { %17317 = vst [vmem:[#allocation31_spill] sm:$0xff] %v12965_v16  ;;  %v5287_v46 = vsel %vm4990_vm7, %v5286_v33, %v5245_v49  ;;  %v12975_v55 = vperm.slane %v5277_v62, %v12378_v1  ;;  %v7132_v47 = vrot.slane %v4784_v8, 4  ;;  %v12981_v10 = vperm.slane %v5263_v40, %v12378_v1 }
0x13c5   : > { %v7121_v38 = vsel %vm4990_vm7, %v4786_v22, %v7120_v20  ;;  %v7118_v59 = vrot.slane %v4786_v22, 4  ;;  %v12984_v22 = vperm.slane %v5287_v46, %v12378_v1  ;;  %v5316_v30 = vrot.slane %v5273_v18, 4 }
0x13c6   : > { %v7129_v60 = vperm.slane %v7121_v38, %v12287_v50  ;;  %17319 = vst [vmem:[#allocation64_spill] sm:$0xff] %v12975_v55  ;;  %v5320_v32 = vrot.slane %v12965_v16, 4  ;;  %v5297_v38 = vperm.slane %v5289_v4, %v12378_v1  ;;  %v5322_v40 = vrot.slane %v12970_v53, 4 }
0x13c7   : > { %3580 = vperm.xlu0 %10709, %v17316_v35   ;;  %17321 = vst [vmem:[#allocation66_spill] sm:$0xff] %v12981_v10  ;;  %v7119_v12 = vsel %vm4990_vm7, %v7118_v59, %v4782_v19 }
0x13c8   : > { %3171 = vperm.xlu2 %10672, %v3166_v51   ;;  %3177 = vperm.xlu1 %10671, %v3166_v51   ;;  %v12978_v51 = vperm.slane %v5299_v28, %v12378_v1  ;;  %17322 = vst [vmem:[#allocation67_spill] sm:$0xff] %v12984_v22  ;;  %v7180_v62 = vrot.slane %v7129_v60, 4  ;;  %v5310_v28 = vrot.slane %v12984_v22, 4  ;;  %v12996_v46 = vsel %vm4990_vm7, %v5297_v38, %v5316_v30 }
0x13c9   : > { %17323 = vst [vmem:[#allocation68_spill] sm:$0xff] %v12996_v46  ;;  %v5314_v19 = vrot.slane %v5297_v38, 4  ;;  %v13015_v30 = vsel %vm4990_vm7, %v5322_v40, %v12975_v55 }
0x13ca   : > { %v3048_v20 = vpop.permute.xlu2 %3047  ;;  %v3016_v25 = vpop.permute.xlu1 %3015  ;;  %17320 = vst [vmem:[#allocation65_spill] sm:$0xff] %v12978_v51  ;;  %v13000_v59 = vsel %vm4990_vm7, %v12978_v51, %v5320_v32 }
0x13cb   : > { %v4788_v58 = vmul.f32 %v4504_v52, %v3048_v20  ;;  %17324 = vst [vmem:[#allocation69_spill] sm:$0xff] %v13000_v59  ;;  %v13018_v32 = vsel %vm4990_vm7, %v5314_v19, %v5273_v18  ;;  %v3192_v19 = vperm.slane %v12246_v13, 7 }
0x13cc   : > { %17327 = vst [vmem:[#allocation71_spill] sm:$0xff] %v13015_v30 }
0x13cd   : > { %v7130_v33 = vrot.slane %v4788_v58, 4  ;;  %v7133_v49 = vsel %vm4990_vm7, %v4788_v58, %v7132_v47  ;;  %17328 = vst [vmem:[#allocation72_spill] sm:$0xff] %v13018_v32 }
0x13ce   : > { %v7141_v35 = vperm.slane %v7133_v49, %v12287_v50  ;;  %v17325_v49 = vperm.slane %v12246_v13, 6 }
0x13cf   : > { %v7131_v20 = vsel %vm4990_vm7, %v7130_v33, %v4784_v8  ;;  %10712 = vset.pattern.permute.xlu0 %v12209_v36  ;;  %v13011_v8 = vsel %vm4990_vm7, %v5310_v28, %v12981_v10  ;;  %v7125_v33 = vperm.slane %v7119_v12, %v12287_v50  ;;  %v17060_v28 = vperm.slane %v12272_v24, 7 }
0x13d0   : > { %v13003_v4 = vperm.slane %v7131_v20, %v12287_v50  ;;  %v7178_v47 = vrot.slane %v7141_v35, 4  ;;  %v7181_v58 = vsel %vm4990_vm7, %v7141_v35, %v7180_v62  ;;  %3184 = vperm.xlu2 %10672, %v17325_v49   ;;  %10674 = vset.pattern.permute.xlu1 %v12209_v36  ;;  %17326 = vst [vmem:[#allocation70_spill] sm:$0xff] %v13011_v8  ;;  %v17070_v8 = vperm.slane %v17330_v57, 1 }
0x13d1   : > { %v4781_v12 = vmul.f32 %v12945_v2, %v17314_v9  ;;  %v4783_v9 = vmul.f32 %v12949_v41, %v3016_v25  ;;  %v4507_v41 = vperm.slane %v4391_v27, 0 }
0x13d2   : > { %v7166_v38 = vrot.slane %v13003_v4, 4  ;;  %v13023_v62 = vsel %vm4990_vm7, %v7178_v47, %v7129_v60  ;;  %v3061_v35 = vpop.permute.xlu2 %3060  ;;  %v3029_v20 = vpop.permute.xlu1 %3028 }
0x13d3   : > { %v13026_v49 = vmul.f32 %v12942_v0, %v3029_v20  ;;  %v4389_v0 = vrot.slane %v12243_v11, 4  ;;  %v5328_v51 = vrot.slane %v4781_v12, 4 }
0x13d4   : > { %v13030_v40 = vsel %vm4990_vm7, %v7166_v38, %v7125_v33 }
0x13d5   : > { %v5326_v18 = vrot.slane %v13026_v49, 4  ;;  %v4505_v2 = vperm.slane %v4389_v0, 0 }
0x13d7   : > { %3613 = vperm.xlu0 %10712, %v17060_v28   ;;  %v5327_v60 = vsel %vm4990_vm7, %v5326_v18, %v4781_v12  ;;  %v4790_v42 = vmul.f32 %v4505_v2, %v3061_v35 }
0x13d8   : > { %10675 = vset.pattern.permute.xlu2 %v12214_v39  ;;  %3197 = vperm.xlu1 %10674, %v3192_v19   ;;  %v13042_v37 = vperm.slane %v5327_v60, %v12287_v50  ;;  %v4390_v60 = vrot.slane %v12243_v11, 5 }
0x13da   : > { %v3074_v47 = vpop.permute.xlu2 %3073  ;;  %v3042_v38 = vpop.permute.xlu1 %3041  ;;  %v5376_v18 = vrot.slane %v13042_v37, 4  ;;  %v4506_v26 = vperm.slane %v4390_v60, 0 }
0x13db   : > { %v4787_v20 = vmul.f32 %v4504_v52, %v3042_v38 }
0x13dc   : > { %v4792_v53 = vmul.f32 %v4506_v26, %v3074_v47 }
0x13dd   : > { %v5338_v28 = vrot.slane %v4787_v20, 4 }
0x13df   : > { %v5339_v61 = vsel %vm4990_vm7, %v5338_v28, %v4783_v9  ;;  %10715 = vset.pattern.permute.xlu0 %v12214_v39  ;;  %v7144_v28 = vrot.slane %v4790_v42, 4 }
0x13e0   : > { %v13053_v52 = vperm.slane %v5339_v61, %v12287_v50  ;;  %3203 = vperm.xlu2 %10675, %v3192_v19   ;;  %3210 = vperm.xlu1 %10674, %v13045_v7   ;;  %v4392_v19 = vrot.slane %v12243_v11, 7  ;;  %v7156_v11 = vrot.slane %v4792_v53, 4 }
0x13e2   : > { %v13059_v25 = vsel %vm4990_vm7, %v13053_v52, %v5376_v18  ;;  %v3087_v35 = vpop.permute.xlu2 %3086  ;;  %v3055_v0 = vpop.permute.xlu1 %3054  ;;  %v13069_v18 = vperm.slane %v4392_v19, 0  ;;  %v3231_v19 = vperm.slane %v17329_v5, 2 }
0x13e3   : > { %v4794_v38 = vmul.f32 %v4507_v41, %v3087_v35  ;;  %v7168_v35 = vrot.slane %v7125_v33, 4 }
0x13e5   : > { %v7142_v29 = vrot.slane %v4794_v38, 4  ;;  %v7145_v61 = vsel %vm4990_vm7, %v4794_v38, %v7144_v28  ;;  %v7189_v28 = vperm.slane %v7181_v58, %v12378_v1  ;;  %v7169_v38 = vsel %vm4990_vm7, %v13003_v4, %v7168_v35 }
0x13e6   : > { %v7153_v60 = vperm.slane %v7145_v61, %v12287_v50  ;;  %v13081_v58 = vperm.slane %v7169_v38, %v12378_v1 }
0x13e7   : > { %3645 = vperm.xlu0 %10715, %v17070_v8   ;;  %v7143_v27 = vsel %vm4990_vm7, %v7142_v29, %v4790_v42  ;;  %v5340_v29 = vrot.slane %v4783_v9, 4  ;;  %v7228_v12 = vrot.slane %v7189_v28, 4 }
0x13e8   : > { %3216 = vperm.xlu2 %10675, %v13045_v7   ;;  %10677 = vset.pattern.permute.xlu1 %v12214_v39  ;;  %v7149_v8 = vperm.slane %v7143_v27, %v12287_v50  ;;  %v7204_v33 = vrot.slane %v7153_v60, 4  ;;  %17331 = vst [vmem:[#allocation11_spill] sm:$0xff] %v13081_v58 }
0x13e9   : > { %v5341_v38 = vsel %vm4990_vm7, %v4787_v20, %v5340_v29 }
0x13ea   : > { %v3100_v55 = vpop.permute.xlu2 %3099  ;;  %v3068_v16 = vpop.permute.xlu1 %3067  ;;  %v7192_v27 = vrot.slane %v7149_v8, 4 }
0x13eb   : > { %v4796_v47 = vmul.f32 %v13069_v18, %v3100_v55  ;;  %v5329_v55 = vsel %vm4990_vm7, %v13026_v49, %v5328_v51 }
0x13ed   : > { %v7154_v22 = vrot.slane %v4796_v47, 4  ;;  %v7157_v42 = vsel %vm4990_vm7, %v4796_v47, %v7156_v11  ;;  %v17332_v47 = vperm.slane %v17329_v5, 1 }
0x13ee   : > { %v7165_v61 = vperm.slane %v7157_v42, %v12287_v50  ;;  %v4789_v42 = vmul.f32 %v4505_v2, %v3055_v0  ;;  %v5349_v2 = vperm.slane %v5341_v38, %v12287_v50 }
0x13ef   : > { %v7155_v4 = vsel %vm4990_vm7, %v7154_v22, %v4792_v53  ;;  %10718 = vset.pattern.permute.xlu0 %v12209_v36  ;;  %v7173_v53 = vperm.slane %v13030_v40, %v12378_v1  ;;  %v7185_v40 = vperm.slane %v13023_v62, %v12378_v1 }
0x13f0   : > { %v7161_v35 = vperm.slane %v7155_v4, %v12287_v50  ;;  %v7202_v9 = vrot.slane %v7165_v61, 4  ;;  %v7205_v11 = vsel %vm4990_vm7, %v7165_v61, %v7204_v33  ;;  %10678 = vset.pattern.permute.xlu2 %v12209_v36  ;;  %3229 = vperm.xlu1 %10677, %v17332_v47   ;;  %v17076_v33 = vperm.slane %v17330_v57, 4 }
0x13f1   : > { %v7213_v51 = vperm.slane %v7205_v11, %v12378_v1  ;;  %v7216_v11 = vrot.slane %v7173_v53, 4 }
0x13f2   : > { %v7190_v22 = vrot.slane %v7161_v35, 4  ;;  %v7193_v49 = vsel %vm4990_vm7, %v7161_v35, %v7192_v27  ;;  %v7203_v4 = vsel %vm4990_vm7, %v7202_v9, %v7153_v60  ;;  %v3081_v10 = vpop.permute.xlu1 %3080  ;;  %v5337_v60 = vperm.slane %v5329_v55, %v12287_v50 }
0x13f3   : > { %v7209_v61 = vperm.slane %v7203_v4, %v12378_v1  ;;  %v4793_v56 = vmul.f32 %v4507_v41, %v3081_v10  ;;  %v13101_v47 = vperm.slane %v7193_v49, %v12378_v1  ;;  %v7226_v20 = vrot.slane %v7213_v51, 4 }
0x13f4   : > { %v7191_v0 = vsel %vm4990_vm7, %v7190_v22, %v7149_v8  ;;  %v13108_v29 = vsel %vm4990_vm7, %v7213_v51, %v7228_v12  ;;  %v5352_v27 = vrot.slane %v4789_v42, 4  ;;  %v4791_v41 = vmul.f32 %v4506_v26, %v3068_v16 }
0x13f5   : > { %17333 = vst [vmem:[#allocation13_spill] sm:$0xff] %v13101_v47  ;;  %v5350_v35 = vrot.slane %v4793_v56, 4  ;;  %v7218_v10 = vrot.slane %v13101_v47, 4  ;;  %v7197_v9 = vperm.slane %v7191_v0, %v12378_v1  ;;  %v13114_v38 = vsel %vm4990_vm7, %v7226_v20, %v7189_v28 }
0x13f6   : > { %17334 = vst [vmem:[#allocation73_spill] sm:$0xff] %v13108_v29  ;;  %v5353_v8 = vsel %vm4990_vm7, %v4793_v56, %v5352_v27  ;;  %v7222_v12 = vrot.slane %v7209_v61, 4  ;;  %v5386_v26 = vrot.slane %v5349_v2, 4  ;;  %v7224_v56 = vrot.slane %v7185_v40, 4 }
0x13f7   : > { %17335 = vst [vmem:[#allocation74_spill] sm:$0xff] %v13114_v38  ;;  %3678 = vperm.xlu0 %10718, %v17076_v33   ;;  %v13121_v62 = vsel %vm4990_vm7, %v7218_v10, %v13081_v58  ;;  %v5351_v16 = vsel %vm4990_vm7, %v5350_v35, %v4789_v42  ;;  %v13129_v51 = vsel %vm4990_vm7, %v7197_v9, %v7216_v11  ;;  %v7214_v22 = vrot.slane %v7197_v9, 4 }
0x13f8   : > { %17336 = vst [vmem:[#allocation75_spill] sm:$0xff] %v13121_v62  ;;  %3236 = vperm.xlu2 %10678, %v3231_v19   ;;  %3242 = vperm.xlu1 %10677, %v3231_v19   ;;  %v13132_v49 = vsel %vm4990_vm7, %v7222_v12, %v7185_v40  ;;  %v5361_v20 = vperm.slane %v5353_v8, %v12287_v50  ;;  %v5364_v35 = vrot.slane %v4791_v41, 4  ;;  %v5388_v11 = vrot.slane %v5337_v60, 4 }
0x13f9   : > { %17337 = vst [vmem:[#allocation76_spill] sm:$0xff] %v13129_v51  ;;  %v13142_v27 = vsel %vm4990_vm7, %v7209_v61, %v7224_v56  ;;  %v13146_v40 = vsel %vm4990_vm7, %v7214_v22, %v7173_v53  ;;  %v5387_v8 = vsel %vm4990_vm7, %v5386_v26, %v5337_v60  ;;  %v5357_v12 = vperm.slane %v5351_v16, %v12287_v50 }
0x13fa   : > { %17338 = vst [vmem:[#allocation77_spill] sm:$0xff] %v13132_v49  ;;  %v3094_v0 = vpop.permute.xlu1 %3093  ;;  %v5389_v61 = vsel %vm4990_vm7, %v5349_v2, %v5388_v11  ;;  %v5412_v56 = vrot.slane %v5361_v20, 4  ;;  %v5385_v53 = vperm.slane %v13059_v25, %v12378_v1  ;;  %v13161_v60 = vperm.slane %v5387_v8, %v12378_v1 }
0x13fb   : > { %17339 = vst [vmem:[#allocation78_spill] sm:$0xff] %v13142_v27  ;;  %v4795_v10 = vmul.f32 %v13069_v18, %v3094_v0  ;;  %v5374_v18 = vrot.slane %v13053_v52, 4  ;;  %v5400_v26 = vrot.slane %v5357_v12, 4  ;;  %v13169_v52 = vperm.slane %v5389_v61, %v12378_v1 }
0x13fc   : > { %17340 = vst [vmem:[#allocation79_spill] sm:$0xff] %v13146_v40  ;;  %v4395_v27 = vrot.slane %v12246_v13, 3  ;;  %v17086_v49 = vperm.slane %v17351_v54, 1  ;;  %v17097_v40 = vperm.slane %v17351_v54, 6  ;;  %v4397_v51 = vrot.slane %v12246_v13, 5 }
0x13fd   : > { %v5362_v4 = vrot.slane %v4795_v10, 4  ;;  %v5365_v42 = vsel %vm4990_vm7, %v4795_v10, %v5364_v35  ;;  %17341 = vst [vmem:[#allocation80_spill] sm:$0xff] %v13161_v60  ;;  %v13176_v10 = vpop.permute.xlu2 %3119 }
0x13fe   : > { %v5373_v55 = vperm.slane %v5365_v42, %v12287_v50  ;;  %v17342_v42 = vperm.slane %v17329_v5, 3  ;;  %17343 = vst [vmem:[#allocation81_spill] sm:$0xff] %v13169_v52 }
0x13ff   : > { %v5363_v22 = vsel %vm4990_vm7, %v5362_v4, %v4791_v41  ;;  %10721 = vset.pattern.permute.xlu0 %v12214_v39 }
0x1400   : > { %v5369_v16 = vperm.slane %v5363_v22, %v12287_v50  ;;  %v5410_v0 = vrot.slane %v5373_v55, 4  ;;  %v5413_v2 = vsel %vm4990_vm7, %v5373_v55, %v5412_v56  ;;  %3249 = vperm.xlu2 %10678, %v17342_v42   ;;  %10680 = vset.pattern.permute.xlu1 %v12209_v36  ;;  %v17075_v55 = vperm.slane %v17330_v57, 6  ;;  %v3107_v22 = vpop.permute.xlu0 %3106 }
0x1401   : > { %v13172_v25 = vperm.slane %v5413_v2, %v12378_v1  ;;  %v5428_v56 = vrot.slane %v5385_v53, 4  ;;  %v5375_v2 = vsel %vm4990_vm7, %v5374_v18, %v13042_v37 }
0x1402   : > { %v5398_v41 = vrot.slane %v5369_v16, 4  ;;  %v5401_v4 = vsel %vm4990_vm7, %v5369_v16, %v5400_v26  ;;  %v5411_v35 = vsel %vm4990_vm7, %v5410_v0, %v5361_v20  ;;  %v4394_v26 = vrot.slane %v12246_v13, 2 }
0x1403   : > { %17344 = vst [vmem:[#allocation82_spill] sm:$0xff] %v13172_v25  ;;  %v13180_v11 = vperm.slane %v5411_v35, %v12378_v1  ;;  %v5409_v8 = vperm.slane %v5401_v4, %v12378_v1  ;;  %v5434_v61 = vrot.slane %v13172_v25, 4  ;;  %v5432_v16 = vrot.slane %v13161_v60, 4 }
0x1404   : > { %v5399_v20 = vsel %vm4990_vm7, %v5398_v41, %v5357_v12  ;;  %v3257_v0 = vperm.slane %v17329_v5, 4 }
0x1405   : > { %17345 = vst [vmem:[#allocation83_spill] sm:$0xff] %v13180_v11  ;;  %v13191_v42 = vperm.slane %v5399_v20, %v12378_v1  ;;  %v13194_v4 = vsel %vm4990_vm7, %v5409_v8, %v5428_v56  ;;  %v13198_v35 = vsel %vm4990_vm7, %v5434_v61, %v13169_v52  ;;  %v5426_v18 = vrot.slane %v5409_v8, 4 }
0x1406   : > { %17346 = vst [vmem:[#allocation84_spill] sm:$0xff] %v13194_v4  ;;  %v13206_v41 = vsel %vm4990_vm7, %v13180_v11, %v5432_v16  ;;  %v4393_v20 = vrot.slane %v12246_v13, 1  ;;  %v13212_v56 = vperm.slane %v5375_v2, %v12378_v1  ;;  %v4511_v16 = vperm.slane %v4394_v26, 0 }
0x1407   : > { %17347 = vst [vmem:[#allocation85_spill] sm:$0xff] %v13198_v35  ;;  %3710 = vperm.xlu0 %10721, %v17075_v55   ;;  %v5422_v61 = vrot.slane %v13191_v42, 4  ;;  %v13219_v8 = vsel %vm4990_vm7, %v5426_v18, %v5385_v53  ;;  %v3270_v26 = vperm.slane %v17329_v5, 5 }
0x1408   : > { %17348 = vst [vmem:[#allocation86_spill] sm:$0xff] %v13206_v41  ;;  %10681 = vset.pattern.permute.xlu2 %v12214_v39  ;;  %3262 = vperm.xlu1 %10680, %v3257_v0   ;;  %v4510_v37 = vperm.slane %v4393_v20, 0  ;;  %v3126_v53 = vpop.permute.xlu0 %3125  ;;  %v4512_v20 = vperm.slane %v4395_v27, 0 }
0x1409   : > { %17349 = vst [vmem:[#allocation87_spill] sm:$0xff] %v13219_v8  ;;  %v13223_v19 = vsel %vm4990_vm7, %v5422_v61, %v13212_v56 }
0x140a   : > { %17350 = vst [vmem:[#allocation88_spill] sm:$0xff] %v13223_v19  ;;  %v3139_v28 = vpop.permute.xlu2 %3138  ;;  %v3113_v12 = vpop.permute.xlu1 %3112  ;;  %v4800_v18 = vmul.f32 %v4510_v37, %v3126_v53 }
0x140b   : > { %v4802_v55 = vmul.f32 %v4511_v16, %v3139_v28  ;;  %v4798_v9 = vmul.f32 %v3113_v12, %v12253_v15 }
0x140c   : > { %v7244_v45 = vrot.slane %v4800_v18, 4 }
0x140d   : > { %v7230_v33 = vrot.slane %v4802_v55, 4  ;;  %v7232_v17 = vrot.slane %v4798_v9, 4 }
0x140f   : > { %v7233_v61 = vsel %vm4990_vm7, %v4802_v55, %v7232_v17  ;;  %10724 = vset.pattern.permute.xlu0 %v12209_v36  ;;  %v7231_v2 = vsel %vm4990_vm7, %v7230_v33, %v4798_v9 }
0x1410   : > { %3268 = vperm.xlu2 %10681, %v3257_v0   ;;  %3275 = vperm.xlu1 %10680, %v3270_v26   ;;  %v7241_v28 = vperm.slane %v7233_v61, %v12287_v50  ;;  %v13236_v63 = vperm.slane %v7231_v2, %v12287_v50 }
0x1412   : > { %v3152_v12 = vpop.permute.xlu2 %3151  ;;  %v7292_v55 = vrot.slane %v7241_v28, 4  ;;  %v7280_v33 = vrot.slane %v13236_v63, 4 }
0x1413   : > { %v4804_v29 = vmul.f32 %v4512_v20, %v3152_v12 }
0x1415   : > { %v7242_v53 = vrot.slane %v4804_v29, 4  ;;  %v7245_v17 = vsel %vm4990_vm7, %v4804_v29, %v7244_v45  ;;  %v4797_v45 = vmul.f32 %v3107_v22, %v12253_v15  ;;  %v17352_v15 = vperm.slane %v17329_v5, 6 }
0x1416   : > { %v7253_v0 = vperm.slane %v7245_v17, %v12287_v50 }
0x1417   : > { %v7243_v38 = vsel %vm4990_vm7, %v7242_v53, %v4800_v18  ;;  %3743 = vperm.xlu0 %10724, %v17086_v49   ;;  %v4799_v53 = vmul.f32 %v4510_v37, %v13176_v10  ;;  %v3159_v37 = vpop.permute.xlu0 %3158 }
0x1418   : > { %v13245_v27 = vperm.slane %v7243_v38, %v12287_v50  ;;  %v7290_v9 = vrot.slane %v7253_v0, 4  ;;  %v13248_v2 = vsel %vm4990_vm7, %v7253_v0, %v7292_v55  ;;  %3281 = vperm.xlu2 %10681, %v3270_v26   ;;  %10683 = vset.pattern.permute.xlu1 %v12214_v39  ;;  %v5440_v38 = vrot.slane %v4797_v45, 4 }
0x141a   : > { %v13254_v29 = vsel %vm4990_vm7, %v13245_v27, %v7280_v33  ;;  %v13257_v18 = vsel %vm4990_vm7, %v7290_v9, %v7241_v28  ;;  %v3133_v61 = vpop.permute.xlu1 %3132  ;;  %v5452_v28 = vrot.slane %v4799_v53, 4  ;;  %v7278_v46 = vrot.slane %v13245_v27, 4 }
0x141b   : > { %v4801_v12 = vmul.f32 %v4511_v16, %v3133_v61  ;;  %v17085_v16 = vperm.slane %v17351_v54, 3 }
0x141d   : > { %v5441_v17 = vsel %vm4990_vm7, %v4801_v12, %v5440_v38  ;;  %v5438_v55 = vrot.slane %v4801_v12, 4  ;;  %v3296_v38 = vperm.slane %v17329_v5, 7 }
0x141e   : > { %v13266_v22 = vperm.slane %v5441_v17, %v12287_v50 }
0x141f   : > { %10727 = vset.pattern.permute.xlu0 %v12214_v39  ;;  %v5439_v17 = vsel %vm4990_vm7, %v5438_v55, %v4797_v45 }
0x1420   : > { %10684 = vset.pattern.permute.xlu2 %v12209_v36  ;;  %3294 = vperm.xlu1 %10683, %v17352_v15   ;;  %v5500_v9 = vrot.slane %v13266_v22, 4 }
0x1422   : > { %v3146_v26 = vpop.permute.xlu1 %3145 }
0x1423   : > { %v4803_v0 = vmul.f32 %v4512_v20, %v3146_v26  ;;  %v13279_v20 = vpop.permute.xlu2 %3171 }
0x1425   : > { %v5450_v33 = vrot.slane %v4803_v0, 4  ;;  %v5453_v10 = vsel %vm4990_vm7, %v4803_v0, %v5452_v28  ;;  %v13289_v28 = vperm.slane %v5439_v17, %v12287_v50  ;;  %v4396_v0 = vrot.slane %v12246_v13, 4 }
0x1426   : > { %v13272_v61 = vperm.slane %v5453_v10, %v12287_v50  ;;  %v3191_v10 = vpop.permute.xlu0 %3190 }
0x1427   : > { %v5451_v15 = vsel %vm4990_vm7, %v5450_v33, %v4799_v53  ;;  %3775 = vperm.xlu0 %10727, %v17085_v16   ;;  %v4398_v53 = vrot.slane %v12246_v13, 6 }
0x1428   : > { %v13282_v12 = vperm.slane %v5451_v15, %v12287_v50  ;;  %v13286_v26 = vsel %vm4990_vm7, %v13272_v61, %v5500_v9  ;;  %3301 = vperm.xlu2 %10684, %v3296_v38   ;;  %3307 = vperm.xlu1 %10683, %v3296_v38   ;;  %v17353_v9 = vld [vmem:[#allocation29_spill] sm:$0xff]  ;;  %v4513_v38 = vperm.slane %v4396_v0, 0  ;;  %v4514_v0 = vperm.slane %v4397_v51, 0 }
0x1429   : > { %v4515_v33 = vperm.slane %v4398_v53, 0  ;;  %v4399_v53 = vrot.slane %v12246_v13, 7 }
0x142a   : > { %v5486_v45 = vrot.slane %v13282_v12, 4 }
0x142b   : > { %v3185_v17 = vpop.permute.xlu2 %3184  ;;  %v4810_v16 = vmul.f32 %v4515_v33, %v3191_v10  ;;  %v13310_v34 = vperm.slane %v4399_v53, 0 }
0x142c   : > { %v13295_v55 = vsel %vm4990_vm7, %v5486_v45, %v13289_v28  ;;  %v3322_v45 = vperm.slane %v17354_v14, 1 }
0x142d   : > { %v7254_v41 = vrot.slane %v4810_v16, 4 }
0x142f   : > { %10730 = vset.pattern.permute.xlu0 %v12209_v36 }
0x1430   : > { %10686 = vset.pattern.permute.xlu1 %v12209_v36  ;;  %3314 = vperm.xlu2 %10684, %v17353_v9  }
0x1432   : > { %v3165_v15 = vpop.permute.xlu1 %3164 }
0x1433   : > { %v4806_v49 = vmul.f32 %v4513_v38, %v3165_v15 }
0x1435   : > { %v7256_v59 = vrot.slane %v4806_v49, 4  ;;  %v7255_v10 = vsel %vm4990_vm7, %v7254_v41, %v4806_v49  ;;  %v3335_v49 = vperm.slane %v17354_v14, 2 }
0x1436   : > { %v7261_v13 = vperm.slane %v7255_v10, %v12287_v50 }
0x1437   : > { %3808 = vperm.xlu0 %10730, %v17097_v40   ;;  %v7257_v15 = vsel %vm4990_vm7, %v4810_v16, %v7256_v59  ;;  %v4805_v40 = vmul.f32 %v4513_v38, %v3159_v37  ;;  %v7301_v59 = vperm.slane %v13248_v2, %v12378_v1  ;;  %v7279_v2 = vsel %vm4990_vm7, %v7278_v46, %v13236_v63 }
0x1438   : > { %3327 = vperm.xlu1 %10686, %v3322_v45   ;;  %10687 = vset.pattern.permute.xlu2 %v12214_v39  ;;  %v7265_v35 = vperm.slane %v7257_v15, %v12287_v50 }
0x1439   : > { %v5464_v53 = vrot.slane %v4805_v40, 4 }
0x143a   : > { %v3204_v62 = vpop.permute.xlu2 %3203  ;;  %v3178_v32 = vpop.permute.xlu1 %3177  ;;  %v7316_v37 = vrot.slane %v7265_v35, 4 }
0x143b   : > { %v4812_v8 = vmul.f32 %v13310_v34, %v3204_v62  ;;  %v4808_v30 = vmul.f32 %v4514_v0, %v3178_v32  ;;  %v7289_v32 = vperm.slane %v13254_v29, %v12378_v1  ;;  %v7304_v62 = vrot.slane %v7261_v13, 4 }
0x143d   : > { %v7266_v4 = vrot.slane %v4812_v8, 4  ;;  %v7268_v51 = vrot.slane %v4808_v30, 4 }
0x143f   : > { %v7267_v41 = vsel %vm4990_vm7, %v7266_v4, %v4808_v30  ;;  %v7269_v16 = vsel %vm4990_vm7, %v4812_v8, %v7268_v51  ;;  %10733 = vset.pattern.permute.xlu0 %v12214_v39  ;;  %v4809_v30 = vmul.f32 %v4515_v33, %v3185_v17  ;;  %v7297_v4 = vperm.slane %v13257_v18, %v12378_v1 }
0x1440   : > { %v7273_v27 = vperm.slane %v7267_v41, %v12287_v50  ;;  %v7277_v38 = vperm.slane %v7269_v16, %v12287_v50  ;;  %3340 = vperm.xlu1 %10686, %v3335_v49   ;;  %3333 = vperm.xlu2 %10687, %v3322_v45   ;;  %v17355_v41 = vld [vmem:[#allocation15_spill] sm:$0xff]  ;;  %v7332_v45 = vrot.slane %v7289_v32, 4  ;;  %v13340_v18 = vperm.slane %v7279_v2, %v12378_v1 }
0x1441   : > { %v13334_v16 = vperm.slane %v17355_v41, 0  ;;  %v7340_v33 = vrot.slane %v7301_v59, 4  ;;  %v5462_v17 = vrot.slane %v4809_v30, 4  ;;  %v5465_v2 = vsel %vm4990_vm7, %v4809_v30, %v5464_v53 }
0x1442   : > { %v7302_v8 = vrot.slane %v7273_v27, 4  ;;  %v7305_v10 = vsel %vm4990_vm7, %v7273_v27, %v7304_v62  ;;  %v7314_v29 = vrot.slane %v7277_v38, 4  ;;  %v7317_v15 = vsel %vm4990_vm7, %v7277_v38, %v7316_v37  ;;  %17357 = vst [vmem:[#allocation12_spill] sm:$0xff] %v13340_v18  ;;  %v13373_v30 = vpop.permute.xlu2 %3216 }
0x1443   : > { %v7313_v51 = vperm.slane %v7305_v10, %v12378_v1  ;;  %17356 = vst [vmem:[#allocation29_spill] sm:$0xff] %v13334_v16  ;;  %v7325_v19 = vperm.slane %v7317_v15, %v12378_v1  ;;  %v5488_v53 = vrot.slane %v13289_v28, 4  ;;  %v5509_v28 = vperm.slane %v13286_v26, %v12378_v1 }
0x1444   : > { %v7303_v63 = vsel %vm4990_vm7, %v7302_v8, %v7261_v13  ;;  %v7315_v46 = vsel %vm4990_vm7, %v7314_v29, %v7265_v35  ;;  %v7336_v13 = vrot.slane %v7297_v4, 4  ;;  %v4807_v35 = vmul.f32 %v4514_v0, %v13279_v20 }
0x1445   : > { %v13343_v62 = vperm.slane %v7303_v63, %v12378_v1  ;;  %v7330_v37 = vrot.slane %v7313_v51, 4  ;;  %v13346_v27 = vsel %vm4990_vm7, %v7313_v51, %v7332_v45  ;;  %v7321_v38 = vperm.slane %v7315_v46, %v12378_v1 }
0x1446   : > { %17359 = vst [vmem:[#allocation90_spill] sm:$0xff] %v13346_v27  ;;  %v13350_v10 = vsel %vm4990_vm7, %v7325_v19, %v7340_v33  ;;  %v7338_v8 = vrot.slane %v7325_v19, 4  ;;  %v5463_v20 = vsel %vm4990_vm7, %v5462_v17, %v4805_v40  ;;  %v5476_v46 = vrot.slane %v4807_v35, 4 }
0x1447   : > { %17358 = vst [vmem:[#allocation89_spill] sm:$0xff] %v13343_v62  ;;  %3840 = vperm.xlu0 %10733, %v13334_v16   ;;  %v7326_v29 = vrot.slane %v13343_v62, 4  ;;  %v13357_v15 = vsel %vm4990_vm7, %v7330_v37, %v7289_v32  ;;  %v7334_v51 = vrot.slane %v7321_v38, 4  ;;  %v13361_v45 = vsel %vm4990_vm7, %v7321_v38, %v7336_v13 }
0x1448   : > { %17360 = vst [vmem:[#allocation91_spill] sm:$0xff] %v13350_v10  ;;  %10689 = vset.pattern.permute.xlu1 %v12214_v39  ;;  %3346 = vperm.xlu2 %10687, %v3335_v49   ;;  %v13364_v19 = vsel %vm4990_vm7, %v7338_v8, %v7301_v59  ;;  %v5473_v32 = vperm.slane %v5465_v2, %v12287_v50  ;;  %v4400_v33 = vrot.slane %v17329_v5, 1  ;;  %v4401_v13 = vrot.slane %v17329_v5, 2 }
0x1449   : > { %17361 = vst [vmem:[#allocation92_spill] sm:$0xff] %v13357_v15  ;;  %v13369_v0 = vsel %vm4990_vm7, %v7326_v29, %v13340_v18  ;;  %v13376_v63 = vsel %vm4990_vm7, %v7334_v51, %v7297_v4  ;;  %v5489_v40 = vsel %vm4990_vm7, %v13282_v12, %v5488_v53  ;;  %v5469_v17 = vperm.slane %v5463_v20, %v12287_v50 }
0x144a   : > { %17362 = vst [vmem:[#allocation93_spill] sm:$0xff] %v13361_v45  ;;  %v3198_v49 = vpop.permute.xlu1 %3197  ;;  %v5524_v4 = vrot.slane %v5473_v32, 4  ;;  %v13392_v12 = vperm.slane %v5489_v40, %v12378_v1  ;;  %v17367_v53 = vperm.slane %v17354_v14, 3 }
0x144b   : > { %17363 = vst [vmem:[#allocation94_spill] sm:$0xff] %v13364_v19  ;;  %v4811_v59 = vmul.f32 %v13310_v34, %v3198_v49  ;;  %v5498_v34 = vrot.slane %v13272_v61, 4  ;;  %v5512_v29 = vrot.slane %v5469_v17, 4  ;;  %v4518_v49 = vperm.slane %v4400_v33, 0 }
0x144c   : > { %17364 = vst [vmem:[#allocation95_spill] sm:$0xff] %v13369_v0 }
0x144d   : > { %17365 = vst [vmem:[#allocation96_spill] sm:$0xff] %v13376_v63  ;;  %v5474_v37 = vrot.slane %v4811_v59, 4  ;;  %v5477_v38 = vsel %vm4990_vm7, %v4811_v59, %v5476_v46  ;;  %v5548_v46 = vrot.slane %v5509_v28, 4 }
0x144e   : > { %v5485_v8 = vperm.slane %v5477_v38, %v12287_v50  ;;  %17366 = vst [vmem:[#allocation97_spill] sm:$0xff] %v13392_v12 }
0x144f   : > { %v5475_v2 = vsel %vm4990_vm7, %v5474_v37, %v4807_v35  ;;  %10736 = vset.pattern.permute.xlu0 %v12209_v36  ;;  %v13400_v35 = vperm.slane %v4401_v13, 0 }
0x1450   : > { %v5481_v26 = vperm.slane %v5475_v2, %v12287_v50  ;;  %v5522_v51 = vrot.slane %v5485_v8, 4  ;;  %v5525_v20 = vsel %vm4990_vm7, %v5485_v8, %v5524_v4  ;;  %3359 = vperm.xlu1 %10689, %v17367_v53   ;;  %10690 = vset.pattern.permute.xlu2 %v12209_v36  ;;  %v5493_v4 = vperm.slane %v13295_v55, %v12378_v1  ;;  %v3224_v55 = vpop.permute.xlu0 %3223 }
0x1451   : > { %v5533_v61 = vperm.slane %v5525_v20, %v12378_v1  ;;  %v4402_v53 = vrot.slane %v17329_v5, 3  ;;  %v4815_v0 = vmul.f32 %v4518_v49, %v3224_v55 }
0x1452   : > { %v5510_v59 = vrot.slane %v5481_v26, 4  ;;  %v5513_v40 = vsel %vm4990_vm7, %v5481_v26, %v5512_v29  ;;  %v5523_v37 = vsel %vm4990_vm7, %v5522_v51, %v5473_v32  ;;  %v3237_v38 = vpop.permute.xlu2 %3236  ;;  %v3211_v2 = vpop.permute.xlu1 %3210  ;;  %v5499_v29 = vsel %vm4990_vm7, %v5498_v34, %v13266_v22 }
0x1453   : > { %v13407_v8 = vperm.slane %v5513_v40, %v12378_v1  ;;  %v4813_v33 = vmul.f32 %v3211_v2, %v13045_v7  ;;  %v13412_v13 = vperm.slane %v5523_v37, %v12378_v1  ;;  %v5540_v26 = vrot.slane %v13392_v12, 4 }
0x1454   : > { %v5511_v32 = vsel %vm4990_vm7, %v5510_v59, %v5469_v17  ;;  %v13419_v51 = vsel %vm4990_vm7, %v5533_v61, %v5548_v46  ;;  %v4817_v40 = vmul.f32 %v13400_v35, %v3237_v38  ;;  %v5546_v20 = vrot.slane %v5533_v61, 4 }
0x1455   : > { %17368 = vst [vmem:[#allocation98_spill] sm:$0xff] %v13407_v8  ;;  %v5552_v2 = vrot.slane %v4813_v33, 4  ;;  %v3361_v37 = vperm.slane %v17354_v14, 4  ;;  %v5517_v16 = vperm.slane %v5511_v32, %v12378_v1  ;;  %v13427_v22 = vsel %vm4990_vm7, %v13407_v8, %v5540_v26 }
0x1456   : > { %17369 = vst [vmem:[#allocation99_spill] sm:$0xff] %v13412_v13  ;;  %v13430_v17 = vperm.slane %v5499_v29, %v12378_v1  ;;  %v17373_v46 = vperm.slane %v17355_v41, 3  ;;  %v5536_v59 = vrot.slane %v5493_v4, 4  ;;  %v5542_v61 = vrot.slane %v13412_v13, 4 }
0x1457   : > { %17370 = vst [vmem:[#allocation100_spill] sm:$0xff] %v13419_v51  ;;  %v5553_v34 = vsel %vm4990_vm7, %v4817_v40, %v5552_v2  ;;  %v5534_v38 = vrot.slane %v5517_v16, 4  ;;  %v4520_v55 = vperm.slane %v4402_v53, 0  ;;  %v13444_v29 = vsel %vm4990_vm7, %v5546_v20, %v5509_v28 }
0x1458   : > { %17371 = vst [vmem:[#allocation101_spill] sm:$0xff] %v13427_v22  ;;  %3873 = vperm.xlu0 %10736, %v17373_v46   ;;  %3372 = vperm.xlu1 %10689, %v3361_v37   ;;  %v13437_v32 = vsel %vm4990_vm7, %v5517_v16, %v5536_v59  ;;  %v13441_v26 = vsel %vm4990_vm7, %v5542_v61, %v13430_v17  ;;  %v5550_v18 = vrot.slane %v4817_v40, 4  ;;  %v4406_v8 = vrot.slane %v17329_v5, 7 }
0x1459   : > { %17372 = vst [vmem:[#allocation102_spill] sm:$0xff] %v13430_v17  ;;  %3366 = vperm.xlu2 %10690, %v3361_v37   ;;  %v13447_v2 = vperm.slane %v5553_v34, %v12287_v50  ;;  %v13450_v62 = vsel %vm4990_vm7, %v5534_v38, %v5493_v4  ;;  %v5564_v37 = vrot.slane %v4815_v0, 4  ;;  %v17378_v34 = vperm.slane %v17354_v14, 5 }
0x145a   : > { %17374 = vst [vmem:[#allocation103_spill] sm:$0xff] %v13437_v32  ;;  %v3250_v46 = vpop.permute.xlu2 %3249  ;;  %v5551_v28 = vsel %vm4990_vm7, %v5550_v18, %v4813_v33  ;;  %v3530_v32 = vperm.slane %v12272_v24, 1 }
0x145b   : > { %17375 = vst [vmem:[#allocation104_spill] sm:$0xff] %v13441_v26  ;;  %v4819_v53 = vmul.f32 %v4520_v55, %v3250_v46  ;;  %v5612_v59 = vrot.slane %v13447_v2, 4  ;;  %v13471_v38 = vperm.slane %v5551_v28, %v12287_v50  ;;  %v3256_v46 = vpop.permute.xlu0 %3255 }
0x145c   : > { %17376 = vst [vmem:[#allocation105_spill] sm:$0xff] %v13444_v29 }
0x145d   : > { %17377 = vst [vmem:[#allocation106_spill] sm:$0xff] %v13450_v62  ;;  %v5562_v13 = vrot.slane %v4819_v53, 4  ;;  %v5565_v16 = vsel %vm4990_vm7, %v4819_v53, %v5564_v37  ;;  %v4820_v53 = vmul.f32 %v4520_v55, %v3256_v46 }
0x145e   : > { %v13455_v61 = vperm.slane %v5565_v16, %v12287_v50 }
0x145f   : > { %v5563_v20 = vsel %vm4990_vm7, %v5562_v13, %v4815_v0  ;;  %v17106_v13 = vperm.slane %v17355_v41, 5 }
0x1460   : > { %10739 = vset.pattern.permute.xlu0 %v12214_v39  ;;  %v13461_v4 = vperm.slane %v5563_v20, %v12287_v50  ;;  %v13465_v40 = vsel %vm4990_vm7, %v13455_v61, %v5612_v59  ;;  %10692 = vset.pattern.permute.xlu1 %v12209_v36  ;;  %v3387_v59 = vperm.slane %v17354_v14, 6  ;;  %v4814_v20 = vmul.f32 %v13373_v30, %v13045_v7 }
0x1461   : > { %3379 = vperm.xlu2 %10690, %v17378_v34   ;;  %v3400_v30 = vperm.slane %v17354_v14, 7 }
0x1462   : > { %v5598_v18 = vrot.slane %v13461_v4, 4  ;;  %v3230_v0 = vpop.permute.xlu1 %3229 }
0x1463   : > { %v4816_v33 = vmul.f32 %v4518_v49, %v3230_v0  ;;  %v7354_v0 = vrot.slane %v4820_v53, 4 }
0x1464   : > { %v13477_v37 = vsel %vm4990_vm7, %v5598_v18, %v13471_v38  ;;  %v7344_v18 = vrot.slane %v4814_v20, 4 }
0x1465   : > { %v7356_v16 = vrot.slane %v4816_v33, 4 }
0x1467   : > { %v7357_v28 = vsel %vm4990_vm7, %v4820_v53, %v7356_v16  ;;  %v7355_v16 = vsel %vm4990_vm7, %v7354_v0, %v4816_v33  ;;  %v3289_v0 = vpop.permute.xlu0 %3288 }
0x1468   : > { %3905 = vperm.xlu0 %10739, %v17106_v13   ;;  %3392 = vperm.xlu1 %10692, %v3387_v59   ;;  %v7365_v49 = vperm.slane %v7357_v28, %v12287_v50 }
0x1469   : > { %10693 = vset.pattern.permute.xlu2 %v12214_v39 }
0x146a   : > { %v3243_v34 = vpop.permute.xlu1 %3242  ;;  %v7402_v17 = vrot.slane %v7365_v49, 4  ;;  %v13494_v28 = vpop.permute.xlu2 %3268 }
0x146b   : > { %v4818_v55 = vmul.f32 %v13400_v35, %v3243_v34  ;;  %v4405_v34 = vrot.slane %v17329_v5, 6 }
0x146d   : > { %v7342_v46 = vrot.slane %v4818_v55, 4  ;;  %v7345_v62 = vsel %vm4990_vm7, %v4818_v55, %v7344_v18  ;;  %v17379_v18 = vld [vmem:[#allocation16_spill] sm:$0xff] }
0x146e   : > { %v7353_v7 = vperm.slane %v7345_v62, %v12287_v50  ;;  %v13503_v62 = vperm.slane %v7355_v16, %v12287_v50  ;;  %v13511_v55 = vperm.slane %v17379_v18, 0  ;;  %v17118_v52 = vperm.slane %v17379_v18, 2 }
0x146f   : > { %v7343_v13 = vsel %vm4990_vm7, %v7342_v46, %v4814_v20 }
0x1470   : > { %10742 = vset.pattern.permute.xlu0 %v12209_v36  ;;  %v13497_v41 = vperm.slane %v7343_v13, %v12287_v50  ;;  %v13500_v35 = vsel %vm4990_vm7, %v7402_v17, %v7353_v7  ;;  %v7404_v53 = vrot.slane %v7353_v7, 4  ;;  %3405 = vperm.xlu1 %10692, %v3400_v30   ;;  %17380 = vst [vmem:[#allocation107_spill] sm:$0xff] %v13511_v55  ;;  %v4403_v13 = vrot.slane %v17329_v5, 4 }
0x1471   : > { %3398 = vperm.xlu2 %10693, %v3387_v59   ;;  %v13518_v59 = vperm.slane %v4405_v34, 0 }
0x1472   : > { %v7392_v33 = vrot.slane %v13497_v41, 4  ;;  %v13507_v20 = vsel %vm4990_vm7, %v7365_v49, %v7404_v53  ;;  %v4521_v49 = vperm.slane %v4403_v13, 0  ;;  %v13522_v46 = vpop.permute.xlu2 %3281 }
0x1473   : > { %v4825_v16 = vmul.f32 %v13518_v59, %v3289_v0  ;;  %v13534_v0 = vperm.slane %v4406_v8, 0 }
0x1474   : > { %v13515_v17 = vsel %vm4990_vm7, %v13503_v62, %v7392_v33  ;;  %v4404_v33 = vrot.slane %v17329_v5, 5 }
0x1475   : > { %v5574_v34 = vrot.slane %v4825_v16, 4 }
0x1478   : > { %3938 = vperm.xlu0 %10742, %v13511_v55   ;;  %10695 = vset.pattern.permute.xlu1 %v12214_v39 }
0x1479   : > { %3411 = vperm.xlu2 %10693, %v3400_v30   ;;  %v13530_v30 = vperm.slane %v4404_v33, 0 }
0x147a   : > { %v3263_v7 = vpop.permute.xlu1 %3262 }
0x147b   : > { %v4821_v53 = vmul.f32 %v4521_v49, %v3263_v7  ;;  %v5600_v7 = vrot.slane %v13471_v38, 4  ;;  %v3426_v38 = vperm.slane %v12268_v21, 1 }
0x147d   : > { %v5576_v12 = vrot.slane %v4821_v53, 4  ;;  %v5575_v13 = vsel %vm4990_vm7, %v5574_v34, %v4821_v53  ;;  %v5601_v33 = vsel %vm4990_vm7, %v13461_v4, %v5600_v7 }
0x147e   : > { %v5581_v54 = vperm.slane %v5575_v13, %v12287_v50  ;;  %v13554_v4 = vperm.slane %v5601_v33, %v12378_v1 }
0x147f   : > { %v5577_v55 = vsel %vm4990_vm7, %v4825_v16, %v5576_v12  ;;  %v13544_v16 = vpop.permute.xlu0 %3320 }
0x1480   : > { %10745 = vset.pattern.permute.xlu0 %v12214_v39  ;;  %3424 = vperm.xlu1 %10695, %v12595_v48   ;;  %v5585_v53 = vperm.slane %v5577_v55, %v12287_v50  ;;  %17381 = vst [vmem:[#allocation108_spill] sm:$0xff] %v13554_v4  ;;  %v5624_v55 = vrot.slane %v5581_v54, 4 }
0x1481   : > { %10696 = vset.pattern.permute.xlu2 %v12209_v36 }
0x1482   : > { %v3302_v47 = vpop.permute.xlu2 %3301  ;;  %v3276_v58 = vpop.permute.xlu1 %3275  ;;  %v5636_v13 = vrot.slane %v5585_v53, 4 }
0x1483   : > { %v4827_v5 = vmul.f32 %v13534_v0, %v3302_v47  ;;  %v4823_v25 = vmul.f32 %v13530_v30, %v3276_v58  ;;  %v5621_v47 = vperm.slane %v13465_v40, %v12378_v1  ;;  %v5610_v40 = vrot.slane %v13455_v61, 4 }
0x1484   : > { %v5652_v61 = vrot.slane %v13554_v4, 4 }
0x1485   : > { %v5586_v12 = vrot.slane %v4827_v5, 4  ;;  %v5588_v8 = vrot.slane %v4823_v25, 4  ;;  %v5660_v11 = vrot.slane %v5621_v47, 4 }
0x1487   : > { %v5587_v58 = vsel %vm4990_vm7, %v5586_v12, %v4823_v25  ;;  %v5589_v34 = vsel %vm4990_vm7, %v4827_v5, %v5588_v8  ;;  %v5605_v25 = vperm.slane %v13477_v37, %v12378_v1  ;;  %v5611_v37 = vsel %vm4990_vm7, %v5610_v40, %v13447_v2 }
0x1488   : > { %3970 = vperm.xlu0 %10745, %v17118_v52   ;;  %v5593_v7 = vperm.slane %v5587_v58, %v12287_v50  ;;  %v5597_v60 = vperm.slane %v5589_v34, %v12287_v50  ;;  %3437 = vperm.xlu1 %10695, %v3426_v38   ;;  %v17120_v40 = vperm.slane %v17379_v18, 5 }
0x1489   : > { %3431 = vperm.xlu2 %10696, %v3426_v38  }
0x148a   : > { %v5622_v5 = vrot.slane %v5593_v7, 4  ;;  %v5625_v12 = vsel %vm4990_vm7, %v5593_v7, %v5624_v55  ;;  %v5634_v8 = vrot.slane %v5597_v60, 4  ;;  %v5637_v33 = vsel %vm4990_vm7, %v5597_v60, %v5636_v13 }
0x148b   : > { %v13564_v52 = vperm.slane %v5625_v12, %v12378_v1  ;;  %v5645_v58 = vperm.slane %v5637_v33, %v12378_v1  ;;  %v5648_v13 = vrot.slane %v5605_v25, 4  ;;  %v4822_v7 = vmul.f32 %v4521_v49, %v13494_v28 }
0x148c   : > { %v5623_v34 = vsel %vm4990_vm7, %v5622_v5, %v5581_v54  ;;  %v5635_v38 = vsel %vm4990_vm7, %v5634_v8, %v5585_v53  ;;  %v13590_v5 = vpop.permute.xlu0 %3353  ;;  %v13593_v28 = vperm.slane %v5611_v37, %v12378_v1  ;;  %v17387_v49 = vperm.slane %v12268_v21, 2 }
0x148d   : > { %v13573_v55 = vperm.slane %v5635_v38, %v12378_v1  ;;  %v5629_v60 = vperm.slane %v5623_v34, %v12378_v1  ;;  %v13579_v12 = vsel %vm4990_vm7, %v13564_v52, %v5652_v61  ;;  %v5658_v54 = vrot.slane %v5645_v58, 4 }
0x148e   : > { %17383 = vst [vmem:[#allocation110_spill] sm:$0xff] %v13579_v12  ;;  %v13582_v53 = vsel %vm4990_vm7, %v5645_v58, %v5660_v11  ;;  %v7368_v38 = vrot.slane %v4822_v7, 4  ;;  %v3452_v11 = vperm.slane %v12268_v21, 3  ;;  %v4413_v12 = vrot.slane %v17354_v14, 7 }
0x148f   : > { %17382 = vst [vmem:[#allocation109_spill] sm:$0xff] %v13573_v55  ;;  %v13586_v2 = vsel %vm4990_vm7, %v5629_v60, %v5648_v13  ;;  %v5654_v8 = vrot.slane %v13573_v55, 4  ;;  %v13602_v33 = vsel %vm4990_vm7, %v5658_v54, %v5621_v47  ;;  %v5646_v34 = vrot.slane %v5629_v60, 4 }
0x1490   : > { %17384 = vst [vmem:[#allocation111_spill] sm:$0xff] %v13582_v53  ;;  %10748 = vset.pattern.permute.xlu0 %v12209_v36  ;;  %10698 = vset.pattern.permute.xlu1 %v12209_v36 }
0x1491   : > { %17385 = vst [vmem:[#allocation112_spill] sm:$0xff] %v13586_v2  ;;  %3444 = vperm.xlu2 %10696, %v17387_v49   ;;  %v13608_v37 = vsel %vm4990_vm7, %v5654_v8, %v13593_v28  ;;  %v13617_v54 = vsel %vm4990_vm7, %v5646_v34, %v5605_v25  ;;  %v4824_v8 = vmul.f32 %v13530_v30, %v13522_v46 }
0x1492   : > { %17386 = vst [vmem:[#allocation113_spill] sm:$0xff] %v13593_v28  ;;  %v3295_v61 = vpop.permute.xlu1 %3294  ;;  %v13634_v46 = vperm.slane %v13507_v20, %v12378_v1  ;;  %v7401_v20 = vperm.slane %v13515_v17, %v12378_v1 }
0x1493   : > { %17388 = vst [vmem:[#allocation114_spill] sm:$0xff] %v13602_v33  ;;  %v4826_v49 = vmul.f32 %v13518_v59, %v3295_v61  ;;  %v7380_v13 = vrot.slane %v4824_v8, 4  ;;  %v4408_v33 = vrot.slane %v17354_v14, 2 }
0x1494   : > { %17389 = vst [vmem:[#allocation115_spill] sm:$0xff] %v13608_v37  ;;  %v13627_v61 = vpop.permute.xlu0 %3385  ;;  %v7452_v51 = vrot.slane %v13634_v46, 4  ;;  %v17400_v37 = vld [vmem:[#allocation17_spill] sm:$0xff] }
0x1495   : > { %17390 = vst [vmem:[#allocation116_spill] sm:$0xff] %v13617_v54  ;;  %v7366_v60 = vrot.slane %v4826_v49, 4  ;;  %v7369_v58 = vsel %vm4990_vm7, %v4826_v49, %v7368_v38 }
0x1496   : > { %v7377_v25 = vperm.slane %v7369_v58, %v12287_v50  ;;  %v7409_v58 = vperm.slane %v13500_v35, %v12378_v1  ;;  %v4409_v35 = vrot.slane %v17354_v14, 3 }
0x1497   : > { %v7367_v59 = vsel %vm4990_vm7, %v7366_v60, %v4822_v7  ;;  %v3465_v60 = vperm.slane %v12268_v21, 4 }
0x1498   : > { %4003 = vperm.xlu0 %10748, %v17120_v40   ;;  %3457 = vperm.xlu1 %10698, %v3452_v11   ;;  %v7373_v49 = vperm.slane %v7367_v59, %v12287_v50  ;;  %v3315_v40 = vpop.permute.xlu2 %3314  ;;  %v7428_v54 = vrot.slane %v7377_v25, 4  ;;  %v7448_v26 = vrot.slane %v7409_v58, 4 }
0x1499   : > { %10699 = vset.pattern.permute.xlu2 %v12214_v39 }
0x149a   : > { %v3308_v34 = vpop.permute.xlu1 %3307  ;;  %v7416_v59 = vrot.slane %v7373_v49, 4 }
0x149b   : > { %v4828_v38 = vmul.f32 %v13534_v0, %v3308_v34 }
0x149d   : > { %v7378_v30 = vrot.slane %v4828_v38, 4  ;;  %v7381_v47 = vsel %vm4990_vm7, %v4828_v38, %v7380_v13 }
0x149e   : > { %v7389_v7 = vperm.slane %v7381_v47, %v12287_v50 }
0x149f   : > { %v7379_v0 = vsel %vm4990_vm7, %v7378_v30, %v4824_v8  ;;  %v13650_v8 = vpop.permute.xlu0 %3418 }
0x14a0   : > { %10751 = vset.pattern.permute.xlu0 %v12214_v39  ;;  %v7385_v34 = vperm.slane %v7379_v0, %v12287_v50  ;;  %v7426_v13 = vrot.slane %v7389_v7, 4  ;;  %v7429_v38 = vsel %vm4990_vm7, %v7389_v7, %v7428_v54  ;;  %3470 = vperm.xlu1 %10698, %v3465_v60  }
0x14a1   : > { %3463 = vperm.xlu2 %10699, %v3452_v11   ;;  %v7437_v47 = vperm.slane %v7429_v38, %v12378_v1  ;;  %v17126_v11 = vperm.slane %v17379_v18, 7  ;;  %v7444_v38 = vrot.slane %v7401_v20, 4 }
0x14a2   : > { %v7414_v30 = vrot.slane %v7385_v34, 4  ;;  %v7417_v53 = vsel %vm4990_vm7, %v7385_v34, %v7416_v59  ;;  %v7427_v17 = vsel %vm4990_vm7, %v7426_v13, %v7377_v25  ;;  %v7390_v59 = vrot.slane %v13503_v62, 4  ;;  %v3334_v13 = vpop.permute.xlu2 %3333 }
0x14a3   : > { %v7425_v0 = vperm.slane %v7417_v53, %v12378_v1  ;;  %v7433_v29 = vperm.slane %v7427_v17, %v12378_v1  ;;  %v13658_v54 = vsel %vm4990_vm7, %v7437_v47, %v7452_v51  ;;  %v4407_v25 = vrot.slane %v17354_v14, 1 }
0x14a4   : > { %17391 = vst [vmem:[#allocation117_spill] sm:$0xff] %v13658_v54  ;;  %v7415_v7 = vsel %vm4990_vm7, %v7414_v30, %v7373_v49  ;;  %v13674_v49 = vperm.slane %v4409_v35, 0  ;;  %v7391_v30 = vsel %vm4990_vm7, %v7390_v59, %v13497_v41  ;;  %v7450_v10 = vrot.slane %v7437_v47, 4 }
0x14a5   : > { %v13666_v53 = vperm.slane %v7415_v7, %v12378_v1  ;;  %v7442_v34 = vrot.slane %v7425_v0, 4  ;;  %v13669_v17 = vsel %vm4990_vm7, %v7425_v0, %v7444_v38  ;;  %v13672_v51 = vsel %vm4990_vm7, %v7433_v29, %v7448_v26 }
0x14a6   : > { %17393 = vst [vmem:[#allocation119_spill] sm:$0xff] %v13669_v17  ;;  %v4526_v7 = vperm.slane %v4407_v25, 0  ;;  %v13686_v26 = vperm.slane %v7391_v30, %v12378_v1  ;;  %v4835_v38 = vmul.f32 %v13674_v49, %v13590_v5  ;;  %v4829_v25 = vmul.f32 %v3315_v40, %v17353_v9 }
0x14a7   : > { %17392 = vst [vmem:[#allocation118_spill] sm:$0xff] %v13666_v53  ;;  %v13681_v62 = vsel %vm4990_vm7, %v7442_v34, %v7401_v20  ;;  %v7438_v0 = vrot.slane %v13666_v53, 4  ;;  %v13690_v59 = vpop.permute.xlu0 %3450  ;;  %v7446_v34 = vrot.slane %v7433_v29, 4  ;;  %v4527_v5 = vperm.slane %v4408_v33, 0 }
0x14a8   : > { %17394 = vst [vmem:[#allocation120_spill] sm:$0xff] %v13672_v51  ;;  %4035 = vperm.xlu0 %10751, %v17126_v11   ;;  %10701 = vset.pattern.permute.xlu1 %v12214_v39  ;;  %v5674_v11 = vrot.slane %v4835_v38, 4  ;;  %v17398_v54 = vperm.slane %v12268_v21, 5  ;;  %v13721_v40 = vsel %vm4990_vm7, %v7450_v10, %v13634_v46  ;;  %v3491_v29 = vperm.slane %v12268_v21, 6 }
0x14a9   : > { %17395 = vst [vmem:[#allocation121_spill] sm:$0xff] %v13681_v62  ;;  %3476 = vperm.xlu2 %10699, %v3465_v60   ;;  %v13695_v60 = vsel %vm4990_vm7, %v7438_v0, %v13686_v26  ;;  %v17402_v46 = vperm.slane %v17400_v37, 2  ;;  %v4832_v19 = vmul.f32 %v4526_v7, %v3334_v13 }
0x14aa   : > { %17396 = vst [vmem:[#allocation122_spill] sm:$0xff] %v13686_v26  ;;  %v3328_v35 = vpop.permute.xlu1 %3327 }
0x14ab   : > { %v4831_v41 = vmul.f32 %v4526_v7, %v3328_v35  ;;  %17397 = vst [vmem:[#allocation123_spill] sm:$0xff] %v13695_v60  ;;  %v3347_v35 = vpop.permute.xlu2 %3346  ;;  %v17139_v7 = vperm.slane %v17400_v37, 4 }
0x14ac   : > { %17401 = vst [vmem:[#allocation125_spill] sm:$0xff] %v13721_v40  ;;  %v17403_v40 = vperm.slane %v12268_v21, 7 }
0x14ad   : > { %v5676_v20 = vrot.slane %v4831_v41, 4  ;;  %v5675_v0 = vsel %vm4990_vm7, %v5674_v11, %v4831_v41  ;;  %v5664_v11 = vrot.slane %v4829_v25, 4 }
0x14af   : > { %v5677_v30 = vsel %vm4990_vm7, %v4835_v38, %v5676_v20  ;;  %v13709_v38 = vsel %vm4990_vm7, %v7446_v34, %v7409_v58  ;;  %v13724_v58 = vperm.slane %v5675_v0, %v12287_v50  ;;  %v13729_v63 = vpop.permute.xlu0 %3483 }
0x14b0   : > { %10754 = vset.pattern.permute.xlu0 %v12209_v36  ;;  %3489 = vperm.xlu1 %10701, %v17398_v54   ;;  %17399 = vst [vmem:[#allocation124_spill] sm:$0xff] %v13709_v38  ;;  %v13712_v47 = vperm.slane %v5677_v30, %v12287_v50 }
0x14b1   : > { %10702 = vset.pattern.permute.xlu2 %v12209_v36  ;;  %v5710_v0 = vrot.slane %v13724_v58, 4 }
0x14b2   : > { %v3341_v33 = vpop.permute.xlu1 %3340  ;;  %v5722_v54 = vrot.slane %v13712_v47, 4 }
0x14b3   : > { %v4833_v41 = vmul.f32 %v4527_v5, %v3341_v33 }
0x14b5   : > { %v5662_v30 = vrot.slane %v4833_v41, 4  ;;  %v5665_v20 = vsel %vm4990_vm7, %v4833_v41, %v5664_v11  ;;  %v13747_v41 = vpop.permute.xlu2 %3366 }
0x14b6   : > { %v13733_v33 = vperm.slane %v5665_v20, %v12287_v50  ;;  %v4830_v20 = vmul.f32 %v13544_v16, %v17353_v9 }
0x14b7   : > { %v5663_v10 = vsel %vm4990_vm7, %v5662_v30, %v4829_v25  ;;  %v4834_v30 = vmul.f32 %v4527_v5, %v3347_v35  ;;  %v7468_v5 = vrot.slane %v4832_v19, 4 }
0x14b8   : > { %4068 = vperm.xlu0 %10754, %v17402_v46   ;;  %v13741_v34 = vperm.slane %v5663_v10, %v12287_v50  ;;  %v13745_v11 = vsel %vm4990_vm7, %v5722_v54, %v13733_v33  ;;  %3502 = vperm.xlu1 %10701, %v3491_v29   ;;  %v7456_v46 = vrot.slane %v4830_v20, 4  ;;  %v13757_v54 = vpop.permute.xlu0 %3515 }
0x14b9   : > { %3496 = vperm.xlu2 %10702, %v3491_v29   ;;  %v7454_v35 = vrot.slane %v4834_v30, 4 }
0x14ba   : > { %v13753_v25 = vsel %vm4990_vm7, %v5710_v0, %v13741_v34  ;;  %v7457_v10 = vsel %vm4990_vm7, %v4834_v30, %v7456_v46  ;;  %v13770_v0 = vperm.slane %v12272_v24, 0  ;;  %v4410_v46 = vrot.slane %v17354_v14, 4 }
0x14bb   : > { %v13763_v9 = vperm.slane %v7457_v10, %v12287_v50  ;;  %v4412_v10 = vrot.slane %v17354_v14, 6  ;;  %v4411_v30 = vrot.slane %v17354_v14, 5 }
0x14bd   : > { %v13765_v16 = vpop.permute.xlu2 %3379  ;;  %v7516_v51 = vrot.slane %v13763_v9, 4  ;;  %v4531_v17 = vperm.slane %v4412_v10, 0  ;;  %v13792_v15 = vperm.slane %v4411_v30, 0 }
0x14c0   : > { %10757 = vset.pattern.permute.xlu0 %v12214_v39  ;;  %10704 = vset.pattern.permute.xlu1 %v12209_v36 }
0x14c1   : > { %3509 = vperm.xlu2 %10702, %v17403_v40  }
0x14c2   : > { %v3360_v29 = vpop.permute.xlu1 %3359 }
0x14c3   : > { %v4836_v13 = vmul.f32 %v13674_v49, %v3360_v29  ;;  %v7455_v49 = vsel %vm4990_vm7, %v7454_v35, %v4830_v20 }
0x14c4   : > { %v7461_v20 = vperm.slane %v7455_v49, %v12287_v50  ;;  %v13803_v49 = vperm.slane %v4413_v12, 0 }
0x14c5   : > { %v7466_v40 = vrot.slane %v4836_v13, 4  ;;  %v7469_v45 = vsel %vm4990_vm7, %v4836_v13, %v7468_v5  ;;  %v13787_v13 = vpop.permute.xlu0 %3548 }
0x14c6   : > { %v13777_v38 = vperm.slane %v7469_v45, %v12287_v50  ;;  %v4529_v45 = vperm.slane %v4410_v46, 0  ;;  %v4840_v46 = vmul.f32 %v13792_v15, %v13627_v61 }
0x14c7   : > { %v7467_v29 = vsel %vm4990_vm7, %v7466_v40, %v4832_v19 }
0x14c8   : > { %4100 = vperm.xlu0 %10757, %v17139_v7   ;;  %v7473_v27 = vperm.slane %v7467_v29, %v12287_v50  ;;  %v7517_v5 = vsel %vm4990_vm7, %v13777_v38, %v7516_v51  ;;  %3522 = vperm.xlu1 %10704, %v13770_v0   ;;  %v7492_v2 = vrot.slane %v4840_v46, 4 }
0x14c9   : > { %10705 = vset.pattern.permute.xlu2 %v12214_v39  ;;  %v7525_v60 = vperm.slane %v7517_v5, %v12378_v1 }
0x14ca   : > { %v7502_v35 = vrot.slane %v7473_v27, 4  ;;  %v3373_v19 = vpop.permute.xlu1 %3372 }
0x14cb   : > { %v3399_v40 = vpop.permute.xlu2 %3398  ;;  %v4838_v7 = vmul.f32 %v4529_v45, %v3373_v19 }
0x14cc   : > { %v4842_v29 = vmul.f32 %v4531_v17, %v3399_v40  ;;  %v7503_v62 = vsel %vm4990_vm7, %v7502_v35, %v7461_v20  ;;  %v7504_v35 = vrot.slane %v7461_v20, 4 }
0x14cd   : > { %v7480_v51 = vrot.slane %v4838_v7, 4  ;;  %v13806_v14 = vpop.permute.xlu0 %3580 }
0x14ce   : > { %v7478_v22 = vrot.slane %v4842_v29, 4  ;;  %17404 = vst [vmem:[#allocation126_spill] sm:$0xff] %v13806_v14 }
0x14cf   : > { %v7481_v10 = vsel %vm4990_vm7, %v4842_v29, %v7480_v51  ;;  %v17147_v29 = vperm.slane %v17400_v37, 7  ;;  %v7505_v51 = vsel %vm4990_vm7, %v7473_v27, %v7504_v35 }
0x14d0   : > { %10760 = vset.pattern.permute.xlu0 %v12209_v36  ;;  %3535 = vperm.xlu1 %10704, %v3530_v32   ;;  %v7479_v30 = vsel %vm4990_vm7, %v7478_v22, %v4838_v7  ;;  %v7489_v19 = vperm.slane %v7481_v10, %v12287_v50  ;;  %v7514_v10 = vrot.slane %v13777_v38, 4 }
0x14d1   : > { %3528 = vperm.xlu2 %10705, %v13770_v0   ;;  %v7485_v18 = vperm.slane %v7479_v30, %v12287_v50 }
0x14d2   : > { %v7540_v7 = vrot.slane %v7489_v19, 4 }
0x14d3   : > { %v3412_v40 = vpop.permute.xlu2 %3411  ;;  %v7528_v27 = vrot.slane %v7485_v18, 4 }
0x14d4   : > { %v4844_v61 = vmul.f32 %v13803_v49, %v3412_v40  ;;  %v13820_v40 = vperm.slane %v7505_v51, %v12378_v1 }
0x14d6   : > { %v7490_v22 = vrot.slane %v4844_v61, 4  ;;  %v7493_v12 = vsel %vm4990_vm7, %v4844_v61, %v7492_v2  ;;  %17405 = vst [vmem:[#allocation127_spill] sm:$0xff] %v13820_v40  ;;  %v4837_v2 = vmul.f32 %v4529_v45, %v13747_v41  ;;  %v7515_v41 = vsel %vm4990_vm7, %v7514_v10, %v13763_v9  ;;  %v13838_v45 = vpop.permute.xlu0 %3613 }
0x14d7   : > { %v7501_v20 = vperm.slane %v7493_v12, %v12287_v50  ;;  %v13857_v10 = vperm.slane %v7515_v41, %v12378_v1 }
0x14d8   : > { %v7491_v53 = vsel %vm4990_vm7, %v7490_v22, %v4840_v46  ;;  %4133 = vperm.xlu0 %10760, %v17147_v29   ;;  %10707 = vset.pattern.permute.xlu1 %v12214_v39  ;;  %v7564_v46 = vrot.slane %v7525_v60, 4  ;;  %v7509_v29 = vperm.slane %v7503_v62, %v12378_v1  ;;  %v5724_v62 = vrot.slane %v13733_v33, 4 }
0x14d9   : > { %v7497_v30 = vperm.slane %v7491_v53, %v12287_v50  ;;  %v7538_v5 = vrot.slane %v7501_v20, 4  ;;  %v7541_v35 = vsel %vm4990_vm7, %v7501_v20, %v7540_v7  ;;  %3541 = vperm.xlu2 %10705, %v3530_v32   ;;  %17411 = vst [vmem:[#allocation133_spill] sm:$0xff] %v13857_v10 }
0x14da   : > { %v7549_v38 = vperm.slane %v7541_v35, %v12378_v1  ;;  %v3393_v12 = vpop.permute.xlu1 %3392  ;;  %v5725_v41 = vsel %vm4990_vm7, %v13712_v47, %v5724_v62  ;;  %v5712_v47 = vrot.slane %v13741_v34, 4  ;;  %v5729_v34 = vperm.slane %v13745_v11, %v12378_v1 }
0x14db   : > { %v7526_v61 = vrot.slane %v7497_v30, 4  ;;  %v7529_v22 = vsel %vm4990_vm7, %v7497_v30, %v7528_v27  ;;  %v7539_v51 = vsel %vm4990_vm7, %v7538_v5, %v7489_v19  ;;  %v4841_v7 = vmul.f32 %v4531_v17, %v3393_v12 }
0x14dc   : > { %v13831_v53 = vperm.slane %v7529_v22, %v12378_v1  ;;  %v13834_v32 = vperm.slane %v7539_v51, %v12378_v1  ;;  %v7562_v20 = vrot.slane %v7549_v38, 4  ;;  %v7556_v19 = vrot.slane %v13820_v40, 4 }
0x14dd   : > { %v7527_v27 = vsel %vm4990_vm7, %v7526_v61, %v7485_v18  ;;  %v13843_v30 = vsel %vm4990_vm7, %v7549_v38, %v7564_v46  ;;  %v5688_v5 = vrot.slane %v4837_v2, 4  ;;  %v5686_v17 = vrot.slane %v4841_v7, 4 }
0x14de   : > { %17406 = vst [vmem:[#allocation128_spill] sm:$0xff] %v13831_v53  ;;  %v7533_v35 = vperm.slane %v7527_v27, %v12378_v1  ;;  %v7552_v22 = vrot.slane %v7509_v29, 4  ;;  %v13849_v51 = vsel %vm4990_vm7, %v13831_v53, %v7556_v19  ;;  %v13852_v9 = vsel %vm4990_vm7, %v7562_v20, %v7525_v60 }
0x14df   : > { %17407 = vst [vmem:[#allocation129_spill] sm:$0xff] %v13834_v32  ;;  %v4839_v18 = vmul.f32 %v13792_v15, %v13765_v16  ;;  %v5689_v33 = vsel %vm4990_vm7, %v4841_v7, %v5688_v5  ;;  %v7558_v38 = vrot.slane %v13834_v32, 4  ;;  %v17412_v46 = vperm.slane %v12272_v24, 2  ;;  %v17416_v5 = vld [vmem:[#allocation18_spill] sm:$0xff] }
0x14e0   : > { %17408 = vst [vmem:[#allocation130_spill] sm:$0xff] %v13843_v30  ;;  %10763 = vset.pattern.permute.xlu0 %v12214_v39  ;;  %v13866_v60 = vsel %vm4990_vm7, %v7533_v35, %v7552_v22  ;;  %v7550_v61 = vrot.slane %v7533_v35, 4  ;;  %v5687_v15 = vsel %vm4990_vm7, %v5686_v17, %v4837_v2  ;;  %v5697_v12 = vperm.slane %v5689_v33, %v12287_v50  ;;  %v13882_v17 = vpop.permute.xlu0 %3645 }
0x14e1   : > { %17409 = vst [vmem:[#allocation131_spill] sm:$0xff] %v13849_v51  ;;  %10708 = vset.pattern.permute.xlu2 %v12209_v36  ;;  %3554 = vperm.xlu1 %10707, %v17412_v46   ;;  %v13871_v16 = vsel %vm4990_vm7, %v7558_v38, %v13857_v10  ;;  %v5700_v27 = vrot.slane %v4839_v18, 4  ;;  %v17148_v35 = vperm.slane %v17416_v5, 1  ;;  %v5693_v2 = vperm.slane %v5687_v15, %v12287_v50 }
0x14e2   : > { %17410 = vst [vmem:[#allocation132_spill] sm:$0xff] %v13852_v9  ;;  %v3406_v7 = vpop.permute.xlu1 %3405  ;;  %v13875_v20 = vsel %vm4990_vm7, %v7550_v61, %v7509_v29  ;;  %v5748_v33 = vrot.slane %v5697_v12, 4  ;;  %v3556_v29 = vperm.slane %v12272_v24, 3  ;;  %v13888_v61 = vperm.slane %v5725_v41, %v12378_v1 }
0x14e3   : > { %17413 = vst [vmem:[#allocation134_spill] sm:$0xff] %v13866_v60  ;;  %v4843_v19 = vmul.f32 %v13803_v49, %v3406_v7  ;;  %v5736_v62 = vrot.slane %v5693_v2, 4  ;;  %v5717_v41 = vperm.slane %v13753_v25, %v12378_v1  ;;  %v4416_v10 = vrot.slane %v12268_v21, 3 }
0x14e4   : > { %17414 = vst [vmem:[#allocation135_spill] sm:$0xff] %v13871_v16  ;;  %v3686_v16 = vperm.slane %v17330_v57, 5 }
0x14e5   : > { %17415 = vst [vmem:[#allocation136_spill] sm:$0xff] %v13875_v20  ;;  %v5698_v22 = vrot.slane %v4843_v19, 4  ;;  %v5701_v38 = vsel %vm4990_vm7, %v4843_v19, %v5700_v27  ;;  %v13896_v19 = vpop.permute.xlu2 %3431 }
0x14e6   : > { %17417 = vst [vmem:[#allocation137_spill] sm:$0xff] %v13882_v17  ;;  %v5709_v46 = vperm.slane %v5701_v38, %v12287_v50 }
0x14e7   : > { %17418 = vst [vmem:[#allocation138_spill] sm:$0xff] %v13888_v61  ;;  %v5699_v49 = vsel %vm4990_vm7, %v5698_v22, %v4839_v18 }
0x14e8   : > { %4165 = vperm.xlu0 %10763, %v17148_v35   ;;  %v5705_v15 = vperm.slane %v5699_v49, %v12287_v50  ;;  %v5746_v7 = vrot.slane %v5709_v46, 4  ;;  %v5749_v27 = vsel %vm4990_vm7, %v5709_v46, %v5748_v33  ;;  %v5772_v33 = vrot.slane %v13888_v61, 4  ;;  %v13913_v25 = vpop.permute.xlu0 %3678 }
0x14e9   : > { %3561 = vperm.xlu2 %10708, %v3556_v29   ;;  %3567 = vperm.xlu1 %10707, %v3556_v29   ;;  %v13903_v18 = vperm.slane %v5749_v27, %v12378_v1  ;;  %v5713_v46 = vsel %vm4990_vm7, %v13724_v58, %v5712_v47  ;;  %17421 = vst [vmem:[#allocation141_spill] sm:$0xff] %v13913_v25  ;;  %v5760_v47 = vrot.slane %v5717_v41, 4 }
0x14ea   : > { %v5734_v22 = vrot.slane %v5705_v15, 4  ;;  %v5737_v38 = vsel %vm4990_vm7, %v5705_v15, %v5736_v62  ;;  %v5747_v49 = vsel %vm4990_vm7, %v5746_v7, %v5697_v12  ;;  %v5768_v62 = vrot.slane %v5729_v34, 4 }
0x14eb   : > { %17419 = vst [vmem:[#allocation139_spill] sm:$0xff] %v13903_v18  ;;  %v13911_v29 = vperm.slane %v5737_v38, %v12378_v1  ;;  %v5753_v27 = vperm.slane %v5747_v49, %v12378_v1  ;;  %v13919_v35 = vsel %vm4990_vm7, %v13903_v18, %v5772_v33  ;;  %v13922_v12 = vperm.slane %v5713_v46, %v12378_v1 }
0x14ec   : > { %v5735_v11 = vsel %vm4990_vm7, %v5734_v22, %v5693_v2  ;;  %17422 = vst [vmem:[#allocation142_spill] sm:$0xff] %v13919_v35  ;;  %v4415_v7 = vrot.slane %v12268_v21, 2  ;;  %v17425_v38 = vperm.slane %v12272_v24, 4 }
0x14ed   : > { %17420 = vst [vmem:[#allocation140_spill] sm:$0xff] %v13911_v29  ;;  %v5762_v15 = vrot.slane %v13911_v29, 4  ;;  %v5741_v58 = vperm.slane %v5735_v11, %v12378_v1  ;;  %v13929_v2 = vsel %vm4990_vm7, %v5753_v27, %v5768_v62  ;;  %v5766_v22 = vrot.slane %v5753_v27, 4  ;;  %v3445_v20 = vpop.permute.xlu2 %3444 }
0x14ee   : > { %17423 = vst [vmem:[#allocation143_spill] sm:$0xff] %v13922_v12  ;;  %v4535_v37 = vperm.slane %v4415_v7, 0 }
0x14ef   : > { %17424 = vst [vmem:[#allocation144_spill] sm:$0xff] %v13929_v2  ;;  %v13936_v49 = vsel %vm4990_vm7, %v5762_v15, %v13922_v12  ;;  %v13939_v33 = vsel %vm4990_vm7, %v5741_v58, %v5760_v47  ;;  %v13942_v46 = vsel %vm4990_vm7, %v5766_v22, %v5729_v34  ;;  %v5758_v11 = vrot.slane %v5741_v58, 4 }
0x14f0   : > { %10766 = vset.pattern.permute.xlu0 %v12209_v36  ;;  %17426 = vst [vmem:[#allocation145_spill] sm:$0xff] %v13936_v49  ;;  %v13949_v32 = vpop.permute.xlu0 %3710  ;;  %v4414_v15 = vrot.slane %v12268_v21, 1  ;;  %v3582_v34 = vperm.slane %v12272_v24, 5  ;;  %v4850_v58 = vmul.f32 %v4535_v37, %v13690_v59  ;;  %v4536_v22 = vperm.slane %v4416_v10, 0  ;;  %v17487_v49 = vld [vmem:[#allocation113_spill] sm:$0xff] }
0x14f1   : > { %3574 = vperm.xlu2 %10708, %v17425_v38   ;;  %10710 = vset.pattern.permute.xlu1 %v12209_v36  ;;  %17427 = vst [vmem:[#allocation146_spill] sm:$0xff] %v13939_v33  ;;  %v17156_v38 = vperm.slane %v17416_v5, 4  ;;  %v13947_v25 = vsel %vm4990_vm7, %v5758_v11, %v5717_v41 }
0x14f2   : > { %17428 = vst [vmem:[#allocation147_spill] sm:$0xff] %v13942_v46  ;;  %v3425_v62 = vpop.permute.xlu1 %3424  ;;  %v4534_v7 = vperm.slane %v4414_v15, 0  ;;  %v7566_v59 = vrot.slane %v4850_v58, 4 }
0x14f3   : > { %v4846_v27 = vmul.f32 %v3425_v62, %v12595_v48  ;;  %17429 = vst [vmem:[#allocation148_spill] sm:$0xff] %v13947_v25 }
0x14f4   : > { %17430 = vst [vmem:[#allocation149_spill] sm:$0xff] %v13949_v32 }
0x14f5   : > { %v7568_v47 = vrot.slane %v4846_v27, 4  ;;  %v7567_v29 = vsel %vm4990_vm7, %v7566_v59, %v4846_v27 }
0x14f7   : > { %v7569_v41 = vsel %vm4990_vm7, %v4850_v58, %v7568_v47  ;;  %v13977_v58 = vperm.slane %v7567_v29, %v12287_v50  ;;  %v4847_v29 = vmul.f32 %v4534_v7, %v13896_v19 }
0x14f8   : > { %4198 = vperm.xlu0 %10766, %v17156_v38   ;;  %v13960_v40 = vperm.slane %v7569_v41, %v12287_v50  ;;  %v13962_v53 = vpop.permute.xlu0 %3743  ;;  %v3595_v38 = vperm.slane %v12272_v24, 6 }
0x14f9   : > { %10711 = vset.pattern.permute.xlu2 %v12214_v39  ;;  %3587 = vperm.xlu1 %10710, %v3582_v34   ;;  %17431 = vst [vmem:[#allocation150_spill] sm:$0xff] %v13962_v53 }
0x14fa   : > { %v3438_v62 = vpop.permute.xlu1 %3437  ;;  %v7628_v47 = vrot.slane %v13960_v40, 4 }
0x14fb   : > { %v3464_v11 = vpop.permute.xlu2 %3463  ;;  %v4848_v32 = vmul.f32 %v4534_v7, %v3438_v62  ;;  %v4849_v62 = vmul.f32 %v4535_v37, %v3445_v20  ;;  %v4419_v20 = vrot.slane %v12268_v21, 6 }
0x14fc   : > { %v4852_v25 = vmul.f32 %v4536_v22, %v3464_v11 }
0x14fd   : > { %v7580_v18 = vrot.slane %v4848_v32, 4 }
0x14fe   : > { %v7578_v61 = vrot.slane %v4852_v25, 4 }
0x14ff   : > { %v7581_v10 = vsel %vm4990_vm7, %v4852_v25, %v7580_v18 }
0x1500   : > { %v7579_v15 = vsel %vm4990_vm7, %v7578_v61, %v4848_v32  ;;  %10769 = vset.pattern.permute.xlu0 %v12214_v39  ;;  %v13974_v11 = vperm.slane %v7581_v10, %v12287_v50  ;;  %v17158_v61 = vperm.slane %v17416_v5, 6  ;;  %v13989_v25 = vpop.permute.xlu0 %3775 }
0x1501   : > { %v13971_v41 = vperm.slane %v7579_v15, %v12287_v50  ;;  %3593 = vperm.xlu2 %10711, %v3582_v34   ;;  %3600 = vperm.xlu1 %10710, %v3595_v38   ;;  %17432 = vst [vmem:[#allocation151_spill] sm:$0xff] %v13989_v25  ;;  %v4845_v34 = vmul.f32 %v13650_v8, %v12595_v48  ;;  %v4417_v25 = vrot.slane %v12268_v21, 4 }
0x1502   : > { %v13982_v32 = vsel %vm4990_vm7, %v13974_v11, %v7628_v47  ;;  %v5788_v47 = vrot.slane %v4847_v29, 4 }
0x1503   : > { %v7614_v27 = vrot.slane %v13971_v41, 4  ;;  %v13997_v59 = vpop.permute.xlu2 %3476  ;;  %v5776_v10 = vrot.slane %v4845_v34, 4 }
0x1505   : > { %v13987_v18 = vsel %vm4990_vm7, %v7614_v27, %v13977_v58  ;;  %v5774_v27 = vrot.slane %v4849_v62, 4  ;;  %v5777_v48 = vsel %vm4990_vm7, %v4849_v62, %v5776_v10  ;;  %v14015_v10 = vperm.slane %v4417_v25, 0 }
0x1506   : > { %v14026_v25 = vperm.slane %v17330_v57, 0 }
0x1507   : > { %v5775_v7 = vsel %vm4990_vm7, %v5774_v27, %v4845_v34 }
0x1508   : > { %4230 = vperm.xlu0 %10769, %v17158_v61   ;;  %v14000_v17 = vpop.permute.xlu0 %3808  ;;  %v5781_v34 = vperm.slane %v5775_v7, %v12287_v50  ;;  %v4420_v7 = vrot.slane %v12268_v21, 7 }
0x1509   : > { %3606 = vperm.xlu2 %10711, %v3595_v38   ;;  %10713 = vset.pattern.permute.xlu1 %v12214_v39  ;;  %17433 = vst [vmem:[#allocation152_spill] sm:$0xff] %v14000_v17  ;;  %v4418_v38 = vrot.slane %v12268_v21, 5  ;;  %v17435_v17 = vld [vmem:[#allocation21_spill] sm:$0xff] }
0x150a   : > { %v3458_v15 = vpop.permute.xlu1 %3457  ;;  %v17164_v12 = vperm.slane %v17435_v17, 1 }
0x150b   : > { %v4851_v53 = vmul.f32 %v4536_v22, %v3458_v15  ;;  %v5785_v22 = vperm.slane %v5777_v48, %v12287_v50  ;;  %v4538_v48 = vperm.slane %v4418_v38, 0 }
0x150d   : > { %v5786_v37 = vrot.slane %v4851_v53, 4  ;;  %v5789_v8 = vsel %vm4990_vm7, %v4851_v53, %v5788_v47  ;;  %v17434_v53 = vperm.slane %v12272_v24, 7  ;;  %v14017_v47 = vperm.slane %v4419_v20, 0 }
0x150e   : > { %v5797_v19 = vperm.slane %v5789_v8, %v12287_v50  ;;  %v4855_v55 = vmul.f32 %v4538_v48, %v13729_v63 }
0x150f   : > { %v5787_v61 = vsel %vm4990_vm7, %v5786_v37, %v4847_v29 }
0x1510   : > { %10772 = vset.pattern.permute.xlu0 %v12209_v36  ;;  %v5793_v15 = vperm.slane %v5787_v61, %v12287_v50  ;;  %v5834_v62 = vrot.slane %v5797_v19, 4  ;;  %v14028_v20 = vpop.permute.xlu0 %3840  ;;  %v5812_v28 = vrot.slane %v4855_v55, 4 }
0x1511   : > { %10714 = vset.pattern.permute.xlu2 %v12209_v36  ;;  %3619 = vperm.xlu1 %10713, %v17434_v53   ;;  %17436 = vst [vmem:[#allocation153_spill] sm:$0xff] %v14028_v20 }
0x1512   : > { %v5822_v27 = vrot.slane %v5793_v15, 4  ;;  %v5835_v29 = vsel %vm4990_vm7, %v5834_v62, %v5785_v22  ;;  %v3471_v8 = vpop.permute.xlu1 %3470 }
0x1513   : > { %v3497_v37 = vpop.permute.xlu2 %3496  ;;  %v4853_v5 = vmul.f32 %v14015_v10, %v3471_v8 }
0x1514   : > { %v4857_v61 = vmul.f32 %v14017_v47, %v3497_v37  ;;  %v5823_v53 = vsel %vm4990_vm7, %v5822_v27, %v5781_v34  ;;  %v5836_v37 = vrot.slane %v5785_v22, 4  ;;  %v4540_v27 = vperm.slane %v4420_v7, 0 }
0x1515   : > { %v5800_v62 = vrot.slane %v4853_v5, 4 }
0x1516   : > { %v5798_v26 = vrot.slane %v4857_v61, 4  ;;  %v5837_v20 = vsel %vm4990_vm7, %v5797_v19, %v5836_v37  ;;  %v5824_v19 = vrot.slane %v5781_v34, 4 }
0x1517   : > { %v5801_v38 = vsel %vm4990_vm7, %v4857_v61, %v5800_v62  ;;  %v14042_v62 = vperm.slane %v5837_v20, %v12378_v1 }
0x1518   : > { %4263 = vperm.xlu0 %10772, %v17164_v12   ;;  %v5799_v8 = vsel %vm4990_vm7, %v5798_v26, %v4853_v5  ;;  %v5809_v21 = vperm.slane %v5801_v38, %v12287_v50  ;;  %v14045_v4 = vpop.permute.xlu0 %3873  ;;  %v4860_v5 = vmul.f32 %v4540_v27, %v13757_v54 }
0x1519   : > { %3632 = vperm.xlu1 %10713, %v14026_v25   ;;  %3626 = vperm.xlu2 %10714, %v14026_v25   ;;  %v5805_v61 = vperm.slane %v5799_v8, %v12287_v50  ;;  %17437 = vst [vmem:[#allocation154_spill] sm:$0xff] %v14045_v4  ;;  %v5884_v34 = vrot.slane %v14042_v62, 4 }
0x151a   : > { %v5860_v7 = vrot.slane %v5809_v21, 4 }
0x151b   : > { %v3510_v14 = vpop.permute.xlu2 %3509 }
0x151c   : > { %v4859_v63 = vmul.f32 %v4540_v27, %v3510_v14  ;;  %v5848_v14 = vrot.slane %v5805_v61, 4 }
0x151e   : > { %v5810_v22 = vrot.slane %v4859_v63, 4  ;;  %v5813_v12 = vsel %vm4990_vm7, %v4859_v63, %v5812_v28  ;;  %v17438_v28 = vperm.slane %v17330_v57, 1 }
0x151f   : > { %v5821_v26 = vperm.slane %v5813_v12, %v12287_v50  ;;  %v5841_v12 = vperm.slane %v5835_v29, %v12378_v1 }
0x1520   : > { %v5811_v38 = vsel %vm4990_vm7, %v5810_v22, %v4855_v55  ;;  %10775 = vset.pattern.permute.xlu0 %v12214_v39 }
0x1521   : > { %v5817_v37 = vperm.slane %v5811_v38, %v12287_v50  ;;  %v5858_v20 = vrot.slane %v5821_v26, 4  ;;  %v5861_v8 = vsel %vm4990_vm7, %v5821_v26, %v5860_v7  ;;  %10716 = vset.pattern.permute.xlu1 %v12209_v36  ;;  %3639 = vperm.xlu2 %10714, %v17438_v28   ;;  %v5829_v26 = vperm.slane %v5823_v53, %v12378_v1 }
0x1522   : > { %v14058_v54 = vperm.slane %v5861_v8, %v12378_v1  ;;  %v3490_v7 = vpop.permute.xlu1 %3489  ;;  %v5825_v38 = vsel %vm4990_vm7, %v5793_v15, %v5824_v19  ;;  %v4854_v53 = vmul.f32 %v14015_v10, %v13997_v59 }
0x1523   : > { %v5846_v27 = vrot.slane %v5817_v37, 4  ;;  %v5849_v63 = vsel %vm4990_vm7, %v5817_v37, %v5848_v14  ;;  %v5859_v22 = vsel %vm4990_vm7, %v5858_v20, %v5809_v21  ;;  %v4856_v28 = vmul.f32 %v4538_v48, %v3490_v7 }
0x1524   : > { %v14067_v29 = vperm.slane %v5849_v63, %v12378_v1  ;;  %v5865_v8 = vperm.slane %v5859_v22, %v12378_v1  ;;  %v14073_v4 = vsel %vm4990_vm7, %v14058_v54, %v5884_v34  ;;  %v7602_v14 = vrot.slane %v4860_v5, 4 }
0x1525   : > { %v5847_v55 = vsel %vm4990_vm7, %v5846_v27, %v5805_v61  ;;  %17439 = vst [vmem:[#allocation155_spill] sm:$0xff] %v14073_v4  ;;  %v7604_v37 = vrot.slane %v4856_v28, 4  ;;  %v5880_v21 = vrot.slane %v5841_v12, 4  ;;  %v14078_v15 = vperm.slane %v5825_v38, %v12378_v1  ;;  %v14084_v27 = vpop.permute.xlu0 %3905 }
0x1526   : > { %v3647_v48 = vperm.slane %v17330_v57, 2  ;;  %v5872_v19 = vrot.slane %v5829_v26, 4  ;;  %v17440_v61 = vperm.slane %v17435_v17, 3  ;;  %v5874_v34 = vrot.slane %v14067_v29, 4 }
0x1527   : > { %v7605_v20 = vsel %vm4990_vm7, %v4860_v5, %v7604_v37  ;;  %v5853_v63 = vperm.slane %v5847_v55, %v12378_v1  ;;  %v14089_v22 = vsel %vm4990_vm7, %v5865_v8, %v5880_v21  ;;  %v7603_v59 = vsel %vm4990_vm7, %v7602_v14, %v4856_v28 }
0x1528   : > { %4295 = vperm.xlu0 %10775, %v17440_v61   ;;  %17441 = vst [vmem:[#allocation156_spill] sm:$0xff] %v14089_v22  ;;  %v14097_v5 = vsel %vm4990_vm7, %v5874_v34, %v14078_v15  ;;  %v5878_v38 = vrot.slane %v5865_v8, 4  ;;  %v7613_v37 = vperm.slane %v7605_v20, %v12287_v50  ;;  %v7592_v10 = vrot.slane %v4854_v53, 4 }
0x1529   : > { %3652 = vperm.xlu1 %10716, %v3647_v48   ;;  %10717 = vset.pattern.permute.xlu2 %v12214_v39  ;;  %17442 = vst [vmem:[#allocation157_spill] sm:$0xff] %v14097_v5  ;;  %v14100_v7 = vsel %vm4990_vm7, %v5853_v63, %v5872_v19  ;;  %v5870_v61 = vrot.slane %v5853_v63, 4  ;;  %v7616_v8 = vrot.slane %v13977_v58, 4  ;;  %v7609_v55 = vperm.slane %v7603_v59, %v12287_v50 }
0x152a   : > { %17443 = vst [vmem:[#allocation158_spill] sm:$0xff] %v14100_v7  ;;  %v3503_v28 = vpop.permute.xlu1 %3502  ;;  %v14111_v19 = vsel %vm4990_vm7, %v5878_v38, %v5841_v12  ;;  %v7626_v14 = vrot.slane %v13974_v11, 4  ;;  %v7650_v12 = vrot.slane %v7613_v37, 4  ;;  %v3660_v58 = vperm.slane %v17330_v57, 3 }
0x152b   : > { %v4858_v34 = vmul.f32 %v14017_v47, %v3503_v28  ;;  %17444 = vst [vmem:[#allocation159_spill] sm:$0xff] %v14111_v19  ;;  %v14118_v35 = vsel %vm4990_vm7, %v5870_v61, %v5829_v26  ;;  %v7617_v47 = vsel %vm4990_vm7, %v13971_v41, %v7616_v8  ;;  %v7621_v59 = vperm.slane %v13987_v18, %v12378_v1 }
0x152c   : > { %17445 = vst [vmem:[#allocation160_spill] sm:$0xff] %v14118_v35  ;;  %v7637_v11 = vperm.slane %v13982_v32, %v12378_v1  ;;  %v7638_v26 = vrot.slane %v7609_v55, 4  ;;  %v14137_v8 = vperm.slane %v7617_v47, %v12378_v1  ;;  %v7627_v18 = vsel %vm4990_vm7, %v7626_v14, %v13960_v40 }
0x152d   : > { %v7590_v21 = vrot.slane %v4858_v34, 4  ;;  %v7593_v63 = vsel %vm4990_vm7, %v4858_v34, %v7592_v10  ;;  %v14134_v34 = vpop.permute.xlu2 %3528  ;;  %v14144_v32 = vpop.permute.xlu0 %3938  ;;  %v17167_v47 = vperm.slane %v17435_v17, 6  ;;  %v7664_v20 = vrot.slane %v7621_v59, 4 }
0x152e   : > { %v7601_v38 = vperm.slane %v7593_v63, %v12287_v50  ;;  %17446 = vst [vmem:[#allocation161_spill] sm:$0xff] %v14144_v32  ;;  %v14154_v14 = vperm.slane %v7627_v18, %v12378_v1  ;;  %v7676_v35 = vrot.slane %v7637_v11, 4 }
0x152f   : > { %v7591_v28 = vsel %vm4990_vm7, %v7590_v21, %v4854_v53  ;;  %v4422_v21 = vrot.slane %v12272_v24, 2 }
0x1530   : > { %10778 = vset.pattern.permute.xlu0 %v12209_v36  ;;  %v7597_v10 = vperm.slane %v7591_v28, %v12287_v50  ;;  %v7651_v41 = vsel %vm4990_vm7, %v7650_v12, %v7601_v38  ;;  %v7652_v61 = vrot.slane %v7601_v38, 4 }
0x1531   : > { %3665 = vperm.xlu1 %10716, %v3660_v58   ;;  %3658 = vperm.xlu2 %10717, %v3647_v48   ;;  %v14142_v53 = vperm.slane %v7651_v41, %v12378_v1 }
0x1532   : > { %v7639_v63 = vsel %vm4990_vm7, %v7638_v26, %v7597_v10  ;;  %v7640_v12 = vrot.slane %v7597_v10, 4  ;;  %v7653_v38 = vsel %vm4990_vm7, %v7613_v37, %v7652_v61  ;;  %v7668_v10 = vrot.slane %v14137_v8, 4 }
0x1533   : > { %v7661_v48 = vperm.slane %v7653_v38, %v12378_v1  ;;  %v7645_v28 = vperm.slane %v7639_v63, %v12378_v1  ;;  %v7670_v41 = vrot.slane %v14142_v53, 4 }
0x1534   : > { %v7641_v40 = vsel %vm4990_vm7, %v7609_v55, %v7640_v12  ;;  %v14173_v12 = vperm.slane %v4422_v21, 0 }
0x1535   : > { %v14158_v26 = vperm.slane %v7641_v40, %v12378_v1  ;;  %v14161_v37 = vsel %vm4990_vm7, %v7645_v28, %v7664_v20  ;;  %v7674_v63 = vrot.slane %v7661_v48, 4  ;;  %v14168_v55 = vsel %vm4990_vm7, %v7670_v41, %v14154_v14 }
0x1536   : > { %17447 = vst [vmem:[#allocation162_spill] sm:$0xff] %v14161_v37  ;;  %v14171_v18 = vsel %vm4990_vm7, %v7661_v48, %v7676_v35  ;;  %v5204_v20 = vrot.slane %v12716_v3, 4  ;;  %v7662_v3 = vrot.slane %v7645_v28, 4  ;;  %v5092_v40 = vrot.slane %v12711_v6, 4 }
0x1537   : > { %17448 = vst [vmem:[#allocation163_spill] sm:$0xff] %v14168_v55  ;;  %v14180_v38 = vsel %vm4990_vm7, %v14158_v26, %v7668_v10  ;;  %v14188_v21 = vsel %vm4990_vm7, %v7674_v63, %v7637_v11  ;;  %v3542_v10 = vpop.permute.xlu2 %3541  ;;  %v14202_v11 = vmul.f32 %v14173_v12, %v13787_v13  ;;  %v14204_v63 = vpop.permute.xlu0 %3970  ;;  %v4423_v6 = vrot.slane %v12272_v24, 3  ;;  %v17458_v55 = vld [vmem:[#allocation36_spill] sm:$0xff] }
0x1538   : > { %17449 = vst [vmem:[#allocation164_spill] sm:$0xff] %v14171_v18  ;;  %4328 = vperm.xlu0 %10778, %v17167_v47   ;;  %v14198_v47 = vsel %vm4990_vm7, %v7662_v3, %v7621_v59  ;;  %v5093_v28 = vsel %vm4990_vm7, %v12641_v31, %v5092_v40  ;;  %v17454_v13 = vperm.slane %v17330_v57, 4  ;;  %v5098_v31 = vrot.slane %v12702_v23, 4 }
0x1539   : > { %17450 = vst [vmem:[#allocation165_spill] sm:$0xff] %v14180_v38  ;;  %10719 = vset.pattern.permute.xlu1 %v12214_v39  ;;  %3671 = vperm.xlu2 %10717, %v3660_v58   ;;  %v5205_v58 = vsel %vm4990_vm7, %v12699_v43, %v5204_v20  ;;  %v5210_v43 = vrot.slane %v12680_v44, 4  ;;  %v5886_v59 = vrot.slane %v14202_v11, 4  ;;  %v4421_v20 = vrot.slane %v12272_v24, 1 }
0x153a   : > { %17451 = vst [vmem:[#allocation166_spill] sm:$0xff] %v14188_v21  ;;  %v3523_v61 = vpop.permute.xlu1 %3522  ;;  %v10791_v41 = vpack.i.bf16 %v5205_v58, %v5093_v28  ;;  %v4544_v40 = vperm.slane %v4423_v6, 0  ;;  %v17455_v58 = vld [vmem:[#allocation41_spill] sm:$0xff]  ;;  %v17466_v21 = vld [vmem:[#allocation83_spill] sm:$0xff] }
0x153b   : > { %17452 = vst [vmem:[#allocation167_spill] sm:$0xff] %v14198_v47  ;;  %v14209_v48 = vmul.f32 %v3523_v61, %v13770_v0  ;;  %v5211_v28 = vsel %vm4990_vm7, %v5210_v43, %v17455_v58  ;;  %v4542_v35 = vperm.slane %v4421_v20, 0  ;;  %v6994_v43 = vrot.slane %v17458_v55, 4  ;;  %v17460_v58 = vld [vmem:[#allocation35_spill] sm:$0xff] }
0x153c   : > { %17453 = vst [vmem:[#allocation168_spill] sm:$0xff] %v14204_v63 }
0x153d   : > { %v5887_v61 = vsel %vm4990_vm7, %v5886_v59, %v14209_v48  ;;  %v6995_v55 = vsel %vm4990_vm7, %v6994_v43, %v17460_v58  ;;  %v17465_v58 = vld [vmem:[#allocation67_spill] sm:$0xff]  ;;  %v4864_v51 = vmul.f32 %v4542_v35, %v3542_v10 }
0x153e   : > { %v17470_v10 = vld [vmem:[#allocation31_spill] sm:$0xff] }
0x153f   : > { %v14234_v6 = vpop.permute.xlu0 %4003 }
0x1540   : > { %10792 = vrot.lane.b32.xlu0 %v10791_v41, %s11555_s26  ;;  %v14227_v41 = vperm.slane %v5887_v61, %v12287_v50  ;;  %17457 = vst [vmem:[#allocation41_spill] sm:$0xff] %v14234_v6 }
0x1541   : > { %3684 = vperm.xlu1 %10719, %v17454_v13   ;;  %10720 = vset.pattern.permute.xlu2 %v12209_v36  ;;  %v17456_v13 = vld [vmem:[#allocation40_spill] sm:$0xff] }
0x1542   : > { %v3536_v44 = vpop.permute.xlu1 %3535  ;;  %v5099_v30 = vsel %vm4990_vm7, %v5098_v31, %v17456_v13  ;;  %v5936_v61 = vrot.slane %v14227_v41, 4 }
0x1543   : > { %v3562_v3 = vpop.permute.xlu2 %3561  ;;  %v14232_v18 = vmul.f32 %v4542_v35, %v3536_v44  ;;  %v10806_v59 = vpack.i.bf16 %v5211_v28, %v5099_v30  ;;  %v17461_v28 = vld [vmem:[#allocation19_spill] sm:$0xff] }
0x1544   : > { %v14224_v47 = vmul.f32 %v4544_v40, %v3562_v3  ;;  %v17459_v3 = vld [vmem:[#allocation20_spill] sm:$0xff] }
0x1545   : > { %v6882_v30 = vrot.slane %v17459_v3, 4  ;;  %v17464_v3 = vld [vmem:[#allocation66_spill] sm:$0xff] }
0x1546   : > { %v5898_v23 = vrot.slane %v14224_v47, 4  ;;  %v5312_v9 = vrot.slane %v17464_v3, 4 }
0x1547   : > { %v6883_v13 = vsel %vm4990_vm7, %v6882_v30, %v17461_v28  ;;  %v4862_v28 = vmul.f32 %v14134_v34, %v13770_v0  ;;  %v17469_v34 = vld [vmem:[#allocation80_spill] sm:$0xff] }
0x1548   : > { %v5899_v20 = vsel %vm4990_vm7, %v5898_v23, %v14232_v18  ;;  %10807 = vrot.lane.b32.xlu0 %v10806_v59, %s11549_s20  ;;  %v10821_v23 = vpack.i.bf16 %v6995_v55, %v6883_v13  ;;  %v14255_v59 = vpop.permute.xlu0 %4035  ;;  %v5313_v55 = vsel %vm4990_vm7, %v17465_v58, %v5312_v9 }
0x1549   : > { %v14243_v31 = vperm.slane %v5899_v20, %v12287_v50  ;;  %3697 = vperm.xlu1 %10719, %v3686_v16   ;;  %3691 = vperm.xlu2 %10720, %v3686_v16   ;;  %17462 = vst [vmem:[#allocation40_spill] sm:$0xff] %v14255_v59  ;;  %v17463_v16 = vperm.slane %v17330_v57, 6  ;;  %v5424_v20 = vrot.slane %v13212_v56, 4  ;;  %v5430_v56 = vrot.slane %v17466_v21, 4 }
0x154b   : > { %v14248_v44 = vsel %vm4990_vm7, %v14243_v31, %v5936_v61  ;;  %v5425_v43 = vsel %vm4990_vm7, %v13191_v42, %v5424_v20  ;;  %v17467_v42 = vld [vmem:[#allocation65_spill] sm:$0xff]  ;;  %v5431_v20 = vsel %vm4990_vm7, %v5430_v56, %v17469_v34  ;;  %v3575_v37 = vpop.permute.xlu2 %3574 }
0x154c   : > { %v5318_v9 = vrot.slane %v17467_v42, 4 }
0x154e   : > { %v5319_v58 = vsel %vm4990_vm7, %v5318_v9, %v17470_v10  ;;  %v4427_v10 = vrot.slane %v12272_v24, 7 }
0x154f   : > { %v10846_v60 = vpack.i.bf16 %v5431_v20, %v5319_v58  ;;  %v17473_v20 = vld [vmem:[#allocation64_spill] sm:$0xff] }
0x1550   : > { %10822 = vrot.lane.b32.xlu0 %v10821_v23, %s11551_s23  ;;  %v10831_v23 = vpack.i.bf16 %v5425_v43, %v5313_v55  ;;  %v7692_v43 = vrot.slane %v4864_v51, 4  ;;  %v17471_v55 = vld [vmem:[#allocation14_spill] sm:$0xff] }
0x1551   : > { %10722 = vset.pattern.permute.xlu1 %v12209_v36  ;;  %3704 = vperm.xlu2 %10720, %v17463_v16   ;;  %v3712_v16 = vperm.slane %v17330_v57, 7 }
0x1553   : > { %v3555_v61 = vpop.permute.xlu1 %3554 }
0x1554   : > { %v4866_v30 = vmul.f32 %v14173_v12, %v3555_v61  ;;  %v14275_v12 = vpop.permute.xlu0 %4068  ;;  %v7680_v61 = vrot.slane %v4862_v28, 4 }
0x1555   : > { %17468 = vst [vmem:[#allocation36_spill] sm:$0xff] %v14275_v12  ;;  %v17510_v12 = vld [vmem:[#allocation139_spill] sm:$0xff] }
0x1556   : > { %v7678_v13 = vrot.slane %v4866_v30, 4 }
0x1558   : > { %v7679_v3 = vsel %vm4990_vm7, %v7678_v13, %v4862_v28  ;;  %10832 = vrot.lane.b32.xlu0 %v10831_v23, %s11556_s28  ;;  %v14283_v13 = vperm.slane %v17471_v55, 0  ;;  %v7681_v23 = vsel %vm4990_vm7, %v4866_v30, %v7680_v61  ;;  %v17472_v28 = vld [vmem:[#allocation81_spill] sm:$0xff] }
0x1559   : > { %3717 = vperm.xlu1 %10722, %v3712_v16   ;;  %10723 = vset.pattern.permute.xlu2 %v12214_v39  ;;  %v7685_v35 = vperm.slane %v7679_v3, %v12287_v50  ;;  %v5436_v3 = vrot.slane %v17472_v28, 4  ;;  %v14294_v9 = vperm.slane %v7681_v23, %v12287_v50  ;;  %v4425_v28 = vrot.slane %v12272_v24, 5 }
0x155b   : > { %v3568_v0 = vpop.permute.xlu1 %3567 }
0x155c   : > { %v4868_v21 = vmul.f32 %v4544_v40, %v3568_v0  ;;  %v7728_v0 = vrot.slane %v7685_v35, 4  ;;  %v14310_v58 = vpop.permute.xlu0 %4100 }
0x155d   : > { %17475 = vst [vmem:[#allocation20_spill] sm:$0xff] %v14310_v58 }
0x155e   : > { %v7690_v42 = vrot.slane %v4868_v21, 4  ;;  %v7693_v38 = vsel %vm4990_vm7, %v4868_v21, %v7692_v43  ;;  %v17474_v43 = vld [vmem:[#allocation82_spill] sm:$0xff] }
0x155f   : > { %v14288_v56 = vperm.slane %v7693_v38, %v12287_v50  ;;  %v5324_v38 = vrot.slane %v17473_v20, 4  ;;  %v5437_v21 = vsel %vm4990_vm7, %v17474_v43, %v5436_v3  ;;  %v17477_v3 = vld [vmem:[#allocation11_spill] sm:$0xff] }
0x1560   : > { %v7691_v40 = vsel %vm4990_vm7, %v7690_v42, %v4864_v51  ;;  %10847 = vrot.lane.b32.xlu0 %v10846_v60, %s11550_s22  ;;  %v17476_v42 = vld [vmem:[#allocation63_spill] sm:$0xff]  ;;  %v7220_v20 = vrot.slane %v17477_v3, 4  ;;  %v17480_v3 = vld [vmem:[#allocation54_spill] sm:$0xff] }
0x1561   : > { %v7697_v30 = vperm.slane %v7691_v40, %v12287_v50  ;;  %v7738_v34 = vrot.slane %v14288_v56, 4  ;;  %3723 = vperm.xlu2 %10723, %v3712_v16   ;;  %3730 = vperm.xlu1 %10722, %v14283_v13   ;;  %v5900_v16 = vrot.slane %v14232_v18, 4  ;;  %v5325_v40 = vsel %vm4990_vm7, %v17476_v42, %v5324_v38 }
0x1562   : > { %v14330_v38 = vperm.slane %v4425_v28, 0  ;;  %v5888_v42 = vrot.slane %v14209_v48, 4 }
0x1563   : > { %v7726_v61 = vrot.slane %v7697_v30, 4  ;;  %v14301_v51 = vsel %vm4990_vm7, %v7697_v30, %v7728_v0  ;;  %v14305_v60 = vsel %vm4990_vm7, %v7738_v34, %v14294_v9  ;;  %v10861_v0 = vpack.i.bf16 %v5437_v21, %v5325_v40  ;;  %v14319_v30 = vpop.permute.xlu2 %3593  ;;  %v17479_v21 = vld [vmem:[#allocation13_spill] sm:$0xff] }
0x1564   : > { %v14321_v34 = vperm.slane %v4427_v10, 0  ;;  %v5901_v18 = vsel %vm4990_vm7, %v14224_v47, %v5900_v16  ;;  %v7221_v10 = vsel %vm4990_vm7, %v17479_v21, %v7220_v20  ;;  %v5650_v20 = vrot.slane %v13564_v52, 4  ;;  %v14344_v21 = vpop.permute.xlu0 %4133 }
0x1565   : > { %v14314_v23 = vsel %vm4990_vm7, %v7726_v61, %v7685_v35  ;;  %v4424_v35 = vrot.slane %v12272_v24, 4  ;;  %v17478_v61 = vld [vmem:[#allocation56_spill] sm:$0xff]  ;;  %v5909_v47 = vperm.slane %v5901_v18, %v12287_v50  ;;  %17481 = vst [vmem:[#allocation35_spill] sm:$0xff] %v14344_v21  ;;  %v5889_v48 = vsel %vm4990_vm7, %v14202_v11, %v5888_v42 }
0x1566   : > { %v7108_v43 = vrot.slane %v17478_v61, 4  ;;  %v4426_v61 = vrot.slane %v12272_v24, 6  ;;  %v17483_v24 = vperm.slane %v17471_v55, 1  ;;  %v5897_v52 = vperm.slane %v5889_v48, %v12287_v50  ;;  %v17486_v48 = vld [vmem:[#allocation102_spill] sm:$0xff] }
0x1567   : > { %v4545_v46 = vperm.slane %v4424_v35, 0  ;;  %v5946_v22 = vrot.slane %v5909_v47, 4 }
0x1568   : > { %10862 = vrot.lane.b32.xlu0 %v10861_v0, %s11557_s0  ;;  %v4875_v0 = vmul.f32 %v14321_v34, %v13838_v45  ;;  %v7109_v4 = vsel %vm4990_vm7, %v17480_v3, %v7108_v43  ;;  %v17482_v45 = vld [vmem:[#allocation98_spill] sm:$0xff]  ;;  %v4547_v35 = vperm.slane %v4426_v61, 0  ;;  %v17484_v43 = vld [vmem:[#allocation108_spill] sm:$0xff]  ;;  %v17485_v3 = vld [vmem:[#allocation97_spill] sm:$0xff]  ;;  %v5544_v61 = vrot.slane %v17486_v48, 4 }
0x1569   : > { %3736 = vperm.xlu2 %10723, %v14283_v13   ;;  %10725 = vset.pattern.permute.xlu1 %v12214_v39  ;;  %v10876_v28 = vpack.i.bf16 %v7221_v10, %v7109_v4  ;;  %v5538_v2 = vrot.slane %v17482_v45, 4  ;;  %v5651_v10 = vsel %vm4990_vm7, %v5650_v20, %v17484_v43  ;;  %v5947_v45 = vsel %vm4990_vm7, %v5946_v22, %v5897_v52 }
0x156a   : > { %v5922_v18 = vrot.slane %v4875_v0, 4  ;;  %v5934_v20 = vrot.slane %v14243_v31, 4  ;;  %v14370_v22 = vperm.slane %v5947_v45, %v12378_v1  ;;  %v17489_v31 = vld [vmem:[#allocation109_spill] sm:$0xff] }
0x156b   : > { %v3588_v40 = vpop.permute.xlu1 %3587  ;;  %v3607_v4 = vpop.permute.xlu2 %3606 }
0x156c   : > { %v4871_v16 = vmul.f32 %v14330_v38, %v3588_v40  ;;  %v4869_v40 = vmul.f32 %v4545_v46, %v3575_v37 }
0x156e   : > { %v5924_v19 = vrot.slane %v4871_v16, 4  ;;  %v5923_v11 = vsel %vm4990_vm7, %v5922_v18, %v4871_v16  ;;  %v5656_v16 = vrot.slane %v17487_v49, 4  ;;  %v5948_v18 = vrot.slane %v5897_v52, 4 }
0x1570   : > { %v5925_v33 = vsel %vm4990_vm7, %v4875_v0, %v5924_v19  ;;  %10877 = vrot.lane.b32.xlu0 %v10876_v28, %s11555_s26  ;;  %v5912_v19 = vrot.slane %v4869_v40, 4  ;;  %v5539_v28 = vsel %vm4990_vm7, %v5538_v2, %v17485_v3  ;;  %v3751_v2 = vperm.slane %v17471_v55, 2 }
0x1571   : > { %10726 = vset.pattern.permute.xlu2 %v12209_v36  ;;  %3749 = vperm.xlu1 %10725, %v17483_v24   ;;  %v5933_v37 = vperm.slane %v5925_v33, %v12287_v50  ;;  %v5929_v24 = vperm.slane %v5923_v11, %v12287_v50  ;;  %v10886_v7 = vpack.i.bf16 %v5651_v10, %v5539_v28  ;;  %v17488_v11 = vld [vmem:[#allocation126_spill] sm:$0xff] }
0x1572   : > { %v4870_v10 = vmul.f32 %v4545_v46, %v17488_v11  ;;  %v5949_v3 = vsel %vm4990_vm7, %v5909_v47, %v5948_v18  ;;  %v5657_v52 = vsel %vm4990_vm7, %v17489_v31, %v5656_v16  ;;  %v5935_v46 = vsel %vm4990_vm7, %v5934_v20, %v14227_v41 }
0x1573   : > { %v3601_v42 = vpop.permute.xlu1 %3600  ;;  %v5970_v5 = vrot.slane %v5933_v37, 4  ;;  %v4874_v47 = vmul.f32 %v4547_v35, %v3607_v4 }
0x1574   : > { %v4873_v0 = vmul.f32 %v4547_v35, %v3601_v42  ;;  %v17492_v35 = vld [vmem:[#allocation12_spill] sm:$0xff]  ;;  %v7704_v31 = vrot.slane %v4870_v10, 4 }
0x1575   : > { %v7328_v20 = vrot.slane %v17492_v35, 4 }
0x1576   : > { %v5910_v43 = vrot.slane %v4873_v0, 4  ;;  %v5913_v33 = vsel %vm4990_vm7, %v4873_v0, %v5912_v19  ;;  %v14378_v19 = vpop.permute.xlu0 %4165  ;;  %v5958_v0 = vrot.slane %v5929_v24, 4 }
0x1577   : > { %v5921_v42 = vperm.slane %v5913_v33, %v12287_v50  ;;  %17490 = vst [vmem:[#allocation19_spill] sm:$0xff] %v14378_v19  ;;  %v14382_v33 = vpop.permute.xlu2 %3626 }
0x1578   : > { %v5911_v49 = vsel %vm4990_vm7, %v5910_v43, %v4869_v40  ;;  %10887 = vrot.lane.b32.xlu0 %v10886_v7, %s11551_s23  ;;  %v5945_v7 = vperm.slane %v14248_v44, %v12378_v1  ;;  %v5992_v43 = vrot.slane %v14370_v22, 4 }
0x1579   : > { %v5917_v28 = vperm.slane %v5911_v49, %v12287_v50  ;;  %v5971_v48 = vsel %vm4990_vm7, %v5970_v5, %v5921_v42  ;;  %v5972_v45 = vrot.slane %v5921_v42, 4  ;;  %3756 = vperm.xlu2 %10726, %v3751_v2   ;;  %3762 = vperm.xlu1 %10725, %v3751_v2   ;;  %v4428_v42 = vrot.slane %v17330_v57, 1  ;;  %v17491_v2 = vld [vmem:[#allocation99_spill] sm:$0xff] }
0x157a   : > { %v14389_v40 = vperm.slane %v5971_v48, %v12378_v1  ;;  %v5545_v11 = vsel %vm4990_vm7, %v17491_v2, %v5544_v61  ;;  %v14413_v61 = vperm.slane %v5949_v3, %v12378_v1  ;;  %v17494_v3 = vld [vmem:[#allocation122_spill] sm:$0xff] }
0x157b   : > { %v5959_v16 = vsel %vm4990_vm7, %v5958_v0, %v5917_v28  ;;  %v5960_v18 = vrot.slane %v5917_v28, 4  ;;  %v5973_v5 = vsel %vm4990_vm7, %v5933_v37, %v5972_v45  ;;  %v10901_v4 = vpack.i.bf16 %v5657_v52, %v5545_v11 }
0x157c   : > { %v14398_v41 = vperm.slane %v5959_v16, %v12378_v1  ;;  %v14401_v44 = vperm.slane %v5973_v5, %v12378_v1  ;;  %v14407_v37 = vsel %vm4990_vm7, %v14389_v40, %v5992_v43  ;;  %v14410_v0 = vperm.slane %v5935_v46, %v12378_v1 }
0x157d   : > { %v5961_v49 = vsel %vm4990_vm7, %v5929_v24, %v5960_v18  ;;  %17493 = vst [vmem:[#allocation66_spill] sm:$0xff] %v14407_v37  ;;  %v7702_v28 = vrot.slane %v4874_v47, 4  ;;  %v5988_v45 = vrot.slane %v5945_v7, 4  ;;  %v14418_v24 = vperm.slane %v4428_v42, 0  ;;  %v17583_v37 = vld [vmem:[#allocation17_spill] sm:$0xff] }
0x157e   : > { %v5982_v48 = vrot.slane %v14398_v41, 4  ;;  %v5969_v52 = vperm.slane %v5961_v49, %v12378_v1  ;;  %v5994_v16 = vrot.slane %v14401_v44, 4  ;;  %v4872_v18 = vmul.f32 %v14330_v38, %v14319_v30  ;;  %v14443_v49 = vpop.permute.xlu0 %4198 }
0x157f   : > { %v7705_v5 = vsel %vm4990_vm7, %v4874_v47, %v7704_v31  ;;  %v7440_v46 = vrot.slane %v17494_v3, 4  ;;  %v17495_v43 = vperm.slane %v17471_v55, 3  ;;  %v7740_v47 = vrot.slane %v14294_v9, 4  ;;  %17500 = vst [vmem:[#allocation80_spill] sm:$0xff] %v14443_v49  ;;  %v17501_v3 = vld [vmem:[#allocation89_spill] sm:$0xff] }
0x1580   : > { %10902 = vrot.lane.b32.xlu0 %v10901_v4, %s11558_s17  ;;  %v14430_v2 = vsel %vm4990_vm7, %v5982_v48, %v14410_v0  ;;  %v14433_v42 = vsel %vm4990_vm7, %v5969_v52, %v5988_v45  ;;  %v14437_v30 = vsel %vm4990_vm7, %v5994_v16, %v14413_v61  ;;  %v5986_v38 = vrot.slane %v5969_v52, 4  ;;  %v17499_v4 = vld [vmem:[#allocation118_spill] sm:$0xff]  ;;  %v14446_v48 = vpop.permute.xlu2 %3639 }
0x1581   : > { %3769 = vperm.xlu2 %10726, %v17495_v43   ;;  %10728 = vset.pattern.permute.xlu1 %v12209_v36  ;;  %17496 = vst [vmem:[#allocation67_spill] sm:$0xff] %v14430_v2  ;;  %v7703_v11 = vsel %vm4990_vm7, %v7702_v28, %v4870_v10  ;;  %v7441_v35 = vsel %vm4990_vm7, %v17499_v4, %v7440_v46  ;;  %v7716_v52 = vrot.slane %v4872_v18, 4  ;;  %v17503_v28 = vld [vmem:[#allocation143_spill] sm:$0xff]  ;;  %v17504_v4 = vld [vmem:[#allocation137_spill] sm:$0xff] }
0x1582   : > { %17497 = vst [vmem:[#allocation83_spill] sm:$0xff] %v14433_v42  ;;  %v7713_v31 = vperm.slane %v7705_v5, %v12287_v50  ;;  %v7329_v43 = vsel %vm4990_vm7, %v17501_v3, %v7328_v20  ;;  %v14451_v16 = vsel %vm4990_vm7, %v5986_v38, %v5945_v7  ;;  %v7741_v9 = vsel %vm4990_vm7, %v14288_v56, %v7740_v47  ;;  %v17505_v38 = vld [vmem:[#allocation140_spill] sm:$0xff] }
0x1583   : > { %17498 = vst [vmem:[#allocation65_spill] sm:$0xff] %v14437_v30  ;;  %v3620_v45 = vpop.permute.xlu1 %3619  ;;  %v5764_v46 = vrot.slane %v17503_v28, 4  ;;  %v14459_v5 = vmul.f32 %v14418_v24, %v17504_v4  ;;  %v7709_v49 = vperm.slane %v7703_v11, %v12287_v50  ;;  %v10916_v19 = vpack.i.bf16 %v7441_v35, %v7329_v43 }
0x1584   : > { %17502 = vst [vmem:[#allocation31_spill] sm:$0xff] %v14451_v16  ;;  %v4876_v10 = vmul.f32 %v14321_v34, %v3620_v45  ;;  %v4429_v7 = vrot.slane %v17330_v57, 2  ;;  %v14467_v56 = vperm.slane %v7741_v9, %v12378_v1  ;;  %v7764_v34 = vrot.slane %v7713_v31, 4 }
0x1585   : > { %v5765_v3 = vsel %vm4990_vm7, %v17505_v38, %v5764_v46  ;;  %v3777_v45 = vperm.slane %v17471_v55, 4  ;;  %v7737_v11 = vperm.slane %v14301_v51, %v12378_v1  ;;  %v5876_v43 = vrot.slane %v14078_v15, 4 }
0x1586   : > { %v7714_v58 = vrot.slane %v4876_v10, 4  ;;  %v7717_v20 = vsel %vm4990_vm7, %v4876_v10, %v7716_v52  ;;  %v4430_v52 = vrot.slane %v17330_v57, 3  ;;  %v7752_v10 = vrot.slane %v7709_v49, 4 }
0x1587   : > { %v7725_v47 = vperm.slane %v7717_v20, %v12287_v50  ;;  %v14483_v51 = vperm.slane %v4429_v7, 0  ;;  %v7745_v15 = vperm.slane %v14305_v60, %v12378_v1  ;;  %v7733_v60 = vperm.slane %v14314_v23, %v12378_v1 }
0x1588   : > { %v7715_v35 = vsel %vm4990_vm7, %v7714_v58, %v4872_v18  ;;  %10917 = vrot.lane.b32.xlu0 %v10916_v19, %s11556_s28  ;;  %v5877_v58 = vsel %vm4990_vm7, %v14067_v29, %v5876_v43  ;;  %v5882_v29 = vrot.slane %v14058_v54, 4  ;;  %v4552_v17 = vperm.slane %v4430_v52, 0 }
0x1589   : > { %v7721_v9 = vperm.slane %v7715_v35, %v12287_v50  ;;  %v7762_v28 = vrot.slane %v7725_v47, 4  ;;  %v7765_v46 = vsel %vm4990_vm7, %v7725_v47, %v7764_v34  ;;  %10729 = vset.pattern.permute.xlu2 %v12214_v39  ;;  %3782 = vperm.xlu1 %10728, %v3777_v45   ;;  %v7788_v47 = vrot.slane %v14467_v56, 4 }
0x158a   : > { %v14481_v4 = vperm.slane %v7765_v46, %v12378_v1  ;;  %v14494_v46 = vpop.permute.xlu0 %4230  ;;  %v10941_v43 = vpack.i.bf16 %v5877_v58, %v5765_v3  ;;  %v7784_v3 = vrot.slane %v7745_v15, 4 }
0x158b   : > { %v7750_v19 = vrot.slane %v7721_v9, 4  ;;  %v7753_v18 = vsel %vm4990_vm7, %v7721_v9, %v7752_v10  ;;  %v7763_v20 = vsel %vm4990_vm7, %v7762_v28, %v7713_v31  ;;  %v3633_v38 = vpop.permute.xlu1 %3632  ;;  %v3659_v34 = vpop.permute.xlu2 %3658  ;;  %17506 = vst [vmem:[#allocation14_spill] sm:$0xff] %v14494_v46  ;;  %v7780_v9 = vrot.slane %v7737_v11, 4 }
0x158c   : > { %v7769_v35 = vperm.slane %v7763_v20, %v12378_v1  ;;  %v4882_v7 = vmul.f32 %v14483_v51, %v3659_v34  ;;  %v7761_v10 = vperm.slane %v7753_v18, %v12378_v1  ;;  %v14502_v31 = vsel %vm4990_vm7, %v14481_v4, %v7788_v47 }
0x158d   : > { %17507 = vst [vmem:[#allocation81_spill] sm:$0xff] %v14502_v31  ;;  %v4878_v28 = vmul.f32 %v3633_v38, %v14026_v25  ;;  %v3790_v34 = vperm.slane %v17471_v55, 5  ;;  %v7751_v23 = vsel %vm4990_vm7, %v7750_v19, %v7709_v49  ;;  %v7776_v47 = vrot.slane %v7733_v60, 4 }
0x158e   : > { %v7790_v20 = vrot.slane %v4882_v7, 4  ;;  %v7782_v21 = vrot.slane %v7769_v35, 4  ;;  %v14507_v46 = vsel %vm4990_vm7, %v7761_v10, %v7780_v9  ;;  %v7778_v54 = vrot.slane %v7761_v10, 4 }
0x158f   : > { %17508 = vst [vmem:[#allocation64_spill] sm:$0xff] %v14507_v46  ;;  %v7757_v38 = vperm.slane %v7751_v23, %v12378_v1  ;;  %v5770_v9 = vrot.slane %v17510_v12, 4  ;;  %v7792_v49 = vrot.slane %v4878_v28, 4 }
0x1590   : > { %v7791_v58 = vsel %vm4990_vm7, %v7790_v20, %v4878_v28  ;;  %10942 = vrot.lane.b32.xlu0 %v10941_v43, %s11555_s26  ;;  %v14513_v18 = vsel %vm4990_vm7, %v7782_v21, %v7745_v15  ;;  %v14518_v10 = vsel %vm4990_vm7, %v7778_v54, %v7737_v11  ;;  %v14524_v43 = vsel %vm4990_vm7, %v7769_v35, %v7784_v3  ;;  %v17515_v28 = vld [vmem:[#allocation138_spill] sm:$0xff] }
0x1591   : > { %17509 = vst [vmem:[#allocation82_spill] sm:$0xff] %v14513_v18  ;;  %3788 = vperm.xlu2 %10729, %v3777_v45   ;;  %3795 = vperm.xlu1 %10728, %v3790_v34   ;;  %v14521_v19 = vsel %vm4990_vm7, %v7757_v38, %v7776_v47  ;;  %v7774_v21 = vrot.slane %v7757_v38, 4  ;;  %v5883_v20 = vsel %vm4990_vm7, %v5882_v29, %v14042_v62  ;;  %v7804_v45 = vrot.slane %v14459_v5, 4 }
0x1592   : > { %17511 = vst [vmem:[#allocation63_spill] sm:$0xff] %v14518_v10  ;;  %v7797_v11 = vperm.slane %v7791_v58, %v12287_v50  ;;  %v5771_v54 = vsel %vm4990_vm7, %v5770_v9, %v17515_v28  ;;  %v7793_v23 = vsel %vm4990_vm7, %v4882_v7, %v7792_v49  ;;  %v14537_v47 = vpop.permute.xlu0 %4263  ;;  %v7666_v29 = vrot.slane %v14158_v26, 4  ;;  %v17517_v58 = vld [vmem:[#allocation128_spill] sm:$0xff] }
0x1593   : > { %17512 = vst [vmem:[#allocation11_spill] sm:$0xff] %v14521_v19  ;;  %v3672_v15 = vpop.permute.xlu2 %3671  ;;  %v14530_v12 = vsel %vm4990_vm7, %v7774_v21, %v7733_v60  ;;  %v10956_v38 = vpack.i.bf16 %v5883_v20, %v5771_v54  ;;  %v7554_v9 = vrot.slane %v17517_v58, 4  ;;  %v14548_v7 = vperm.slane %v7793_v23, %v12287_v50  ;;  %v17521_v58 = vld [vmem:[#allocation133_spill] sm:$0xff] }
0x1594   : > { %17513 = vst [vmem:[#allocation56_spill] sm:$0xff] %v14524_v43  ;;  %v4884_v52 = vmul.f32 %v4552_v17, %v3672_v15  ;;  %v7840_v49 = vrot.slane %v7797_v11, 4 }
0x1595   : > { %17514 = vst [vmem:[#allocation13_spill] sm:$0xff] %v14530_v12 }
0x1596   : > { %v7802_v35 = vrot.slane %v4884_v52, 4  ;;  %v7805_v3 = vsel %vm4990_vm7, %v4884_v52, %v7804_v45  ;;  %17516 = vst [vmem:[#allocation54_spill] sm:$0xff] %v14537_v47  ;;  %v7667_v52 = vsel %vm4990_vm7, %v7666_v29, %v14137_v8  ;;  %v17520_v8 = vperm.slane %v17471_v55, 6 }
0x1597   : > { %v14540_v62 = vperm.slane %v7805_v3, %v12287_v50 }
0x1598   : > { %v7803_v60 = vsel %vm4990_vm7, %v7802_v35, %v14459_v5  ;;  %10957 = vrot.lane.b32.xlu0 %v10956_v38, %s11549_s20  ;;  %v14573_v38 = vmul.f32 %v14382_v33, %v14026_v25 }
0x1599   : > { %v7809_v21 = vperm.slane %v7803_v60, %v12287_v50  ;;  %v7850_v15 = vrot.slane %v14540_v62, 4  ;;  %3801 = vperm.xlu2 %10729, %v3790_v34   ;;  %10731 = vset.pattern.permute.xlu1 %v12214_v39  ;;  %v17518_v34 = vld [vmem:[#allocation127_spill] sm:$0xff] }
0x159a   : > { %v7555_v23 = vsel %vm4990_vm7, %v7554_v9, %v17518_v34  ;;  %v14576_v60 = vpop.permute.xlu0 %4295  ;;  %v7560_v9 = vrot.slane %v17521_v58, 4  ;;  %v6000_v59 = vrot.slane %v14573_v38, 4 }
0x159b   : > { %v7838_v20 = vrot.slane %v7809_v21, 4  ;;  %v14554_v26 = vsel %vm4990_vm7, %v7809_v21, %v7840_v49  ;;  %v14558_v5 = vsel %vm4990_vm7, %v7850_v15, %v14548_v7  ;;  %v3653_v45 = vpop.permute.xlu1 %3652  ;;  %v10971_v3 = vpack.i.bf16 %v7667_v52, %v7555_v23  ;;  %17519 = vst [vmem:[#allocation98_spill] sm:$0xff] %v14576_v60  ;;  %v17522_v21 = vld [vmem:[#allocation129_spill] sm:$0xff] }
0x159c   : > { %v14563_v28 = vmul.f32 %v14483_v51, %v3653_v45  ;;  %v7672_v51 = vrot.slane %v14154_v14, 4  ;;  %v7561_v15 = vsel %vm4990_vm7, %v17522_v21, %v7560_v9  ;;  %v14596_v14 = vmul.f32 %v14418_v24, %v14446_v48 }
0x159d   : > { %v14566_v54 = vsel %vm4990_vm7, %v7838_v20, %v7797_v11  ;;  %v3816_v52 = vperm.slane %v17471_v55, 7 }
0x159e   : > { %v5998_v35 = vrot.slane %v14563_v28, 4  ;;  %v7673_v25 = vsel %vm4990_vm7, %v14142_v53, %v7672_v51  ;;  %v17524_v51 = vld [vmem:[#allocation29_spill] sm:$0xff] }
0x159f   : > { %v10986_v45 = vpack.i.bf16 %v7673_v25, %v7561_v15  ;;  %v17526_v25 = vld [vmem:[#allocation149_spill] sm:$0xff] }
0x15a0   : > { %10972 = vrot.lane.b32.xlu0 %v10971_v3, %s11551_s23  ;;  %v5999_v11 = vsel %vm4990_vm7, %v5998_v35, %v14573_v38  ;;  %v4433_v35 = vrot.slane %v17330_v57, 6  ;;  %v4431_v3 = vrot.slane %v17330_v57, 4  ;;  %v6001_v38 = vsel %vm4990_vm7, %v14563_v28, %v6000_v59 }
0x15a1   : > { %10732 = vset.pattern.permute.xlu2 %v12209_v36  ;;  %3814 = vperm.xlu1 %10731, %v17520_v8   ;;  %v14590_v49 = vperm.slane %v5999_v11, %v12287_v50  ;;  %v14662_v59 = vperm.slane %v6001_v38, %v12287_v50 }
0x15a2   : > { %v4555_v8 = vperm.slane %v4433_v35, 0  ;;  %v4553_v11 = vperm.slane %v4431_v3, 0  ;;  %v17528_v35 = vld [vmem:[#allocation141_spill] sm:$0xff]  ;;  %v7852_v3 = vrot.slane %v14548_v7, 4 }
0x15a3   : > { %v3666_v29 = vpop.permute.xlu1 %3665  ;;  %v14607_v23 = vpop.permute.xlu2 %3691 }
0x15a4   : > { %v14587_v33 = vmul.f32 %v4552_v17, %v3666_v29  ;;  %v6048_v17 = vrot.slane %v14590_v49, 4  ;;  %v4890_v21 = vmul.f32 %v4555_v8, %v17526_v25  ;;  %v14626_v12 = vmul.f32 %v4553_v11, %v17528_v35 }
0x15a6   : > { %v6010_v20 = vrot.slane %v14587_v33, 4  ;;  %v6024_v46 = vrot.slane %v14626_v12, 4 }
0x15a8   : > { %v6011_v53 = vsel %vm4990_vm7, %v6010_v20, %v14596_v14  ;;  %10987 = vrot.lane.b32.xlu0 %v10986_v45, %s11558_s17  ;;  %v4432_v20 = vrot.slane %v17330_v57, 5  ;;  %v17527_v45 = vld [vmem:[#allocation15_spill] sm:$0xff] }
0x15a9   : > { %v14605_v34 = vperm.slane %v6011_v53, %v12287_v50  ;;  %3821 = vperm.xlu2 %10732, %v3816_v52   ;;  %3827 = vperm.xlu1 %10731, %v3816_v52   ;;  %v3842_v52 = vperm.slane %v17527_v45, 1  ;;  %v4447_v10 = vrot.slane %v17527_v45, 6 }
0x15aa   : > { %v14609_v24 = vpop.permute.xlu0 %4328  ;;  %v4554_v60 = vperm.slane %v4432_v20, 0 }
0x15ab   : > { %17523 = vst [vmem:[#allocation108_spill] sm:$0xff] %v14609_v24  ;;  %v14613_v48 = vsel %vm4990_vm7, %v14605_v34, %v6048_v17  ;;  %v3705_v58 = vpop.permute.xlu2 %3704  ;;  %v4434_v17 = vrot.slane %v17330_v57, 7  ;;  %v7814_v24 = vrot.slane %v4890_v21, 4 }
0x15ad   : > { %v14636_v57 = vperm.slane %v4434_v17, 0  ;;  %v7857_v17 = vperm.slane %v14558_v5, %v12378_v1 }
0x15b1   : > { %10734 = vset.pattern.permute.xlu1 %v12209_v36  ;;  %3834 = vperm.xlu2 %10732, %v17524_v51  }
0x15b2   : > { %v14619_v29 = vpop.permute.xlu0 %10792 }
0x15b3   : > { %17525 = vst [vmem:[#allocation97_spill] sm:$0xff] %v14619_v29  ;;  %v3685_v9 = vpop.permute.xlu1 %3684 }
0x15b4   : > { %v4886_v15 = vmul.f32 %v4553_v11, %v3685_v9  ;;  %v7853_v9 = vsel %vm4990_vm7, %v14540_v62, %v7852_v3 }
0x15b5   : > { %v14642_v6 = vperm.slane %v7853_v9, %v12378_v1  ;;  %v3855_v9 = vperm.slane %v17527_v45, 2 }
0x15b6   : > { %v7816_v53 = vrot.slane %v4886_v15, 4  ;;  %v7815_v25 = vsel %vm4990_vm7, %v7814_v24, %v4886_v15 }
0x15b7   : > { %v7821_v62 = vperm.slane %v7815_v25, %v12287_v50  ;;  %v4889_v25 = vmul.f32 %v4555_v8, %v3705_v58  ;;  %v7896_v8 = vrot.slane %v7857_v17, 4 }
0x15b8   : > { %v7817_v29 = vsel %vm4990_vm7, %v4890_v21, %v7816_v53  ;;  %v7849_v53 = vperm.slane %v14554_v26, %v12378_v1  ;;  %v7845_v26 = vperm.slane %v14566_v54, %v12378_v1 }
0x15b9   : > { %3847 = vperm.xlu1 %10734, %v3842_v52   ;;  %10735 = vset.pattern.permute.xlu2 %v12214_v39  ;;  %v7825_v24 = vperm.slane %v7817_v29, %v12287_v50 }
0x15ba   : > { %v14634_v47 = vpop.permute.xlu0 %10807  ;;  %v7892_v58 = vrot.slane %v7849_v53, 4 }
0x15bb   : > { %17529 = vst [vmem:[#allocation102_spill] sm:$0xff] %v14634_v47  ;;  %v3698_v11 = vpop.permute.xlu1 %3697  ;;  %v3724_v35 = vpop.permute.xlu2 %3723  ;;  %v7864_v47 = vrot.slane %v7821_v62, 4  ;;  %v7876_v32 = vrot.slane %v7825_v24, 4 }
0x15bc   : > { %v4888_v7 = vmul.f32 %v4554_v60, %v3698_v11  ;;  %v4892_v20 = vmul.f32 %v14636_v57, %v3724_v35  ;;  %v6012_v11 = vrot.slane %v14596_v14, 4  ;;  %v7900_v14 = vrot.slane %v14642_v6, 4 }
0x15be   : > { %v7828_v21 = vrot.slane %v4888_v7, 4  ;;  %v7826_v15 = vrot.slane %v4892_v20, 4 }
0x15c0   : > { %v7827_v29 = vsel %vm4990_vm7, %v7826_v15, %v4888_v7  ;;  %v7829_v35 = vsel %vm4990_vm7, %v4892_v20, %v7828_v21  ;;  %v6013_v15 = vsel %vm4990_vm7, %v14587_v33, %v6012_v11 }
0x15c1   : > { %v7833_v5 = vperm.slane %v7827_v29, %v12287_v50  ;;  %v7837_v3 = vperm.slane %v7829_v35, %v12287_v50  ;;  %3860 = vperm.xlu1 %10734, %v3855_v9   ;;  %3853 = vperm.xlu2 %10735, %v3842_v52   ;;  %v7888_v29 = vrot.slane %v7845_v26, 4  ;;  %v4887_v35 = vmul.f32 %v4554_v60, %v14607_v23 }
0x15c2   : > { %v14664_v28 = vpop.permute.xlu0 %10822  ;;  %v6021_v11 = vperm.slane %v6013_v15, %v12287_v50 }
0x15c3   : > { %17530 = vst [vmem:[#allocation113_spill] sm:$0xff] %v14664_v28  ;;  %v7862_v7 = vrot.slane %v7833_v5, 4  ;;  %v7865_v54 = vsel %vm4990_vm7, %v7833_v5, %v7864_v47  ;;  %v7874_v20 = vrot.slane %v7837_v3, 4  ;;  %v7877_v21 = vsel %vm4990_vm7, %v7837_v3, %v7876_v32 }
0x15c4   : > { %v7873_v52 = vperm.slane %v7865_v54, %v12378_v1  ;;  %v14673_v38 = vperm.slane %v7877_v21, %v12378_v1  ;;  %v6022_v28 = vrot.slane %v4889_v25, 4  ;;  %v6025_v47 = vsel %vm4990_vm7, %v4889_v25, %v6024_v46  ;;  %v14714_v54 = vpop.permute.xlu2 %3736 }
0x15c5   : > { %v7875_v63 = vsel %vm4990_vm7, %v7874_v20, %v7825_v24  ;;  %v7863_v2 = vsel %vm4990_vm7, %v7862_v7, %v7821_v62  ;;  %v6046_v62 = vrot.slane %v14605_v34, 4  ;;  %v6033_v25 = vperm.slane %v6025_v47, %v12287_v50 }
0x15c6   : > { %v7881_v32 = vperm.slane %v7875_v63, %v12378_v1  ;;  %v7890_v3 = vrot.slane %v7873_v52, 4  ;;  %v14682_v33 = vsel %vm4990_vm7, %v14673_v38, %v7900_v14  ;;  %v7869_v60 = vperm.slane %v7863_v2, %v12378_v1 }
0x15c7   : > { %17531 = vst [vmem:[#allocation126_spill] sm:$0xff] %v14682_v33  ;;  %v14689_v23 = vsel %vm4990_vm7, %v7873_v52, %v7892_v58  ;;  %v6023_v34 = vsel %vm4990_vm7, %v6022_v28, %v14626_v12  ;;  %v6058_v28 = vrot.slane %v6021_v11, 4 }
0x15c8   : > { %17532 = vst [vmem:[#allocation109_spill] sm:$0xff] %v14689_v23  ;;  %v14693_v46 = vsel %vm4990_vm7, %v7890_v3, %v7849_v53  ;;  %v7894_v63 = vrot.slane %v7881_v32, 4  ;;  %v14696_v24 = vsel %vm4990_vm7, %v7881_v32, %v7896_v8  ;;  %v14703_v14 = vsel %vm4990_vm7, %v7869_v60, %v7888_v29 }
0x15c9   : > { %17533 = vst [vmem:[#allocation99_spill] sm:$0xff] %v14693_v46  ;;  %10737 = vset.pattern.permute.xlu1 %v12214_v39  ;;  %3866 = vperm.xlu2 %10735, %v3855_v9   ;;  %v7886_v58 = vrot.slane %v7869_v60, 4  ;;  %v6036_v29 = vrot.slane %v4887_v35, 4  ;;  %v6047_v32 = vsel %vm4990_vm7, %v6046_v62, %v14590_v49  ;;  %v6029_v3 = vperm.slane %v6023_v34, %v12287_v50  ;;  %v17538_v60 = vld [vmem:[#allocation88_spill] sm:$0xff] }
0x15ca   : > { %17534 = vst [vmem:[#allocation12_spill] sm:$0xff] %v14696_v24  ;;  %v10833_v53 = vpop.permute.xlu0 %10832  ;;  %v14708_v7 = vsel %vm4990_vm7, %v7894_v63, %v7857_v17  ;;  %v6060_v17 = vrot.slane %v14662_v59, 4  ;;  %v6084_v62 = vrot.slane %v6033_v25, 4  ;;  %v4461_v23 = vrot.slane %v17583_v37, 6 }
0x15cb   : > { %17535 = vst [vmem:[#allocation122_spill] sm:$0xff] %v14703_v14  ;;  %v10835_v20 = vunpack.i.h.bf16 %v10833_v53  ;;  %v10834_v21 = vunpack.i.l.bf16 %v10833_v53  ;;  %v3718_v15 = vpop.permute.xlu1 %3717  ;;  %v14719_v12 = vsel %vm4990_vm7, %v7886_v58, %v7845_v26  ;;  %v17540_v53 = vld [vmem:[#allocation70_spill] sm:$0xff]  ;;  %v17542_v26 = vrot.slane %v17471_v55, 1 }
0x15cc   : > { %17536 = vst [vmem:[#allocation118_spill] sm:$0xff] %v14708_v7  ;;  %v4891_v47 = vmul.f32 %v14636_v57, %v3718_v15  ;;  %v4436_v15 = vrot.slane %v17471_v55, 2  ;;  %v6061_v49 = vsel %vm4990_vm7, %v6021_v11, %v6060_v17  ;;  %v17543_v11 = vperm.slane %v17527_v45, 3  ;;  %v17544_v17 = vld [vmem:[#allocation150_spill] sm:$0xff] }
0x15cd   : > { %17537 = vst [vmem:[#allocation89_spill] sm:$0xff] %v14719_v12  ;;  %v14728_v63 = vsel %vm823_vm1, %v17538_v60, %v10835_v20  ;;  %v14732_v9 = vsel %vm823_vm1, %v17540_v53, %v10834_v21  ;;  %v14736_v58 = vperm.slane %v17542_v26, 0  ;;  %v6057_v20 = vperm.slane %v14613_v48, %v12378_v1 }
0x15ce   : > { %17539 = vst [vmem:[#allocation143_spill] sm:$0xff] %v14728_v63  ;;  %v6034_v8 = vrot.slane %v4891_v47, 4  ;;  %v6037_v57 = vsel %vm4990_vm7, %v4891_v47, %v6036_v29  ;;  %v6059_v21 = vsel %vm4990_vm7, %v6058_v28, %v14662_v59  ;;  %v6053_v53 = vperm.slane %v6047_v32, %v12378_v1 }
0x15cf   : > { %17541 = vst [vmem:[#allocation137_spill] sm:$0xff] %v14732_v9  ;;  %v6045_v34 = vperm.slane %v6037_v57, %v12287_v50  ;;  %v6072_v26 = vrot.slane %v6029_v3, 4  ;;  %v4895_v48 = vmul.f32 %v14736_v58, %v17544_v17  ;;  %v4437_v59 = vrot.slane %v17471_v55, 3 }
0x15d0   : > { %v6035_v60 = vsel %vm4990_vm7, %v6034_v8, %v4887_v35  ;;  %v14761_v28 = vperm.slane %v4436_v15, 0  ;;  %v14767_v17 = vperm.slane %v6061_v49, %v12378_v1  ;;  %v6100_v2 = vrot.slane %v6057_v20, 4 }
0x15d1   : > { %v6041_v29 = vperm.slane %v6035_v60, %v12287_v50  ;;  %v6082_v47 = vrot.slane %v6045_v34, 4  ;;  %v6085_v5 = vsel %vm4990_vm7, %v6045_v34, %v6084_v62  ;;  %3879 = vperm.xlu1 %10737, %v17543_v11   ;;  %10738 = vset.pattern.permute.xlu2 %v12209_v36  ;;  %v5984_v11 = vrot.slane %v14410_v0, 4 }
0x15d2   : > { %v14757_v35 = vperm.slane %v6085_v5, %v12378_v1  ;;  %v14759_v8 = vpop.permute.xlu0 %10847  ;;  %v6065_v5 = vperm.slane %v6059_v21, %v12378_v1  ;;  %v6096_v12 = vrot.slane %v6053_v53, 4 }
0x15d3   : > { %17545 = vst [vmem:[#allocation140_spill] sm:$0xff] %v14759_v8  ;;  %v6070_v32 = vrot.slane %v6041_v29, 4  ;;  %v6073_v57 = vsel %vm4990_vm7, %v6041_v29, %v6072_v26  ;;  %v6083_v62 = vsel %vm4990_vm7, %v6082_v47, %v6033_v25  ;;  %v3757_v34 = vpop.permute.xlu2 %3756  ;;  %v3731_v60 = vpop.permute.xlu1 %3730  ;;  %v3881_v47 = vperm.slane %v17527_v45, 4 }
0x15d4   : > { %v4893_v52 = vmul.f32 %v3731_v60, %v14283_v13  ;;  %v6081_v43 = vperm.slane %v6073_v57, %v12378_v1  ;;  %v6106_v26 = vrot.slane %v14757_v35, 4  ;;  %v6089_v25 = vperm.slane %v6083_v62, %v12378_v1 }
0x15d5   : > { %v6071_v15 = vsel %vm4990_vm7, %v6070_v32, %v6029_v3  ;;  %v4897_v29 = vmul.f32 %v14761_v28, %v3757_v34  ;;  %v5985_v57 = vsel %vm4990_vm7, %v14398_v41, %v5984_v11  ;;  %v4560_v34 = vperm.slane %v4437_v59, 0 }
0x15d6   : > { %v6112_v0 = vrot.slane %v4893_v52, 4  ;;  %v6077_v49 = vperm.slane %v6071_v15, %v12378_v1  ;;  %v14779_v60 = vsel %vm4990_vm7, %v6081_v43, %v6100_v2  ;;  %v14783_v3 = vsel %vm4990_vm7, %v6106_v26, %v14767_v17 }
0x15d7   : > { %17546 = vst [vmem:[#allocation139_spill] sm:$0xff] %v14779_v60  ;;  %v6098_v21 = vrot.slane %v6081_v43, 4  ;;  %v6104_v19 = vrot.slane %v6065_v5, 4  ;;  %v6102_v14 = vrot.slane %v6089_v25, 4  ;;  %v6124_v41 = vrot.slane %v4895_v48, 4  ;;  %v17561_v43 = vld [vmem:[#allocation107_spill] sm:$0xff] }
0x15d8   : > { %17547 = vst [vmem:[#allocation138_spill] sm:$0xff] %v14783_v3  ;;  %v6113_v32 = vsel %vm4990_vm7, %v4897_v29, %v6112_v0  ;;  %v6097_v62 = vsel %vm4990_vm7, %v6077_v49, %v6096_v12  ;;  %v6094_v24 = vrot.slane %v6077_v49, 4  ;;  %v6110_v12 = vrot.slane %v4897_v29, 4 }
0x15d9   : > { %3892 = vperm.xlu1 %10737, %v3881_v47   ;;  %3886 = vperm.xlu2 %10738, %v3881_v47   ;;  %v11001_v15 = vpack.i.bf16 %v6097_v62, %v5985_v57  ;;  %v14796_v0 = vsel %vm4990_vm7, %v6098_v21, %v6057_v20  ;;  %v14799_v59 = vperm.slane %v6113_v32, %v12287_v50  ;;  %v5990_v49 = vrot.slane %v14389_v40, 4 }
0x15da   : > { %v14789_v2 = vpop.permute.xlu0 %10862  ;;  %17549 = vst [vmem:[#allocation127_spill] sm:$0xff] %v14796_v0  ;;  %v14804_v57 = vsel %vm4990_vm7, %v6094_v24, %v6053_v53  ;;  %v14809_v20 = vsel %vm4990_vm7, %v6089_v25, %v6104_v19  ;;  %v6111_v24 = vsel %vm4990_vm7, %v6110_v12, %v4893_v52  ;;  %v6108_v12 = vrot.slane %v14767_v17, 4 }
0x15db   : > { %17548 = vst [vmem:[#allocation128_spill] sm:$0xff] %v14789_v2  ;;  %v3770_v11 = vpop.permute.xlu2 %3769  ;;  %11002 = vrot.lane.b32.xlu0 %v11001_v15, %s11556_s28  ;;  %v6103_v15 = vsel %vm4990_vm7, %v6102_v14, %v6065_v5  ;;  %v6172_v40 = vrot.slane %v14799_v59, 4  ;;  %v5991_v19 = vsel %vm4990_vm7, %v5990_v49, %v14370_v22  ;;  %v17551_v14 = vperm.slane %v17527_v45, 5 }
0x15dc   : > { %v4899_v47 = vmul.f32 %v4560_v34, %v3770_v11  ;;  %17550 = vst [vmem:[#allocation133_spill] sm:$0xff] %v14809_v20  ;;  %v11016_v5 = vpack.i.bf16 %v6103_v15, %v5991_v19  ;;  %v14836_v52 = vperm.slane %v6111_v24, %v12287_v50  ;;  %v3907_v15 = vperm.slane %v17527_v45, 6 }
0x15dd   : > { %v4441_v62 = vrot.slane %v17471_v55, 7  ;;  %v15123_v20 = vperm.slane %v17583_v37, 0 }
0x15de   : > { %v6122_v21 = vrot.slane %v4899_v47, 4  ;;  %v6125_v32 = vsel %vm4990_vm7, %v4899_v47, %v6124_v41 }
0x15df   : > { %v14817_v11 = vperm.slane %v6125_v32, %v12287_v50  ;;  %v6109_v32 = vsel %vm4990_vm7, %v14757_v35, %v6108_v12 }
0x15e0   : > { %v6123_v53 = vsel %vm4990_vm7, %v6122_v21, %v4895_v48  ;;  %v5996_v21 = vrot.slane %v14413_v61, 4 }
0x15e1   : > { %v14824_v25 = vperm.slane %v6123_v53, %v12287_v50  ;;  %v14828_v41 = vsel %vm4990_vm7, %v14817_v11, %v6172_v40  ;;  %10740 = vset.pattern.permute.xlu1 %v12209_v36  ;;  %3899 = vperm.xlu2 %10738, %v17551_v14   ;;  %v17553_v53 = vld [vmem:[#allocation151_spill] sm:$0xff]  ;;  %v7898_v14 = vrot.slane %v14673_v38, 4 }
0x15e2   : > { %v14833_v47 = vpop.permute.xlu0 %10877  ;;  %v5997_v40 = vsel %vm4990_vm7, %v14401_v44, %v5996_v21  ;;  %v14853_v17 = vmul.f32 %v4560_v34, %v17553_v53  ;;  %v7786_v44 = vrot.slane %v14481_v4, 4  ;;  %v14869_v34 = vmul.f32 %v14714_v54, %v14283_v13 }
0x15e3   : > { %17552 = vst [vmem:[#allocation129_spill] sm:$0xff] %v14833_v47  ;;  %v6158_v22 = vrot.slane %v14824_v25, 4  ;;  %v3750_v48 = vpop.permute.xlu1 %3749  ;;  %11017 = vrot.lane.b32.xlu0 %v11016_v5, %s11550_s22  ;;  %v11031_v24 = vpack.i.bf16 %v6109_v32, %v5997_v40  ;;  %v7899_v38 = vsel %vm4990_vm7, %v7898_v14, %v14642_v6  ;;  %v3920_v21 = vperm.slane %v17527_v45, 7 }
0x15e4   : > { %v14860_v35 = vmul.f32 %v14736_v58, %v3750_v48  ;;  %v7787_v4 = vsel %vm4990_vm7, %v7786_v44, %v14467_v56  ;;  %v4438_v53 = vrot.slane %v17471_v55, 4 }
0x15e5   : > { %v14843_v49 = vsel %vm4990_vm7, %v6158_v22, %v14836_v52  ;;  %v7914_v22 = vrot.slane %v14853_v17, 4  ;;  %v11056_v54 = vpack.i.bf16 %v7899_v38, %v7787_v4 }
0x15e7   : > { %v7915_v58 = vsel %vm4990_vm7, %v7914_v22, %v14860_v35 }
0x15e8   : > { %v14889_v32 = vperm.slane %v7915_v58, %v12287_v50  ;;  %v17556_v58 = vld [vmem:[#allocation152_spill] sm:$0xff] }
0x15e9   : > { %3912 = vperm.xlu1 %10740, %v3907_v15   ;;  %10741 = vset.pattern.permute.xlu2 %v12214_v39 }
0x15ea   : > { %v14855_v19 = vpop.permute.xlu0 %10887 }
0x15eb   : > { %17554 = vst [vmem:[#allocation29_spill] sm:$0xff] %v14855_v19  ;;  %v3763_v61 = vpop.permute.xlu1 %3762  ;;  %11032 = vrot.lane.b32.xlu0 %v11031_v24, %s11557_s0  ;;  %v14881_v48 = vpop.permute.xlu2 %3788  ;;  %v4440_v24 = vrot.slane %v17471_v55, 6 }
0x15ec   : > { %v14863_v5 = vmul.f32 %v14761_v28, %v3763_v61 }
0x15ed   : > { %v14899_v14 = vperm.slane %v4440_v24, 0  ;;  %v17559_v24 = vld [vmem:[#allocation95_spill] sm:$0xff] }
0x15ee   : > { %v7902_v12 = vrot.slane %v14863_v5, 4 }
0x15f0   : > { %v7903_v28 = vsel %vm4990_vm7, %v7902_v12, %v14869_v34 }
0x15f1   : > { %v14884_v13 = vperm.slane %v7903_v28, %v12287_v50  ;;  %3925 = vperm.xlu1 %10740, %v3920_v21   ;;  %3918 = vperm.xlu2 %10741, %v3907_v15   ;;  %v14902_v15 = vperm.slane %v4438_v53, 0  ;;  %v4905_v28 = vmul.f32 %v14899_v14, %v17556_v58  ;;  %v4439_v53 = vrot.slane %v17471_v55, 5 }
0x15f2   : > { %v14886_v6 = vpop.permute.xlu0 %10902 }
0x15f3   : > { %17555 = vst [vmem:[#allocation149_spill] sm:$0xff] %v14886_v6  ;;  %v7952_v40 = vrot.slane %v14884_v13, 4  ;;  %11057 = vrot.lane.b32.xlu0 %v11056_v54, %s11549_s20  ;;  %v14904_v44 = vpop.permute.xlu2 %3801  ;;  %v17557_v54 = vld [vmem:[#allocation123_spill] sm:$0xff]  ;;  %v14921_v58 = vperm.slane %v4439_v53, 0 }
0x15f5   : > { %v14896_v56 = vsel %vm4990_vm7, %v14889_v32, %v7952_v40 }
0x15f9   : > { %10743 = vset.pattern.permute.xlu1 %v12214_v39  ;;  %3931 = vperm.xlu2 %10741, %v3920_v21  }
0x15fa   : > { %v10918_v61 = vpop.permute.xlu0 %10917 }
0x15fb   : > { %v10920_v22 = vunpack.i.h.bf16 %v10918_v61  ;;  %v10919_v12 = vunpack.i.l.bf16 %v10918_v61  ;;  %v3783_v38 = vpop.permute.xlu1 %3782  ;;  %v6134_v61 = vrot.slane %v4905_v28, 4 }
0x15fc   : > { %v4901_v4 = vmul.f32 %v14902_v15, %v3783_v38 }
0x15fd   : > { %v14911_v40 = vsel %vm823_vm1, %v17557_v54, %v10920_v22  ;;  %v14915_v21 = vsel %vm823_vm1, %v17559_v24, %v10919_v12  ;;  %v14925_v54 = vperm.slane %v4441_v62, 0  ;;  %v6160_v12 = vrot.slane %v14836_v52, 4 }
0x15fe   : > { %17558 = vst [vmem:[#allocation15_spill] sm:$0xff] %v14911_v40  ;;  %v6136_v29 = vrot.slane %v4901_v4, 4  ;;  %v6135_v38 = vsel %vm4990_vm7, %v6134_v61, %v4901_v4  ;;  %v6170_v62 = vrot.slane %v14817_v11, 4  ;;  %v6181_v52 = vperm.slane %v14828_v41, %v12378_v1 }
0x15ff   : > { %17560 = vst [vmem:[#allocation141_spill] sm:$0xff] %v14915_v21  ;;  %v6161_v40 = vsel %vm4990_vm7, %v14824_v25, %v6160_v12  ;;  %v6141_v53 = vperm.slane %v6135_v38, %v12287_v50  ;;  %v6165_v11 = vperm.slane %v14843_v49, %v12378_v1 }
0x1600   : > { %v6137_v22 = vsel %vm4990_vm7, %v4905_v28, %v6136_v29  ;;  %v17562_v29 = vld [vmem:[#allocation16_spill] sm:$0xff]  ;;  %v14941_v19 = vperm.slane %v6161_v40, %v12378_v1 }
0x1601   : > { %10744 = vset.pattern.permute.xlu2 %v12209_v36  ;;  %3944 = vperm.xlu1 %10743, %v17561_v43   ;;  %v6145_v21 = vperm.slane %v6137_v22, %v12287_v50  ;;  %v3946_v28 = vperm.slane %v17562_v29, 1  ;;  %v6184_v25 = vrot.slane %v6141_v53, 4 }
0x1603   : > { %v3822_v24 = vpop.permute.xlu2 %3821  ;;  %v3796_v26 = vpop.permute.xlu1 %3795  ;;  %v6196_v38 = vrot.slane %v6145_v21, 4 }
0x1604   : > { %v4907_v6 = vmul.f32 %v14925_v54, %v3822_v24  ;;  %v4903_v55 = vmul.f32 %v14921_v58, %v3796_v26 }
0x1606   : > { %v6146_v4 = vrot.slane %v4907_v6, 4  ;;  %v6148_v61 = vrot.slane %v4903_v55, 4 }
0x1608   : > { %v6147_v24 = vsel %vm4990_vm7, %v6146_v4, %v4903_v55  ;;  %v6149_v26 = vsel %vm4990_vm7, %v4907_v6, %v6148_v61  ;;  %v6212_v61 = vrot.slane %v14941_v19, 4 }
0x1609   : > { %v6153_v22 = vperm.slane %v6147_v24, %v12287_v50  ;;  %v6157_v12 = vperm.slane %v6149_v26, %v12287_v50  ;;  %3951 = vperm.xlu2 %10744, %v3946_v28   ;;  %3957 = vperm.xlu1 %10743, %v3946_v28   ;;  %v6171_v24 = vsel %vm4990_vm7, %v6170_v62, %v14799_v59  ;;  %v6220_v26 = vrot.slane %v6181_v52, 4 }
0x160a   : > { %v14970_v59 = vperm.slane %v6171_v24, %v12378_v1  ;;  %v17566_v62 = vperm.slane %v17562_v29, 2 }
0x160b   : > { %v6182_v47 = vrot.slane %v6153_v22, 4  ;;  %v6185_v41 = vsel %vm4990_vm7, %v6153_v22, %v6184_v25  ;;  %v6194_v55 = vrot.slane %v6157_v12, 4  ;;  %v6197_v6 = vsel %vm4990_vm7, %v6157_v12, %v6196_v38 }
0x160c   : > { %v14950_v40 = vperm.slane %v6185_v41, %v12378_v1  ;;  %v6205_v4 = vperm.slane %v6197_v6, %v12378_v1  ;;  %v6208_v22 = vrot.slane %v6165_v11, 4 }
0x160d   : > { %v6183_v28 = vsel %vm4990_vm7, %v6182_v47, %v6141_v53  ;;  %v6195_v49 = vsel %vm4990_vm7, %v6194_v55, %v6145_v21  ;;  %v7916_v47 = vrot.slane %v14860_v35, 4 }
0x160e   : > { %v14959_v25 = vperm.slane %v6195_v49, %v12378_v1  ;;  %v6189_v38 = vperm.slane %v6183_v28, %v12378_v1  ;;  %v14964_v12 = vsel %vm4990_vm7, %v14950_v40, %v6212_v61  ;;  %v6218_v41 = vrot.slane %v6205_v4, 4 }
0x160f   : > { %17563 = vst [vmem:[#allocation88_spill] sm:$0xff] %v14964_v12  ;;  %v14967_v6 = vsel %vm4990_vm7, %v6205_v4, %v6220_v26  ;;  %v4902_v61 = vmul.f32 %v14902_v15, %v14881_v48  ;;  %v7904_v49 = vrot.slane %v14869_v34, 4  ;;  %v7917_v26 = vsel %vm4990_vm7, %v14853_v17, %v7916_v47 }
0x1610   : > { %17564 = vst [vmem:[#allocation70_spill] sm:$0xff] %v14967_v6  ;;  %v14974_v21 = vsel %vm4990_vm7, %v6189_v38, %v6208_v22  ;;  %v6214_v53 = vrot.slane %v14959_v25, 4  ;;  %v14981_v55 = vsel %vm4990_vm7, %v6218_v41, %v6181_v52  ;;  %v6206_v4 = vrot.slane %v6189_v38, 4 }
0x1611   : > { %17565 = vst [vmem:[#allocation150_spill] sm:$0xff] %v14974_v21  ;;  %3964 = vperm.xlu2 %10744, %v17566_v62   ;;  %10746 = vset.pattern.permute.xlu1 %v12209_v36  ;;  %v7928_v22 = vrot.slane %v4902_v61, 4  ;;  %v7905_v38 = vsel %vm4990_vm7, %v14863_v5, %v7904_v49  ;;  %v7925_v15 = vperm.slane %v7917_v26, %v12287_v50  ;;  %v3972_v41 = vperm.slane %v17562_v29, 3 }
0x1612   : > { %17567 = vst [vmem:[#allocation151_spill] sm:$0xff] %v14981_v55  ;;  %v14987_v35 = vsel %vm4990_vm7, %v6214_v53, %v14970_v59  ;;  %v14990_v28 = vsel %vm4990_vm7, %v6206_v4, %v6165_v11  ;;  %v4904_v11 = vmul.f32 %v14921_v58, %v14904_v44  ;;  %v7913_v34 = vperm.slane %v7905_v38, %v12287_v50  ;;  %v17622_v55 = vld [vmem:[#allocation20_spill] sm:$0xff] }
0x1613   : > { %17568 = vst [vmem:[#allocation152_spill] sm:$0xff] %v14987_v35  ;;  %v3815_v24 = vpop.permute.xlu1 %3814 }
0x1614   : > { %17569 = vst [vmem:[#allocation123_spill] sm:$0xff] %v14990_v28  ;;  %v4906_v52 = vmul.f32 %v14899_v14, %v3815_v24  ;;  %v7962_v14 = vrot.slane %v7925_v15, 4  ;;  %v7940_v62 = vrot.slane %v4904_v11, 4  ;;  %v7964_v58 = vrot.slane %v7913_v34, 4 }
0x1616   : > { %v7926_v48 = vrot.slane %v4906_v52, 4  ;;  %v7929_v53 = vsel %vm4990_vm7, %v4906_v52, %v7928_v22  ;;  %v7963_v24 = vsel %vm4990_vm7, %v7962_v14, %v7913_v34  ;;  %v3835_v52 = vpop.permute.xlu2 %3834 }
0x1617   : > { %v7937_v5 = vperm.slane %v7929_v53, %v12287_v50  ;;  %v4909_v31 = vmul.f32 %v3835_v52, %v17524_v51 }
0x1618   : > { %v7927_v17 = vsel %vm4990_vm7, %v7926_v48, %v4902_v61  ;;  %v3985_v61 = vperm.slane %v17562_v29, 4  ;;  %v15014_v48 = vperm.slane %v7963_v24, %v12378_v1 }
0x1619   : > { %10747 = vset.pattern.permute.xlu2 %v12214_v39  ;;  %3977 = vperm.xlu1 %10746, %v3972_v41   ;;  %v7933_v44 = vperm.slane %v7927_v17, %v12287_v50  ;;  %v7988_v22 = vrot.slane %v7937_v5, 4  ;;  %v7950_v17 = vrot.slane %v14889_v32, 4 }
0x161b   : > { %v3828_v47 = vpop.permute.xlu1 %3827 }
0x161c   : > { %v4908_v4 = vmul.f32 %v14925_v54, %v3828_v47  ;;  %v7976_v54 = vrot.slane %v7933_v44, 4 }
0x161e   : > { %v7938_v49 = vrot.slane %v4908_v4, 4  ;;  %v7941_v26 = vsel %vm4990_vm7, %v4908_v4, %v7940_v62  ;;  %v7965_v62 = vsel %vm4990_vm7, %v7925_v15, %v7964_v58 }
0x161f   : > { %v7949_v38 = vperm.slane %v7941_v26, %v12287_v50  ;;  %v15036_v58 = vperm.slane %v7965_v62, %v12378_v1 }
0x1620   : > { %v7939_v53 = vsel %vm4990_vm7, %v7938_v49, %v4904_v11  ;;  %v7961_v49 = vperm.slane %v14896_v56, %v12378_v1 }
0x1621   : > { %v7945_v14 = vperm.slane %v7939_v53, %v12287_v50  ;;  %v7986_v47 = vrot.slane %v7949_v38, 4  ;;  %v7989_v34 = vsel %vm4990_vm7, %v7949_v38, %v7988_v22  ;;  %3983 = vperm.xlu2 %10747, %v3972_v41   ;;  %3990 = vperm.xlu1 %10746, %v3985_v61   ;;  %v4444_v53 = vrot.slane %v17527_v45, 3 }
0x1622   : > { %v15022_v4 = vperm.slane %v7989_v34, %v12378_v1  ;;  %v7951_v41 = vsel %vm4990_vm7, %v7950_v17, %v14884_v13  ;;  %v3854_v13 = vpop.permute.xlu2 %3853 }
0x1623   : > { %v7974_v26 = vrot.slane %v7945_v14, 4  ;;  %v7977_v24 = vsel %vm4990_vm7, %v7945_v14, %v7976_v54  ;;  %v7987_v11 = vsel %vm4990_vm7, %v7986_v47, %v7937_v5  ;;  %v8008_v5 = vrot.slane %v15014_v48, 4  ;;  %v15044_v54 = vpop.permute.xlu0 %10942 }
0x1624   : > { %v7985_v32 = vperm.slane %v7977_v24, %v12378_v1  ;;  %v15033_v15 = vperm.slane %v7987_v11, %v12378_v1  ;;  %v8010_v38 = vrot.slane %v15022_v4, 4  ;;  %17570 = vst [vmem:[#allocation95_spill] sm:$0xff] %v15044_v54  ;;  %v4568_v17 = vperm.slane %v4444_v53, 0 }
0x1625   : > { %v7975_v22 = vsel %vm4990_vm7, %v7974_v26, %v7933_v44  ;;  %v8004_v44 = vrot.slane %v7961_v49, 4  ;;  %v15055_v62 = vperm.slane %v7951_v41, %v12378_v1  ;;  %v4442_v26 = vrot.slane %v17527_v45, 1  ;;  %v17576_v41 = vld [vmem:[#allocation154_spill] sm:$0xff] }
0x1626   : > { %v15042_v56 = vperm.slane %v7975_v22, %v12378_v1  ;;  %v8002_v14 = vrot.slane %v7985_v32, 4  ;;  %v15048_v47 = vsel %vm4990_vm7, %v15033_v15, %v8008_v5  ;;  %v15052_v34 = vsel %vm4990_vm7, %v8010_v38, %v15036_v58 }
0x1627   : > { %17571 = vst [vmem:[#allocation107_spill] sm:$0xff] %v15048_v47  ;;  %v15064_v22 = vsel %vm4990_vm7, %v7985_v32, %v8004_v44  ;;  %v4915_v38 = vmul.f32 %v4568_v17, %v17576_v41  ;;  %v4566_v28 = vperm.slane %v4442_v26, 0  ;;  %v4443_v54 = vrot.slane %v17527_v45, 2 }
0x1628   : > { %17572 = vst [vmem:[#allocation16_spill] sm:$0xff] %v15052_v34  ;;  %v7998_v24 = vrot.slane %v15042_v56, 4  ;;  %v15061_v11 = vsel %vm4990_vm7, %v8002_v14, %v7961_v49  ;;  %v17578_v32 = vperm.slane %v17562_v29, 5  ;;  %v6224_v26 = vrot.slane %v4909_v31, 4 }
0x1629   : > { %3996 = vperm.xlu2 %10747, %v3985_v61   ;;  %10749 = vset.pattern.permute.xlu1 %v12214_v39  ;;  %17573 = vst [vmem:[#allocation169_spill] sm:$0xff] %v15061_v11  ;;  %v6234_v61 = vrot.slane %v4915_v38, 4  ;;  %v4567_v14 = vperm.slane %v4443_v54, 0 }
0x162a   : > { %17574 = vst [vmem:[#allocation170_spill] sm:$0xff] %v15064_v22  ;;  %v15068_v5 = vsel %vm4990_vm7, %v7998_v24, %v15055_v62  ;;  %v3867_v49 = vpop.permute.xlu2 %3866 }
0x162b   : > { %17575 = vst [vmem:[#allocation171_spill] sm:$0xff] %v15068_v5  ;;  %v3848_v53 = vpop.permute.xlu1 %3847  ;;  %v15073_v33 = vpop.permute.xlu0 %10957 }
0x162c   : > { %v4911_v2 = vmul.f32 %v4566_v28, %v3848_v53  ;;  %17577 = vst [vmem:[#allocation154_spill] sm:$0xff] %v15073_v33 }
0x162e   : > { %v6235_v44 = vsel %vm4990_vm7, %v6234_v61, %v4911_v2  ;;  %v6236_v24 = vrot.slane %v4911_v2, 4 }
0x162f   : > { %v15080_v53 = vperm.slane %v6235_v44, %v12287_v50 }
0x1630   : > { %v6237_v52 = vsel %vm4990_vm7, %v4915_v38, %v6236_v24 }
0x1631   : > { %10750 = vset.pattern.permute.xlu2 %v12209_v36  ;;  %4009 = vperm.xlu1 %10749, %v17578_v32   ;;  %v4011_v32 = vperm.slane %v17562_v29, 6  ;;  %v15090_v2 = vperm.slane %v6237_v52, %v12287_v50  ;;  %v6270_v61 = vrot.slane %v15080_v53, 4 }
0x1633   : > { %v3861_v41 = vpop.permute.xlu1 %3860  ;;  %v15097_v24 = vpop.permute.xlu2 %3886 }
0x1634   : > { %v4913_v8 = vmul.f32 %v4567_v14, %v3861_v41 }
0x1636   : > { %v6222_v18 = vrot.slane %v4913_v8, 4  ;;  %v6225_v33 = vsel %vm4990_vm7, %v4913_v8, %v6224_v26  ;;  %v15099_v8 = vpop.permute.xlu0 %10972  ;;  %v17580_v26 = vld [vmem:[#allocation153_spill] sm:$0xff] }
0x1637   : > { %v15085_v7 = vperm.slane %v6225_v33, %v12287_v50  ;;  %v4914_v33 = vmul.f32 %v4567_v14, %v3867_v49  ;;  %17579 = vst [vmem:[#allocation172_spill] sm:$0xff] %v15099_v8  ;;  %v4910_v52 = vmul.f32 %v17580_v26, %v17524_v51  ;;  %v4912_v51 = vmul.f32 %v4566_v28, %v3854_v13 }
0x1638   : > { %v6223_v54 = vsel %vm4990_vm7, %v6222_v18, %v4909_v31  ;;  %v4445_v26 = vrot.slane %v17527_v45, 4  ;;  %v4571_v13 = vperm.slane %v4447_v10, 0 }
0x1639   : > { %v15094_v44 = vperm.slane %v6223_v54, %v12287_v50  ;;  %v6284_v38 = vrot.slane %v15085_v7, 4  ;;  %4016 = vperm.xlu2 %10750, %v4011_v32   ;;  %4022 = vperm.xlu1 %10749, %v4011_v32   ;;  %v8014_v41 = vrot.slane %v4914_v33, 4  ;;  %v17581_v54 = vperm.slane %v17562_v29, 7 }
0x163a   : > { %v4569_v28 = vperm.slane %v4445_v26, 0  ;;  %v4050_v26 = vperm.slane %v17583_v37, 1 }
0x163b   : > { %v15103_v31 = vsel %vm4990_vm7, %v6270_v61, %v15094_v44  ;;  %v15107_v18 = vsel %vm4990_vm7, %v15090_v2, %v6284_v38  ;;  %v8015_v49 = vsel %vm4990_vm7, %v8014_v41, %v4910_v52  ;;  %v15115_v14 = vpop.permute.xlu2 %3899  ;;  %v4446_v41 = vrot.slane %v17527_v45, 5 }
0x163c   : > { %v15120_v38 = vperm.slane %v8015_v49, %v12287_v50  ;;  %v8028_v49 = vrot.slane %v4912_v51, 4 }
0x163d   : > { %v4570_v63 = vperm.slane %v4446_v41, 0 }
0x163e   : > { %v15117_v8 = vpop.permute.xlu0 %10987 }
0x163f   : > { %17582 = vst [vmem:[#allocation153_spill] sm:$0xff] %v15117_v8 }
0x1641   : > { %4029 = vperm.xlu2 %10750, %v17581_v54   ;;  %10752 = vset.pattern.permute.xlu1 %v12209_v36 }
0x1643   : > { %v3880_v32 = vpop.permute.xlu1 %3879 }
0x1644   : > { %v4916_v61 = vmul.f32 %v4568_v17, %v3880_v32  ;;  %v8064_v17 = vrot.slane %v15120_v38, 4 }
0x1646   : > { %v8026_v54 = vrot.slane %v4916_v61, 4 }
0x1648   : > { %v8027_v46 = vsel %vm4990_vm7, %v8026_v54, %v4912_v51  ;;  %v8029_v54 = vsel %vm4990_vm7, %v4916_v61, %v8028_v49  ;;  %v8016_v51 = vrot.slane %v4910_v52, 4 }
0x1649   : > { %v15131_v32 = vperm.slane %v8027_v46, %v12287_v50  ;;  %10753 = vset.pattern.permute.xlu2 %v12214_v39  ;;  %4042 = vperm.xlu1 %10752, %v15123_v20   ;;  %v4448_v46 = vrot.slane %v17527_v45, 7  ;;  %v8037_v10 = vperm.slane %v8029_v54, %v12287_v50 }
0x164b   : > { %v8065_v8 = vsel %vm4990_vm7, %v15131_v32, %v8064_v17  ;;  %v3893_v16 = vpop.permute.xlu1 %3892  ;;  %v3919_v0 = vpop.permute.xlu2 %3918  ;;  %v4920_v17 = vmul.f32 %v4570_v63, %v14084_v27  ;;  %v4572_v61 = vperm.slane %v4448_v46, 0  ;;  %v8074_v49 = vrot.slane %v8037_v10, 4 }
0x164c   : > { %v4918_v9 = vmul.f32 %v4569_v28, %v3893_v16  ;;  %v4922_v30 = vmul.f32 %v4571_v13, %v3919_v0  ;;  %v17585_v0 = vld [vmem:[#allocation67_spill] sm:$0xff] }
0x164d   : > { %v11003_v3 = vpop.permute.xlu0 %11002 }
0x164e   : > { %v8040_v42 = vrot.slane %v4918_v9, 4  ;;  %v8038_v60 = vrot.slane %v4922_v30, 4  ;;  %v11005_v22 = vunpack.i.h.bf16 %v11003_v3  ;;  %v11004_v5 = vunpack.i.l.bf16 %v11003_v3 }
0x164f   : > { %v8017_v3 = vsel %vm4990_vm7, %v4914_v33, %v8016_v51 }
0x1650   : > { %v8041_v41 = vsel %vm4990_vm7, %v4922_v30, %v8040_v42  ;;  %v15145_v16 = vsel %vm823_vm1, %v14804_v57, %v11005_v22  ;;  %v15149_v45 = vsel %vm823_vm1, %v17585_v0, %v11004_v5  ;;  %v8039_v52 = vsel %vm4990_vm7, %v8038_v60, %v4918_v9 }
0x1651   : > { %17584 = vst [vmem:[#allocation17_spill] sm:$0xff] %v15145_v16  ;;  %4048 = vperm.xlu2 %10753, %v15123_v20   ;;  %4055 = vperm.xlu1 %10752, %v4050_v26   ;;  %v8049_v27 = vperm.slane %v8041_v41, %v12287_v50  ;;  %v8052_v30 = vrot.slane %v4920_v17, 4  ;;  %v8025_v57 = vperm.slane %v8017_v3, %v12287_v50 }
0x1652   : > { %17586 = vst [vmem:[#allocation67_spill] sm:$0xff] %v15149_v45  ;;  %v8045_v22 = vperm.slane %v8039_v52, %v12287_v50  ;;  %v4917_v9 = vmul.f32 %v4569_v28, %v15097_v24  ;;  %v8073_v60 = vperm.slane %v8065_v8, %v12378_v1 }
0x1653   : > { %v3932_v42 = vpop.permute.xlu2 %3931  ;;  %v8075_v16 = vsel %vm4990_vm7, %v8074_v49, %v8025_v57  ;;  %v8100_v45 = vrot.slane %v8049_v27, 4  ;;  %v8062_v49 = vrot.slane %v15131_v32, 4 }
0x1654   : > { %v4924_v54 = vmul.f32 %v4572_v61, %v3932_v42  ;;  %v8088_v51 = vrot.slane %v8045_v22, 4  ;;  %v15168_v42 = vperm.slane %v8075_v16, %v12378_v1  ;;  %v6248_v32 = vrot.slane %v4917_v9, 4 }
0x1656   : > { %v8050_v5 = vrot.slane %v4924_v54, 4  ;;  %v8053_v0 = vsel %vm4990_vm7, %v4924_v54, %v8052_v30  ;;  %v8076_v54 = vrot.slane %v8025_v57, 4  ;;  %v8063_v57 = vsel %vm4990_vm7, %v8062_v49, %v15120_v38 }
0x1657   : > { %v8061_v33 = vperm.slane %v8053_v0, %v12287_v50  ;;  %v8116_v0 = vrot.slane %v8073_v60, 4  ;;  %v6272_v38 = vrot.slane %v15094_v44, 4  ;;  %v17589_v49 = vperm.slane %v17583_v37, 2 }
0x1658   : > { %v8051_v46 = vsel %vm4990_vm7, %v8050_v5, %v4920_v17 }
0x1659   : > { %v8057_v41 = vperm.slane %v8051_v46, %v12287_v50  ;;  %v8098_v3 = vrot.slane %v8061_v33, 4  ;;  %v8101_v52 = vsel %vm4990_vm7, %v8061_v33, %v8100_v45  ;;  %4061 = vperm.xlu2 %10753, %v4050_v26   ;;  %10755 = vset.pattern.permute.xlu1 %v12214_v39  ;;  %v4919_v33 = vmul.f32 %v4570_v63, %v15115_v14 }
0x165a   : > { %v15173_v28 = vperm.slane %v8101_v52, %v12378_v1  ;;  %v8077_v46 = vsel %vm4990_vm7, %v8037_v10, %v8076_v54 }
0x165b   : > { %v8086_v30 = vrot.slane %v8057_v41, 4  ;;  %v8089_v24 = vsel %vm4990_vm7, %v8057_v41, %v8088_v51  ;;  %v8099_v8 = vsel %vm4990_vm7, %v8098_v3, %v8049_v27  ;;  %v3913_v17 = vpop.permute.xlu1 %3912  ;;  %v8120_v51 = vrot.slane %v15168_v42, 4 }
0x165c   : > { %v15176_v45 = vperm.slane %v8099_v8, %v12378_v1  ;;  %v4921_v26 = vmul.f32 %v4571_v13, %v3913_v17  ;;  %v8097_v5 = vperm.slane %v8089_v24, %v12378_v1  ;;  %v8122_v3 = vrot.slane %v15173_v28, 4 }
0x165d   : > { %v8087_v16 = vsel %vm4990_vm7, %v8086_v30, %v8045_v22  ;;  %v15201_v52 = vperm.slane %v8077_v46, %v12378_v1  ;;  %v15208_v24 = vperm.slane %v8063_v57, %v12378_v1 }
0x165e   : > { %v6246_v27 = vrot.slane %v4921_v26, 4  ;;  %v15186_v41 = vperm.slane %v8087_v16, %v12378_v1  ;;  %v15189_v13 = vsel %vm4990_vm7, %v8097_v5, %v8116_v0  ;;  %v6249_v22 = vsel %vm4990_vm7, %v4921_v26, %v6248_v32 }
0x165f   : > { %17587 = vst [vmem:[#allocation173_spill] sm:$0xff] %v15189_v13  ;;  %v8114_v14 = vrot.slane %v8097_v5, 4  ;;  %v15197_v10 = vsel %vm4990_vm7, %v15176_v45, %v8120_v51  ;;  %v6257_v44 = vperm.slane %v6249_v22, %v12287_v50  ;;  %v6260_v32 = vrot.slane %v4919_v33, 4 }
0x1660   : > { %17588 = vst [vmem:[#allocation174_spill] sm:$0xff] %v15197_v10  ;;  %v6247_v30 = vsel %vm4990_vm7, %v6246_v27, %v4917_v9  ;;  %v8110_v8 = vrot.slane %v15186_v41, 4  ;;  %v15221_v9 = vsel %vm4990_vm7, %v8122_v3, %v15201_v52  ;;  %v6273_v27 = vsel %vm4990_vm7, %v15080_v53, %v6272_v38 }
0x1661   : > { %10756 = vset.pattern.permute.xlu2 %v12209_v36  ;;  %4074 = vperm.xlu1 %10755, %v17589_v49   ;;  %v15212_v17 = vsel %vm4990_vm7, %v8114_v14, %v8073_v60  ;;  %17591 = vst [vmem:[#allocation176_spill] sm:$0xff] %v15221_v9  ;;  %v6253_v46 = vperm.slane %v6247_v30, %v12287_v50  ;;  %v6308_v22 = vrot.slane %v6257_v44, 4  ;;  %v4102_v26 = vperm.slane %v17583_v37, 5 }
0x1662   : > { %17590 = vst [vmem:[#allocation175_spill] sm:$0xff] %v15212_v17  ;;  %v15225_v0 = vsel %vm4990_vm7, %v8110_v8, %v15208_v24  ;;  %v6293_v14 = vperm.slane %v15107_v18, %v12378_v1  ;;  %v6281_v8 = vperm.slane %v6273_v27, %v12378_v1 }
0x1663   : > { %v3926_v54 = vpop.permute.xlu1 %3925  ;;  %v15241_v38 = vpop.permute.xlu2 %3951 }
0x1664   : > { %v4923_v16 = vmul.f32 %v4572_v61, %v3926_v54  ;;  %v4076_v61 = vperm.slane %v17583_v37, 3  ;;  %v6296_v54 = vrot.slane %v6253_v46, 4 }
0x1666   : > { %v6258_v51 = vrot.slane %v4923_v16, 4  ;;  %v6261_v57 = vsel %vm4990_vm7, %v4923_v16, %v6260_v32  ;;  %v6282_v32 = vrot.slane %v15090_v2, 4  ;;  %v6277_v16 = vperm.slane %v15103_v31, %v12378_v1 }
0x1667   : > { %v6269_v3 = vperm.slane %v6261_v57, %v12287_v50  ;;  %v6324_v31 = vrot.slane %v6281_v8, 4 }
0x1668   : > { %v6259_v49 = vsel %vm4990_vm7, %v6258_v51, %v4919_v33  ;;  %v6210_v33 = vrot.slane %v14950_v40, 4  ;;  %v6283_v2 = vsel %vm4990_vm7, %v6282_v32, %v15085_v7 }
0x1669   : > { %v6265_v30 = vperm.slane %v6259_v49, %v12287_v50  ;;  %v6306_v60 = vrot.slane %v6269_v3, 4  ;;  %v6309_v53 = vsel %vm4990_vm7, %v6269_v3, %v6308_v22  ;;  %4081 = vperm.xlu2 %10756, %v4076_v61   ;;  %4087 = vperm.xlu1 %10755, %v4076_v61   ;;  %v6332_v49 = vrot.slane %v6293_v14, 4 }
0x166a   : > { %v6317_v18 = vperm.slane %v6309_v53, %v12378_v1 }
0x166b   : > { %v6294_v27 = vrot.slane %v6265_v30, 4  ;;  %v6297_v51 = vsel %vm4990_vm7, %v6265_v30, %v6296_v54  ;;  %v6307_v57 = vsel %vm4990_vm7, %v6306_v60, %v6257_v44  ;;  %v6211_v54 = vsel %vm4990_vm7, %v6210_v33, %v14941_v19 }
0x166c   : > { %v6305_v22 = vperm.slane %v6297_v51, %v12378_v1  ;;  %v6313_v3 = vperm.slane %v6307_v57, %v12378_v1  ;;  %v15256_v53 = vsel %vm4990_vm7, %v6317_v18, %v6332_v49  ;;  %v6330_v5 = vrot.slane %v6317_v18, 4 }
0x166d   : > { %v6295_v61 = vsel %vm4990_vm7, %v6294_v27, %v6253_v46  ;;  %17592 = vst [vmem:[#allocation177_spill] sm:$0xff] %v15256_v53  ;;  %v6320_v60 = vrot.slane %v6277_v16, 4  ;;  %v6289_v51 = vperm.slane %v6283_v2, %v12378_v1  ;;  %v4450_v27 = vrot.slane %v17562_v29, 2  ;;  %v3965_v2 = vpop.permute.xlu2 %3964 }
0x166e   : > { %v6322_v40 = vrot.slane %v6305_v22, 4  ;;  %v6301_v44 = vperm.slane %v6295_v61, %v12378_v1  ;;  %v15262_v30 = vsel %vm4990_vm7, %v6305_v22, %v6324_v31  ;;  %v6326_v32 = vrot.slane %v6313_v3, 4 }
0x166f   : > { %17593 = vst [vmem:[#allocation178_spill] sm:$0xff] %v15262_v30  ;;  %v17594_v18 = vperm.slane %v17583_v37, 4  ;;  %v15281_v49 = vsel %vm4990_vm7, %v6330_v5, %v6293_v14  ;;  %v4449_v5 = vrot.slane %v17562_v29, 1  ;;  %v4451_v14 = vrot.slane %v17562_v29, 3 }
0x1670   : > { %v6323_v7 = vsel %vm4990_vm7, %v6322_v40, %v6281_v8  ;;  %v15273_v33 = vsel %vm4990_vm7, %v6301_v44, %v6320_v60  ;;  %v15278_v8 = vsel %vm4990_vm7, %v6326_v32, %v6289_v51  ;;  %17597 = vst [vmem:[#allocation181_spill] sm:$0xff] %v15281_v49  ;;  %v6328_v60 = vrot.slane %v6289_v51, 4  ;;  %v17599_v51 = vld [vmem:[#allocation168_spill] sm:$0xff] }
0x1671   : > { %4094 = vperm.xlu2 %10756, %v17594_v18   ;;  %10758 = vset.pattern.permute.xlu1 %v12209_v36  ;;  %v11071_v19 = vpack.i.bf16 %v6323_v7, %v6211_v54  ;;  %17595 = vst [vmem:[#allocation179_spill] sm:$0xff] %v15273_v33  ;;  %v6318_v54 = vrot.slane %v6301_v44, 4  ;;  %v4575_v7 = vperm.slane %v4450_v27, 0  ;;  %v6216_v18 = vrot.slane %v14970_v59, 4 }
0x1672   : > { %17596 = vst [vmem:[#allocation180_spill] sm:$0xff] %v15278_v8  ;;  %v4576_v22 = vperm.slane %v4451_v14, 0  ;;  %v8000_v46 = vrot.slane %v15055_v62, 4 }
0x1673   : > { %v3945_v61 = vpop.permute.xlu1 %3944  ;;  %11072 = vrot.lane.b32.xlu0 %v11071_v19, %s11551_s23  ;;  %v15291_v32 = vsel %vm4990_vm7, %v6318_v54, %v6277_v16  ;;  %v6329_v19 = vsel %vm4990_vm7, %v6313_v3, %v6328_v60  ;;  %v6217_v44 = vsel %vm4990_vm7, %v14959_v25, %v6216_v18  ;;  %v4930_v27 = vmul.f32 %v4575_v7, %v17599_v51 }
0x1674   : > { %17598 = vst [vmem:[#allocation182_spill] sm:$0xff] %v15291_v32  ;;  %v4926_v63 = vmul.f32 %v3945_v61, %v17561_v43  ;;  %v11086_v16 = vpack.i.bf16 %v6329_v19, %v6217_v44  ;;  %v4574_v54 = vperm.slane %v4449_v5, 0  ;;  %v8112_v61 = vrot.slane %v15208_v24, 4 }
0x1675   : > { %v8126_v25 = vrot.slane %v4930_v27, 4  ;;  %v4115_v5 = vperm.slane %v17583_v37, 6  ;;  %v8001_v14 = vsel %vm4990_vm7, %v15042_v56, %v8000_v46  ;;  %v8118_v51 = vrot.slane %v15176_v45, 4 }
0x1676   : > { %v8128_v59 = vrot.slane %v4926_v63, 4  ;;  %v8113_v19 = vsel %vm4990_vm7, %v15186_v41, %v8112_v61  ;;  %v4927_v61 = vmul.f32 %v4574_v54, %v15241_v38  ;;  %v4452_v38 = vrot.slane %v17562_v29, 4 }
0x1677   : > { %v8127_v44 = vsel %vm4990_vm7, %v8126_v25, %v4926_v63  ;;  %v11101_v41 = vpack.i.bf16 %v8113_v19, %v8001_v14  ;;  %v4929_v25 = vmul.f32 %v4575_v7, %v3965_v2  ;;  %v4454_v2 = vrot.slane %v17562_v29, 6 }
0x1678   : > { %v15323_v56 = vperm.slane %v8127_v44, %v12287_v50 }
0x1679   : > { %10759 = vset.pattern.permute.xlu2 %v12214_v39  ;;  %4107 = vperm.xlu1 %10758, %v4102_v26  }
0x167b   : > { %v3984_v40 = vpop.permute.xlu2 %3983  ;;  %v3958_v31 = vpop.permute.xlu1 %3957  ;;  %11087 = vrot.lane.b32.xlu0 %v11086_v16, %s11558_s17 }
0x167c   : > { %v4932_v3 = vmul.f32 %v4576_v22, %v3984_v40  ;;  %v4928_v60 = vmul.f32 %v4574_v54, %v3958_v31  ;;  %v8129_v40 = vsel %vm4990_vm7, %v4930_v27, %v8128_v59  ;;  %v8006_v27 = vrot.slane %v15033_v15, 4 }
0x167d   : > { %v15326_v63 = vperm.slane %v8129_v40, %v12287_v50  ;;  %v8119_v59 = vsel %vm4990_vm7, %v8118_v51, %v15168_v42  ;;  %v6348_v42 = vrot.slane %v4927_v61, 4  ;;  %v6334_v40 = vrot.slane %v4929_v25, 4 }
0x167e   : > { %v8138_v18 = vrot.slane %v4932_v3, 4  ;;  %v8140_v57 = vrot.slane %v4928_v60, 4  ;;  %v8007_v15 = vsel %vm4990_vm7, %v8006_v27, %v15014_v48  ;;  %v8012_v48 = vrot.slane %v15036_v58, 4 }
0x1680   : > { %v8139_v31 = vsel %vm4990_vm7, %v8138_v18, %v4928_v60  ;;  %v8141_v24 = vsel %vm4990_vm7, %v4932_v3, %v8140_v57  ;;  %v17600_v3 = vld [vmem:[#allocation161_spill] sm:$0xff]  ;;  %v11116_v18 = vpack.i.bf16 %v8119_v59, %v8007_v15 }
0x1681   : > { %v15316_v62 = vperm.slane %v8139_v31, %v12287_v50  ;;  %v15319_v16 = vperm.slane %v8141_v24, %v12287_v50  ;;  %4113 = vperm.xlu2 %10759, %v4102_v26   ;;  %4120 = vperm.xlu1 %10758, %v4115_v5   ;;  %v4925_v60 = vmul.f32 %v17600_v3, %v17561_v43  ;;  %v8124_v43 = vrot.slane %v15201_v52, 4 }
0x1682   : > { %v15370_v3 = vperm.slane %v4452_v38, 0 }
0x1683   : > { %v8174_v46 = vrot.slane %v15316_v62, 4  ;;  %v8186_v57 = vrot.slane %v15319_v16, 4  ;;  %11102 = vrot.lane.b32.xlu0 %v11101_v41, %s11556_s28  ;;  %v6336_v19 = vrot.slane %v4925_v60, 4  ;;  %v15348_v14 = vpop.permute.xlu2 %3996  ;;  %v8125_v24 = vsel %vm4990_vm7, %v15173_v28, %v8124_v43 }
0x1684   : > { %v6335_v52 = vsel %vm4990_vm7, %v6334_v40, %v4925_v60  ;;  %v17601_v28 = vperm.slane %v17583_v37, 7 }
0x1685   : > { %v15334_v26 = vsel %vm4990_vm7, %v8174_v46, %v15323_v56  ;;  %v15338_v45 = vsel %vm4990_vm7, %v8186_v57, %v15326_v63  ;;  %v6337_v7 = vsel %vm4990_vm7, %v4929_v25, %v6336_v19  ;;  %v8013_v46 = vsel %vm4990_vm7, %v15022_v4, %v8012_v48 }
0x1686   : > { %v6345_v58 = vperm.slane %v6337_v7, %v12287_v50  ;;  %v11131_v59 = vpack.i.bf16 %v8125_v24, %v8013_v46  ;;  %v15372_v25 = vperm.slane %v4454_v2, 0  ;;  %v6341_v60 = vperm.slane %v6335_v52, %v12287_v50  ;;  %v17602_v2 = vld [vmem:[#allocation18_spill] sm:$0xff]  ;;  %v17603_v7 = vld [vmem:[#allocation41_spill] sm:$0xff] }
0x1687   : > { %v15382_v48 = vperm.slane %v17602_v2, 0  ;;  %v4206_v9 = vperm.slane %v17602_v2, 5 }
0x1688   : > { %v6396_v24 = vrot.slane %v6345_v58, 4 }
0x1689   : > { %4126 = vperm.xlu2 %10759, %v4115_v5   ;;  %10761 = vset.pattern.permute.xlu1 %v12214_v39 }
0x168b   : > { %v3978_v44 = vpop.permute.xlu1 %3977  ;;  %11117 = vrot.lane.b32.xlu0 %v11116_v18, %s11550_s22 }
0x168c   : > { %v4931_v31 = vmul.f32 %v4576_v22, %v3978_v44  ;;  %v4453_v22 = vrot.slane %v17562_v29, 5 }
0x168e   : > { %v6346_v54 = vrot.slane %v4931_v31, 4  ;;  %v6349_v5 = vsel %vm4990_vm7, %v4931_v31, %v6348_v42  ;;  %v4578_v19 = vperm.slane %v4453_v22, 0  ;;  %v4455_v31 = vrot.slane %v17562_v29, 7 }
0x168f   : > { %v6357_v41 = vperm.slane %v6349_v5, %v12287_v50 }
0x1690   : > { %v6347_v51 = vsel %vm4990_vm7, %v6346_v54, %v4927_v61  ;;  %v4935_v54 = vmul.f32 %v4578_v19, %v17603_v7  ;;  %v4580_v22 = vperm.slane %v4455_v31, 0  ;;  %v6384_v31 = vrot.slane %v6341_v60, 4 }
0x1691   : > { %v6353_v57 = vperm.slane %v6347_v51, %v12287_v50  ;;  %v6394_v27 = vrot.slane %v6357_v41, 4  ;;  %10762 = vset.pattern.permute.xlu2 %v12209_v36  ;;  %4139 = vperm.xlu1 %10761, %v17601_v28   ;;  %v6397_v51 = vsel %vm4990_vm7, %v6357_v41, %v6396_v24  ;;  %v17604_v24 = vperm.slane %v17602_v2, 1 }
0x1693   : > { %v6382_v61 = vrot.slane %v6353_v57, 4  ;;  %v6395_v4 = vsel %vm4990_vm7, %v6394_v27, %v6345_v58  ;;  %v4017_v15 = vpop.permute.xlu2 %4016  ;;  %v3991_v18 = vpop.permute.xlu1 %3990  ;;  %11132 = vrot.lane.b32.xlu0 %v11131_v59, %s11557_s0  ;;  %v6372_v27 = vrot.slane %v4935_v54, 4 }
0x1694   : > { %v4937_v44 = vmul.f32 %v15372_v25, %v4017_v15  ;;  %v4933_v42 = vmul.f32 %v15370_v3, %v3991_v18 }
0x1695   : > { %v6383_v40 = vsel %vm4990_vm7, %v6382_v61, %v6341_v60  ;;  %v15393_v61 = vperm.slane %v6397_v51, %v12378_v1 }
0x1696   : > { %v6358_v43 = vrot.slane %v4937_v44, 4  ;;  %v6360_v38 = vrot.slane %v4933_v42, 4 }
0x1697   : > { %v6444_v60 = vrot.slane %v15393_v61, 4 }
0x1698   : > { %v6361_v5 = vsel %vm4990_vm7, %v4937_v44, %v6360_v38  ;;  %v6359_v52 = vsel %vm4990_vm7, %v6358_v43, %v4933_v42  ;;  %v6401_v42 = vperm.slane %v6395_v4, %v12378_v1 }
0x1699   : > { %4152 = vperm.xlu1 %10761, %v15382_v48   ;;  %4146 = vperm.xlu2 %10762, %v15382_v48   ;;  %v6369_v29 = vperm.slane %v6361_v5, %v12287_v50  ;;  %v6365_v59 = vperm.slane %v6359_v52, %v12287_v50  ;;  %v6385_v52 = vsel %vm4990_vm7, %v6353_v57, %v6384_v31 }
0x169b   : > { %v4030_v46 = vpop.permute.xlu2 %4029  ;;  %v6420_v18 = vrot.slane %v6369_v29, 4  ;;  %v6408_v43 = vrot.slane %v6365_v59, 4 }
0x169c   : > { %v4939_v28 = vmul.f32 %v4580_v22, %v4030_v46 }
0x169e   : > { %v6370_v58 = vrot.slane %v4939_v28, 4  ;;  %v6373_v15 = vsel %vm4990_vm7, %v4939_v28, %v6372_v27  ;;  %v6389_v28 = vperm.slane %v6383_v40, %v12378_v1  ;;  %v4167_v40 = vperm.slane %v17602_v2, 2 }
0x169f   : > { %v6381_v44 = vperm.slane %v6373_v15, %v12287_v50 }
0x16a0   : > { %v6371_v41 = vsel %vm4990_vm7, %v6370_v58, %v4935_v54  ;;  %v17605_v58 = vld [vmem:[#allocation40_spill] sm:$0xff] }
0x16a1   : > { %v6377_v38 = vperm.slane %v6371_v41, %v12287_v50  ;;  %v6418_v7 = vrot.slane %v6381_v44, 4  ;;  %v6421_v5 = vsel %vm4990_vm7, %v6381_v44, %v6420_v18  ;;  %10764 = vset.pattern.permute.xlu1 %v12209_v36  ;;  %4159 = vperm.xlu2 %10762, %v17604_v24   ;;  %v4940_v15 = vmul.f32 %v4580_v22, %v17605_v58 }
0x16a2   : > { %v15406_v51 = vperm.slane %v6421_v5, %v12378_v1  ;;  %v6440_v41 = vrot.slane %v6401_v42, 4  ;;  %v4934_v24 = vmul.f32 %v15370_v3, %v15348_v14  ;;  %v8188_v14 = vrot.slane %v15326_v63, 4 }
0x16a3   : > { %v6406_v4 = vrot.slane %v6377_v38, 4  ;;  %v6409_v54 = vsel %vm4990_vm7, %v6377_v38, %v6408_v43  ;;  %v6419_v46 = vsel %vm4990_vm7, %v6418_v7, %v6369_v29  ;;  %v4010_v27 = vpop.permute.xlu1 %4009  ;;  %v15423_v29 = vperm.slane %v6385_v52, %v12378_v1 }
0x16a4   : > { %v4936_v18 = vmul.f32 %v4578_v19, %v4010_v27  ;;  %v15414_v44 = vperm.slane %v6409_v54, %v12378_v1  ;;  %v6425_v57 = vperm.slane %v6419_v46, %v12378_v1  ;;  %v15420_v5 = vsel %vm4990_vm7, %v15406_v51, %v6444_v60 }
0x16a5   : > { %v6407_v31 = vsel %vm4990_vm7, %v6406_v4, %v6365_v59  ;;  %v6432_v38 = vrot.slane %v6389_v28, 4  ;;  %v8162_v59 = vrot.slane %v4940_v15, 4  ;;  %v4180_v63 = vperm.slane %v17602_v2, 3 }
0x16a6   : > { %v8164_v43 = vrot.slane %v4936_v18, 4  ;;  %v6434_v19 = vrot.slane %v15414_v44, 4  ;;  %v6413_v22 = vperm.slane %v6407_v31, %v12378_v1  ;;  %v15429_v7 = vsel %vm4990_vm7, %v6425_v57, %v6440_v41 }
0x16a7   : > { %v6438_v4 = vrot.slane %v6425_v57, 4  ;;  %v8163_v46 = vsel %vm4990_vm7, %v8162_v59, %v4936_v18  ;;  %v8152_v57 = vrot.slane %v4934_v24, 4  ;;  %v8189_v18 = vsel %vm4990_vm7, %v15319_v16, %v8188_v14 }
0x16a8   : > { %v8165_v60 = vsel %vm4990_vm7, %v4940_v15, %v8164_v43  ;;  %v15437_v52 = vsel %vm4990_vm7, %v6434_v19, %v15423_v29  ;;  %v15440_v54 = vsel %vm4990_vm7, %v6413_v22, %v6432_v38  ;;  %v6430_v58 = vrot.slane %v6413_v22, 4 }
0x16a9   : > { %4172 = vperm.xlu1 %10764, %v4167_v40   ;;  %10765 = vset.pattern.permute.xlu2 %v12214_v39  ;;  %v15444_v27 = vsel %vm4990_vm7, %v6438_v4, %v6401_v42  ;;  %v8173_v3 = vperm.slane %v8165_v60, %v12287_v50  ;;  %v8176_v43 = vrot.slane %v15323_v56, 4  ;;  %v8169_v42 = vperm.slane %v8163_v46, %v12287_v50 }
0x16aa   : > { %v15450_v41 = vsel %vm4990_vm7, %v6430_v58, %v6389_v28  ;;  %v8193_v28 = vperm.slane %v15338_v45, %v12378_v1  ;;  %v8181_v56 = vperm.slane %v15334_v26, %v12378_v1  ;;  %v15467_v60 = vperm.slane %v8189_v18, %v12378_v1 }
0x16ab   : > { %v4023_v15 = vpop.permute.xlu1 %4022  ;;  %17606 = vst [vmem:[#allocation168_spill] sm:$0xff] %v15450_v41  ;;  %v8177_v38 = vsel %vm4990_vm7, %v15316_v62, %v8176_v43  ;;  %v8210_v59 = vrot.slane %v8173_v3, 4  ;;  %v8198_v4 = vrot.slane %v8169_v42, 4  ;;  %v15471_v14 = vpop.permute.xlu2 %4048 }
0x16ac   : > { %v4938_v31 = vmul.f32 %v15372_v25, %v4023_v15  ;;  %v15474_v45 = vperm.slane %v8177_v38, %v12378_v1 }
0x16ae   : > { %v8150_v19 = vrot.slane %v4938_v31, 4  ;;  %v8153_v22 = vsel %vm4990_vm7, %v4938_v31, %v8152_v57  ;;  %v8232_v31 = vrot.slane %v8193_v28, 4 }
0x16af   : > { %v8161_v25 = vperm.slane %v8153_v22, %v12287_v50 }
0x16b0   : > { %v8151_v16 = vsel %vm4990_vm7, %v8150_v19, %v4934_v24  ;;  %v8224_v19 = vrot.slane %v8181_v56, 4 }
0x16b1   : > { %v8157_v46 = vperm.slane %v8151_v16, %v12287_v50  ;;  %v8211_v58 = vsel %vm4990_vm7, %v8210_v59, %v8161_v25  ;;  %v8212_v62 = vrot.slane %v8161_v25, 4  ;;  %4185 = vperm.xlu1 %10764, %v4180_v63   ;;  %4178 = vperm.xlu2 %10765, %v4167_v40   ;;  %v8236_v59 = vrot.slane %v15467_v60, 4 }
0x16b2   : > { %v8217_v26 = vperm.slane %v8211_v58, %v12378_v1  ;;  %v8228_v16 = vrot.slane %v15474_v45, 4 }
0x16b3   : > { %v8199_v24 = vsel %vm4990_vm7, %v8198_v4, %v8157_v46  ;;  %v8200_v15 = vrot.slane %v8157_v46, 4  ;;  %v8213_v57 = vsel %vm4990_vm7, %v8173_v3, %v8212_v62 }
0x16b4   : > { %v15480_v43 = vperm.slane %v8213_v57, %v12378_v1  ;;  %v8205_v18 = vperm.slane %v8199_v24, %v12378_v1  ;;  %v8230_v22 = vrot.slane %v8217_v26, 4  ;;  %v15485_v38 = vsel %vm4990_vm7, %v8217_v26, %v8232_v31  ;;  %v4062_v24 = vpop.permute.xlu2 %4061 }
0x16b5   : > { %v8201_v40 = vsel %vm4990_vm7, %v8169_v42, %v8200_v15  ;;  %17607 = vst [vmem:[#allocation161_spill] sm:$0xff] %v15485_v38  ;;  %v4457_v26 = vrot.slane %v17583_v37, 2  ;;  %v4456_v57 = vrot.slane %v17583_v37, 1  ;;  %v4458_v31 = vrot.slane %v17583_v37, 3 }
0x16b6   : > { %v15489_v25 = vperm.slane %v8201_v40, %v12378_v1  ;;  %v15492_v3 = vsel %vm4990_vm7, %v8205_v18, %v8224_v19  ;;  %v15496_v4 = vsel %vm4990_vm7, %v8230_v22, %v8193_v28  ;;  %v15500_v46 = vsel %vm4990_vm7, %v15480_v43, %v8236_v59 }
0x16b7   : > { %17608 = vst [vmem:[#allocation18_spill] sm:$0xff] %v15500_v46  ;;  %v8222_v42 = vrot.slane %v8205_v18, 4  ;;  %v4583_v15 = vperm.slane %v4457_v26, 0  ;;  %v17611_v19 = vperm.slane %v17602_v2, 4  ;;  %v4584_v40 = vperm.slane %v4458_v31, 0 }
0x16b8   : > { %v15504_v58 = vsel %vm4990_vm7, %v15489_v25, %v8228_v16 }
0x16b9   : > { %17609 = vst [vmem:[#allocation41_spill] sm:$0xff] %v15504_v58  ;;  %10767 = vset.pattern.permute.xlu1 %v12214_v39  ;;  %4191 = vperm.xlu2 %10765, %v4180_v63   ;;  %v15508_v62 = vsel %vm4990_vm7, %v8222_v42, %v8181_v56  ;;  %v17612_v63 = vld [vmem:[#allocation36_spill] sm:$0xff]  ;;  %v4582_v56 = vperm.slane %v4456_v57, 0  ;;  %v15523_v57 = vpop.permute.xlu0 %11017 }
0x16ba   : > { %17610 = vst [vmem:[#allocation40_spill] sm:$0xff] %v15508_v62  ;;  %v4945_v22 = vmul.f32 %v4583_v15, %v17612_v63 }
0x16bb   : > { %v4043_v28 = vpop.permute.xlu1 %4042  ;;  %17613 = vst [vmem:[#allocation36_spill] sm:$0xff] %v15523_v57 }
0x16bc   : > { %v4941_v18 = vmul.f32 %v4043_v28, %v15123_v20  ;;  %v6446_v41 = vrot.slane %v4945_v22, 4 }
0x16be   : > { %v6448_v42 = vrot.slane %v4941_v18, 4  ;;  %v6447_v28 = vsel %vm4990_vm7, %v6446_v41, %v4941_v18 }
0x16c1   : > { %4204 = vperm.xlu1 %10767, %v17611_v19   ;;  %10768 = vset.pattern.permute.xlu2 %v12209_v36  ;;  %v6449_v19 = vsel %vm4990_vm7, %v4945_v22, %v6448_v42  ;;  %v15550_v18 = vpop.permute.xlu0 %11032  ;;  %v4232_v42 = vperm.slane %v17602_v2, 7 }
0x16c2   : > { %v15535_v41 = vperm.slane %v6449_v19, %v12287_v50  ;;  %17615 = vst [vmem:[#allocation183_spill] sm:$0xff] %v15550_v18 }
0x16c3   : > { %v4082_v59 = vpop.permute.xlu2 %4081  ;;  %v4056_v16 = vpop.permute.xlu1 %4055 }
0x16c4   : > { %v4947_v62 = vmul.f32 %v4584_v40, %v4082_v59  ;;  %v4943_v26 = vmul.f32 %v4582_v56, %v4056_v16  ;;  %v15532_v16 = vperm.slane %v6447_v28, %v12287_v50  ;;  %v4944_v28 = vmul.f32 %v4582_v56, %v4062_v24 }
0x16c6   : > { %v6458_v32 = vrot.slane %v4947_v62, 4  ;;  %v6460_v34 = vrot.slane %v4943_v26, 4  ;;  %v6496_v12 = vrot.slane %v15532_v16, 4 }
0x16c8   : > { %v6459_v47 = vsel %vm4990_vm7, %v6458_v32, %v4943_v26  ;;  %v6461_v63 = vsel %vm4990_vm7, %v4947_v62, %v6460_v34  ;;  %v4942_v26 = vmul.f32 %v15471_v14, %v15123_v20  ;;  %v17617_v14 = vld [vmem:[#allocation21_spill] sm:$0xff] }
0x16c9   : > { %v15526_v31 = vperm.slane %v6459_v47, %v12287_v50  ;;  %v15529_v59 = vperm.slane %v6461_v63, %v12287_v50  ;;  %4217 = vperm.xlu1 %10767, %v4206_v9   ;;  %4211 = vperm.xlu2 %10768, %v4206_v9   ;;  %v17614_v9 = vperm.slane %v17602_v2, 6  ;;  %v15556_v11 = vpop.permute.xlu0 %11057  ;;  %v15564_v24 = vperm.slane %v17617_v14, 0 }
0x16ca   : > { %17616 = vst [vmem:[#allocation184_spill] sm:$0xff] %v15556_v11 }
0x16cb   : > { %v6494_v32 = vrot.slane %v15526_v31, 4  ;;  %v6506_v34 = vrot.slane %v15529_v59, 4  ;;  %v4095_v13 = vpop.permute.xlu2 %4094  ;;  %17618 = vst [vmem:[#allocation21_spill] sm:$0xff] %v15564_v24 }
0x16cd   : > { %v15541_v62 = vsel %vm4990_vm7, %v6494_v32, %v15532_v16  ;;  %v15545_v47 = vsel %vm4990_vm7, %v6506_v34, %v15535_v41  ;;  %v8240_v32 = vrot.slane %v4942_v26, 4  ;;  %v8252_v34 = vrot.slane %v4944_v28, 4 }
0x16d1   : > { %10770 = vset.pattern.permute.xlu1 %v12209_v36  ;;  %4224 = vperm.xlu2 %10768, %v17614_v9  }
0x16d3   : > { %v4075_v22 = vpop.permute.xlu1 %4074 }
0x16d4   : > { %v4946_v19 = vmul.f32 %v4583_v15, %v4075_v22 }
0x16d6   : > { %v8238_v57 = vrot.slane %v4946_v19, 4  ;;  %v8241_v9 = vsel %vm4990_vm7, %v4946_v19, %v8240_v32 }
0x16d8   : > { %v8239_v15 = vsel %vm4990_vm7, %v8238_v57, %v4942_v26 }
0x16d9   : > { %4237 = vperm.xlu1 %10770, %v4232_v42   ;;  %10771 = vset.pattern.permute.xlu2 %v12214_v39 }
0x16db   : > { %v4088_v63 = vpop.permute.xlu1 %4087  ;;  %v15594_v32 = vpop.permute.xlu2 %4113 }
0x16dc   : > { %v4948_v10 = vmul.f32 %v4584_v40, %v4088_v63  ;;  %v15569_v40 = vperm.slane %v8241_v9, %v12287_v50 }
0x16de   : > { %v8250_v18 = vrot.slane %v4948_v10, 4  ;;  %v8253_v17 = vsel %vm4990_vm7, %v4948_v10, %v8252_v34  ;;  %v4462_v10 = vrot.slane %v17583_v37, 7  ;;  %v4459_v34 = vrot.slane %v17583_v37, 4 }
0x16df   : > { %v15561_v20 = vperm.slane %v8253_v17, %v12287_v50  ;;  %v15578_v17 = vperm.slane %v8239_v15, %v12287_v50  ;;  %v17620_v15 = vld [vmem:[#allocation35_spill] sm:$0xff] }
0x16e0   : > { %v8251_v56 = vsel %vm4990_vm7, %v8250_v18, %v4944_v28  ;;  %v15592_v63 = vperm.slane %v4462_v10, 0  ;;  %v4463_v10 = vrot.slane %v17602_v2, 1 }
0x16e1   : > { %v15572_v22 = vperm.slane %v8251_v56, %v12287_v50  ;;  %v8298_v19 = vrot.slane %v15561_v20, 4  ;;  %4243 = vperm.xlu2 %10771, %v4232_v42   ;;  %4250 = vperm.xlu1 %10770, %v15564_v24   ;;  %v4460_v42 = vrot.slane %v17583_v37, 5 }
0x16e2   : > { %v4955_v56 = vmul.f32 %v15592_v63, %v17620_v15  ;;  %v15613_v8 = vperm.slane %v4463_v10, 0 }
0x16e3   : > { %v8286_v57 = vrot.slane %v15572_v22, 4  ;;  %v15583_v18 = vsel %vm4990_vm7, %v8298_v19, %v15569_v40  ;;  %v15599_v9 = vperm.slane %v4460_v42, 0  ;;  %v6508_v42 = vrot.slane %v15535_v41, 4 }
0x16e4   : > { %v6482_v53 = vrot.slane %v4955_v56, 4  ;;  %17623 = vst [vmem:[#allocation20_spill] sm:$0xff] %v15613_v8 }
0x16e5   : > { %v15587_v26 = vsel %vm4990_vm7, %v8286_v57, %v15578_v17  ;;  %v15589_v28 = vpop.permute.xlu0 %11072  ;;  %v4585_v57 = vperm.slane %v4459_v34, 0  ;;  %v4127_v34 = vpop.permute.xlu2 %4126  ;;  %v6509_v37 = vsel %vm4990_vm7, %v15529_v59, %v6508_v42 }
0x16e6   : > { %17619 = vst [vmem:[#allocation185_spill] sm:$0xff] %v15589_v28  ;;  %v15633_v16 = vperm.slane %v6509_v37, %v12378_v1 }
0x16e7   : > { %v15609_v49 = vmul.f32 %v4585_v57, %v17622_v55  ;;  %v4949_v35 = vmul.f32 %v4585_v57, %v4095_v13  ;;  %v4587_v55 = vperm.slane %v4461_v23, 0  ;;  %v4271_v23 = vperm.slane %v17617_v14, 2 }
0x16e9   : > { %4256 = vperm.xlu2 %10771, %v15564_v24   ;;  %10773 = vset.pattern.permute.xlu1 %v12214_v39 }
0x16eb   : > { %v4108_v19 = vpop.permute.xlu1 %4107 }
0x16ec   : > { %v4951_v28 = vmul.f32 %v15599_v9, %v4108_v19 }
0x16ed   : > { %v15605_v11 = vpop.permute.xlu0 %11087 }
0x16ee   : > { %17621 = vst [vmem:[#allocation35_spill] sm:$0xff] %v15605_v11  ;;  %v6484_v6 = vrot.slane %v4951_v28, 4  ;;  %v6483_v19 = vsel %vm4990_vm7, %v6482_v53, %v4951_v28  ;;  %v17624_v11 = vperm.slane %v17617_v14, 1  ;;  %v17625_v28 = vld [vmem:[#allocation19_spill] sm:$0xff] }
0x16ef   : > { %v6489_v57 = vperm.slane %v6483_v19, %v12287_v50  ;;  %v15627_v10 = vmul.f32 %v15613_v8, %v17625_v28  ;;  %v6513_v19 = vperm.slane %v15545_v47, %v12378_v1 }
0x16f0   : > { %v6485_v15 = vsel %vm4990_vm7, %v4955_v56, %v6484_v6  ;;  %v8264_v6 = vrot.slane %v15609_v49, 4  ;;  %v6472_v56 = vrot.slane %v4949_v35, 4 }
0x16f1   : > { %10774 = vset.pattern.permute.xlu2 %v12209_v36  ;;  %4269 = vperm.xlu1 %10773, %v17624_v11   ;;  %v6493_v13 = vperm.slane %v6485_v15, %v12287_v50  ;;  %v6497_v11 = vsel %vm4990_vm7, %v15526_v31, %v6496_v12  ;;  %v4954_v31 = vmul.f32 %v4587_v55, %v4127_v34  ;;  %v6518_v33 = vrot.slane %v6489_v57, 4 }
0x16f2   : > { %v6505_v34 = vperm.slane %v6497_v11, %v12378_v1 }
0x16f3   : > { %v4121_v41 = vpop.permute.xlu1 %4120  ;;  %v6530_v28 = vrot.slane %v6493_v13, 4  ;;  %v15648_v24 = vpop.permute.xlu2 %4146  ;;  %v8262_v11 = vrot.slane %v4954_v31, 4 }
0x16f4   : > { %v4953_v53 = vmul.f32 %v4587_v55, %v4121_v41  ;;  %v6501_v41 = vperm.slane %v15541_v62, %v12378_v1  ;;  %v17627_v62 = vld [vmem:[#allocation171_spill] sm:$0xff] }
0x16f5   : > { %v11103_v59 = vpop.permute.xlu0 %11102 }
0x16f6   : > { %v6470_v42 = vrot.slane %v4953_v53, 4  ;;  %v6473_v15 = vsel %vm4990_vm7, %v4953_v53, %v6472_v56  ;;  %v11105_v30 = vunpack.i.h.bf16 %v11103_v59  ;;  %v11104_v12 = vunpack.i.l.bf16 %v11103_v59 }
0x16f7   : > { %v6481_v21 = vperm.slane %v6473_v15, %v12287_v50  ;;  %v6556_v59 = vrot.slane %v15633_v16, 4 }
0x16f8   : > { %v6471_v58 = vsel %vm4990_vm7, %v6470_v42, %v4949_v35  ;;  %v15644_v37 = vsel %vm823_vm1, %v15225_v0, %v11105_v30  ;;  %v15652_v8 = vsel %vm823_vm1, %v17627_v62, %v11104_v12  ;;  %v6436_v0 = vrot.slane %v15423_v29, 4 }
0x16f9   : > { %17626 = vst [vmem:[#allocation19_spill] sm:$0xff] %v15644_v37  ;;  %v6477_v56 = vperm.slane %v6471_v58, %v12287_v50  ;;  %v6531_v53 = vsel %vm4990_vm7, %v6530_v28, %v6481_v21  ;;  %v6532_v47 = vrot.slane %v6481_v21, 4  ;;  %4276 = vperm.xlu2 %10774, %v4271_v23   ;;  %4282 = vperm.xlu1 %10773, %v4271_v23   ;;  %v6552_v30 = vrot.slane %v6513_v19, 4 }
0x16fa   : > { %17628 = vst [vmem:[#allocation171_spill] sm:$0xff] %v15652_v8  ;;  %v6537_v35 = vperm.slane %v6531_v53, %v12378_v1  ;;  %v6544_v28 = vrot.slane %v6501_v41, 4  ;;  %v8265_v62 = vsel %vm4990_vm7, %v4954_v31, %v8264_v6  ;;  %v8263_v6 = vsel %vm4990_vm7, %v8262_v11, %v15609_v49 }
0x16fb   : > { %v6519_v58 = vsel %vm4990_vm7, %v6518_v33, %v6477_v56  ;;  %v6520_v55 = vrot.slane %v6477_v56, 4  ;;  %v6533_v21 = vsel %vm4990_vm7, %v6493_v13, %v6532_v47  ;;  %v4952_v13 = vmul.f32 %v15599_v9, %v15594_v32 }
0x16fc   : > { %v6541_v42 = vperm.slane %v6533_v21, %v12378_v1  ;;  %v6525_v15 = vperm.slane %v6519_v58, %v12378_v1  ;;  %v15663_v23 = vsel %vm4990_vm7, %v6537_v35, %v6552_v30  ;;  %v6550_v33 = vrot.slane %v6537_v35, 4 }
0x16fd   : > { %v6521_v12 = vsel %vm4990_vm7, %v6489_v57, %v6520_v55  ;;  %v6437_v56 = vsel %vm4990_vm7, %v15414_v44, %v6436_v0  ;;  %v6548_v47 = vrot.slane %v6505_v34, 4  ;;  %v17629_v31 = vperm.slane %v17617_v14, 3 }
0x16fe   : > { %v6529_v53 = vperm.slane %v6521_v12, %v12378_v1  ;;  %v15675_v30 = vsel %vm4990_vm7, %v6525_v15, %v6544_v28  ;;  %v15678_v57 = vsel %vm4990_vm7, %v6550_v33, %v6513_v19  ;;  %v15681_v58 = vsel %vm4990_vm7, %v6541_v42, %v6556_v59  ;;  %v15702_v33 = vpop.permute.xlu2 %4159 }
0x16ff   : > { %v6542_v55 = vrot.slane %v6525_v15, 4  ;;  %v8300_v21 = vrot.slane %v15569_v40, 4  ;;  %v6442_v59 = vrot.slane %v15406_v51, 4  ;;  %v6554_v28 = vrot.slane %v6541_v42, 4  ;;  %v17674_v15 = vld [vmem:[#allocation59_spill] sm:$0xff] }
0x1700   : > { %v6549_v35 = vsel %vm4990_vm7, %v6529_v53, %v6548_v47  ;;  %v6546_v32 = vrot.slane %v6529_v53, 4  ;;  %v8288_v49 = vrot.slane %v15578_v17, 4  ;;  %v8273_v11 = vperm.slane %v8265_v62, %v12287_v50 }
0x1701   : > { %4289 = vperm.xlu2 %10774, %v17629_v31   ;;  %10776 = vset.pattern.permute.xlu1 %v12209_v36  ;;  %v11146_v19 = vpack.i.bf16 %v6549_v35, %v6437_v56  ;;  %v15708_v40 = vsel %vm4990_vm7, %v6542_v55, %v6501_v41  ;;  %v8276_v51 = vrot.slane %v4952_v13, 4  ;;  %v8269_v42 = vperm.slane %v8263_v6, %v12287_v50 }
0x1702   : > { %v15698_v12 = vsel %vm4990_vm7, %v6546_v32, %v6505_v34  ;;  %17630 = vst [vmem:[#allocation186_spill] sm:$0xff] %v15708_v40  ;;  %v8301_v34 = vsel %vm4990_vm7, %v15561_v20, %v8300_v21  ;;  %v8364_v56 = vrot.slane %v15627_v10, 4  ;;  %v8289_v47 = vsel %vm4990_vm7, %v15572_v22, %v8288_v49 }
0x1703   : > { %v4140_v53 = vpop.permute.xlu1 %4139  ;;  %11147 = vrot.lane.b32.xlu0 %v11146_v19, %s11555_s26  ;;  %v4464_v62 = vrot.slane %v17602_v2, 2  ;;  %v4297_v41 = vperm.slane %v17617_v14, 4  ;;  %v6555_v31 = vsel %vm4990_vm7, %v6554_v28, %v15633_v16  ;;  %v15723_v20 = vperm.slane %v8301_v34, %v12378_v1 }
0x1704   : > { %v4956_v17 = vmul.f32 %v15592_v63, %v4140_v53  ;;  %v8324_v6 = vrot.slane %v8273_v11, 4  ;;  %v6443_v19 = vsel %vm4990_vm7, %v6442_v59, %v15393_v61  ;;  %v8312_v22 = vrot.slane %v8269_v42, 4 }
0x1705   : > { %v8297_v21 = vperm.slane %v8289_v47, %v12378_v1  ;;  %v8305_v49 = vperm.slane %v15583_v18, %v12378_v1  ;;  %v15736_v61 = vperm.slane %v4464_v62, 0  ;;  %v8226_v59 = vrot.slane %v15489_v25, 4 }
0x1706   : > { %v8274_v35 = vrot.slane %v4956_v17, 4  ;;  %v8277_v32 = vsel %vm4990_vm7, %v4956_v17, %v8276_v51  ;;  %v11161_v51 = vpack.i.bf16 %v6555_v31, %v6443_v19  ;;  %v8293_v25 = vperm.slane %v15587_v26, %v12378_v1 }
0x1707   : > { %v8285_v63 = vperm.slane %v8277_v32, %v12287_v50 }
0x1708   : > { %v8275_v55 = vsel %vm4990_vm7, %v8274_v35, %v4952_v13  ;;  %v4465_v13 = vrot.slane %v17602_v2, 3 }
0x1709   : > { %v8281_v53 = vperm.slane %v8275_v55, %v12287_v50  ;;  %v8322_v16 = vrot.slane %v8285_v63, 4  ;;  %v8325_v28 = vsel %vm4990_vm7, %v8285_v63, %v8324_v6  ;;  %10777 = vset.pattern.permute.xlu2 %v12214_v39  ;;  %4302 = vperm.xlu1 %10776, %v4297_v41   ;;  %v8348_v6 = vrot.slane %v15723_v20, 4 }
0x170a   : > { %v8333_v34 = vperm.slane %v8325_v28, %v12378_v1  ;;  %v8344_v55 = vrot.slane %v8305_v49, 4 }
0x170b   : > { %v8310_v17 = vrot.slane %v8281_v53, 4  ;;  %v8313_v18 = vsel %vm4990_vm7, %v8281_v53, %v8312_v22  ;;  %v8323_v47 = vsel %vm4990_vm7, %v8322_v16, %v8273_v11  ;;  %v4153_v35 = vpop.permute.xlu1 %4152  ;;  %v4179_v32 = vpop.permute.xlu2 %4178  ;;  %11162 = vrot.lane.b32.xlu0 %v11161_v51, %s11549_s20  ;;  %v8340_v22 = vrot.slane %v8297_v21, 4 }
0x170c   : > { %v8321_v31 = vperm.slane %v8313_v18, %v12378_v1  ;;  %v8329_v62 = vperm.slane %v8323_v47, %v12378_v1  ;;  %v4958_v63 = vmul.f32 %v4153_v35, %v15382_v48  ;;  %v15751_v11 = vsel %vm4990_vm7, %v8333_v34, %v8348_v6 }
0x170d   : > { %v8311_v19 = vsel %vm4990_vm7, %v8310_v17, %v8269_v42  ;;  %17631 = vst [vmem:[#allocation187_spill] sm:$0xff] %v15751_v11  ;;  %v4962_v16 = vmul.f32 %v15736_v61, %v4179_v32  ;;  %v4310_v18 = vperm.slane %v17617_v14, 5  ;;  %v8227_v17 = vsel %vm4990_vm7, %v8226_v59, %v15474_v45 }
0x170e   : > { %v8352_v53 = vrot.slane %v4958_v63, 4  ;;  %v8338_v28 = vrot.slane %v8321_v31, 4  ;;  %v8317_v51 = vperm.slane %v8311_v19, %v12378_v1  ;;  %v8342_v47 = vrot.slane %v8329_v62, 4 }
0x170f   : > { %v15757_v35 = vsel %vm4990_vm7, %v8321_v31, %v8340_v22  ;;  %v15760_v26 = vsel %vm4990_vm7, %v8329_v62, %v8344_v55  ;;  %v8336_v32 = vrot.slane %v8293_v25, 4  ;;  %v4592_v19 = vperm.slane %v4465_v13, 0 }
0x1710   : > { %17632 = vst [vmem:[#allocation188_spill] sm:$0xff] %v15757_v35  ;;  %v8353_v42 = vsel %vm4990_vm7, %v4962_v16, %v8352_v53  ;;  %v8339_v6 = vsel %vm4990_vm7, %v8338_v28, %v8297_v21  ;;  %v8346_v9 = vrot.slane %v8333_v34, 4  ;;  %v8334_v29 = vrot.slane %v8317_v51, 4 }
0x1711   : > { %17633 = vst [vmem:[#allocation189_spill] sm:$0xff] %v15760_v26  ;;  %4308 = vperm.xlu2 %10777, %v4297_v41   ;;  %4315 = vperm.xlu1 %10776, %v4310_v18   ;;  %v11176_v0 = vpack.i.bf16 %v8339_v6, %v8227_v17  ;;  %v15767_v31 = vsel %vm4990_vm7, %v8317_v51, %v8336_v32  ;;  %v8234_v34 = vrot.slane %v15480_v43, 4  ;;  %v8350_v59 = vrot.slane %v4962_v16, 4 }
0x1712   : > { %v15770_v62 = vsel %vm4990_vm7, %v8342_v47, %v8305_v49  ;;  %v8361_v21 = vperm.slane %v8353_v42, %v12287_v50  ;;  %v15786_v51 = vsel %vm4990_vm7, %v8334_v29, %v8293_v25  ;;  %v8347_v43 = vsel %vm4990_vm7, %v8346_v9, %v15723_v20 }
0x1713   : > { %v4192_v41 = vpop.permute.xlu2 %4191  ;;  %11177 = vrot.lane.b32.xlu0 %v11176_v0, %s11551_s23  ;;  %17635 = vst [vmem:[#allocation190_spill] sm:$0xff] %v15786_v51  ;;  %v8351_v16 = vsel %vm4990_vm7, %v8350_v59, %v4958_v63  ;;  %v8235_v29 = vsel %vm4990_vm7, %v8234_v34, %v15467_v60  ;;  %v4957_v20 = vmul.f32 %v15648_v24, %v15382_v48  ;;  %v4467_v48 = vrot.slane %v17602_v2, 5 }
0x1714   : > { %v4964_v53 = vmul.f32 %v4592_v19, %v4192_v41  ;;  %v8412_v42 = vrot.slane %v8361_v21, 4  ;;  %v11196_v9 = vpack.i.bf16 %v8347_v43, %v8235_v29  ;;  %v15809_v63 = vperm.slane %v8351_v16, %v12287_v50 }
0x1715   : > { %v4466_v24 = vrot.slane %v17602_v2, 4  ;;  %v4594_v43 = vperm.slane %v4467_v48, 0 }
0x1716   : > { %v8362_v47 = vrot.slane %v4964_v53, 4  ;;  %v8365_v0 = vsel %vm4990_vm7, %v4964_v53, %v8364_v56  ;;  %v17636_v53 = vld [vmem:[#allocation20_spill] sm:$0xff] }
0x1717   : > { %v8373_v17 = vperm.slane %v8365_v0, %v12287_v50  ;;  %v17637_v0 = vperm.slane %v17617_v14, 6 }
0x1718   : > { %v8363_v6 = vsel %vm4990_vm7, %v8362_v47, %v15627_v10  ;;  %v4959_v47 = vmul.f32 %v17636_v53, %v15702_v33 }
0x1719   : > { %v15800_v25 = vperm.slane %v8363_v6, %v12287_v50  ;;  %v8410_v32 = vrot.slane %v8373_v17, 4  ;;  %v15803_v56 = vsel %vm4990_vm7, %v8373_v17, %v8412_v42  ;;  %4321 = vperm.xlu2 %10777, %v4310_v18   ;;  %10779 = vset.pattern.permute.xlu1 %v12214_v39  ;;  %v6560_v18 = vrot.slane %v4957_v20, 4 }
0x171a   : > { %v4593_v6 = vperm.slane %v4466_v24, 0  ;;  %v6572_v29 = vrot.slane %v4959_v47, 4 }
0x171b   : > { %v8398_v10 = vrot.slane %v15800_v25, 4  ;;  %v15813_v60 = vsel %vm4990_vm7, %v8410_v32, %v8361_v21  ;;  %v4173_v41 = vpop.permute.xlu1 %4172  ;;  %11197 = vrot.lane.b32.xlu0 %v11196_v9, %s11549_s20 }
0x171c   : > { %v4961_v34 = vmul.f32 %v15736_v61, %v4173_v41 }
0x171d   : > { %v15819_v39 = vsel %vm4990_vm7, %v8398_v10, %v15809_v63  ;;  %v4468_v10 = vrot.slane %v17602_v2, 6 }
0x171e   : > { %v6558_v59 = vrot.slane %v4961_v34, 4  ;;  %v6561_v21 = vsel %vm4990_vm7, %v4961_v34, %v6560_v18  ;;  %v4336_v18 = vperm.slane %v17617_v14, 7 }
0x171f   : > { %v6569_v42 = vperm.slane %v6561_v21, %v12287_v50 }
0x1720   : > { %v6559_v61 = vsel %vm4990_vm7, %v6558_v59, %v4957_v20  ;;  %v17638_v59 = vld [vmem:[#allocation80_spill] sm:$0xff] }
0x1721   : > { %10780 = vset.pattern.permute.xlu2 %v12209_v36  ;;  %4334 = vperm.xlu1 %10779, %v17637_v0   ;;  %v6565_v33 = vperm.slane %v6559_v61, %v12287_v50  ;;  %v6620_v34 = vrot.slane %v6569_v42, 4  ;;  %v4965_v48 = vmul.f32 %v4593_v6, %v17638_v59  ;;  %v4595_v61 = vperm.slane %v4468_v10, 0  ;;  %v17639_v10 = vld [vmem:[#allocation46_spill] sm:$0xff] }
0x1723   : > { %v4186_v17 = vpop.permute.xlu1 %4185  ;;  %v4212_v16 = vpop.permute.xlu2 %4211  ;;  %v6608_v53 = vrot.slane %v6565_v33, 4 }
0x1724   : > { %v4963_v32 = vmul.f32 %v4592_v19, %v4186_v17  ;;  %v15831_v9 = vmul.f32 %v4594_v43, %v4212_v16 }
0x1726   : > { %v6570_v36 = vrot.slane %v4963_v32, 4  ;;  %v6573_v41 = vsel %vm4990_vm7, %v4963_v32, %v6572_v29 }
0x1727   : > { %v6581_v20 = vperm.slane %v6573_v41, %v12287_v50  ;;  %v6584_v41 = vrot.slane %v4965_v48, 4 }
0x1728   : > { %v6571_v24 = vsel %vm4990_vm7, %v6570_v36, %v4959_v47 }
0x1729   : > { %v6577_v19 = vperm.slane %v6571_v24, %v12287_v50  ;;  %v6618_v21 = vrot.slane %v6581_v20, 4  ;;  %v15842_v0 = vsel %vm4990_vm7, %v6581_v20, %v6620_v34  ;;  %4341 = vperm.xlu2 %10780, %v4336_v18   ;;  %4347 = vperm.xlu1 %10779, %v4336_v18   ;;  %v17640_v18 = vld [vmem:[#allocation44_spill] sm:$0xff] }
0x172a   : > { %v17641_v24 = vpack.i.bf16 %v17639_v10, %v17640_v18  ;;  %v17649_v10 = vld [vmem:[#allocation49_spill] sm:$0xff] }
0x172b   : > { %v6606_v17 = vrot.slane %v6577_v19, 4  ;;  %v15845_v16 = vsel %vm4990_vm7, %v6577_v19, %v6608_v53  ;;  %v15848_v29 = vsel %vm4990_vm7, %v6618_v21, %v6569_v42  ;;  %v4225_v32 = vpop.permute.xlu2 %4224  ;;  %v17642_v42 = vld [vmem:[#allocation48_spill] sm:$0xff]  ;;  %v17643_v53 = vld [vmem:[#allocation30_spill] sm:$0xff]  ;;  %v17650_v18 = vld [vmem:[#allocation33_spill] sm:$0xff] }
0x172c   : > { %v4969_v47 = vmul.f32 %v4595_v61, %v4225_v32  ;;  %v17644_v19 = vpack.i.bf16 %v17642_v42, %v17643_v53 }
0x172d   : > { %v15851_v36 = vsel %vm4990_vm7, %v6606_v17, %v6565_v33  ;;  %v17645_v33 = vld [vmem:[#allocation14_spill] sm:$0xff] }
0x172e   : > { %v6582_v59 = vrot.slane %v4969_v47, 4  ;;  %v15854_v34 = vsel %vm4990_vm7, %v4969_v47, %v6584_v41  ;;  %v4970_v17 = vmul.f32 %v4595_v61, %v17645_v33  ;;  %v4469_v41 = vrot.slane %v17602_v2, 7 }
0x1730   : > { %v15857_v20 = vsel %vm4990_vm7, %v6582_v59, %v4965_v48  ;;  %v8374_v47 = vrot.slane %v4970_v17, 4  ;;  %v17646_v48 = vld [vmem:[#allocation45_spill] sm:$0xff]  ;;  %v17647_v59 = vld [vmem:[#allocation32_spill] sm:$0xff]  ;;  %v4596_v61 = vperm.slane %v4469_v41, 0 }
0x1731   : > { %10787 = vrot.lane.b32.xlu1 %v17641_v24, %s11551_s23  ;;  %10782 = vrot.lane.b32.xlu2 %v17644_v19, %s11556_s28  ;;  %v17648_v45 = vpack.i.bf16 %v17646_v48, %v17647_v59  ;;  %v17651_v24 = vpack.i.bf16 %v17649_v10, %v17650_v18 }
0x1733   : > { %v4205_v21 = vpop.permute.xlu1 %4204 }
0x1734   : > { %v4966_v32 = vmul.f32 %v4593_v6, %v4205_v21  ;;  %v8400_v6 = vrot.slane %v15809_v63, 4  ;;  %v8417_v63 = vperm.slane %v15813_v60, %v12378_v1  ;;  %v8405_v60 = vperm.slane %v15819_v39, %v12378_v1 }
0x1736   : > { %v8376_v28 = vrot.slane %v4966_v32, 4  ;;  %v8375_v42 = vsel %vm4990_vm7, %v8374_v47, %v4966_v32  ;;  %v8401_v48 = vsel %vm4990_vm7, %v15800_v25, %v8400_v6  ;;  %v8421_v32 = vperm.slane %v15803_v56, %v12378_v1  ;;  %v17655_v56 = vld [vmem:[#allocation43_spill] sm:$0xff] }
0x1738   : > { %v8377_v53 = vsel %vm4990_vm7, %v4970_v17, %v8376_v28  ;;  %v8409_v28 = vperm.slane %v8401_v48, %v12378_v1 }
0x1739   : > { %10802 = vrot.lane.b32.xlu1 %v17648_v45, %s11558_s17  ;;  %10797 = vrot.lane.b32.xlu2 %v17651_v24, %s11550_s22  ;;  %v8381_v45 = vperm.slane %v8375_v42, %v12287_v50  ;;  %v8385_v59 = vperm.slane %v8377_v53, %v12287_v50  ;;  %v17652_v42 = vld [vmem:[#allocation42_spill] sm:$0xff]  ;;  %v17653_v53 = vld [vmem:[#allocation24_spill] sm:$0xff] }
0x173a   : > { %v17654_v6 = vpack.i.bf16 %v17652_v42, %v17653_v53  ;;  %v8460_v42 = vrot.slane %v8421_v32, 4 }
0x173b   : > { %v4218_v19 = vpop.permute.xlu1 %4217  ;;  %v4244_v2 = vpop.permute.xlu2 %4243  ;;  %v8424_v41 = vrot.slane %v8381_v45, 4  ;;  %v8436_v25 = vrot.slane %v8385_v59, 4 }
0x173c   : > { %v4968_v21 = vmul.f32 %v4594_v43, %v4218_v19  ;;  %v4972_v33 = vmul.f32 %v4596_v61, %v4244_v2  ;;  %v17656_v19 = vld [vmem:[#allocation47_spill] sm:$0xff] }
0x173d   : > { %v17657_v2 = vpack.i.bf16 %v17655_v56, %v17656_v19 }
0x173e   : > { %v8388_v10 = vrot.slane %v4968_v21, 4  ;;  %v8386_v18 = vrot.slane %v4972_v33, 4 }
0x1740   : > { %v8387_v43 = vsel %vm4990_vm7, %v8386_v18, %v4968_v21  ;;  %v8389_v17 = vsel %vm4990_vm7, %v4972_v33, %v8388_v10 }
0x1741   : > { %v8393_v47 = vperm.slane %v8387_v43, %v12287_v50  ;;  %v8397_v24 = vperm.slane %v8389_v17, %v12287_v50  ;;  %10817 = vrot.lane.b32.xlu1 %v17654_v6, %s11556_s28  ;;  %10812 = vrot.lane.b32.xlu2 %v17657_v2, %s11557_s0  ;;  %v8452_v17 = vrot.slane %v8409_v28, 4  ;;  %v8456_v6 = vrot.slane %v8417_v63, 4 }
0x1743   : > { %v8422_v21 = vrot.slane %v8393_v47, 4  ;;  %v8425_v33 = vsel %vm4990_vm7, %v8393_v47, %v8424_v41  ;;  %v8434_v48 = vrot.slane %v8397_v24, 4  ;;  %v8437_v10 = vsel %vm4990_vm7, %v8397_v24, %v8436_v25  ;;  %v17658_v25 = vld [vmem:[#allocation64_spill] sm:$0xff] }
0x1744   : > { %v8445_v18 = vperm.slane %v8437_v10, %v12378_v1  ;;  %v8433_v43 = vperm.slane %v8425_v33, %v12378_v1  ;;  %v8448_v47 = vrot.slane %v8405_v60, 4 }
0x1745   : > { %v8435_v53 = vsel %vm4990_vm7, %v8434_v48, %v8385_v59  ;;  %v8423_v56 = vsel %vm4990_vm7, %v8422_v21, %v8381_v45  ;;  %v17659_v45 = vld [vmem:[#allocation84_spill] sm:$0xff] }
0x1746   : > { %v8453_v19 = vsel %vm4990_vm7, %v8433_v43, %v8452_v17  ;;  %v8441_v39 = vperm.slane %v8435_v53, %v12378_v1  ;;  %v15912_v41 = vsel %vm4990_vm7, %v8445_v18, %v8460_v42  ;;  %v8450_v2 = vrot.slane %v8433_v43, 4  ;;  %v17660_v21 = vld [vmem:[#allocation68_spill] sm:$0xff]  ;;  %v17662_v17 = vld [vmem:[#allocation38_spill] sm:$0xff] }
0x1747   : > { %v11206_v24 = vpack.i.bf16 %v8453_v19, %v17658_v25  ;;  %v8458_v10 = vrot.slane %v8445_v18, 4  ;;  %v8429_v33 = vperm.slane %v8423_v56, %v12378_v1  ;;  %v17661_v48 = vpack.i.bf16 %v17659_v45, %v17660_v21  ;;  %v17663_v42 = vld [vmem:[#allocation22_spill] sm:$0xff]  ;;  %v15942_v25 = vpop.permute.xlu2 %4256 }
0x1748   : > { %v15917_v55 = vsel %vm4990_vm7, %v8441_v39, %v8456_v6  ;;  %v8454_v59 = vrot.slane %v8441_v39, 4  ;;  %v17664_v53 = vpack.i.bf16 %v17662_v17, %v17663_v42  ;;  %v15928_v19 = vsel %vm4990_vm7, %v8450_v2, %v8409_v28 }
0x1749   : > { %10842 = vrot.lane.b32.xlu1 %v17661_v48, %s11555_s26  ;;  %v15931_v18 = vsel %vm4990_vm7, %v8458_v10, %v8421_v32  ;;  %v15934_v43 = vsel %vm4990_vm7, %v8429_v33, %v8448_v47  ;;  %v8446_v6 = vrot.slane %v8429_v33, 4  ;;  %11207 = vrot.lane.b32.xlu0 %v11206_v24, %s11555_s26  ;;  %v6593_v39 = vperm.slane %v15854_v34, %v12287_v50 }
0x174a   : > { %10827 = vrot.lane.b32.xlu2 %v17664_v53, %s11555_s26  ;;  %v15938_v56 = vsel %vm4990_vm7, %v8454_v59, %v8417_v63  ;;  %v6596_v32 = vrot.slane %v15831_v9, 4  ;;  %v6589_v47 = vperm.slane %v15857_v20, %v12287_v50  ;;  %v6629_v24 = vperm.slane %v15842_v0, %v12378_v1  ;;  %v17666_v53 = vld [vmem:[#allocation85_spill] sm:$0xff] }
0x174b   : > { %v4238_v45 = vpop.permute.xlu1 %4237  ;;  %v15945_v28 = vsel %vm4990_vm7, %v8446_v6, %v8405_v60  ;;  %v4471_v34 = vrot.slane %v17617_v14, 2  ;;  %v6644_v33 = vrot.slane %v6593_v39, 4  ;;  %v4470_v60 = vrot.slane %v17617_v14, 1  ;;  %v17667_v6 = vld [vmem:[#allocation71_spill] sm:$0xff] }
0x174c   : > { %17665 = vst [vmem:[#allocation20_spill] sm:$0xff] %v15945_v28  ;;  %v4971_v2 = vmul.f32 %v4596_v61, %v4238_v45  ;;  %v6617_v21 = vperm.slane %v15845_v16, %v12378_v1  ;;  %v6625_v20 = vperm.slane %v15848_v29, %v12378_v1  ;;  %v6632_v0 = vrot.slane %v6589_v47, 4  ;;  %v17670_v16 = vld [vmem:[#allocation72_spill] sm:$0xff] }
0x174d   : > { %v17668_v45 = vpack.i.bf16 %v17666_v53, %v17667_v6  ;;  %v6613_v29 = vperm.slane %v15851_v36, %v12378_v1 }
0x174e   : > { %v6594_v63 = vrot.slane %v4971_v2, 4  ;;  %v6597_v10 = vsel %vm4990_vm7, %v4971_v2, %v6596_v32  ;;  %v17669_v32 = vld [vmem:[#allocation87_spill] sm:$0xff]  ;;  %v6664_v13 = vrot.slane %v6625_v20, 4 }
0x174f   : > { %v6605_v59 = vperm.slane %v6597_v10, %v12287_v50  ;;  %v17671_v2 = vpack.i.bf16 %v17669_v32, %v17670_v16  ;;  %v6668_v10 = vrot.slane %v6629_v24, 4 }
0x1750   : > { %v6595_v61 = vsel %vm4990_vm7, %v6594_v63, %v15831_v9  ;;  %v4599_v63 = vperm.slane %v4471_v34, 0  ;;  %v6660_v34 = vrot.slane %v6617_v21, 4 }
0x1751   : > { %v6601_v48 = vperm.slane %v6595_v61, %v12287_v50  ;;  %v6642_v17 = vrot.slane %v6605_v59, 4  ;;  %v6645_v42 = vsel %vm4990_vm7, %v6605_v59, %v6644_v33  ;;  %10857 = vrot.lane.b32.xlu1 %v17668_v45, %s11549_s20  ;;  %v4472_v61 = vrot.slane %v17617_v14, 3 }
0x1752   : > { %10837 = vrot.lane.b32.xlu2 %v17671_v2, %s11551_s23  ;;  %v6653_v9 = vperm.slane %v6645_v42, %v12378_v1 }
0x1753   : > { %v6630_v33 = vrot.slane %v6601_v48, 4  ;;  %v6633_v59 = vsel %vm4990_vm7, %v6601_v48, %v6632_v0  ;;  %v6643_v53 = vsel %vm4990_vm7, %v6642_v17, %v6593_v39  ;;  %v4277_v6 = vpop.permute.xlu2 %4276  ;;  %v4251_v42 = vpop.permute.xlu1 %4250  ;;  %v6656_v48 = vrot.slane %v6613_v29, 4 }
0x1754   : > { %v6649_v45 = vperm.slane %v6643_v53, %v12378_v1  ;;  %v15979_v49 = vmul.f32 %v4599_v63, %v4277_v6  ;;  %v15982_v32 = vsel %vm4990_vm7, %v6653_v9, %v6668_v10  ;;  %v6641_v16 = vperm.slane %v6633_v59, %v12378_v1 }
0x1755   : > { %v6631_v36 = vsel %vm4990_vm7, %v6630_v33, %v6589_v47  ;;  %v6666_v2 = vrot.slane %v6653_v9, 4  ;;  %v17672_v47 = vld [vmem:[#allocation21_spill] sm:$0xff] }
0x1756   : > { %v6670_v0 = vrot.slane %v15979_v49, 4  ;;  %v6637_v39 = vperm.slane %v6631_v36, %v12378_v1  ;;  %v6662_v17 = vrot.slane %v6649_v45, 4  ;;  %v15989_v53 = vsel %vm4990_vm7, %v6641_v16, %v6660_v34  ;;  %v17673_v36 = vld [vmem:[#allocation75_spill] sm:$0xff] }
0x1757   : > { %v15992_v10 = vsel %vm4990_vm7, %v6666_v2, %v6629_v24  ;;  %v6658_v6 = vrot.slane %v6641_v16, 4  ;;  %v15995_v44 = vsel %vm4990_vm7, %v6649_v45, %v6664_v13  ;;  %v4973_v33 = vmul.f32 %v4251_v42, %v17672_v47  ;;  %v17676_v24 = vld [vmem:[#allocation86_spill] sm:$0xff]  ;;  %v17677_v2 = vld [vmem:[#allocation69_spill] sm:$0xff] }
0x1758   : > { %v15999_v9 = vsel %vm4990_vm7, %v6637_v39, %v6656_v48  ;;  %v16002_v59 = vsel %vm4990_vm7, %v6662_v17, %v6625_v20  ;;  %v17675_v34 = vpack.i.bf16 %v17673_v36, %v17674_v15  ;;  %v17678_v16 = vpack.i.bf16 %v17676_v24, %v17677_v2  ;;  %v17680_v36 = vld [vmem:[#allocation54_spill] sm:$0xff]  ;;  %v17685_v2 = vld [vmem:[#allocation103_spill] sm:$0xff] }
0x1759   : > { %v6654_v13 = vrot.slane %v6637_v39, 4  ;;  %v16013_v45 = vsel %vm4990_vm7, %v6658_v6, %v6617_v21  ;;  %v4598_v42 = vperm.slane %v4470_v60, 0  ;;  %v4600_v48 = vperm.slane %v4472_v61, 0  ;;  %v17681_v61 = vld [vmem:[#allocation76_spill] sm:$0xff] }
0x175a   : > { %10872 = vrot.lane.b32.xlu1 %v17675_v34, %s11551_s23  ;;  %10852 = vrot.lane.b32.xlu2 %v17678_v16, %s11558_s17  ;;  %v6671_v28 = vsel %vm4990_vm7, %v6670_v0, %v4973_v33  ;;  %v17682_v0 = vld [vmem:[#allocation60_spill] sm:$0xff] }
0x175b   : > { %v4290_v20 = vpop.permute.xlu2 %4289  ;;  %v16017_v17 = vsel %vm4990_vm7, %v6654_v13, %v6613_v29  ;;  %v16020_v15 = vperm.slane %v6671_v28, %v12287_v50  ;;  %v4975_v34 = vmul.f32 %v4598_v42, %v17680_v36  ;;  %v17683_v6 = vpack.i.bf16 %v17681_v61, %v17682_v0  ;;  %v17684_v29 = vld [vmem:[#allocation112_spill] sm:$0xff]  ;;  %v17688_v61 = vld [vmem:[#allocation110_spill] sm:$0xff]  ;;  %v17689_v0 = vld [vmem:[#allocation101_spill] sm:$0xff] }
0x175c   : > { %17679 = vst [vmem:[#allocation80_spill] sm:$0xff] %v16017_v17  ;;  %v4979_v51 = vmul.f32 %v4600_v48, %v4290_v20  ;;  %v17686_v28 = vpack.i.bf16 %v17684_v29, %v17685_v2  ;;  %v17687_v20 = vld [vmem:[#allocation98_spill] sm:$0xff]  ;;  %v17691_v29 = vld [vmem:[#allocation115_spill] sm:$0xff]  ;;  %v17692_v2 = vld [vmem:[#allocation104_spill] sm:$0xff] }
0x175d   : > { %v6720_v21 = vrot.slane %v16020_v15, 4  ;;  %v16041_v36 = vmul.f32 %v4600_v48, %v17687_v20  ;;  %v6684_v37 = vrot.slane %v4975_v34, 4 }
0x175e   : > { %v6682_v24 = vrot.slane %v4979_v51, 4 }
0x1760   : > { %v6683_v39 = vsel %vm4990_vm7, %v6682_v24, %v4975_v34 }
0x1761   : > { %v16026_v60 = vperm.slane %v6683_v39, %v12287_v50  ;;  %v8474_v39 = vrot.slane %v16041_v36, 4 }
0x1762   : > { %10867 = vrot.lane.b32.xlu2 %v17683_v6, %s11556_s28  ;;  %10882 = vrot.lane.b32.xlu1 %v17686_v28, %s11556_s28  ;;  %v17690_v6 = vpack.i.bf16 %v17688_v61, %v17689_v0  ;;  %v17693_v28 = vpack.i.bf16 %v17691_v29, %v17692_v2  ;;  %v17697_v2 = vld [vmem:[#allocation111_spill] sm:$0xff] }
0x1763   : > { %v16038_v16 = vsel %vm4990_vm7, %v16026_v60, %v6720_v21  ;;  %v4270_v13 = vpop.permute.xlu1 %4269 }
0x1764   : > { %v16043_v24 = vmul.f32 %v4598_v42, %v4270_v13  ;;  %v16061_v13 = vmul.f32 %v15942_v25, %v17672_v47 }
0x1766   : > { %v8475_v21 = vsel %vm4990_vm7, %v8474_v39, %v16043_v24  ;;  %v17694_v39 = vld [vmem:[#allocation114_spill] sm:$0xff] }
0x1767   : > { %v8481_v42 = vperm.slane %v8475_v21, %v12287_v50 }
0x1769   : > { %v8510_v0 = vrot.slane %v8481_v42, 4 }
0x176a   : > { %10892 = vrot.lane.b32.xlu2 %v17690_v6, %s11555_s26  ;;  %10897 = vrot.lane.b32.xlu1 %v17693_v28, %s11550_s22  ;;  %v17698_v28 = vld [vmem:[#allocation100_spill] sm:$0xff] }
0x176b   : > { %v4283_v17 = vpop.permute.xlu1 %4282  ;;  %v16066_v6 = vpop.permute.xlu2 %4308  ;;  %v17699_v25 = vpack.i.bf16 %v17697_v2, %v17698_v28  ;;  %v17703_v2 = vld [vmem:[#allocation119_spill] sm:$0xff] }
0x176c   : > { %v16056_v48 = vmul.f32 %v4599_v63, %v4283_v17  ;;  %v17695_v63 = vld [vmem:[#allocation105_spill] sm:$0xff] }
0x176d   : > { %v17696_v17 = vpack.i.bf16 %v17694_v39, %v17695_v63  ;;  %v17700_v39 = vld [vmem:[#allocation121_spill] sm:$0xff]  ;;  %v17701_v63 = vld [vmem:[#allocation92_spill] sm:$0xff] }
0x176e   : > { %v8462_v20 = vrot.slane %v16056_v48, 4 }
0x1770   : > { %v8463_v61 = vsel %vm4990_vm7, %v8462_v20, %v16061_v13  ;;  %v4475_v20 = vrot.slane %v17617_v14, 6 }
0x1771   : > { %v8469_v29 = vperm.slane %v8463_v61, %v12287_v50  ;;  %v4473_v61 = vrot.slane %v17617_v14, 4 }
0x1772   : > { %10907 = vrot.lane.b32.xlu2 %v17696_v17, %s11549_s20  ;;  %10912 = vrot.lane.b32.xlu1 %v17699_v25, %s11557_s0  ;;  %v16085_v8 = vperm.slane %v4475_v20, 0  ;;  %v17702_v17 = vpack.i.bf16 %v17700_v39, %v17701_v63  ;;  %v6685_v25 = vsel %vm4990_vm7, %v4979_v51, %v6684_v37  ;;  %v17706_v20 = vld [vmem:[#allocation108_spill] sm:$0xff]  ;;  %v4476_v37 = vrot.slane %v17617_v14, 7 }
0x1773   : > { %v16078_v47 = vsel %vm4990_vm7, %v8510_v0, %v8469_v29  ;;  %v8512_v21 = vrot.slane %v8469_v29, 4  ;;  %v17704_v0 = vld [vmem:[#allocation90_spill] sm:$0xff]  ;;  %v6672_v29 = vrot.slane %v4973_v33, 4  ;;  %v6693_v39 = vperm.slane %v6685_v25, %v12287_v50 }
0x1774   : > { %v17705_v28 = vpack.i.bf16 %v17703_v2, %v17704_v0  ;;  %v4985_v46 = vmul.f32 %v16085_v8, %v17706_v20  ;;  %v17707_v0 = vld [vmem:[#allocation157_spill] sm:$0xff]  ;;  %v17711_v25 = vld [vmem:[#allocation146_spill] sm:$0xff]  ;;  %v16121_v26 = vperm.slane %v4476_v37, 0 }
0x1775   : > { %v16082_v40 = vsel %vm4990_vm7, %v8481_v42, %v8512_v21  ;;  %v16096_v42 = vperm.slane %v4473_v61, 0  ;;  %v16098_v21 = vpop.permute.xlu2 %4321  ;;  %v6673_v63 = vsel %vm4990_vm7, %v15979_v49, %v6672_v29  ;;  %v6730_v2 = vrot.slane %v6693_v39, 4 }
0x1776   : > { %v6694_v51 = vrot.slane %v4985_v46, 4  ;;  %v6681_v61 = vperm.slane %v6673_v63, %v12287_v50  ;;  %v6718_v63 = vrot.slane %v16026_v60, 4 }
0x1778   : > { %v6719_v60 = vsel %vm4990_vm7, %v6718_v63, %v16020_v15  ;;  %v17714_v15 = vld [vmem:[#allocation144_spill] sm:$0xff] }
0x177a   : > { %10922 = vrot.lane.b32.xlu2 %v17702_v17, %s11551_s23  ;;  %10927 = vrot.lane.b32.xlu1 %v17705_v28, %s11555_s26  ;;  %v4474_v17 = vrot.slane %v17617_v14, 5  ;;  %v17708_v28 = vld [vmem:[#allocation145_spill] sm:$0xff] }
0x177b   : > { %v4303_v34 = vpop.permute.xlu1 %4302  ;;  %v17709_v20 = vpack.i.bf16 %v17707_v0, %v17708_v28 }
0x177c   : > { %v4981_v11 = vmul.f32 %v16096_v42, %v4303_v34  ;;  %v17710_v34 = vld [vmem:[#allocation158_spill] sm:$0xff]  ;;  %v16117_v49 = vperm.slane %v4474_v17, 0 }
0x177d   : > { %v17712_v38 = vpack.i.bf16 %v17710_v34, %v17711_v25  ;;  %v6731_v34 = vsel %vm4990_vm7, %v6730_v2, %v6681_v61 }
0x177e   : > { %v6696_v33 = vrot.slane %v4981_v11, 4  ;;  %v6695_v29 = vsel %vm4990_vm7, %v6694_v51, %v4981_v11  ;;  %v8476_v11 = vrot.slane %v16043_v24, 4 }
0x1780   : > { %v6697_v14 = vsel %vm4990_vm7, %v4985_v46, %v6696_v33 }
0x1781   : > { %v6705_v17 = vperm.slane %v6697_v14, %v12287_v50  ;;  %v17713_v14 = vld [vmem:[#allocation156_spill] sm:$0xff] }
0x1782   : > { %10937 = vrot.lane.b32.xlu1 %v17709_v20, %s11551_s23  ;;  %10932 = vrot.lane.b32.xlu2 %v17712_v38, %s11556_s28  ;;  %v6732_v20 = vrot.slane %v6681_v61, 4  ;;  %v6701_v38 = vperm.slane %v6695_v29, %v12287_v50  ;;  %v6737_v61 = vperm.slane %v6731_v34, %v12378_v1  ;;  %v17715_v63 = vpack.i.bf16 %v17713_v14, %v17714_v15 }
0x1783   : > { %v4342_v35 = vpop.permute.xlu2 %4341  ;;  %v4316_v22 = vpop.permute.xlu1 %4315  ;;  %v6756_v25 = vrot.slane %v6705_v17, 4  ;;  %v8477_v34 = vsel %vm4990_vm7, %v16041_v36, %v8476_v11 }
0x1784   : > { %v4987_v0 = vmul.f32 %v16121_v26, %v4342_v35  ;;  %v4983_v28 = vmul.f32 %v16117_v49, %v4316_v22  ;;  %v6733_v37 = vsel %vm4990_vm7, %v6693_v39, %v6732_v20  ;;  %v6729_v35 = vperm.slane %v16038_v16, %v12378_v1  ;;  %v17716_v39 = vld [vmem:[#allocation159_spill] sm:$0xff] }
0x1785   : > { %v6744_v2 = vrot.slane %v6701_v38, 4  ;;  %v17717_v16 = vld [vmem:[#allocation147_spill] sm:$0xff] }
0x1786   : > { %v6706_v46 = vrot.slane %v4987_v0, 4  ;;  %v6708_v33 = vrot.slane %v4983_v28, 4  ;;  %v17718_v20 = vpack.i.bf16 %v17716_v39, %v17717_v16  ;;  %v6772_v11 = vrot.slane %v6729_v35, 4 }
0x1788   : > { %v6707_v22 = vsel %vm4990_vm7, %v6706_v46, %v4983_v28  ;;  %v6709_v51 = vsel %vm4990_vm7, %v4987_v0, %v6708_v33  ;;  %v8464_v0 = vrot.slane %v16061_v13, 4  ;;  %v16150_v28 = vperm.slane %v6733_v37, %v12378_v1 }
0x1789   : > { %v6713_v24 = vperm.slane %v6707_v22, %v12287_v50  ;;  %v6717_v29 = vperm.slane %v6709_v51, %v12287_v50  ;;  %v6725_v46 = vperm.slane %v6719_v60, %v12378_v1  ;;  %v6776_v60 = vrot.slane %v6737_v61, 4 }
0x178a   : > { %10952 = vrot.lane.b32.xlu1 %v17715_v63, %s11558_s17  ;;  %10947 = vrot.lane.b32.xlu2 %v17718_v20, %s11550_s22 }
0x178b   : > { %v6742_v33 = vrot.slane %v6713_v24, 4  ;;  %v6745_v22 = vsel %vm4990_vm7, %v6713_v24, %v6744_v2  ;;  %v6754_v51 = vrot.slane %v6717_v29, 4  ;;  %v6757_v14 = vsel %vm4990_vm7, %v6717_v29, %v6756_v25  ;;  %v10783_v15 = vpop.permute.xlu2 %10782  ;;  %v17719_v24 = vld [vmem:[#allocation50_spill] sm:$0xff] }
0x178c   : > { %v6753_v63 = vperm.slane %v6745_v22, %v12378_v1  ;;  %v10785_v39 = vunpack.i.h.bf16 %v10783_v15  ;;  %v10784_v16 = vunpack.i.l.bf16 %v10783_v15  ;;  %v16159_v13 = vperm.slane %v6757_v14, %v12378_v1  ;;  %v17720_v29 = vld [vmem:[#allocation34_spill] sm:$0xff] }
0x178d   : > { %v6743_v37 = vsel %vm4990_vm7, %v6742_v33, %v6701_v38  ;;  %v6755_v36 = vsel %vm4990_vm7, %v6754_v51, %v6705_v17  ;;  %v8465_v2 = vsel %vm4990_vm7, %v16056_v48, %v8464_v0  ;;  %v6768_v22 = vrot.slane %v6725_v46, 4  ;;  %v17732_v0 = vld [vmem:[#allocation132_spill] sm:$0xff] }
0x178e   : > { %v16167_v25 = vsel %vm823_vm1, %v17719_v24, %v10785_v39  ;;  %v16171_v20 = vsel %vm823_vm1, %v17720_v29, %v10784_v16  ;;  %v8485_v14 = vperm.slane %v8477_v34, %v12287_v50  ;;  %v6749_v38 = vperm.slane %v6743_v37, %v12378_v1  ;;  %v17721_v34 = vld [vmem:[#allocation155_spill] sm:$0xff]  ;;  %v17722_v16 = vld [vmem:[#allocation142_spill] sm:$0xff] }
0x178f   : > { %v6761_v17 = vperm.slane %v6755_v36, %v12378_v1  ;;  %v16177_v33 = vsel %vm4990_vm7, %v6753_v63, %v6772_v11  ;;  %v4982_v48 = vmul.f32 %v16096_v42, %v16066_v6  ;;  %v6778_v51 = vrot.slane %v16159_v13, 4  ;;  %v17724_v36 = vld [vmem:[#allocation162_spill] sm:$0xff] }
0x1790   : > { %v6770_v15 = vrot.slane %v6753_v63, 4  ;;  %v8473_v39 = vperm.slane %v8465_v2, %v12287_v50  ;;  %v17723_v37 = vpack.i.bf16 %v17721_v34, %v17722_v16  ;;  %v17725_v11 = vld [vmem:[#allocation134_spill] sm:$0xff]  ;;  %v6769_v6 = vsel %vm4990_vm7, %v6749_v38, %v6768_v22 }
0x1791   : > { %v17726_v24 = vpack.i.bf16 %v17724_v36, %v17725_v11  ;;  %v6766_v42 = vrot.slane %v6749_v38, 4  ;;  %v16195_v29 = vsel %vm4990_vm7, %v6761_v17, %v6776_v60  ;;  %v11211_v63 = vpack.i.bf16 %v6769_v6, %v15999_v9  ;;  %v17731_v9 = vld [vmem:[#allocation166_spill] sm:$0xff] }
0x1792   : > { %10962 = vrot.lane.b32.xlu2 %v17723_v37, %s11557_s0  ;;  %v16200_v2 = vsel %vm4990_vm7, %v6778_v51, %v16150_v28  ;;  %v16203_v34 = vsel %vm4990_vm7, %v6770_v15, %v6729_v35  ;;  %v6774_v22 = vrot.slane %v6761_v17, 4  ;;  %v8524_v35 = vrot.slane %v8473_v39, 4 }
0x1793   : > { %10967 = vrot.lane.b32.xlu1 %v17726_v24, %s11556_s28  ;;  %v4335_v37 = vpop.permute.xlu1 %4334  ;;  %v16207_v36 = vpop.permute.xlu2 %10797  ;;  %v16210_v38 = vsel %vm4990_vm7, %v6766_v42, %v6725_v46  ;;  %11212 = vrot.lane.b32.xlu0 %v11211_v63, %s11556_s28  ;;  %v8522_v15 = vrot.slane %v8485_v14, 4  ;;  %v8488_v11 = vrot.slane %v4982_v48, 4  ;;  %v4984_v46 = vmul.f32 %v16117_v49, %v16098_v21  ;;  %v17729_v63 = vld [vmem:[#allocation131_spill] sm:$0xff] }
0x1794   : > { %17727 = vst [vmem:[#allocation46_spill] sm:$0xff] %v16210_v38  ;;  %v4986_v51 = vmul.f32 %v16085_v8, %v4335_v37  ;;  %v6775_v6 = vsel %vm4990_vm7, %v6774_v22, %v6737_v61  ;;  %v8525_v60 = vsel %vm4990_vm7, %v8485_v14, %v8524_v35  ;;  %v17728_v8 = vld [vmem:[#allocation165_spill] sm:$0xff]  ;;  %v17733_v61 = vpack.i.bf16 %v17731_v9, %v17732_v0 }
0x1795   : > { %v8523_v17 = vsel %vm4990_vm7, %v8522_v15, %v8473_v39  ;;  %v17730_v37 = vpack.i.bf16 %v17728_v8, %v17729_v63  ;;  %v11226_v39 = vpack.i.bf16 %v6775_v6, %v16002_v59  ;;  %v16242_v14 = vperm.slane %v16078_v47, %v12378_v1  ;;  %v17734_v59 = vld [vmem:[#allocation97_spill] sm:$0xff]  ;;  %v17737_v6 = vld [vmem:[#allocation135_spill] sm:$0xff] }
0x1796   : > { %v8486_v24 = vrot.slane %v4986_v51, 4  ;;  %v8489_v16 = vsel %vm4990_vm7, %v4986_v51, %v8488_v11  ;;  %v16235_v21 = vperm.slane %v8523_v17, %v12378_v1  ;;  %v8533_v51 = vperm.slane %v8525_v60, %v12378_v1 }
0x1797   : > { %v8497_v49 = vperm.slane %v8489_v16, %v12287_v50  ;;  %v8500_v35 = vrot.slane %v4984_v46, 4  ;;  %v10795_v9 = vunpack.i.h.bf16 %v17734_v59  ;;  %v10794_v15 = vunpack.i.l.bf16 %v17734_v59  ;;  %v17736_v59 = vld [vmem:[#allocation163_spill] sm:$0xff] }
0x1798   : > { %v8487_v42 = vsel %vm4990_vm7, %v8486_v24, %v4982_v48  ;;  %v6780_v11 = vrot.slane %v16150_v28, 4  ;;  %v17735_v24 = vld [vmem:[#allocation102_spill] sm:$0xff]  ;;  %v8521_v60 = vperm.slane %v16082_v40, %v12378_v1  ;;  %v8568_v28 = vrot.slane %v16235_v21, 4 }
0x1799   : > { %v8493_v16 = vperm.slane %v8487_v42, %v12287_v50  ;;  %v8548_v8 = vrot.slane %v8497_v49, 4 }
0x179a   : > { %10977 = vrot.lane.b32.xlu2 %v17730_v37, %s11555_s26  ;;  %v6781_v37 = vsel %vm4990_vm7, %v16159_v13, %v6780_v11  ;;  %v17739_v13 = vld [vmem:[#allocation139_spill] sm:$0xff]  ;;  %v8564_v38 = vrot.slane %v8521_v60, 4 }
0x179b   : > { %10992 = vrot.lane.b32.xlu1 %v17733_v61, %s11549_s20  ;;  %v4348_v48 = vpop.permute.xlu1 %4347  ;;  %v16238_v22 = vpop.permute.xlu2 %10812  ;;  %11227 = vrot.lane.b32.xlu0 %v11226_v39, %s11550_s22  ;;  %v8572_v61 = vrot.slane %v8533_v51, 4  ;;  %v8560_v39 = vrot.slane %v16242_v14, 4  ;;  %v17740_v11 = vld [vmem:[#allocation83_spill] sm:$0xff] }
0x179c   : > { %v4988_v0 = vmul.f32 %v16121_v26, %v4348_v48  ;;  %v8536_v48 = vrot.slane %v8493_v16, 4  ;;  %v11241_v26 = vpack.i.bf16 %v6781_v37, %v15982_v32 }
0x179e   : > { %v8498_v17 = vrot.slane %v4988_v0, 4  ;;  %v8501_v47 = vsel %vm4990_vm7, %v4988_v0, %v8500_v35 }
0x179f   : > { %v8509_v63 = vperm.slane %v8501_v47, %v12287_v50  ;;  %v17738_v47 = vpack.i.bf16 %v17736_v59, %v17737_v6  ;;  %v10799_v59 = vunpack.i.l.bf16 %v16207_v36 }
0x17a0   : > { %v8499_v42 = vsel %vm4990_vm7, %v8498_v17, %v4984_v46  ;;  %v17741_v46 = vpack.i.bf16 %v17739_v13, %v17740_v11 }
0x17a1   : > { %v8505_v35 = vperm.slane %v8499_v42, %v12287_v50  ;;  %v8546_v0 = vrot.slane %v8509_v63, 4  ;;  %v8549_v40 = vsel %vm4990_vm7, %v8509_v63, %v8548_v8  ;;  %v10800_v50 = vunpack.i.h.bf16 %v16207_v36 }
0x17a2   : > { %10982 = vrot.lane.b32.xlu2 %v17738_v47, %s11550_s22  ;;  %v8557_v17 = vperm.slane %v8549_v40, %v12378_v1 }
0x17a3   : > { %11012 = vrot.lane.b32.xlu1 %v17741_v46, %s11555_s26  ;;  %v8537_v8 = vsel %vm4990_vm7, %v8505_v35, %v8536_v48  ;;  %v8547_v63 = vsel %vm4990_vm7, %v8546_v0, %v8497_v49  ;;  %v10788_v42 = vpop.permute.xlu1 %10787  ;;  %11242 = vrot.lane.b32.xlu0 %v11241_v26, %s11557_s0  ;;  %v8534_v32 = vrot.slane %v8505_v35, 4 }
0x17a4   : > { %v16277_v6 = vpop.permute.xlu2 %10827  ;;  %v8545_v47 = vperm.slane %v8537_v8, %v12378_v1  ;;  %v10790_v13 = vunpack.i.h.bf16 %v10788_v42  ;;  %v10789_v40 = vunpack.i.l.bf16 %v10788_v42  ;;  %v8553_v37 = vperm.slane %v8547_v63, %v12378_v1  ;;  %v17743_v63 = vld [vmem:[#allocation130_spill] sm:$0xff] }
0x17a5   : > { %v8573_v11 = vsel %vm4990_vm7, %v8557_v17, %v8572_v61  ;;  %v8570_v48 = vrot.slane %v8557_v17, 4 }
0x17a6   : > { %v9486_v49 = vsel %vm800_vm0, %v16171_v20, %v10789_v40  ;;  %v9487_v0 = vsel %vm800_vm0, %v16167_v25, %v10790_v13  ;;  %v11276_v36 = vpack.i.bf16 %v8573_v11, %v15912_v41  ;;  %v8562_v46 = vrot.slane %v8545_v47, 4  ;;  %v17742_v41 = vld [vmem:[#allocation164_spill] sm:$0xff] }
0x17a7   : > { %v9503_v8 = vsel %vm9502_vm8, %v9486_v49, %v10794_v15  ;;  %v9504_v42 = vsel %vm9502_vm8, %v9487_v0, %v10795_v9  ;;  %v8569_v26 = vsel %vm4990_vm7, %v8553_v37, %v8568_v28  ;;  %v16293_v35 = vsel %vm4990_vm7, %v8545_v47, %v8564_v38  ;;  %v17745_v9 = vld [vmem:[#allocation138_spill] sm:$0xff]  ;;  %v17746_v28 = vld [vmem:[#allocation65_spill] sm:$0xff]  ;;  %v17808_v40 = vld [vmem:[#allocation116_spill] sm:$0xff] }
0x17a8   : > { %v9520_v61 = vsel %vm9519_vm2, %v9503_v8, %v10799_v59  ;;  %v9521_v17 = vsel %vm9519_vm2, %v9504_v42, %v10800_v50  ;;  %v11266_v20 = vpack.i.bf16 %v8569_v26, %v15917_v55  ;;  %v16299_v25 = vsel %vm4990_vm7, %v8562_v46, %v8521_v60  ;;  %v17748_v50 = vld [vmem:[#allocation41_spill] sm:$0xff] }
0x17a9   : > { %v17744_v15 = vpack.i.bf16 %v17742_v41, %v17743_v63  ;;  %v17747_v13 = vpack.i.bf16 %v17745_v9, %v17746_v28  ;;  %v16314_v55 = vsel %vm4990_vm7, %v8570_v48, %v8533_v51  ;;  %v8566_v60 = vrot.slane %v8553_v37, 4 }
0x17aa   : > { %v10815_v47 = vunpack.i.h.bf16 %v16238_v22  ;;  %v8535_v11 = vsel %vm4990_vm7, %v8534_v32, %v8493_v16  ;;  %v10814_v49 = vunpack.i.l.bf16 %v16238_v22  ;;  %v17751_v28 = vunpack.i.l.bf16 %v17735_v24 }
0x17ab   : > { %10997 = vrot.lane.b32.xlu2 %v17744_v15, %s11557_s0  ;;  %11027 = vrot.lane.b32.xlu1 %v17747_v13, %s11549_s20  ;;  %v10803_v0 = vpop.permute.xlu1 %10802  ;;  %v8541_v8 = vperm.slane %v8535_v11, %v12378_v1  ;;  %v16324_v51 = vsel %vm4990_vm7, %v8566_v60, %v16235_v21  ;;  %v17749_v21 = vld [vmem:[#allocation137_spill] sm:$0xff]  ;;  %v17750_v15 = vld [vmem:[#allocation143_spill] sm:$0xff] }
0x17ac   : > { %v10838_v46 = vpop.permute.xlu2 %10837  ;;  %v10805_v37 = vunpack.i.h.bf16 %v10803_v0  ;;  %v10804_v48 = vunpack.i.l.bf16 %v10803_v0  ;;  %11267 = vrot.lane.b32.xlu0 %v11266_v20, %s11558_s17  ;;  %v17753_v0 = vld [vmem:[#allocation127_spill] sm:$0xff]  ;;  %v17805_v20 = vld [vmem:[#allocation141_spill] sm:$0xff] }
0x17ad   : > { %v10840_v42 = vunpack.i.h.bf16 %v10838_v46  ;;  %v10839_v26 = vunpack.i.l.bf16 %v10838_v46  ;;  %v16328_v41 = vsel %vm4990_vm7, %v8541_v8, %v8560_v39  ;;  %v8558_v16 = vrot.slane %v8541_v8, 4  ;;  %v17754_v46 = vld [vmem:[#allocation31_spill] sm:$0xff] }
0x17ae   : > { %v9537_v1 = vsel %vm9536_vm3, %v9520_v61, %v10804_v48  ;;  %v9538_v32 = vsel %vm9536_vm3, %v9521_v17, %v10805_v37  ;;  %v17752_v61 = vunpack.i.h.bf16 %v17735_v24  ;;  %v17755_v8 = vpack.i.bf16 %v17753_v0, %v17754_v46  ;;  %v17757_v37 = vld [vmem:[#allocation63_spill] sm:$0xff] }
0x17af   : > { %v9488_v63 = vsel %vm800_vm0, %v17749_v21, %v10839_v26  ;;  %v9489_v9 = vsel %vm800_vm0, %v17750_v15, %v10840_v42  ;;  %v16342_v39 = vsel %vm4990_vm7, %v8558_v16, %v16242_v14  ;;  %v9554_v13 = vsel %vm9553_vm4, %v9537_v1, %v17751_v28  ;;  %v17756_v14 = vld [vmem:[#allocation99_spill] sm:$0xff]  ;;  %v17760_v28 = vld [vmem:[#allocation52_spill] sm:$0xff] }
0x17b0   : > { %v9555_v17 = vsel %vm9553_vm4, %v9538_v32, %v17752_v61  ;;  %v16351_v60 = vsel %vm9570_vm5, %v9554_v13, %v10814_v49  ;;  %v17758_v48 = vpack.i.bf16 %v17756_v14, %v17757_v37  ;;  %v10830_v21 = vunpack.i.h.bf16 %v16277_v6  ;;  %v17761_v61 = vld [vmem:[#allocation27_spill] sm:$0xff]  ;;  %v17763_v14 = vld [vmem:[#allocation133_spill] sm:$0xff]  ;;  %v17764_v37 = vld [vmem:[#allocation66_spill] sm:$0xff] }
0x17b1   : > { %v16354_v11 = vsel %vm9570_vm5, %v9555_v17, %v10815_v47  ;;  %v17759_v47 = vld [vmem:[#allocation113_spill] sm:$0xff]  ;;  %v10829_v15 = vunpack.i.l.bf16 %v16277_v6  ;;  %v17765_v6 = vpack.i.bf16 %v17763_v14, %v17764_v37 }
0x17b2   : > { %v10825_v1 = vunpack.i.h.bf16 %v17759_v47  ;;  %v10824_v32 = vunpack.i.l.bf16 %v17759_v47 }
0x17b3   : > { %11007 = vrot.lane.b32.xlu2 %v17755_v8, %s11551_s23  ;;  %11042 = vrot.lane.b32.xlu1 %v17758_v48, %s11551_s23  ;;  %v10818_v42 = vpop.permute.xlu1 %10817  ;;  %v17766_v48 = vld [vmem:[#allocation118_spill] sm:$0xff] }
0x17b4   : > { %v10853_v26 = vpop.permute.xlu2 %10852  ;;  %v10820_v49 = vunpack.i.h.bf16 %v10818_v42  ;;  %v10819_v16 = vunpack.i.l.bf16 %v10818_v42  ;;  %11277 = vrot.lane.b32.xlu0 %v11276_v36, %s11557_s0  ;;  %v17767_v42 = vld [vmem:[#allocation82_spill] sm:$0xff] }
0x17b5   : > { %v10855_v14 = vunpack.i.h.bf16 %v10853_v26  ;;  %v10854_v37 = vunpack.i.l.bf16 %v10853_v26  ;;  %v17775_v26 = vld [vmem:[#allocation126_spill] sm:$0xff] }
0x17b6   : > { %v9588_v13 = vsel %vm823_vm1, %v17760_v28, %v10820_v49  ;;  %v9587_v17 = vsel %vm823_vm1, %v17761_v61, %v10819_v16  ;;  %v17768_v49 = vpack.i.bf16 %v17766_v48, %v17767_v42  ;;  %v17773_v42 = vld [vmem:[#allocation79_spill] sm:$0xff] }
0x17b7   : > { %v9603_v0 = vsel %vm800_vm0, %v9587_v17, %v10824_v32  ;;  %v9604_v46 = vsel %vm800_vm0, %v9588_v13, %v10825_v1  ;;  %v17769_v13 = vld [vmem:[#allocation124_spill] sm:$0xff] }
0x17b8   : > { %v16378_v36 = vsel %vm9502_vm8, %v9603_v0, %v10829_v15  ;;  %v16381_v8 = vsel %vm9502_vm8, %v9604_v46, %v10830_v21  ;;  %v17770_v21 = vld [vmem:[#allocation96_spill] sm:$0xff] }
0x17b9   : > { %17762 = vst [vmem:[#allocation44_spill] sm:$0xff] %v16381_v8  ;;  %v17771_v61 = vpack.i.bf16 %v17769_v13, %v17770_v21  ;;  %v17772_v17 = vld [vmem:[#allocation140_spill] sm:$0xff]  ;;  %v17819_v8 = vld [vmem:[#allocation173_spill] sm:$0xff] }
0x17ba   : > { %v10850_v0 = vunpack.i.h.bf16 %v17772_v17  ;;  %v10849_v46 = vunpack.i.l.bf16 %v17772_v17  ;;  %v17776_v17 = vld [vmem:[#allocation81_spill] sm:$0xff] }
0x17bb   : > { %11022 = vrot.lane.b32.xlu2 %v17765_v6, %s11558_s17  ;;  %11047 = vrot.lane.b32.xlu1 %v17768_v49, %s11550_s22  ;;  %v10843_v16 = vpop.permute.xlu1 %10842 }
0x17bc   : > { %v10868_v47 = vpop.permute.xlu2 %10867  ;;  %v10845_v32 = vunpack.i.h.bf16 %v10843_v16  ;;  %v10844_v1 = vunpack.i.l.bf16 %v10843_v16  ;;  %11282 = vrot.lane.b32.xlu0 %v17771_v61, %s11550_s22  ;;  %v17774_v16 = vld [vmem:[#allocation62_spill] sm:$0xff] }
0x17bd   : > { %v10870_v28 = vunpack.i.h.bf16 %v10868_v47  ;;  %v10869_v15 = vunpack.i.l.bf16 %v10868_v47 }
0x17be   : > { %v9505_v6 = vsel %vm9502_vm8, %v9488_v63, %v10844_v1  ;;  %v9506_v48 = vsel %vm9502_vm8, %v9489_v9, %v10845_v32  ;;  %v17777_v63 = vpack.i.bf16 %v17775_v26, %v17776_v17  ;;  %v17778_v9 = vld [vmem:[#allocation122_spill] sm:$0xff]  ;;  %v17779_v32 = vld [vmem:[#allocation11_spill] sm:$0xff] }
0x17bf   : > { %v9590_v49 = vsel %vm823_vm1, %v17773_v42, %v10870_v28  ;;  %v9589_v47 = vsel %vm823_vm1, %v17774_v16, %v10869_v15  ;;  %v9522_v24 = vsel %vm9519_vm2, %v9505_v6, %v10849_v46  ;;  %v9523_v13 = vsel %vm9519_vm2, %v9506_v48, %v10850_v0  ;;  %v17781_v0 = vld [vmem:[#allocation117_spill] sm:$0xff]  ;;  %v17782_v6 = vld [vmem:[#allocation91_spill] sm:$0xff] }
0x17c0   : > { %v9539_v21 = vsel %vm9536_vm3, %v9522_v24, %v10854_v37  ;;  %v9540_v61 = vsel %vm9536_vm3, %v9523_v13, %v10855_v14  ;;  %v17780_v1 = vpack.i.bf16 %v17778_v9, %v17779_v32  ;;  %v17783_v24 = vpack.i.bf16 %v17781_v0, %v17782_v6  ;;  %v17784_v14 = vld [vmem:[#allocation128_spill] sm:$0xff]  ;;  %v17789_v0 = vld [vmem:[#allocation150_spill] sm:$0xff] }
0x17c1   : > { %v10865_v37 = vunpack.i.h.bf16 %v17784_v14  ;;  %v10864_v48 = vunpack.i.l.bf16 %v17784_v14  ;;  %v17785_v9 = vld [vmem:[#allocation12_spill] sm:$0xff]  ;;  %v17792_v14 = vld [vmem:[#allocation57_spill] sm:$0xff] }
0x17c2   : > { %v17786_v32 = vld [vmem:[#allocation56_spill] sm:$0xff] }
0x17c3   : > { %11062 = vrot.lane.b32.xlu1 %v17777_v63, %s11557_s0  ;;  %11037 = vrot.lane.b32.xlu2 %v17780_v1, %s11556_s28  ;;  %v10858_v28 = vpop.permute.xlu1 %10857  ;;  %v17787_v1 = vpack.i.bf16 %v17785_v9, %v17786_v32  ;;  %v17804_v63 = vld [vmem:[#allocation29_spill] sm:$0xff] }
0x17c4   : > { %v10893_v15 = vpop.permute.xlu2 %10892  ;;  %v10860_v42 = vunpack.i.h.bf16 %v10858_v28  ;;  %v10859_v46 = vunpack.i.l.bf16 %v10858_v28  ;;  %11297 = vrot.lane.b32.xlu0 %v17783_v24, %s11557_s0  ;;  %v17788_v28 = vld [vmem:[#allocation179_spill] sm:$0xff]  ;;  %v17791_v24 = vld [vmem:[#allocation74_spill] sm:$0xff]  ;;  %v10890_v22 = vunpack.i.h.bf16 %v17804_v63 }
0x17c6   : > { %v9556_v16 = vsel %vm9553_vm4, %v9539_v21, %v10859_v46  ;;  %v9557_v13 = vsel %vm9553_vm4, %v9540_v61, %v10860_v42  ;;  %v17790_v21 = vpack.i.bf16 %v17788_v28, %v17789_v0  ;;  %v17795_v0 = vld [vmem:[#allocation178_spill] sm:$0xff] }
0x17c7   : > { %v16424_v26 = vsel %vm9570_vm5, %v9556_v16, %v10864_v48  ;;  %v16427_v17 = vsel %vm9570_vm5, %v9557_v13, %v10865_v37  ;;  %v17793_v37 = vpack.i.bf16 %v17791_v24, %v17792_v14  ;;  %v17794_v48 = vld [vmem:[#allocation129_spill] sm:$0xff]  ;;  %v17798_v24 = vld [vmem:[#allocation180_spill] sm:$0xff] }
0x17c8   : > { %v10880_v16 = vunpack.i.h.bf16 %v17794_v48  ;;  %v10879_v13 = vunpack.i.l.bf16 %v17794_v48  ;;  %v17799_v14 = vld [vmem:[#allocation152_spill] sm:$0xff] }
0x17cb   : > { %11052 = vrot.lane.b32.xlu2 %v17787_v1, %s11558_s17  ;;  %11067 = vrot.lane.b32.xlu1 %v17790_v21, %s11556_s28  ;;  %v17796_v21 = vld [vmem:[#allocation88_spill] sm:$0xff] }
0x17cc   : > { %v10873_v61 = vpop.permute.xlu1 %10872  ;;  %v10908_v42 = vpop.permute.xlu2 %10907  ;;  %11312 = vrot.lane.b32.xlu0 %v17793_v37, %s11549_s20  ;;  %v17800_v37 = vpack.i.bf16 %v17798_v24, %v17799_v14  ;;  %v17806_v14 = vld [vmem:[#allocation15_spill] sm:$0xff] }
0x17cd   : > { %v10875_v46 = vunpack.i.h.bf16 %v10873_v61  ;;  %v10874_v6 = vunpack.i.l.bf16 %v10873_v61  ;;  %v17797_v61 = vpack.i.bf16 %v17795_v0, %v17796_v21  ;;  %v10889_v0 = vunpack.i.l.bf16 %v17804_v63 }
0x17ce   : > { %v10895_v21 = vunpack.i.h.bf16 %v10893_v15 }
0x17cf   : > { %v9605_v9 = vsel %vm800_vm0, %v9589_v47, %v10874_v6  ;;  %v9606_v32 = vsel %vm800_vm0, %v9590_v49, %v10875_v46 }
0x17d0   : > { %v16448_v1 = vsel %vm9502_vm8, %v9605_v9, %v10879_v13  ;;  %v16451_v28 = vsel %vm9502_vm8, %v9606_v32, %v10880_v16  ;;  %v17801_v9 = vld [vmem:[#allocation39_spill] sm:$0xff]  ;;  %v17802_v16 = vld [vmem:[#allocation25_spill] sm:$0xff] }
0x17d1   : > { %v17803_v32 = vpack.i.bf16 %v17801_v9, %v17802_v16 }
0x17d3   : > { %11077 = vrot.lane.b32.xlu2 %v17797_v61, %s11555_s26  ;;  %11082 = vrot.lane.b32.xlu1 %v17800_v37, %s11550_s22  ;;  %v10894_v61 = vunpack.i.l.bf16 %v10893_v15 }
0x17d4   : > { %v10923_v48 = vpop.permute.xlu2 %10922  ;;  %v10883_v47 = vpop.permute.xlu1 %10882  ;;  %11327 = vrot.lane.b32.xlu0 %v17803_v32, %s11558_s17  ;;  %v17809_v32 = vld [vmem:[#allocation181_spill] sm:$0xff] }
0x17d5   : > { %v10925_v6 = vunpack.i.h.bf16 %v10923_v48  ;;  %v10924_v49 = vunpack.i.l.bf16 %v10923_v48  ;;  %v10885_v46 = vunpack.i.h.bf16 %v10883_v47  ;;  %v10884_v13 = vunpack.i.l.bf16 %v10883_v47  ;;  %v17807_v48 = vld [vmem:[#allocation106_spill] sm:$0xff] }
0x17d7   : > { %v9607_v24 = vsel %vm800_vm0, %v17805_v20, %v10924_v49  ;;  %v9608_v37 = vsel %vm800_vm0, %v17806_v14, %v10925_v6  ;;  %v9474_v47 = vsel %vm823_vm1, %v17807_v48, %v10884_v13  ;;  %v9475_v59 = vsel %vm823_vm1, %v17808_v40, %v10885_v46  ;;  %v17810_v20 = vld [vmem:[#allocation151_spill] sm:$0xff]  ;;  %v17812_v6 = vld [vmem:[#allocation177_spill] sm:$0xff]  ;;  %v17813_v14 = vld [vmem:[#allocation70_spill] sm:$0xff] }
0x17d8   : > { %v9490_v9 = vsel %vm800_vm0, %v9474_v47, %v10889_v0  ;;  %v9491_v16 = vsel %vm800_vm0, %v9475_v59, %v10890_v22  ;;  %v17811_v49 = vpack.i.bf16 %v17809_v32, %v17810_v20  ;;  %v17814_v13 = vpack.i.bf16 %v17812_v6, %v17813_v14  ;;  %v17815_v22 = vld [vmem:[#allocation149_spill] sm:$0xff]  ;;  %v17817_v14 = vld [vmem:[#allocation160_spill] sm:$0xff] }
0x17d9   : > { %v9507_v63 = vsel %vm9502_vm8, %v9490_v9, %v10894_v61  ;;  %v9508_v15 = vsel %vm9502_vm8, %v9491_v16, %v10895_v21  ;;  %v10905_v61 = vunpack.i.h.bf16 %v17815_v22  ;;  %v10904_v21 = vunpack.i.l.bf16 %v17815_v22 }
0x17da   : > { %v10910_v9 = vunpack.i.h.bf16 %v10908_v42  ;;  %v10909_v16 = vunpack.i.l.bf16 %v10908_v42  ;;  %v17818_v42 = vld [vmem:[#allocation109_spill] sm:$0xff] }
0x17db   : > { %11092 = vrot.lane.b32.xlu2 %v17811_v49, %s11549_s20  ;;  %11097 = vrot.lane.b32.xlu1 %v17814_v13, %s11557_s0  ;;  %v17816_v49 = vld [vmem:[#allocation148_spill] sm:$0xff] }
0x17dc   : > { %v10898_v48 = vpop.permute.xlu1 %10897  ;;  %v10933_v40 = vpop.permute.xlu2 %10932 }
0x17dd   : > { %v10900_v46 = vunpack.i.h.bf16 %v10898_v48  ;;  %v10899_v0 = vunpack.i.l.bf16 %v10898_v48  ;;  %v10935_v47 = vunpack.i.h.bf16 %v10933_v40  ;;  %v10934_v59 = vunpack.i.l.bf16 %v10933_v40 }
0x17df   : > { %v9524_v32 = vsel %vm9519_vm2, %v9507_v63, %v10899_v0  ;;  %v9525_v20 = vsel %vm9519_vm2, %v9508_v15, %v10900_v46  ;;  %v9476_v6 = vsel %vm823_vm1, %v17816_v49, %v10934_v59  ;;  %v9477_v13 = vsel %vm823_vm1, %v17817_v14, %v10935_v47  ;;  %v17821_v15 = vld [vmem:[#allocation175_spill] sm:$0xff]  ;;  %v17822_v46 = vld [vmem:[#allocation169_spill] sm:$0xff]  ;;  %v17827_v14 = vld [vmem:[#allocation176_spill] sm:$0xff] }
0x17e0   : > { %v9541_v48 = vsel %vm9536_vm3, %v9524_v32, %v10904_v21  ;;  %v9542_v40 = vsel %vm9536_vm3, %v9525_v20, %v10905_v61  ;;  %v17820_v63 = vpack.i.bf16 %v17818_v42, %v17819_v8  ;;  %v17823_v0 = vpack.i.bf16 %v17821_v15, %v17822_v46  ;;  %v17824_v8 = vld [vmem:[#allocation174_spill] sm:$0xff]  ;;  %v17825_v32 = vld [vmem:[#allocation107_spill] sm:$0xff] }
0x17e1   : > { %v9558_v38 = vsel %vm9553_vm4, %v9541_v48, %v10909_v16  ;;  %v9559_v22 = vsel %vm9553_vm4, %v9542_v40, %v10910_v9  ;;  %v17826_v20 = vpack.i.bf16 %v17824_v8, %v17825_v32  ;;  %v17828_v48 = vld [vmem:[#allocation16_spill] sm:$0xff] }
0x17e2   : > { %v17829_v40 = vpack.i.bf16 %v17827_v14, %v17828_v48 }
0x17e3   : > { %11112 = vrot.lane.b32.xlu1 %v17820_v63, %s11555_s26  ;;  %11107 = vrot.lane.b32.xlu2 %v17823_v0, %s11551_s23  ;;  %v16529_v0 = vpop.permute.xlu0 %11117 }
0x17e4   : > { %v10913_v59 = vpop.permute.xlu1 %10912  ;;  %v10948_v47 = vpop.permute.xlu2 %10947 }
0x17e5   : > { %v10915_v49 = vunpack.i.h.bf16 %v10913_v59  ;;  %v10914_v21 = vunpack.i.l.bf16 %v10913_v59  ;;  %v17830_v59 = vpack.i.bf16 %v15698_v12, %v15437_v52  ;;  %v10950_v48 = vunpack.i.h.bf16 %v10948_v47 }
0x17e7   : > { %v16508_v61 = vsel %vm9570_vm5, %v9558_v38, %v10914_v21  ;;  %v16511_v16 = vsel %vm9570_vm5, %v9559_v22, %v10915_v49  ;;  %v17831_v49 = vpack.i.bf16 %v15675_v30, %v15440_v54 }
0x17e8   : > { %v9704_v9 = vpack.c.bf16 %v16511_v16, %v16508_v61 }
0x17eb   : > { %11122 = vrot.lane.b32.xlu1 %v17826_v20, %s11558_s17  ;;  %11127 = vrot.lane.b32.xlu2 %v17829_v40, %s11549_s20  ;;  %v17832_v20 = vld [vmem:[#allocation95_spill] sm:$0xff]  ;;  %v10949_v40 = vunpack.i.l.bf16 %v10948_v47  ;;  %v17834_v47 = vpack.i.bf16 %v15678_v57, %v15444_v27 }
0x17ec   : > { %v10928_v42 = vpop.permute.xlu1 %10927  ;;  %v10963_v63 = vpop.permute.xlu2 %10962  ;;  %v10945_v14 = vunpack.i.h.bf16 %v17832_v20 }
0x17ed   : > { %v10930_v38 = vunpack.i.h.bf16 %v10928_v42  ;;  %v10929_v15 = vunpack.i.l.bf16 %v10928_v42 }
0x17ef   : > { %v16524_v22 = vsel %vm9502_vm8, %v9607_v24, %v10929_v15  ;;  %v16527_v46 = vsel %vm9502_vm8, %v9608_v37, %v10930_v38  ;;  %v10944_v37 = vunpack.i.l.bf16 %v17832_v20  ;;  %v17833_v15 = vpack.i.bf16 %v15663_v23, %v15429_v7 }
0x17f3   : > { %11142 = vrot.lane.b32.xlu1 %v17830_v59, %s11551_s23  ;;  %11137 = vrot.lane.b32.xlu2 %v17831_v49, %s11556_s28 }
0x17f4   : > { %v10938_v21 = vpop.permute.xlu1 %10937  ;;  %v10978_v8 = vpop.permute.xlu2 %10977 }
0x17f5   : > { %v10940_v32 = vunpack.i.h.bf16 %v10938_v21  ;;  %v10939_v24 = vunpack.i.l.bf16 %v10938_v21 }
0x17f7   : > { %v9492_v42 = vsel %vm800_vm0, %v9476_v6, %v10939_v24  ;;  %v9493_v52 = vsel %vm800_vm0, %v9477_v13, %v10940_v32  ;;  %v16555_v6 = vpop.permute.xlu0 %11132  ;;  %v17835_v32 = vld [vmem:[#allocation154_spill] sm:$0xff] }
0x17f8   : > { %v9509_v12 = vsel %vm9502_vm8, %v9492_v42, %v10944_v37  ;;  %v9510_v38 = vsel %vm9502_vm8, %v9493_v52, %v10945_v14  ;;  %v10960_v24 = vunpack.i.h.bf16 %v17835_v32  ;;  %v10959_v20 = vunpack.i.l.bf16 %v17835_v32 }
0x17f9   : > { %v9526_v54 = vsel %vm9519_vm2, %v9509_v12, %v10949_v40  ;;  %v9527_v30 = vsel %vm9519_vm2, %v9510_v38, %v10950_v48  ;;  %v10965_v14 = vunpack.i.h.bf16 %v10963_v63  ;;  %v10964_v37 = vunpack.i.l.bf16 %v10963_v63 }
0x17fa   : > { %v17836_v42 = vpack.i.bf16 %v15767_v31, %v15492_v3  ;;  %v17837_v63 = vpack.i.bf16 %v15681_v58, %v15420_v5  ;;  %v10980_v3 = vunpack.i.h.bf16 %v10978_v8  ;;  %v10979_v31 = vunpack.i.l.bf16 %v10978_v8  ;;  %v17840_v5 = vld [vmem:[#allocation167_spill] sm:$0xff] }
0x17fb   : > { %11157 = vrot.lane.b32.xlu1 %v17833_v15, %s11558_s17  ;;  %11152 = vrot.lane.b32.xlu2 %v17834_v47, %s11550_s22  ;;  %v17838_v47 = vld [vmem:[#allocation172_spill] sm:$0xff] }
0x17fc   : > { %v10953_v13 = vpop.permute.xlu1 %10952  ;;  %v10983_v59 = vpop.permute.xlu2 %10982 }
0x17fd   : > { %v10955_v49 = vunpack.i.h.bf16 %v10953_v13  ;;  %v10954_v21 = vunpack.i.l.bf16 %v10953_v13  ;;  %v10975_v13 = vunpack.i.h.bf16 %v17838_v47 }
0x17ff   : > { %v9543_v7 = vsel %vm9536_vm3, %v9526_v54, %v10954_v21  ;;  %v9544_v23 = vsel %vm9536_vm3, %v9527_v30, %v10955_v49  ;;  %v16579_v12 = vpop.permute.xlu0 %11147  ;;  %v10974_v49 = vunpack.i.l.bf16 %v17838_v47  ;;  %v17839_v21 = vld [vmem:[#allocation136_spill] sm:$0xff] }
0x1800   : > { %v9560_v48 = vsel %vm9553_vm4, %v9543_v7, %v10959_v20  ;;  %v9561_v27 = vsel %vm9553_vm4, %v9544_v23, %v10960_v24  ;;  %v10984_v24 = vunpack.i.l.bf16 %v10983_v59  ;;  %v10985_v23 = vunpack.i.h.bf16 %v10983_v59 }
0x1801   : > { %v16564_v57 = vsel %vm9570_vm5, %v9560_v48, %v10964_v37  ;;  %v16567_v40 = vsel %vm9570_vm5, %v9561_v27, %v10965_v14  ;;  %v17841_v37 = vld [vmem:[#allocation153_spill] sm:$0xff] }
0x1802   : > { %v9706_v52 = vpack.c.bf16 %v16567_v40, %v16564_v57  ;;  %v10989_v7 = vunpack.i.l.bf16 %v17841_v37  ;;  %v10990_v8 = vunpack.i.h.bf16 %v17841_v37 }
0x1803   : > { %11172 = vrot.lane.b32.xlu1 %v17836_v42, %s11556_s28  ;;  %11167 = vrot.lane.b32.xlu2 %v17837_v63, %s11557_s0  ;;  %v17842_v42 = vpack.i.bf16 %v15770_v62, %v15496_v4  ;;  %v17843_v63 = vld [vmem:[#allocation170_spill] sm:$0xff] }
0x1805   : > { %v10998_v38 = vpop.permute.xlu2 %10997  ;;  %v10968_v54 = vpop.permute.xlu1 %10967 }
0x1806   : > { %v10970_v30 = vunpack.i.h.bf16 %v10968_v54  ;;  %v10969_v15 = vunpack.i.l.bf16 %v10968_v54  ;;  %v17844_v54 = vld [vmem:[#allocation188_spill] sm:$0xff] }
0x1808   : > { %v9593_v32 = vsel %vm823_vm1, %v17839_v21, %v10969_v15  ;;  %v9594_v58 = vsel %vm823_vm1, %v17840_v5, %v10970_v30  ;;  %v17845_v30 = vpack.i.bf16 %v17843_v63, %v17844_v54  ;;  %v11000_v5 = vunpack.i.h.bf16 %v10998_v38 }
0x1809   : > { %v9609_v20 = vsel %vm800_vm0, %v9593_v32, %v10974_v49  ;;  %v9610_v14 = vsel %vm800_vm0, %v9594_v58, %v10975_v13  ;;  %v10999_v58 = vunpack.i.l.bf16 %v10998_v38  ;;  %v17848_v38 = vld [vmem:[#allocation189_spill] sm:$0xff]  ;;  %v17851_v54 = vpack.i.bf16 %v16177_v33, %v15989_v53 }
0x180a   : > { %v9625_v48 = vsel %vm9502_vm8, %v9609_v20, %v10979_v31  ;;  %v9626_v27 = vsel %vm9502_vm8, %v9610_v14, %v10980_v3  ;;  %v16605_v31 = vpop.permute.xlu0 %11162  ;;  %v17846_v14 = vld [vmem:[#allocation67_spill] sm:$0xff] }
0x180b   : > { %11187 = vrot.lane.b32.xlu1 %v17842_v42, %s11550_s22  ;;  %11182 = vrot.lane.b32.xlu2 %v17845_v30, %s11555_s26  ;;  %v9641_v15 = vsel %vm9519_vm2, %v9625_v48, %v10984_v24  ;;  %v9642_v59 = vsel %vm9519_vm2, %v9626_v27, %v10985_v23  ;;  %v17849_v42 = vld [vmem:[#allocation161_spill] sm:$0xff] }
0x180c   : > { %v9657_v47 = vsel %vm9536_vm3, %v9641_v15, %v10989_v7  ;;  %v9658_v49 = vsel %vm9536_vm3, %v9642_v59, %v10990_v8  ;;  %v17847_v7 = vld [vmem:[#allocation17_spill] sm:$0xff]  ;;  %v17850_v63 = vpack.i.bf16 %v17848_v38, %v17849_v42 }
0x180d   : > { %v10993_v13 = vpop.permute.xlu1 %10992  ;;  %v11008_v3 = vpop.permute.xlu2 %11007 }
0x180e   : > { %v10995_v21 = vunpack.i.h.bf16 %v10993_v13  ;;  %v10994_v4 = vunpack.i.l.bf16 %v10993_v13  ;;  %v11010_v62 = vunpack.i.h.bf16 %v11008_v3  ;;  %v11009_v32 = vunpack.i.l.bf16 %v11008_v3  ;;  %v17852_v13 = vld [vmem:[#allocation36_spill] sm:$0xff] }
0x180f   : > { %v11019_v3 = vunpack.i.l.bf16 %v17852_v13 }
0x1810   : > { %v9673_v20 = vsel %vm9553_vm4, %v9657_v47, %v10994_v4  ;;  %v9674_v24 = vsel %vm9553_vm4, %v9658_v49, %v10995_v21  ;;  %v9494_v37 = vsel %vm800_vm0, %v17846_v14, %v11009_v32  ;;  %v9495_v23 = vsel %vm800_vm0, %v17847_v7, %v11010_v62  ;;  %v17854_v14 = vld [vmem:[#allocation18_spill] sm:$0xff] }
0x1811   : > { %v16614_v48 = vsel %vm9570_vm5, %v9673_v20, %v10999_v58  ;;  %v16617_v27 = vsel %vm9570_vm5, %v9674_v24, %v11000_v5  ;;  %v11020_v49 = vunpack.i.h.bf16 %v17852_v13  ;;  %v17853_v24 = vld [vmem:[#allocation187_spill] sm:$0xff] }
0x1812   : > { %v9707_v8 = vpack.c.bf16 %v16617_v27, %v16614_v48  ;;  %v16631_v21 = vpop.permute.xlu0 %11177  ;;  %v17855_v7 = vpack.i.bf16 %v17853_v24, %v17854_v14  ;;  %v17907_v27 = vld [vmem:[#allocation44_spill] sm:$0xff] }
0x1813   : > { %11192 = vrot.lane.b32.xlu2 %v17850_v63, %s11558_s17  ;;  %11222 = vrot.lane.b32.xlu1 %v17851_v54, %s11555_s26 }
0x1815   : > { %v11013_v30 = vpop.permute.xlu1 %11012  ;;  %v11023_v15 = vpop.permute.xlu2 %11022 }
0x1816   : > { %v11015_v59 = vunpack.i.h.bf16 %v11013_v30  ;;  %v11014_v47 = vunpack.i.l.bf16 %v11013_v30  ;;  %v11025_v32 = vunpack.i.h.bf16 %v11023_v15  ;;  %v11024_v5 = vunpack.i.l.bf16 %v11023_v15  ;;  %v17857_v15 = vld [vmem:[#allocation183_spill] sm:$0xff] }
0x1818   : > { %v9511_v4 = vsel %vm9502_vm8, %v9494_v37, %v11014_v47  ;;  %v9512_v62 = vsel %vm9502_vm8, %v9495_v23, %v11015_v59  ;;  %v17856_v37 = vpack.i.bf16 %v16200_v2, %v15992_v10  ;;  %v11035_v59 = vunpack.i.h.bf16 %v17857_v15 }
0x1819   : > { %v9528_v58 = vsel %vm9519_vm2, %v9511_v4, %v11019_v3  ;;  %v9529_v53 = vsel %vm9519_vm2, %v9512_v62, %v11020_v49  ;;  %v11034_v47 = vunpack.i.l.bf16 %v17857_v15  ;;  %v17858_v3 = vld [vmem:[#allocation13_spill] sm:$0xff] }
0x181a   : > { %v9545_v33 = vsel %vm9536_vm3, %v9528_v58, %v11024_v5  ;;  %v9546_v20 = vsel %vm9536_vm3, %v9529_v53, %v11025_v32  ;;  %v17859_v62 = vld [vmem:[#allocation89_spill] sm:$0xff]  ;;  %v16661_v5 = vpop.permute.xlu0 %11197  ;;  %v17860_v53 = vpack.i.bf16 %v16299_v25, %v15928_v19  ;;  %v17862_v19 = vpack.i.bf16 %v17748_v50, %v16293_v35  ;;  %v17866_v50 = vld [vmem:[#allocation184_spill] sm:$0xff] }
0x181b   : > { %11202 = vrot.lane.b32.xlu2 %v17855_v7, %s11557_s0  ;;  %11237 = vrot.lane.b32.xlu1 %v17856_v37, %s11549_s20 }
0x181d   : > { %v11028_v23 = vpop.permute.xlu1 %11027  ;;  %v11038_v38 = vpop.permute.xlu2 %11037 }
0x181e   : > { %v11030_v42 = vunpack.i.h.bf16 %v11028_v23  ;;  %v11029_v63 = vunpack.i.l.bf16 %v11028_v23  ;;  %v11040_v54 = vunpack.i.h.bf16 %v11038_v38  ;;  %v11039_v30 = vunpack.i.l.bf16 %v11038_v38 }
0x1820   : > { %v9562_v13 = vsel %vm9553_vm4, %v9545_v33, %v11029_v63  ;;  %v9563_v49 = vsel %vm9553_vm4, %v9546_v20, %v11030_v42  ;;  %v9595_v4 = vsel %vm823_vm1, %v17858_v3, %v11039_v30  ;;  %v9596_v10 = vsel %vm823_vm1, %v17859_v62, %v11040_v54 }
0x1821   : > { %v16656_v2 = vsel %vm9570_vm5, %v9562_v13, %v11034_v47  ;;  %v16659_v32 = vsel %vm9570_vm5, %v9563_v49, %v11035_v59  ;;  %v17861_v33 = vpack.i.bf16 %v16203_v34, %v16013_v45  ;;  %v17863_v45 = vpack.i.bf16 %v16195_v29, %v15995_v44 }
0x1822   : > { %v9708_v58 = vpack.c.bf16 %v16659_v32, %v16656_v2  ;;  %v16679_v38 = vpop.permute.xlu0 %11207  ;;  %v17864_v44 = vpack.i.bf16 %v16314_v55, %v15931_v18  ;;  %v17865_v29 = vpack.i.bf16 %v16328_v41, %v15934_v43  ;;  %v11059_v59 = vunpack.i.l.bf16 %v17866_v50  ;;  %v17867_v18 = vld [vmem:[#allocation120_spill] sm:$0xff]  ;;  %v17868_v55 = vld [vmem:[#allocation93_spill] sm:$0xff] }
0x1823   : > { %11252 = vrot.lane.b32.xlu1 %v17860_v53, %s11551_s23  ;;  %11217 = vrot.lane.b32.xlu2 %v17861_v33, %s11551_s23  ;;  %v11209_v34 = vunpack.i.l.bf16 %v16679_v38  ;;  %v17869_v62 = vpack.i.bf16 %v17867_v18, %v17868_v55  ;;  %v17870_v43 = vpack.i.bf16 %v16324_v51, %v15938_v56  ;;  %v17874_v56 = vld [vmem:[#allocation171_spill] sm:$0xff]  ;;  %v17877_v18 = vld [vmem:[#allocation61_spill] sm:$0xff] }
0x1825   : > { %v11043_v20 = vpop.permute.xlu1 %11042  ;;  %v16673_v24 = vpop.permute.xlu2 %11052 }
0x1826   : > { %v11045_v14 = vunpack.i.h.bf16 %v11043_v20  ;;  %v11044_v7 = vunpack.i.l.bf16 %v11043_v20  ;;  %v11054_v54 = vunpack.i.l.bf16 %v16673_v24 }
0x1828   : > { %v9611_v37 = vsel %vm800_vm0, %v9595_v4, %v11044_v7  ;;  %v16677_v23 = vsel %vm800_vm0, %v9596_v10, %v11045_v14  ;;  %v17871_v7 = vld [vmem:[#allocation185_spill] sm:$0xff] }
0x1829   : > { %v9627_v30 = vsel %vm9502_vm8, %v9611_v37, %v11209_v34  ;;  %v11075_v37 = vunpack.i.h.bf16 %v17871_v7 }
0x182b   : > { %11257 = vrot.lane.b32.xlu1 %v17862_v19, %s11555_s26  ;;  %11232 = vrot.lane.b32.xlu2 %v17863_v45, %s11558_s17  ;;  %v11074_v19 = vunpack.i.l.bf16 %v17871_v7 }
0x182d   : > { %v16690_v25 = vpop.permute.xlu1 %11047  ;;  %v11078_v42 = vpop.permute.xlu2 %11077 }
0x182e   : > { %v11049_v63 = vunpack.i.l.bf16 %v16690_v25  ;;  %v11080_v45 = vunpack.i.h.bf16 %v11078_v42  ;;  %v11079_v34 = vunpack.i.l.bf16 %v11078_v42 }
0x1830   : > { %v9643_v15 = vsel %vm9519_vm2, %v9627_v30, %v11049_v63  ;;  %v17872_v63 = vld [vmem:[#allocation123_spill] sm:$0xff]  ;;  %v17873_v30 = vld [vmem:[#allocation182_spill] sm:$0xff] }
0x1831   : > { %v9659_v35 = vsel %vm9536_vm3, %v9643_v15, %v11054_v54 }
0x1832   : > { %v9675_v3 = vsel %vm9553_vm4, %v9659_v35, %v11059_v59  ;;  %v17875_v35 = vld [vmem:[#allocation19_spill] sm:$0xff] }
0x1833   : > { %11272 = vrot.lane.b32.xlu1 %v17864_v44, %s11549_s20  ;;  %11247 = vrot.lane.b32.xlu2 %v17865_v29, %s11556_s28 }
0x1835   : > { %v16706_v47 = vpop.permute.xlu1 %11062  ;;  %v11093_v13 = vpop.permute.xlu2 %11092 }
0x1836   : > { %v11064_v49 = vunpack.i.l.bf16 %v16706_v47 }
0x1838   : > { %v16711_v4 = vsel %vm9570_vm5, %v9675_v3, %v11064_v49  ;;  %v17876_v3 = vld [vmem:[#allocation77_spill] sm:$0xff] }
0x1839   : > { %v17878_v55 = vpack.i.bf16 %v17876_v3, %v17877_v18  ;;  %v17886_v3 = vld [vmem:[#allocation78_spill] sm:$0xff] }
0x183b   : > { %11287 = vrot.lane.b32.xlu1 %v17869_v62, %s11558_s17  ;;  %11262 = vrot.lane.b32.xlu2 %v17870_v43, %s11550_s22  ;;  %v17879_v62 = vld [vmem:[#allocation125_spill] sm:$0xff]  ;;  %v17880_v43 = vld [vmem:[#allocation94_spill] sm:$0xff] }
0x183d   : > { %v11068_v41 = vpop.permute.xlu1 %11067  ;;  %v11108_v10 = vpop.permute.xlu2 %11107 }
0x183e   : > { %v11070_v53 = vunpack.i.h.bf16 %v11068_v41  ;;  %v11069_v33 = vunpack.i.l.bf16 %v11068_v41  ;;  %v11110_v20 = vunpack.i.h.bf16 %v11108_v10  ;;  %v11109_v14 = vunpack.i.l.bf16 %v11108_v10 }
0x183f   : > { %v17881_v41 = vpack.i.bf16 %v17879_v62, %v17880_v43 }
0x1840   : > { %v9480_v54 = vsel %vm823_vm1, %v17872_v63, %v11069_v33  ;;  %v9481_v15 = vsel %vm823_vm1, %v17873_v30, %v11070_v53  ;;  %v16729_v51 = vsel %vm800_vm0, %v17874_v56, %v11109_v14  ;;  %v9614_v44 = vsel %vm800_vm0, %v17875_v35, %v11110_v20  ;;  %v17882_v14 = vld [vmem:[#allocation35_spill] sm:$0xff]  ;;  %v17883_v35 = vld [vmem:[#allocation73_spill] sm:$0xff] }
0x1841   : > { %v9496_v29 = vsel %vm800_vm0, %v9480_v54, %v11074_v19  ;;  %v9497_v59 = vsel %vm800_vm0, %v9481_v15, %v11075_v37  ;;  %v11090_v7 = vunpack.i.h.bf16 %v17882_v14  ;;  %v11089_v37 = vunpack.i.l.bf16 %v17882_v14 }
0x1842   : > { %v9513_v49 = vsel %vm9502_vm8, %v9496_v29, %v11079_v34  ;;  %v9514_v42 = vsel %vm9502_vm8, %v9497_v59, %v11080_v45  ;;  %v11095_v19 = vunpack.i.h.bf16 %v11093_v13  ;;  %v11094_v45 = vunpack.i.l.bf16 %v11093_v13  ;;  %v17884_v29 = vld [vmem:[#allocation55_spill] sm:$0xff]  ;;  %v17887_v13 = vld [vmem:[#allocation58_spill] sm:$0xff] }
0x1843   : > { %11302 = vrot.lane.b32.xlu1 %v17878_v55, %s11550_s22  ;;  %11292 = vrot.lane.b32.xlu2 %v17881_v41, %s11549_s20  ;;  %v17885_v59 = vpack.i.bf16 %v17883_v35, %v17884_v29  ;;  %v17888_v18 = vpack.i.bf16 %v17886_v3, %v17887_v13 }
0x1845   : > { %v11083_v10 = vpop.permute.xlu1 %11082  ;;  %v16745_v53 = vpop.permute.xlu2 %11127 }
0x1846   : > { %v11085_v33 = vunpack.i.h.bf16 %v11083_v10  ;;  %v11084_v20 = vunpack.i.l.bf16 %v11083_v10 }
0x1848   : > { %v9530_v34 = vsel %vm9519_vm2, %v9513_v49, %v11084_v20  ;;  %v9531_v63 = vsel %vm9519_vm2, %v9514_v42, %v11085_v33  ;;  %v17889_v33 = vld [vmem:[#allocation51_spill] sm:$0xff]  ;;  %v17890_v20 = vld [vmem:[#allocation26_spill] sm:$0xff] }
0x1849   : > { %v9547_v54 = vsel %vm9536_vm3, %v9530_v34, %v11089_v37  ;;  %v9548_v30 = vsel %vm9536_vm3, %v9531_v63, %v11090_v7  ;;  %v17891_v14 = vpack.i.bf16 %v17889_v33, %v17890_v20  ;;  %v17892_v7 = vld [vmem:[#allocation53_spill] sm:$0xff]  ;;  %v17893_v37 = vld [vmem:[#allocation28_spill] sm:$0xff] }
0x184a   : > { %v9564_v15 = vsel %vm9553_vm4, %v9547_v54, %v11094_v45  ;;  %v9565_v56 = vsel %vm9553_vm4, %v9548_v30, %v11095_v19  ;;  %v17894_v19 = vpack.i.bf16 %v17892_v7, %v17893_v37  ;;  %v11120_v30 = vunpack.i.h.bf16 %v16529_v0 }
0x184b   : > { %11317 = vrot.lane.b32.xlu1 %v17885_v59, %s11557_s0  ;;  %11307 = vrot.lane.b32.xlu2 %v17888_v18, %s11558_s17  ;;  %v11060_v59 = vunpack.i.h.bf16 %v17866_v50  ;;  %v11065_v18 = vunpack.i.h.bf16 %v16706_v47  ;;  %v11130_v47 = vunpack.i.h.bf16 %v16745_v53 }
0x184d   : > { %v11098_v49 = vpop.permute.xlu1 %11097  ;;  %v11138_v42 = vpop.permute.xlu2 %11137 }
0x184e   : > { %v11100_v55 = vunpack.i.h.bf16 %v11098_v49  ;;  %v11099_v62 = vunpack.i.l.bf16 %v11098_v49  ;;  %v11140_v37 = vunpack.i.h.bf16 %v11138_v42 }
0x1850   : > { %v16764_v43 = vsel %vm9570_vm5, %v9564_v15, %v11099_v62  ;;  %v16767_v41 = vsel %vm9570_vm5, %v9565_v56, %v11100_v55  ;;  %v11050_v15 = vunpack.i.h.bf16 %v16690_v25  ;;  %v11055_v56 = vunpack.i.h.bf16 %v16673_v24  ;;  %v17895_v55 = vld [vmem:[#allocation37_spill] sm:$0xff]  ;;  %v17896_v25 = vld [vmem:[#allocation23_spill] sm:$0xff] }
0x1851   : > { %v9710_v10 = vpack.c.bf16 %v16767_v41, %v16764_v43  ;;  %v17897_v62 = vpack.i.bf16 %v17895_v55, %v17896_v25 }
0x1853   : > { %11332 = vrot.lane.b32.xlu1 %v17891_v14, %s11549_s20  ;;  %11322 = vrot.lane.b32.xlu2 %v17894_v19, %s11550_s22  ;;  %v11139_v19 = vunpack.i.l.bf16 %v11138_v42 }
0x1855   : > { %v11113_v45 = vpop.permute.xlu1 %11112  ;;  %v11153_v34 = vpop.permute.xlu2 %11152 }
0x1856   : > { %v11115_v63 = vunpack.i.h.bf16 %v11113_v45  ;;  %v11114_v54 = vunpack.i.l.bf16 %v11113_v45 }
0x1858   : > { %v9628_v35 = vsel %vm9502_vm8, %v16677_v23, %v11115_v63  ;;  %v9630_v29 = vsel %vm9502_vm8, %v9614_v44, %v11114_v54 }
0x1859   : > { %v9644_v3 = vsel %vm9519_vm2, %v9628_v35, %v11050_v15  ;;  %v9646_v13 = vsel %vm9519_vm2, %v9630_v29, %v11120_v30  ;;  %v11135_v35 = vunpack.i.h.bf16 %v16555_v6  ;;  %v17898_v29 = vld [vmem:[#allocation168_spill] sm:$0xff] }
0x185a   : > { %v9660_v49 = vsel %vm9536_vm3, %v9644_v3, %v11055_v56  ;;  %v11119_v56 = vunpack.i.l.bf16 %v16529_v0  ;;  %v17899_v3 = vld [vmem:[#allocation186_spill] sm:$0xff] }
0x185b   : > { %11337 = vrot.lane.b32.xlu2 %v17897_v62, %s11557_s0  ;;  %v9676_v24 = vsel %vm9553_vm4, %v9660_v49, %v11060_v59  ;;  %v9482_v59 = vsel %vm823_vm1, %v17898_v29, %v11139_v19  ;;  %v11129_v49 = vunpack.i.l.bf16 %v16745_v53  ;;  %v11134_v62 = vunpack.i.l.bf16 %v16555_v6 }
0x185c   : > { %v16796_v23 = vsel %vm9570_vm5, %v9676_v24, %v11065_v18  ;;  %v11150_v24 = vunpack.i.h.bf16 %v16579_v12  ;;  %v11155_v19 = vunpack.i.h.bf16 %v11153_v34  ;;  %v11154_v6 = vunpack.i.l.bf16 %v11153_v34 }
0x185d   : > { %v11123_v44 = vpop.permute.xlu1 %11122  ;;  %v11168_v50 = vpop.permute.xlu2 %11167  ;;  %v9709_v33 = vpack.c.bf16 %v16796_v23, %v16711_v4  ;;  %v11164_v29 = vunpack.i.l.bf16 %v16605_v31 }
0x185e   : > { %v11125_v20 = vunpack.i.h.bf16 %v11123_v44  ;;  %v11124_v18 = vunpack.i.l.bf16 %v11123_v44 }
0x1860   : > { %v9662_v14 = vsel %vm9536_vm3, %v9646_v13, %v11125_v20  ;;  %v9483_v13 = vsel %vm823_vm1, %v17899_v3, %v11140_v37  ;;  %v11149_v20 = vunpack.i.l.bf16 %v16579_v12 }
0x1861   : > { %v9678_v7 = vsel %vm9553_vm4, %v9662_v14, %v11130_v47 }
0x1862   : > { %v16829_v37 = vsel %vm9570_vm5, %v9678_v7, %v11135_v35  ;;  %v11170_v7 = vunpack.i.h.bf16 %v11168_v50  ;;  %v11169_v35 = vunpack.i.l.bf16 %v11168_v50  ;;  %v11180_v50 = vunpack.i.h.bf16 %v16631_v21 }
0x1865   : > { %v11143_v45 = vpop.permute.xlu1 %11142  ;;  %v16803_v63 = vpop.permute.xlu2 %11182 }
0x1866   : > { %v11145_v54 = vunpack.i.h.bf16 %v11143_v45  ;;  %v11144_v30 = vunpack.i.l.bf16 %v11143_v45  ;;  %v11185_v15 = vunpack.i.h.bf16 %v16803_v63 }
0x1868   : > { %v9629_v42 = vsel %vm9502_vm8, %v16729_v51, %v11185_v15  ;;  %v9498_v55 = vsel %vm800_vm0, %v9482_v59, %v11144_v30  ;;  %v9499_v25 = vsel %vm800_vm0, %v9483_v13, %v11145_v54 }
0x1869   : > { %v9645_v0 = vsel %vm9519_vm2, %v9629_v42, %v11119_v56  ;;  %v9515_v51 = vsel %vm9502_vm8, %v9498_v55, %v11149_v20  ;;  %v9516_v53 = vsel %vm9502_vm8, %v9499_v25, %v11150_v24  ;;  %v11165_v56 = vunpack.i.h.bf16 %v16605_v31 }
0x186a   : > { %v9661_v47 = vsel %vm9536_vm3, %v9645_v0, %v11124_v18  ;;  %v9532_v59 = vsel %vm9519_vm2, %v9515_v51, %v11154_v6  ;;  %v9533_v3 = vsel %vm9519_vm2, %v9516_v53, %v11155_v19  ;;  %v11213_v18 = vpop.permute.xlu0 %11212  ;;  %v17901_v53 = vld [vmem:[#allocation40_spill] sm:$0xff] }
0x186b   : > { %v9677_v44 = vsel %vm9553_vm4, %v9661_v47, %v11129_v49  ;;  %v11179_v47 = vunpack.i.l.bf16 %v16631_v21 }
0x186c   : > { %v16826_v14 = vsel %vm9570_vm5, %v9677_v44, %v11134_v62  ;;  %v17900_v44 = vld [vmem:[#allocation190_spill] sm:$0xff] }
0x186d   : > { %v11158_v45 = vpop.permute.xlu1 %11157  ;;  %v16831_v54 = vpop.permute.xlu2 %11192  ;;  %v9711_v12 = vpack.c.bf16 %v16829_v37, %v16826_v14 }
0x186e   : > { %v11160_v30 = vunpack.i.h.bf16 %v11158_v45  ;;  %v11159_v15 = vunpack.i.l.bf16 %v11158_v45  ;;  %v11194_v41 = vunpack.i.l.bf16 %v16831_v54 }
0x1870   : > { %v9549_v34 = vsel %vm9536_vm3, %v9532_v59, %v11159_v15  ;;  %v9550_v13 = vsel %vm9536_vm3, %v9533_v3, %v11160_v30  ;;  %v11214_v59 = vunpack.i.l.bf16 %v11213_v18 }
0x1871   : > { %v9566_v42 = vsel %vm9553_vm4, %v9549_v34, %v11164_v29  ;;  %v9567_v49 = vsel %vm9553_vm4, %v9550_v13, %v11165_v56  ;;  %v11215_v29 = vunpack.i.h.bf16 %v11213_v18 }
0x1872   : > { %v9583_v55 = vsel %vm9570_vm5, %v9566_v42, %v11169_v35  ;;  %v9584_v25 = vsel %vm9570_vm5, %v9567_v49, %v11170_v7  ;;  %v11228_v30 = vpop.permute.xlu0 %11227  ;;  %v17902_v42 = vld [vmem:[#allocation46_spill] sm:$0xff] }
0x1873   : > { %v9712_v31 = vpack.c.bf16 %v9584_v25, %v9583_v55  ;;  %v9485_v49 = vsel %vm823_vm1, %v17902_v42, %v11215_v29  ;;  %v17903_v55 = vld [vmem:[#allocation80_spill] sm:$0xff] }
0x1874   : > { %v9484_v25 = vsel %vm823_vm1, %v17903_v55, %v11214_v59 }
0x1875   : > { %v11173_v0 = vpop.permute.xlu1 %11172  ;;  %v16845_v62 = vpop.permute.xlu2 %11202 }
0x1876   : > { %v11175_v24 = vunpack.i.h.bf16 %v11173_v0  ;;  %v11174_v20 = vunpack.i.l.bf16 %v11173_v0 }
0x1878   : > { %v9600_v51 = vsel %vm823_vm1, %v17900_v44, %v11175_v24  ;;  %v9599_v19 = vsel %vm823_vm1, %v17901_v53, %v11174_v20  ;;  %v11229_v44 = vunpack.i.l.bf16 %v11228_v30 }
0x1879   : > { %v9616_v6 = vsel %vm800_vm0, %v9600_v51, %v11180_v50  ;;  %v16855_v45 = vsel %vm800_vm0, %v9599_v19, %v11179_v47  ;;  %v11230_v47 = vunpack.i.h.bf16 %v11228_v30 }
0x187a   : > { %v11243_v21 = vpop.permute.xlu0 %11242 }
0x187b   : > { %v11245_v42 = vunpack.i.h.bf16 %v11243_v21 }
0x187d   : > { %v16857_v15 = vpop.permute.xlu1 %11187  ;;  %v11218_v56 = vpop.permute.xlu2 %11217 }
0x187e   : > { %v11220_v3 = vunpack.i.h.bf16 %v11218_v56  ;;  %v11219_v7 = vunpack.i.l.bf16 %v11218_v56 }
0x1880   : > { %v9500_v0 = vsel %vm800_vm0, %v9484_v25, %v11219_v7  ;;  %v9501_v24 = vsel %vm800_vm0, %v9485_v49, %v11220_v3  ;;  %v11244_v7 = vunpack.i.l.bf16 %v11243_v21  ;;  %v11190_v21 = vunpack.i.h.bf16 %v16857_v15 }
0x1882   : > { %v16869_v55 = vpop.permute.xlu0 %11267 }
0x1885   : > { %v11223_v35 = vpop.permute.xlu1 %11222  ;;  %v11233_v20 = vpop.permute.xlu2 %11232 }
0x1886   : > { %v11225_v34 = vunpack.i.h.bf16 %v11223_v35  ;;  %v11224_v13 = vunpack.i.l.bf16 %v11223_v35  ;;  %v11235_v19 = vunpack.i.h.bf16 %v11233_v20  ;;  %v11234_v56 = vunpack.i.l.bf16 %v11233_v20 }
0x1888   : > { %v9517_v50 = vsel %vm9502_vm8, %v9500_v0, %v11224_v13  ;;  %v9518_v18 = vsel %vm9502_vm8, %v9501_v24, %v11225_v34 }
0x1889   : > { %v9534_v51 = vsel %vm9519_vm2, %v9517_v50, %v11229_v44  ;;  %v9535_v53 = vsel %vm9519_vm2, %v9518_v18, %v11230_v47  ;;  %v11184_v50 = vunpack.i.l.bf16 %v16803_v63  ;;  %v17904_v63 = vld [vmem:[#allocation20_spill] sm:$0xff] }
0x188a   : > { %v9551_v3 = vsel %vm9536_vm3, %v9534_v51, %v11234_v56  ;;  %v9552_v13 = vsel %vm9536_vm3, %v9535_v53, %v11235_v19  ;;  %v11278_v18 = vpop.permute.xlu0 %11277  ;;  %v11195_v56 = vunpack.i.h.bf16 %v16831_v54  ;;  %v11204_v54 = vunpack.i.l.bf16 %v16845_v62 }
0x188b   : > { %v9632_v44 = vsel %vm9502_vm8, %v9616_v6, %v11184_v50 }
0x188c   : > { %v9648_v53 = vsel %vm9519_vm2, %v9632_v44, %v11190_v21  ;;  %v11269_v44 = vunpack.i.l.bf16 %v16869_v55 }
0x188d   : > { %v11238_v29 = vpop.permute.xlu1 %11237  ;;  %v11248_v0 = vpop.permute.xlu2 %11247  ;;  %v9664_v6 = vsel %vm9536_vm3, %v9648_v53, %v11195_v56 }
0x188e   : > { %v11240_v35 = vunpack.i.h.bf16 %v11238_v29  ;;  %v11239_v59 = vunpack.i.l.bf16 %v11238_v29  ;;  %v11249_v47 = vunpack.i.l.bf16 %v11248_v0  ;;  %v11250_v19 = vunpack.i.h.bf16 %v11248_v0 }
0x1890   : > { %v9568_v34 = vsel %vm9553_vm4, %v9551_v3, %v11239_v59  ;;  %v9569_v30 = vsel %vm9553_vm4, %v9552_v13, %v11240_v35  ;;  %v11200_v59 = vunpack.i.h.bf16 %v16661_v5  ;;  %v9602_v43 = vsel %vm823_vm1, %v16342_v39, %v11250_v19 }
0x1891   : > { %v9585_v49 = vsel %vm9570_vm5, %v9568_v34, %v11244_v7  ;;  %v9586_v25 = vsel %vm9570_vm5, %v9569_v30, %v11245_v42  ;;  %v11199_v34 = vunpack.i.l.bf16 %v16661_v5  ;;  %v11210_v30 = vunpack.i.h.bf16 %v16679_v38 }
0x1892   : > { %v9714_v24 = vpack.c.bf16 %v9586_v25, %v9585_v49  ;;  %v11189_v49 = vunpack.i.l.bf16 %v16857_v15  ;;  %v9680_v39 = vsel %vm9553_vm4, %v9664_v6, %v11200_v59  ;;  %v11283_v50 = vpop.permute.xlu0 %11282  ;;  %v11279_v59 = vunpack.i.l.bf16 %v11278_v18 }
0x1894   : > { %9722 = vmatpush.bf16.msrb.mxu2 %v9714_v24 }
0x1895   : > { %v11253_v20 = vpop.permute.xlu1 %11252  ;;  %v11263_v35 = vpop.permute.xlu2 %11262 }
0x1896   : > { %v11254_v51 = vunpack.i.l.bf16 %v11253_v20  ;;  %v11255_v29 = vunpack.i.h.bf16 %v11253_v20  ;;  %v11265_v24 = vunpack.i.h.bf16 %v11263_v35  ;;  %v11264_v20 = vunpack.i.l.bf16 %v11263_v35 }
0x1897   : > { %v11280_v35 = vunpack.i.h.bf16 %v11278_v18  ;;  %v17905_v18 = vpack.c.bf16 %v16427_v17, %v16424_v26  ;;  %v17906_v17 = vpack.c.bf16 %v16354_v11, %v16351_v60 }
0x1898   : > { %9723 = vmatpush.bf16.msrb.mxu2 %v9712_v31  ;;  %v9601_v31 = vsel %vm823_vm1, %v17904_v63, %v11249_v47  ;;  %v9618_v25 = vsel %vm800_vm0, %v9602_v43, %v11255_v29 }
0x1899   : > { %v9617_v7 = vsel %vm800_vm0, %v9601_v31, %v11254_v51 }
0x189a   : > { %v9633_v5 = vsel %vm9502_vm8, %v9617_v7, %v11210_v30  ;;  %v11285_v7 = vunpack.i.h.bf16 %v11283_v50 }
0x189b   : > { %v9649_v2 = vsel %vm9519_vm2, %v9633_v5, %v11264_v20 }
0x189c   : > { %9724 = vmatpush.bf16.msrb.mxu2 %v9710_v10  ;;  %v11205_v10 = vunpack.i.h.bf16 %v16845_v62  ;;  %v11270_v62 = vunpack.i.h.bf16 %v16869_v55  ;;  %v9665_v63 = vsel %vm9536_vm3, %v9649_v2, %v11269_v44  ;;  %v9640_v16 = vsel %vm9519_vm2, %v16527_v46, %v11285_v7  ;;  %v9716_v46 = vld [vmem:[%s17006_s14] sm:$0x7f] }
0x189d   : > { %v11258_v42 = vpop.permute.xlu1 %11257  ;;  %v11293_v19 = vpop.permute.xlu2 %11292 }
0x189e   : > { %v11260_v3 = vunpack.i.h.bf16 %v11258_v42  ;;  %v11259_v13 = vunpack.i.l.bf16 %v11258_v42  ;;  %v9696_v47 = vsel %vm9570_vm5, %v9680_v39, %v11205_v10  ;;  %v11284_v42 = vunpack.i.l.bf16 %v11283_v50 }
0x189f   : > { %v11559_v39 = vmov 0  }
0x18a0   : > { %v9631_v0 = vsel %vm9502_vm8, %v16855_v45, %v11260_v3  ;;  %9725 = vmatpush.bf16.msrb.mxu2 %v9708_v58  ;;  %v9634_v38 = vsel %vm9502_vm8, %v9618_v25, %v11259_v13  ;;  %v11298_v3 = vpop.permute.xlu0 %11297  ;;  %11341 = vset.pattern.permute.xlu0 %v11559_v39 }
0x18a1   : > { %v9647_v15 = vsel %vm9519_vm2, %v9631_v0, %v11189_v49  ;;  %v9650_v32 = vsel %vm9519_vm2, %v9634_v38, %v11265_v24  ;;  %v11294_v49 = vunpack.i.l.bf16 %v11293_v19  ;;  %v11300_v43 = vunpack.i.h.bf16 %v11298_v3  ;;  %9719 = vperm.xlu0 %11341, %v9716_v46  }
0x18a2   : > { %v9663_v21 = vsel %vm9536_vm3, %v9647_v15, %v11194_v41  ;;  %v9666_v57 = vsel %vm9536_vm3, %v9650_v32, %v11270_v62  ;;  %v11299_v41 = vunpack.i.l.bf16 %v11298_v3 }
0x18a3   : > { %v9679_v45 = vsel %vm9553_vm4, %v9663_v21, %v11199_v34  ;;  %v9639_v34 = vsel %vm9519_vm2, %v16524_v22, %v11284_v42  ;;  %v9699_v22 = vld [vmem:[%s17005_s13] sm:$0xf] }
0x18a4   : > { %9726 = vmatpush.bf16.msrb.mxu2 %v9706_v52  ;;  %v9695_v58 = vsel %vm9570_vm5, %v9679_v45, %v11204_v54 }
0x18a5   : > { %v11273_v51 = vpop.permute.xlu1 %11272  ;;  %v9713_v53 = vpack.c.bf16 %v9696_v47, %v9695_v58  ;;  %v11308_v10 = vpop.permute.xlu2 %11307 }
0x18a6   : > { %v11275_v56 = vunpack.i.h.bf16 %v11273_v51  ;;  %v11274_v29 = vunpack.i.l.bf16 %v11273_v51  ;;  %v11310_v45 = vunpack.i.h.bf16 %v11308_v10  ;;  %v11309_v2 = vunpack.i.l.bf16 %v11308_v10 }
0x18a8   : > { %v9681_v40 = vsel %vm9553_vm4, %v9665_v63, %v11274_v29  ;;  %v9682_v52 = vsel %vm9553_vm4, %v9666_v57, %v11275_v56  ;;  %9727 = vmatpush.bf16.msrb.mxu2 %v9704_v9  ;;  %v11295_v9 = vunpack.i.h.bf16 %v11293_v19  ;;  %v11313_v20 = vpop.permute.xlu0 %11312 }
0x18a9   : > { %v9697_v55 = vsel %vm9570_vm5, %v9681_v40, %v11279_v59  ;;  %v9698_v31 = vsel %vm9570_vm5, %v9682_v52, %v11280_v35  ;;  %v11314_v58 = vunpack.i.l.bf16 %v11313_v20 }
0x18aa   : > { %v9715_v6 = vpack.c.bf16 %v9698_v31, %v9697_v55 }
0x18ac   : > { %9728 = vmatpush.bf16.msrb.mxu2 %v17905_v18  ;;  %9735 = vmatpush.bf16.msra.mxu3 %v9715_v6 }
0x18ad   : > { %v11288_v13 = vpop.permute.xlu1 %11287  ;;  %v11323_v32 = vpop.permute.xlu2 %11322 }
0x18ae   : > { %v11290_v30 = vunpack.i.h.bf16 %v11288_v13  ;;  %v11289_v61 = vunpack.i.l.bf16 %v11288_v13  ;;  %v11325_v23 = vunpack.i.h.bf16 %v11323_v32 }
0x18b0   : > { %v9655_v25 = vsel %vm9536_vm3, %v9639_v34, %v11289_v61  ;;  %v9656_v26 = vsel %vm9536_vm3, %v9640_v16, %v11290_v30  ;;  %9729 = vmatpush.bf16.msrb.mxu2 %v17906_v17  ;;  %9736 = vmatpush.bf16.msra.mxu3 %v9713_v53  ;;  %v11328_v19 = vpop.permute.xlu0 %11327 }
0x18b1   : > { %v9671_v0 = vsel %vm9553_vm4, %v9655_v25, %v11294_v49  ;;  %v9672_v5 = vsel %vm9553_vm4, %v9656_v26, %v11295_v9  ;;  %v11330_v29 = vunpack.i.h.bf16 %v11328_v19  ;;  %v11329_v35 = vunpack.i.l.bf16 %v11328_v19 }
0x18b2   : > { %v9687_v38 = vsel %vm9570_vm5, %v9671_v0, %v11299_v41  ;;  %v9688_v15 = vsel %vm9570_vm5, %v9672_v5, %v11300_v43  ;;  %v17908_v49 = vlaneseq }
0x18b3   : > { %v9705_v60 = vpack.c.bf16 %v9688_v15, %v9687_v38  ;;  %9730 = vmatmul.bf16.vlgmr.msrb.gmra.mxu2 %v9699_v22 }
0x18b4   : > { %9737 = vmatpush.bf16.msra.mxu3 %v9711_v12  ;;  %v11315_v12 = vunpack.i.h.bf16 %v11313_v20  ;;  %vm9759_vm0 = vcmp.lt.s32.totalorder %v17908_v49, 256 }
0x18b5   : > { %v11303_v11 = vpop.permute.xlu1 %11302  ;;  %v11338_v56 = vpop.permute.xlu2 %11337 }
0x18b6   : > { %v11305_v54 = vunpack.i.h.bf16 %v11303_v11  ;;  %v11304_v24 = vunpack.i.l.bf16 %v11303_v11  ;;  %v11340_v40 = vunpack.i.h.bf16 %v11338_v56  ;;  %v11339_v52 = vunpack.i.l.bf16 %v11338_v56 }
0x18b8   : > { %v9637_v21 = vsel %vm9519_vm2, %v16448_v1, %v11304_v24  ;;  %v9638_v50 = vsel %vm9519_vm2, %v16451_v28, %v11305_v54  ;;  %9738 = vmatpush.bf16.msra.mxu3 %v9709_v33  ;;  %v11324_v33 = vunpack.i.l.bf16 %v11323_v32 }
0x18b9   : > { %v9653_v14 = vsel %vm9536_vm3, %v9637_v21, %v11309_v2  ;;  %v9654_v37 = vsel %vm9536_vm3, %v9638_v50, %v11310_v45 }
0x18ba   : > { %v9669_v62 = vsel %vm9553_vm4, %v9653_v14, %v11314_v58  ;;  %v9670_v4 = vsel %vm9553_vm4, %v9654_v37, %v11315_v12  ;;  %v9635_v48 = vsel %vm9519_vm2, %v16378_v36, %v11324_v33 }
0x18bb   : > { %v9651_v55 = vsel %vm9536_vm3, %v9635_v48, %v11329_v35 }
0x18bc   : > { %9739 = vmatpush.bf16.msra.mxu3 %v9707_v8  ;;  %v9636_v8 = vsel %vm9519_vm2, %v17907_v27, %v11325_v23 }
0x18bd   : > { %v11318_v1 = vpop.permute.xlu1 %11317  ;;  %v9652_v31 = vsel %vm9536_vm3, %v9636_v8, %v11330_v29 }
0x18be   : > { %v11320_v47 = vunpack.i.h.bf16 %v11318_v1  ;;  %v11319_v28 = vunpack.i.l.bf16 %v11318_v1 }
0x18c0   : > { %v9685_v44 = vsel %vm9570_vm5, %v9669_v62, %v11319_v28  ;;  %v9686_v51 = vsel %vm9570_vm5, %v9670_v4, %v11320_v47  ;;  %9740 = vmatpush.bf16.msra.mxu3 %v9705_v60 }
0x18c1   : > { %v9703_v53 = vpack.c.bf16 %v9686_v51, %v9685_v44 }
0x18c4   : > { %9741 = vmatpush.bf16.msra.mxu3 %v9703_v53 }
0x18c5   : > { %v11333_v59 = vpop.permute.xlu1 %11332 }
0x18c6   : > { %v11335_v63 = vunpack.i.h.bf16 %v11333_v59  ;;  %v11334_v57 = vunpack.i.l.bf16 %v11333_v59 }
0x18c8   : > { %v9667_v42 = vsel %vm9553_vm4, %v9651_v55, %v11334_v57  ;;  %v9668_v36 = vsel %vm9553_vm4, %v9652_v31, %v11335_v63 }
0x18c9   : > { %v9683_v6 = vsel %vm9570_vm5, %v9667_v42, %v11339_v52  ;;  %v9684_v7 = vsel %vm9570_vm5, %v9668_v36, %v11340_v40 }
0x18ca   : > { %v9701_v18 = vpack.c.bf16 %v9684_v7, %v9683_v6 }
0x18cc   : > { %9742 = vmatpush.bf16.msra.mxu3 %v9701_v18 }
0x18cf   : > { %9743 = vmatmul.bf16.vlgmr.msra.gmra.mxu3 %v9699_v22 }
0x1913   : > { %v9720_v3 = vpop.permute.xlu0 %9719 }
0x1936   : > { %v9731_v13 = vpop.f32.mrf.mxu2 }
0x1937   : > { %v9732_v34 = vadd.f32 %v9731_v13, %v9720_v3 }
0x1939   : > { %9748 = vst [vmem:[%s578_s30] sm:$0x3f] %v9732_v34 }
0x193a   : > { %9752 = vst [vmem:[#allocation1] sm:$0xff] %v9732_v34 }
0x193e   : > { %v9733_v30 = vpop.f32.mrf.mxu2 }
0x1952   : > { %v9744_v61 = vpop.f32.mrf.mxu3 }
0x1953   : > { %v9745_v16 = vadd.f32 %v9744_v61, %v9720_v3 }
0x1955   : > { %9749 = vst [vmem:[%s578_s30 + $0x8] sm:$0x3f] %v9745_v16 }
0x1956   : > { %9753 = vst [vmem:[#allocation1 + $0x9] sm:$0xff] %v9745_v16 }
0x195a   : > { %v9746_v9 = vpop.f32.mrf.mxu3 }
0x195d   : > { %v9755_v43 = vld [vmem:[#allocation1 + $0x6] ss:$9 sm:$0xff] }
0x195e   : > { %9761 = vst.msk [vmem:[%s582_s21] sm:$0x3] %vm9759_vm0, %v9755_v43 }
0x195f PF: > { %s17909_s24 = sld [smem:[#allocation10_spill]] }
0x1965   : > { %s29_s21 = sadd.s32 1, %s17909_s24  }
0x1966   : > { %p26_p7 = scmp.ge.s32.totalorder %s29_s21, 4  }
0x1968   :  { %28 = sbr.rel (!%p26_p7) target bundleno = 6 (0x6), region = 148 }
0x196d   :  { %9797 = vsyncpa [#allocation4], 1 }
0x196e   :  { %9799 = vsyncpa [#allocation4 + $0x1], 1 }
0x196f   :  { %9800 = vsyncpa [#allocation6], 1 }

</bundles_post_ra>
